<compile_context>
chip_gen: v7x
topology: tpu7x:2x2x1
jax: 0.10.0
libtpu: 0.0.40
codegen_flags: <defaults>
</compile_context>

<pallas_src>
from functools import partial

import jax
import jax.numpy as jnp
from jax.experimental import pallas as pl
from jax.experimental.pallas import tpu as pltpu

# ----- model hyper-parameters (match the PyTorch module defaults) -----
INPUT_DIM   = 8
D_MODEL     = 64
NHEAD       = 4
HEAD_DIM    = D_MODEL // NHEAD
NUM_LAYERS  = 2
OUTPUT_LEN  = 90
OUT_PAD     = 128             # lane-dense padded decoder width
DIM_FF      = 2048            # nn.TransformerEncoderLayer default dim_feedforward
LN_EPS      = 1e-5

# ----- small example shapes -----
BATCH = 2
SEQ   = 8

# ----- packed f32 "vector slab" row layout (width DIM_FF, zero padded) -----
V_B_IN, V_B_DEC = 0, 1
V_LAYER0 = 2
(V_B_QKV, V_B_O, V_LN1_G, V_LN1_B, V_B1, V_B2, V_LN2_G, V_LN2_B) = range(8)
V_PER_LAYER = 8
N_VEC = V_LAYER0 + NUM_LAYERS * V_PER_LAYER


def _layer_norm(x, gamma, beta):
    mu = jnp.mean(x, axis=-1, keepdims=True)
    var = jnp.mean((x - mu) ** 2, axis=-1, keepdims=True)
    return (x - mu) * jax.lax.rsqrt(var + LN_EPS) * gamma + beta


def transformer_kernel(x_ref, pe_ref, vec_ref, w_in_ref, w_qkv_ref, w_o_ref,
                       w1_ref, w2_ref, w_dec_ref, out_ref, *, b_tile):
    """One grid step = b_tile batch elements, flattened to rows = b_tile*SEQ."""
    rows = b_tile * SEQ

    def vec_row(row, width):                       # (1, width) f32 slice of the param slab
        return vec_ref[row:row + 1, 0:width]

    # ---- input projection + positional encoding (flat (rows, 64) slab) ----
    h = jnp.dot(x_ref[...].astype(jnp.bfloat16), w_in_ref[...],
                preferred_element_type=jnp.float32)
    h = h + vec_row(V_B_IN, D_MODEL) + pe_ref[...]                       # (rows, 64) f32

    # ---- transformer encoder layers (post-norm, relu FFN, no mask, eval dropout) ----
    for layer in range(NUM_LAYERS):
        base = V_LAYER0 + layer * V_PER_LAYER

        # fused QKV projection: one lane-dense (rows,64)@(64,192) MXU op.
        # column layout: [q_h0|q_h1|q_h2|q_h3 | k_h0..k_h3 | v_h0..v_h3], 16 wide each;
        # 1/sqrt(head_dim) is already folded into the Q columns / bias.
        qkv = jnp.dot(h.astype(jnp.bfloat16), w_qkv_ref[layer],
                      preferred_element_type=jnp.float32)
        qkv = qkv + vec_row(base + V_B_QKV, 3 * D_MODEL)                 # (rows, 192) f32

        def grouped(block_idx):
            # -> (NHEAD*b_tile, SEQ, HEAD_DIM), group g = head*b_tile + batch
            parts = []
            for hh in range(NHEAD):
                c = block_idx * D_MODEL + hh * HEAD_DIM
                parts.append(qkv[:, c:c + HEAD_DIM].reshape(b_tile, SEQ, HEAD_DIM))
            return jnp.concatenate(parts, axis=0).astype(jnp.bfloat16)

        q, k, v = grouped(0), grouped(1), grouped(2)

        # flash-style batched score / softmax / context over (head, batch) groups
        scores = jnp.einsum('gqe,gke->gqk', q, k,
                            preferred_element_type=jnp.float32)          # (G, S, S) f32
        scores = scores - jnp.max(scores, axis=-1, keepdims=True)
        p = jnp.exp(scores)
        p = p * pl.reciprocal(jnp.sum(p, axis=-1, keepdims=True), approx=True)

        ctx = jnp.einsum('gqk,gke->gqe', p.astype(jnp.bfloat16), v,
                         preferred_element_type=jnp.float32)             # (G, S, hd) f32

        # concat heads back onto lanes, single (64,64) out-proj (MXU sums over heads)
        heads_out = [ctx[hh * b_tile:(hh + 1) * b_tile].reshape(rows, HEAD_DIM)
                     for hh in range(NHEAD)]
        ctx_cat = jnp.concatenate(heads_out, axis=-1).astype(jnp.bfloat16)  # (rows, 64)
        attn = jnp.dot(ctx_cat, w_o_ref[layer],
                       preferred_element_type=jnp.float32) + vec_row(base + V_B_O, D_MODEL)

        # residual + LayerNorm 1 (f32)
        h1 = _layer_norm(h + attn,
                         vec_row(base + V_LN1_G, D_MODEL),
                         vec_row(base + V_LN1_B, D_MODEL))

        # feed-forward (relu); bf16 intermediate between the two FFN matmuls
        ff = jnp.dot(h1.astype(jnp.bfloat16), w1_ref[layer],
                     preferred_element_type=jnp.float32) + vec_row(base + V_B1, DIM_FF)
        ff = jnp.maximum(ff, 0.0).astype(jnp.bfloat16)                   # (rows, 2048) bf16
        ff = jnp.dot(ff, w2_ref[layer],
                     preferred_element_type=jnp.float32) + vec_row(base + V_B2, D_MODEL)

        h = _layer_norm(h1 + ff,
                        vec_row(base + V_LN2_G, D_MODEL),
                        vec_row(base + V_LN2_B, D_MODEL))

    # ---- mean over sequence per batch element, then decoder (lane-dense 128-wide) ----
    pooled = jnp.mean(h.reshape(b_tile, SEQ, D_MODEL), axis=1)           # (b_tile, 64) f32
    out = jnp.dot(pooled.astype(jnp.bfloat16), w_dec_ref[...],
                  preferred_element_type=jnp.float32) + vec_row(V_B_DEC, OUT_PAD)
    out_ref[...] = out.astype(out_ref.dtype)                             # (b_tile, 128)


def make_positional_encoding(max_len, d_model):
    position = jnp.arange(max_len, dtype=jnp.float32)[:, None]
    div_term = jnp.exp(jnp.arange(0, d_model, 2, dtype=jnp.float32)
                       * (-jnp.log(10000.0) / d_model))
    pe = jnp.zeros((max_len, d_model), dtype=jnp.float32)
    pe = pe.at[:, 0::2].set(jnp.sin(position * div_term))
    pe = pe.at[:, 1::2].set(jnp.cos(position * div_term))
    return pe


def init_params(key):
    """Deterministic synthetic parameters, pre-arranged for the kernel:
       * matmul weights are pre-transposed (y = x @ W_t + b) and cast to bf16,
       * Q/K/V weights are fused column-wise into one (64, 192) matrix per layer with
         1/sqrt(head_dim) folded into the Q columns/bias,
       * all small f32 vectors live in one (N_VEC, DIM_FF) slab,
       * the decoder weight/bias are padded from 90 to 128 output lanes."""
    def nrm(k, shape, scale=0.05):
        return scale * jax.random.normal(k, shape, dtype=jnp.float32)

    keys = iter(jax.random.split(key, 32))
    attn_scale = 1.0 / (HEAD_DIM ** 0.5)

    vecs = jnp.zeros((N_VEC, DIM_FF), jnp.float32)

    w_in_t = nrm(next(keys), (INPUT_DIM, D_MODEL))
    vecs = vecs.at[V_B_IN, :D_MODEL].set(nrm(next(keys), (D_MODEL,)))

    w_dec_t = nrm(next(keys), (D_MODEL, OUTPUT_LEN))
    w_dec = jnp.zeros((D_MODEL, OUT_PAD), jnp.float32).at[:, :OUTPUT_LEN].set(w_dec_t)
    vecs = vecs.at[V_B_DEC, :OUTPUT_LEN].set(nrm(next(keys), (OUTPUT_LEN,)))

    w_qkv_l, w_o_l, w1_l, w2_l = [], [], [], []
    for _ in range(NUM_LAYERS):
        base = V_LAYER0 + len(w_qkv_l) * V_PER_LAYER

        w_qkv_t = nrm(next(keys), (D_MODEL, 3 * D_MODEL))   # [Wq^T | Wk^T | Wv^T]
        b_qkv   = nrm(next(keys), (3 * D_MODEL,))
        w_qkv_t = w_qkv_t.at[:, :D_MODEL].multiply(attn_scale)   # fold 1/sqrt(hd) into Q
        b_qkv   = b_qkv.at[:D_MODEL].multiply(attn_scale)

        w_o_t = nrm(next(keys), (D_MODEL, D_MODEL))          # Wo^T, rows = h*16+e
        b_o   = nrm(next(keys), (D_MODEL,))
        w1_t  = nrm(next(keys), (D_MODEL, DIM_FF))
        b1    = nrm(next(keys), (DIM_FF,))
        w2_t  = nrm(next(keys), (DIM_FF, D_MODEL))
        b2    = nrm(next(keys), (D_MODEL,))

        vecs = vecs.at[base + V_B_QKV, :3 * D_MODEL].set(b_qkv)
        vecs = vecs.at[base + V_B_O,   :D_MODEL].set(b_o)
        vecs = vecs.at[base + V_LN1_G, :D_MODEL].set(1.0)    # LN1 gamma (beta stays 0)
        vecs = vecs.at[base + V_B1,    :DIM_FF].set(b1)
        vecs = vecs.at[base + V_B2,    :D_MODEL].set(b2)
        vecs = vecs.at[base + V_LN2_G, :D_MODEL].set(1.0)    # LN2 gamma (beta stays 0)

        w_qkv_l.append(w_qkv_t); w_o_l.append(w_o_t); w1_l.append(w1_t); w2_l.append(w2_t)

    return dict(
        pe=make_positional_encoding(SEQ, D_MODEL),            # (SEQ, 64) f32
        vecs=vecs,                                             # (N_VEC, 2048) f32
        w_in=w_in_t.astype(jnp.bfloat16),                      # (8, 64)
        w_qkv=jnp.stack(w_qkv_l).astype(jnp.bfloat16),         # (L, 64, 192)
        w_o=jnp.stack(w_o_l).astype(jnp.bfloat16),             # (L, 64, 64)
        w1=jnp.stack(w1_l).astype(jnp.bfloat16),               # (L, 64, 2048)
        w2=jnp.stack(w2_l).astype(jnp.bfloat16),               # (L, 2048, 64)
        w_dec=w_dec.astype(jnp.bfloat16),                      # (64, 128)
    )


def transformer_forecast(x, params, row_tile=256):
    """x: (B, SEQ, INPUT_DIM) f32 -> (B, OUTPUT_LEN) f32."""
    B, S, IN = x.shape
    assert S == SEQ and IN == INPUT_DIM

    # Row tile: 256 rows fills the v6e/v7x 256-wide MXU (128 is already enough on v5e).
    # Keep >= 2 grid steps whenever B >= 2 so both v7x TensorCores get work.
    b_tile = max(1, min(row_tile // SEQ, pl.cdiv(B, 2)))
    num_tiles = pl.cdiv(B, b_tile)
    b_pad = num_tiles * b_tile
    if b_pad != B:
        x = jnp.concatenate([x, jnp.zeros((b_pad - B, SEQ, INPUT_DIM), x.dtype)], axis=0)

    rows = b_tile * SEQ
    x_rows = x.reshape(num_tiles, rows, INPUT_DIM)             # batch folded into rows
    pe_rows = jnp.tile(params['pe'], (b_tile, 1))              # (rows, 64), constant block

    consts = [pe_rows, params['vecs'], params['w_in'], params['w_qkv'],
              params['w_o'], params['w1'], params['w2'], params['w_dec']]

    def build(single_buffer_weights):
        def const_spec(a):
            idx = lambda *_: (0,) * a.ndim
            if single_buffer_weights:
                # constant blocks never change across grid steps -> no double buffering
                return pl.BlockSpec(a.shape, idx, pipeline_mode=pl.Buffered(1))
            return pl.BlockSpec(a.shape, idx)

        in_specs = ([pl.BlockSpec((None, rows, INPUT_DIM), lambda i: (i, 0, 0))]
                    + [const_spec(a) for a in consts])
        return pl.pallas_call(
            partial(transformer_kernel, b_tile=b_tile),
            grid=(num_tiles,),
            in_specs=in_specs,
            out_specs=pl.BlockSpec((None, b_tile, OUT_PAD), lambda i: (i, 0, 0)),
            out_shape=jax.ShapeDtypeStruct((num_tiles, b_tile, OUT_PAD), jnp.float32),
            compiler_params=pltpu.CompilerParams(
                dimension_semantics=("parallel",)),
        )

    inputs = (x_rows, *consts)
    try:
        out = build(True)(*inputs)       # weights single-buffered via pl.Buffered(1)
    except Exception:                    # fallback if pipeline_mode is rejected here
        out = build(False)(*inputs)

    return out.reshape(b_pad, OUT_PAD)[:B, :OUTPUT_LEN]


if __name__ == "__main__":
    key = jax.random.PRNGKey(0)
    kx, kp = jax.random.split(key)
    x = jax.random.normal(kx, (BATCH, SEQ, INPUT_DIM), dtype=jnp.float32)
    params = init_params(kp)

    out = transformer_forecast(x, params)
    out = jax.block_until_ready(out)
    assert out.shape == (BATCH, OUTPUT_LEN), out.shape
    assert bool(jnp.all(jnp.isfinite(out)))
    print("KERNEL_OK")
</pallas_src>

<mosaic_0001>
module attributes {stable_mosaic.version = 11 : i64} {
  func.func @transformer_kernel(%arg0: i32, %arg1: memref<1x8x8xf32, #tpu.memory_space<vmem>>, %arg2: memref<8x64xf32, #tpu.memory_space<vmem>>, %arg3: memref<18x2048xf32, #tpu.memory_space<vmem>>, %arg4: memref<8x64xbf16, #tpu.memory_space<vmem>>, %arg5: memref<2x64x192xbf16, #tpu.memory_space<vmem>>, %arg6: memref<2x64x64xbf16, #tpu.memory_space<vmem>>, %arg7: memref<2x64x2048xbf16, #tpu.memory_space<vmem>>, %arg8: memref<2x2048x64xbf16, #tpu.memory_space<vmem>>, %arg9: memref<64x128xbf16, #tpu.memory_space<vmem>>, %arg10: memref<1x1x128xf32, #tpu.memory_space<vmem>>) attributes {dimension_semantics = [#tpu.dimension_semantics<parallel>], iteration_bounds = array<i64: 2>, scalar_prefetch = 0 : i64, scratch_operands = 0 : i64, tpu.core_type = #tpu.core_type<tc>, window_params = [{transform_indices = @transform_0, window_bounds = array<i64: 1, 8, 8>}, {pipeline_mode = #tpu.pipeline_mode<synchronous>, transform_indices = @transform_1, window_bounds = array<i64: 8, 64>}, {pipeline_mode = #tpu.pipeline_mode<synchronous>, transform_indices = @transform_2, window_bounds = array<i64: 18, 2048>}, {pipeline_mode = #tpu.pipeline_mode<synchronous>, transform_indices = @transform_3, window_bounds = array<i64: 8, 64>}, {pipeline_mode = #tpu.pipeline_mode<synchronous>, transform_indices = @transform_4, window_bounds = array<i64: 2, 64, 192>}, {pipeline_mode = #tpu.pipeline_mode<synchronous>, transform_indices = @transform_5, window_bounds = array<i64: 2, 64, 64>}, {pipeline_mode = #tpu.pipeline_mode<synchronous>, transform_indices = @transform_6, window_bounds = array<i64: 2, 64, 2048>}, {pipeline_mode = #tpu.pipeline_mode<synchronous>, transform_indices = @transform_7, window_bounds = array<i64: 2, 2048, 64>}, {pipeline_mode = #tpu.pipeline_mode<synchronous>, transform_indices = @transform_8, window_bounds = array<i64: 64, 128>}, {transform_indices = @transform_9, window_bounds = array<i64: 1, 1, 128>}]} {
    %c0 = arith.constant 0 : index
    %c0_0 = arith.constant 0 : index
    %c0_1 = arith.constant 0 : index
    %0 = vector.load %arg1[%c0, %c0_0, %c0_1] : memref<1x8x8xf32, #tpu.memory_space<vmem>>, vector<1x8x8xf32>
    %1 = vector.shape_cast %0 : vector<1x8x8xf32> to vector<8x8xf32>
    %2 = arith.truncf %1 : vector<8x8xf32> to vector<8x8xbf16>
    %c0_2 = arith.constant 0 : index
    %c0_3 = arith.constant 0 : index
    %3 = vector.load %arg4[%c0_2, %c0_3] : memref<8x64xbf16, #tpu.memory_space<vmem>>, vector<8x64xbf16>
    %cst = arith.constant dense<0.000000e+00> : vector<8x64xf32>
    %4 = tpu.matmul %2, %3, %cst {dimension_numbers = #tpu.dot_dimension_numbers<[1], [0], [0], [1], [0, 0, 1, 1], [], []>} : vector<8x8xbf16>, vector<8x64xbf16>, vector<8x64xf32> -> vector<8x64xf32>
    %c0_4 = arith.constant 0 : index
    %c0_5 = arith.constant 0 : index
    %5 = vector.load %arg3[%c0_4, %c0_5] : memref<18x2048xf32, #tpu.memory_space<vmem>>, vector<1x64xf32>
    %6 = vector.broadcast %5 : vector<1x64xf32> to vector<8x64xf32>
    %7 = arith.addf %4, %6 : vector<8x64xf32>
    %c0_6 = arith.constant 0 : index
    %c0_7 = arith.constant 0 : index
    %8 = vector.load %arg2[%c0_6, %c0_7] : memref<8x64xf32, #tpu.memory_space<vmem>>, vector<8x64xf32>
    %9 = arith.addf %7, %8 : vector<8x64xf32>
    %10 = arith.truncf %9 : vector<8x64xf32> to vector<8x64xbf16>
    %c0_8 = arith.constant 0 : index
    %c0_9 = arith.constant 0 : index
    %c0_10 = arith.constant 0 : index
    %11 = vector.load %arg5[%c0_8, %c0_9, %c0_10] : memref<2x64x192xbf16, #tpu.memory_space<vmem>>, vector<1x64x192xbf16>
    %12 = vector.shape_cast %11 : vector<1x64x192xbf16> to vector<64x192xbf16>
    %cst_11 = arith.constant dense<0.000000e+00> : vector<8x192xf32>
    %13 = tpu.matmul %10, %12, %cst_11 {dimension_numbers = #tpu.dot_dimension_numbers<[1], [0], [0], [1], [0, 0, 1, 1], [], []>} : vector<8x64xbf16>, vector<64x192xbf16>, vector<8x192xf32> -> vector<8x192xf32>
    %c2 = arith.constant 2 : index
    %c0_12 = arith.constant 0 : index
    %14 = vector.load %arg3[%c2, %c0_12] : memref<18x2048xf32, #tpu.memory_space<vmem>>, vector<1x192xf32>
    %15 = vector.broadcast %14 : vector<1x192xf32> to vector<8x192xf32>
    %16 = arith.addf %13, %15 : vector<8x192xf32>
    %17 = vector.extract_strided_slice %16 {offsets = [0, 0], sizes = [8, 16], strides = [1, 1]} : vector<8x192xf32> to vector<8x16xf32>
    %18 = vector.shape_cast %17 : vector<8x16xf32> to vector<1x8x16xf32>
    %19 = vector.extract_strided_slice %16 {offsets = [0, 16], sizes = [8, 16], strides = [1, 1]} : vector<8x192xf32> to vector<8x16xf32>
    %20 = vector.shape_cast %19 : vector<8x16xf32> to vector<1x8x16xf32>
    %21 = vector.extract_strided_slice %16 {offsets = [0, 32], sizes = [8, 16], strides = [1, 1]} : vector<8x192xf32> to vector<8x16xf32>
    %22 = vector.shape_cast %21 : vector<8x16xf32> to vector<1x8x16xf32>
    %23 = vector.extract_strided_slice %16 {offsets = [0, 48], sizes = [8, 16], strides = [1, 1]} : vector<8x192xf32> to vector<8x16xf32>
    %24 = vector.shape_cast %23 : vector<8x16xf32> to vector<1x8x16xf32>
    %25 = tpu.concatenate %18, %20, %22, %24 in 0 : vector<1x8x16xf32>, vector<1x8x16xf32>, vector<1x8x16xf32>, vector<1x8x16xf32> -> vector<4x8x16xf32>
    %26 = arith.truncf %25 : vector<4x8x16xf32> to vector<4x8x16xbf16>
    %27 = vector.extract_strided_slice %16 {offsets = [0, 64], sizes = [8, 16], strides = [1, 1]} : vector<8x192xf32> to vector<8x16xf32>
    %28 = vector.shape_cast %27 : vector<8x16xf32> to vector<1x8x16xf32>
    %29 = vector.extract_strided_slice %16 {offsets = [0, 80], sizes = [8, 16], strides = [1, 1]} : vector<8x192xf32> to vector<8x16xf32>
    %30 = vector.shape_cast %29 : vector<8x16xf32> to vector<1x8x16xf32>
    %31 = vector.extract_strided_slice %16 {offsets = [0, 96], sizes = [8, 16], strides = [1, 1]} : vector<8x192xf32> to vector<8x16xf32>
    %32 = vector.shape_cast %31 : vector<8x16xf32> to vector<1x8x16xf32>
    %33 = vector.extract_strided_slice %16 {offsets = [0, 112], sizes = [8, 16], strides = [1, 1]} : vector<8x192xf32> to vector<8x16xf32>
    %34 = vector.shape_cast %33 : vector<8x16xf32> to vector<1x8x16xf32>
    %35 = tpu.concatenate %28, %30, %32, %34 in 0 : vector<1x8x16xf32>, vector<1x8x16xf32>, vector<1x8x16xf32>, vector<1x8x16xf32> -> vector<4x8x16xf32>
    %36 = arith.truncf %35 : vector<4x8x16xf32> to vector<4x8x16xbf16>
    %37 = vector.extract_strided_slice %16 {offsets = [0, 128], sizes = [8, 16], strides = [1, 1]} : vector<8x192xf32> to vector<8x16xf32>
    %38 = vector.shape_cast %37 : vector<8x16xf32> to vector<1x8x16xf32>
    %39 = vector.extract_strided_slice %16 {offsets = [0, 144], sizes = [8, 16], strides = [1, 1]} : vector<8x192xf32> to vector<8x16xf32>
    %40 = vector.shape_cast %39 : vector<8x16xf32> to vector<1x8x16xf32>
    %41 = vector.extract_strided_slice %16 {offsets = [0, 160], sizes = [8, 16], strides = [1, 1]} : vector<8x192xf32> to vector<8x16xf32>
    %42 = vector.shape_cast %41 : vector<8x16xf32> to vector<1x8x16xf32>
    %43 = vector.extract_strided_slice %16 {offsets = [0, 176], sizes = [8, 16], strides = [1, 1]} : vector<8x192xf32> to vector<8x16xf32>
    %44 = vector.shape_cast %43 : vector<8x16xf32> to vector<1x8x16xf32>
    %45 = tpu.concatenate %38, %40, %42, %44 in 0 : vector<1x8x16xf32>, vector<1x8x16xf32>, vector<1x8x16xf32>, vector<1x8x16xf32> -> vector<4x8x16xf32>
    %46 = arith.truncf %45 : vector<4x8x16xf32> to vector<4x8x16xbf16>
    "tpu.trace_start"() <{level = 10 : i32, message = "gqe,gke->gqk"}> : () -> ()
    %cst_13 = arith.constant dense<0.000000e+00> : vector<4x8x8xf32>
    %47 = tpu.matmul %26, %36, %cst_13 {dimension_numbers = #tpu.dot_dimension_numbers<[2], [2], [1], [1], [0, 0, 0, 1, 1, 1], [0], [0]>} : vector<4x8x16xbf16>, vector<4x8x16xbf16>, vector<4x8x8xf32> -> vector<4x8x8xf32>
    "tpu.trace_stop"() : () -> ()
    %cst_14 = arith.constant dense<0xFF800000> : vector<4x8xf32>
    %48 = vector.multi_reduction <maximumf>, %47, %cst_14 [2] : vector<4x8x8xf32> to vector<4x8xf32>
    %49 = vector.shape_cast %48 : vector<4x8xf32> to vector<4x8x1xf32>
    %50 = vector.broadcast %49 : vector<4x8x1xf32> to vector<4x8x8xf32>
    %51 = arith.subf %47, %50 : vector<4x8x8xf32>
    %52 = math.exp %51 : vector<4x8x8xf32>
    %cst_15 = arith.constant dense<0.000000e+00> : vector<4x8xf32>
    %53 = vector.multi_reduction <add>, %52, %cst_15 [2] : vector<4x8x8xf32> to vector<4x8xf32>
    %54 = vector.shape_cast %53 : vector<4x8xf32> to vector<4x8x1xf32>
    %55 = tpu.reciprocal %54 {approx = true} : vector<4x8x1xf32> -> vector<4x8x1xf32>
    %56 = vector.broadcast %55 : vector<4x8x1xf32> to vector<4x8x8xf32>
    %57 = arith.mulf %52, %56 : vector<4x8x8xf32>
    %58 = arith.truncf %57 : vector<4x8x8xf32> to vector<4x8x8xbf16>
    "tpu.trace_start"() <{level = 10 : i32, message = "gqk,gke->gqe"}> : () -> ()
    %cst_16 = arith.constant dense<0.000000e+00> : vector<4x8x16xf32>
    %59 = tpu.matmul %58, %46, %cst_16 {dimension_numbers = #tpu.dot_dimension_numbers<[2], [1], [1], [2], [0, 0, 0, 1, 1, 2], [0], [0]>} : vector<4x8x8xbf16>, vector<4x8x16xbf16>, vector<4x8x16xf32> -> vector<4x8x16xf32>
    "tpu.trace_stop"() : () -> ()
    %60 = vector.extract_strided_slice %59 {offsets = [0, 0, 0], sizes = [1, 8, 16], strides = [1, 1, 1]} : vector<4x8x16xf32> to vector<1x8x16xf32>
    %61 = vector.shape_cast %60 : vector<1x8x16xf32> to vector<8x16xf32>
    %62 = vector.extract_strided_slice %59 {offsets = [1, 0, 0], sizes = [1, 8, 16], strides = [1, 1, 1]} : vector<4x8x16xf32> to vector<1x8x16xf32>
    %63 = vector.shape_cast %62 : vector<1x8x16xf32> to vector<8x16xf32>
    %64 = vector.extract_strided_slice %59 {offsets = [2, 0, 0], sizes = [1, 8, 16], strides = [1, 1, 1]} : vector<4x8x16xf32> to vector<1x8x16xf32>
    %65 = vector.shape_cast %64 : vector<1x8x16xf32> to vector<8x16xf32>
    %66 = vector.extract_strided_slice %59 {offsets = [3, 0, 0], sizes = [1, 8, 16], strides = [1, 1, 1]} : vector<4x8x16xf32> to vector<1x8x16xf32>
    %67 = vector.shape_cast %66 : vector<1x8x16xf32> to vector<8x16xf32>
    %68 = tpu.concatenate %61, %63, %65, %67 in 1 : vector<8x16xf32>, vector<8x16xf32>, vector<8x16xf32>, vector<8x16xf32> -> vector<8x64xf32>
    %69 = arith.truncf %68 : vector<8x64xf32> to vector<8x64xbf16>
    %c0_17 = arith.constant 0 : index
    %c0_18 = arith.constant 0 : index
    %c0_19 = arith.constant 0 : index
    %70 = vector.load %arg6[%c0_17, %c0_18, %c0_19] : memref<2x64x64xbf16, #tpu.memory_space<vmem>>, vector<1x64x64xbf16>
    %71 = vector.shape_cast %70 : vector<1x64x64xbf16> to vector<64x64xbf16>
    %cst_20 = arith.constant dense<0.000000e+00> : vector<8x64xf32>
    %72 = tpu.matmul %69, %71, %cst_20 {dimension_numbers = #tpu.dot_dimension_numbers<[1], [0], [0], [1], [0, 0, 1, 1], [], []>} : vector<8x64xbf16>, vector<64x64xbf16>, vector<8x64xf32> -> vector<8x64xf32>
    %c3 = arith.constant 3 : index
    %c0_21 = arith.constant 0 : index
    %73 = vector.load %arg3[%c3, %c0_21] : memref<18x2048xf32, #tpu.memory_space<vmem>>, vector<1x64xf32>
    %74 = vector.broadcast %73 : vector<1x64xf32> to vector<8x64xf32>
    %75 = arith.addf %72, %74 : vector<8x64xf32>
    %76 = arith.addf %9, %75 : vector<8x64xf32>
    %c4 = arith.constant 4 : index
    %c0_22 = arith.constant 0 : index
    %77 = vector.load %arg3[%c4, %c0_22] : memref<18x2048xf32, #tpu.memory_space<vmem>>, vector<1x64xf32>
    %c5 = arith.constant 5 : index
    %c0_23 = arith.constant 0 : index
    %78 = vector.load %arg3[%c5, %c0_23] : memref<18x2048xf32, #tpu.memory_space<vmem>>, vector<1x64xf32>
    %cst_24 = arith.constant dense<0.000000e+00> : vector<8xf32>
    %79 = vector.multi_reduction <add>, %76, %cst_24 [1] : vector<8x64xf32> to vector<8xf32>
    %80 = vector.shape_cast %79 : vector<8xf32> to vector<8x1xf32>
    %cst_25 = arith.constant 6.400000e+01 : f32
    %81 = vector.broadcast %cst_25 : f32 to vector<8x1xf32>
    %82 = arith.divf %80, %81 : vector<8x1xf32>
    %83 = vector.broadcast %82 : vector<8x1xf32> to vector<8x64xf32>
    %84 = arith.subf %76, %83 : vector<8x64xf32>
    %85 = arith.mulf %84, %84 : vector<8x64xf32>
    %cst_26 = arith.constant dense<0.000000e+00> : vector<8xf32>
    %86 = vector.multi_reduction <add>, %85, %cst_26 [1] : vector<8x64xf32> to vector<8xf32>
    %87 = vector.shape_cast %86 : vector<8xf32> to vector<8x1xf32>
    %cst_27 = arith.constant 6.400000e+01 : f32
    %88 = vector.broadcast %cst_27 : f32 to vector<8x1xf32>
    %89 = arith.divf %87, %88 : vector<8x1xf32>
    %90 = vector.broadcast %82 : vector<8x1xf32> to vector<8x64xf32>
    %91 = arith.subf %76, %90 : vector<8x64xf32>
    %cst_28 = arith.constant 9.99999974E-6 : f32
    %92 = vector.broadcast %cst_28 : f32 to vector<8x1xf32>
    %93 = arith.addf %89, %92 : vector<8x1xf32>
    %94 = math.rsqrt %93 : vector<8x1xf32>
    %95 = vector.broadcast %94 : vector<8x1xf32> to vector<8x64xf32>
    %96 = arith.mulf %91, %95 : vector<8x64xf32>
    %97 = vector.broadcast %77 : vector<1x64xf32> to vector<8x64xf32>
    %98 = arith.mulf %96, %97 : vector<8x64xf32>
    %99 = vector.broadcast %78 : vector<1x64xf32> to vector<8x64xf32>
    %100 = arith.addf %98, %99 : vector<8x64xf32>
    %101 = arith.truncf %100 : vector<8x64xf32> to vector<8x64xbf16>
    %c0_29 = arith.constant 0 : index
    %c0_30 = arith.constant 0 : index
    %c0_31 = arith.constant 0 : index
    %102 = vector.load %arg7[%c0_29, %c0_30, %c0_31] : memref<2x64x2048xbf16, #tpu.memory_space<vmem>>, vector<1x64x2048xbf16>
    %103 = vector.shape_cast %102 : vector<1x64x2048xbf16> to vector<64x2048xbf16>
    %cst_32 = arith.constant dense<0.000000e+00> : vector<8x2048xf32>
    %104 = tpu.matmul %101, %103, %cst_32 {dimension_numbers = #tpu.dot_dimension_numbers<[1], [0], [0], [1], [0, 0, 1, 1], [], []>} : vector<8x64xbf16>, vector<64x2048xbf16>, vector<8x2048xf32> -> vector<8x2048xf32>
    %c6 = arith.constant 6 : index
    %c0_33 = arith.constant 0 : index
    %105 = vector.load %arg3[%c6, %c0_33] : memref<18x2048xf32, #tpu.memory_space<vmem>>, vector<1x2048xf32>
    %106 = vector.broadcast %105 : vector<1x2048xf32> to vector<8x2048xf32>
    %107 = arith.addf %104, %106 : vector<8x2048xf32>
    %cst_34 = arith.constant 0.000000e+00 : f32
    %108 = vector.broadcast %cst_34 : f32 to vector<8x2048xf32>
    %109 = arith.maximumf %107, %108 : vector<8x2048xf32>
    %110 = arith.truncf %109 : vector<8x2048xf32> to vector<8x2048xbf16>
    %c0_35 = arith.constant 0 : index
    %c0_36 = arith.constant 0 : index
    %c0_37 = arith.constant 0 : index
    %111 = vector.load %arg8[%c0_35, %c0_36, %c0_37] : memref<2x2048x64xbf16, #tpu.memory_space<vmem>>, vector<1x2048x64xbf16>
    %112 = vector.shape_cast %111 : vector<1x2048x64xbf16> to vector<2048x64xbf16>
    %cst_38 = arith.constant dense<0.000000e+00> : vector<8x64xf32>
    %113 = tpu.matmul %110, %112, %cst_38 {dimension_numbers = #tpu.dot_dimension_numbers<[1], [0], [0], [1], [0, 0, 1, 1], [], []>} : vector<8x2048xbf16>, vector<2048x64xbf16>, vector<8x64xf32> -> vector<8x64xf32>
    %c7 = arith.constant 7 : index
    %c0_39 = arith.constant 0 : index
    %114 = vector.load %arg3[%c7, %c0_39] : memref<18x2048xf32, #tpu.memory_space<vmem>>, vector<1x64xf32>
    %115 = vector.broadcast %114 : vector<1x64xf32> to vector<8x64xf32>
    %116 = arith.addf %113, %115 : vector<8x64xf32>
    %117 = arith.addf %100, %116 : vector<8x64xf32>
    %c8 = arith.constant 8 : index
    %c0_40 = arith.constant 0 : index
    %118 = vector.load %arg3[%c8, %c0_40] : memref<18x2048xf32, #tpu.memory_space<vmem>>, vector<1x64xf32>
    %c9 = arith.constant 9 : index
    %c0_41 = arith.constant 0 : index
    %119 = vector.load %arg3[%c9, %c0_41] : memref<18x2048xf32, #tpu.memory_space<vmem>>, vector<1x64xf32>
    %cst_42 = arith.constant dense<0.000000e+00> : vector<8xf32>
    %120 = vector.multi_reduction <add>, %117, %cst_42 [1] : vector<8x64xf32> to vector<8xf32>
    %121 = vector.shape_cast %120 : vector<8xf32> to vector<8x1xf32>
    %cst_43 = arith.constant 6.400000e+01 : f32
    %122 = vector.broadcast %cst_43 : f32 to vector<8x1xf32>
    %123 = arith.divf %121, %122 : vector<8x1xf32>
    %124 = vector.broadcast %123 : vector<8x1xf32> to vector<8x64xf32>
    %125 = arith.subf %117, %124 : vector<8x64xf32>
    %126 = arith.mulf %125, %125 : vector<8x64xf32>
    %cst_44 = arith.constant dense<0.000000e+00> : vector<8xf32>
    %127 = vector.multi_reduction <add>, %126, %cst_44 [1] : vector<8x64xf32> to vector<8xf32>
    %128 = vector.shape_cast %127 : vector<8xf32> to vector<8x1xf32>
    %cst_45 = arith.constant 6.400000e+01 : f32
    %129 = vector.broadcast %cst_45 : f32 to vector<8x1xf32>
    %130 = arith.divf %128, %129 : vector<8x1xf32>
    %131 = vector.broadcast %123 : vector<8x1xf32> to vector<8x64xf32>
    %132 = arith.subf %117, %131 : vector<8x64xf32>
    %cst_46 = arith.constant 9.99999974E-6 : f32
    %133 = vector.broadcast %cst_46 : f32 to vector<8x1xf32>
    %134 = arith.addf %130, %133 : vector<8x1xf32>
    %135 = math.rsqrt %134 : vector<8x1xf32>
    %136 = vector.broadcast %135 : vector<8x1xf32> to vector<8x64xf32>
    %137 = arith.mulf %132, %136 : vector<8x64xf32>
    %138 = vector.broadcast %118 : vector<1x64xf32> to vector<8x64xf32>
    %139 = arith.mulf %137, %138 : vector<8x64xf32>
    %140 = vector.broadcast %119 : vector<1x64xf32> to vector<8x64xf32>
    %141 = arith.addf %139, %140 : vector<8x64xf32>
    %142 = arith.truncf %141 : vector<8x64xf32> to vector<8x64xbf16>
    %c1 = arith.constant 1 : index
    %c0_47 = arith.constant 0 : index
    %c0_48 = arith.constant 0 : index
    %143 = vector.load %arg5[%c1, %c0_47, %c0_48] : memref<2x64x192xbf16, #tpu.memory_space<vmem>>, vector<1x64x192xbf16>
    %144 = vector.shape_cast %143 : vector<1x64x192xbf16> to vector<64x192xbf16>
    %cst_49 = arith.constant dense<0.000000e+00> : vector<8x192xf32>
    %145 = tpu.matmul %142, %144, %cst_49 {dimension_numbers = #tpu.dot_dimension_numbers<[1], [0], [0], [1], [0, 0, 1, 1], [], []>} : vector<8x64xbf16>, vector<64x192xbf16>, vector<8x192xf32> -> vector<8x192xf32>
    %c10 = arith.constant 10 : index
    %c0_50 = arith.constant 0 : index
    %146 = vector.load %arg3[%c10, %c0_50] : memref<18x2048xf32, #tpu.memory_space<vmem>>, vector<1x192xf32>
    %147 = vector.broadcast %146 : vector<1x192xf32> to vector<8x192xf32>
    %148 = arith.addf %145, %147 : vector<8x192xf32>
    %149 = vector.extract_strided_slice %148 {offsets = [0, 0], sizes = [8, 16], strides = [1, 1]} : vector<8x192xf32> to vector<8x16xf32>
    %150 = vector.shape_cast %149 : vector<8x16xf32> to vector<1x8x16xf32>
    %151 = vector.extract_strided_slice %148 {offsets = [0, 16], sizes = [8, 16], strides = [1, 1]} : vector<8x192xf32> to vector<8x16xf32>
    %152 = vector.shape_cast %151 : vector<8x16xf32> to vector<1x8x16xf32>
    %153 = vector.extract_strided_slice %148 {offsets = [0, 32], sizes = [8, 16], strides = [1, 1]} : vector<8x192xf32> to vector<8x16xf32>
    %154 = vector.shape_cast %153 : vector<8x16xf32> to vector<1x8x16xf32>
    %155 = vector.extract_strided_slice %148 {offsets = [0, 48], sizes = [8, 16], strides = [1, 1]} : vector<8x192xf32> to vector<8x16xf32>
    %156 = vector.shape_cast %155 : vector<8x16xf32> to vector<1x8x16xf32>
    %157 = tpu.concatenate %150, %152, %154, %156 in 0 : vector<1x8x16xf32>, vector<1x8x16xf32>, vector<1x8x16xf32>, vector<1x8x16xf32> -> vector<4x8x16xf32>
    %158 = arith.truncf %157 : vector<4x8x16xf32> to vector<4x8x16xbf16>
    %159 = vector.extract_strided_slice %148 {offsets = [0, 64], sizes = [8, 16], strides = [1, 1]} : vector<8x192xf32> to vector<8x16xf32>
    %160 = vector.shape_cast %159 : vector<8x16xf32> to vector<1x8x16xf32>
    %161 = vector.extract_strided_slice %148 {offsets = [0, 80], sizes = [8, 16], strides = [1, 1]} : vector<8x192xf32> to vector<8x16xf32>
    %162 = vector.shape_cast %161 : vector<8x16xf32> to vector<1x8x16xf32>
    %163 = vector.extract_strided_slice %148 {offsets = [0, 96], sizes = [8, 16], strides = [1, 1]} : vector<8x192xf32> to vector<8x16xf32>
    %164 = vector.shape_cast %163 : vector<8x16xf32> to vector<1x8x16xf32>
    %165 = vector.extract_strided_slice %148 {offsets = [0, 112], sizes = [8, 16], strides = [1, 1]} : vector<8x192xf32> to vector<8x16xf32>
    %166 = vector.shape_cast %165 : vector<8x16xf32> to vector<1x8x16xf32>
    %167 = tpu.concatenate %160, %162, %164, %166 in 0 : vector<1x8x16xf32>, vector<1x8x16xf32>, vector<1x8x16xf32>, vector<1x8x16xf32> -> vector<4x8x16xf32>
    %168 = arith.truncf %167 : vector<4x8x16xf32> to vector<4x8x16xbf16>
    %169 = vector.extract_strided_slice %148 {offsets = [0, 128], sizes = [8, 16], strides = [1, 1]} : vector<8x192xf32> to vector<8x16xf32>
    %170 = vector.shape_cast %169 : vector<8x16xf32> to vector<1x8x16xf32>
    %171 = vector.extract_strided_slice %148 {offsets = [0, 144], sizes = [8, 16], strides = [1, 1]} : vector<8x192xf32> to vector<8x16xf32>
    %172 = vector.shape_cast %171 : vector<8x16xf32> to vector<1x8x16xf32>
    %173 = vector.extract_strided_slice %148 {offsets = [0, 160], sizes = [8, 16], strides = [1, 1]} : vector<8x192xf32> to vector<8x16xf32>
    %174 = vector.shape_cast %173 : vector<8x16xf32> to vector<1x8x16xf32>
    %175 = vector.extract_strided_slice %148 {offsets = [0, 176], sizes = [8, 16], strides = [1, 1]} : vector<8x192xf32> to vector<8x16xf32>
    %176 = vector.shape_cast %175 : vector<8x16xf32> to vector<1x8x16xf32>
    %177 = tpu.concatenate %170, %172, %174, %176 in 0 : vector<1x8x16xf32>, vector<1x8x16xf32>, vector<1x8x16xf32>, vector<1x8x16xf32> -> vector<4x8x16xf32>
    %178 = arith.truncf %177 : vector<4x8x16xf32> to vector<4x8x16xbf16>
    "tpu.trace_start"() <{level = 10 : i32, message = "gqe,gke->gqk"}> : () -> ()
    %cst_51 = arith.constant dense<0.000000e+00> : vector<4x8x8xf32>
    %179 = tpu.matmul %158, %168, %cst_51 {dimension_numbers = #tpu.dot_dimension_numbers<[2], [2], [1], [1], [0, 0, 0, 1, 1, 1], [0], [0]>} : vector<4x8x16xbf16>, vector<4x8x16xbf16>, vector<4x8x8xf32> -> vector<4x8x8xf32>
    "tpu.trace_stop"() : () -> ()
    %cst_52 = arith.constant dense<0xFF800000> : vector<4x8xf32>
    %180 = vector.multi_reduction <maximumf>, %179, %cst_52 [2] : vector<4x8x8xf32> to vector<4x8xf32>
    %181 = vector.shape_cast %180 : vector<4x8xf32> to vector<4x8x1xf32>
    %182 = vector.broadcast %181 : vector<4x8x1xf32> to vector<4x8x8xf32>
    %183 = arith.subf %179, %182 : vector<4x8x8xf32>
    %184 = math.exp %183 : vector<4x8x8xf32>
    %cst_53 = arith.constant dense<0.000000e+00> : vector<4x8xf32>
    %185 = vector.multi_reduction <add>, %184, %cst_53 [2] : vector<4x8x8xf32> to vector<4x8xf32>
    %186 = vector.shape_cast %185 : vector<4x8xf32> to vector<4x8x1xf32>
    %187 = tpu.reciprocal %186 {approx = true} : vector<4x8x1xf32> -> vector<4x8x1xf32>
    %188 = vector.broadcast %187 : vector<4x8x1xf32> to vector<4x8x8xf32>
    %189 = arith.mulf %184, %188 : vector<4x8x8xf32>
    %190 = arith.truncf %189 : vector<4x8x8xf32> to vector<4x8x8xbf16>
    "tpu.trace_start"() <{level = 10 : i32, message = "gqk,gke->gqe"}> : () -> ()
    %cst_54 = arith.constant dense<0.000000e+00> : vector<4x8x16xf32>
    %191 = tpu.matmul %190, %178, %cst_54 {dimension_numbers = #tpu.dot_dimension_numbers<[2], [1], [1], [2], [0, 0, 0, 1, 1, 2], [0], [0]>} : vector<4x8x8xbf16>, vector<4x8x16xbf16>, vector<4x8x16xf32> -> vector<4x8x16xf32>
    "tpu.trace_stop"() : () -> ()
    %192 = vector.extract_strided_slice %191 {offsets = [0, 0, 0], sizes = [1, 8, 16], strides = [1, 1, 1]} : vector<4x8x16xf32> to vector<1x8x16xf32>
    %193 = vector.shape_cast %192 : vector<1x8x16xf32> to vector<8x16xf32>
    %194 = vector.extract_strided_slice %191 {offsets = [1, 0, 0], sizes = [1, 8, 16], strides = [1, 1, 1]} : vector<4x8x16xf32> to vector<1x8x16xf32>
    %195 = vector.shape_cast %194 : vector<1x8x16xf32> to vector<8x16xf32>
    %196 = vector.extract_strided_slice %191 {offsets = [2, 0, 0], sizes = [1, 8, 16], strides = [1, 1, 1]} : vector<4x8x16xf32> to vector<1x8x16xf32>
    %197 = vector.shape_cast %196 : vector<1x8x16xf32> to vector<8x16xf32>
    %198 = vector.extract_strided_slice %191 {offsets = [3, 0, 0], sizes = [1, 8, 16], strides = [1, 1, 1]} : vector<4x8x16xf32> to vector<1x8x16xf32>
    %199 = vector.shape_cast %198 : vector<1x8x16xf32> to vector<8x16xf32>
    %200 = tpu.concatenate %193, %195, %197, %199 in 1 : vector<8x16xf32>, vector<8x16xf32>, vector<8x16xf32>, vector<8x16xf32> -> vector<8x64xf32>
    %201 = arith.truncf %200 : vector<8x64xf32> to vector<8x64xbf16>
    %c1_55 = arith.constant 1 : index
    %c0_56 = arith.constant 0 : index
    %c0_57 = arith.constant 0 : index
    %202 = vector.load %arg6[%c1_55, %c0_56, %c0_57] : memref<2x64x64xbf16, #tpu.memory_space<vmem>>, vector<1x64x64xbf16>
    %203 = vector.shape_cast %202 : vector<1x64x64xbf16> to vector<64x64xbf16>
    %cst_58 = arith.constant dense<0.000000e+00> : vector<8x64xf32>
    %204 = tpu.matmul %201, %203, %cst_58 {dimension_numbers = #tpu.dot_dimension_numbers<[1], [0], [0], [1], [0, 0, 1, 1], [], []>} : vector<8x64xbf16>, vector<64x64xbf16>, vector<8x64xf32> -> vector<8x64xf32>
    %c11 = arith.constant 11 : index
    %c0_59 = arith.constant 0 : index
    %205 = vector.load %arg3[%c11, %c0_59] : memref<18x2048xf32, #tpu.memory_space<vmem>>, vector<1x64xf32>
    %206 = vector.broadcast %205 : vector<1x64xf32> to vector<8x64xf32>
    %207 = arith.addf %204, %206 : vector<8x64xf32>
    %208 = arith.addf %141, %207 : vector<8x64xf32>
    %c12 = arith.constant 12 : index
    %c0_60 = arith.constant 0 : index
    %209 = vector.load %arg3[%c12, %c0_60] : memref<18x2048xf32, #tpu.memory_space<vmem>>, vector<1x64xf32>
    %c13 = arith.constant 13 : index
    %c0_61 = arith.constant 0 : index
    %210 = vector.load %arg3[%c13, %c0_61] : memref<18x2048xf32, #tpu.memory_space<vmem>>, vector<1x64xf32>
    %cst_62 = arith.constant dense<0.000000e+00> : vector<8xf32>
    %211 = vector.multi_reduction <add>, %208, %cst_62 [1] : vector<8x64xf32> to vector<8xf32>
    %212 = vector.shape_cast %211 : vector<8xf32> to vector<8x1xf32>
    %cst_63 = arith.constant 6.400000e+01 : f32
    %213 = vector.broadcast %cst_63 : f32 to vector<8x1xf32>
    %214 = arith.divf %212, %213 : vector<8x1xf32>
    %215 = vector.broadcast %214 : vector<8x1xf32> to vector<8x64xf32>
    %216 = arith.subf %208, %215 : vector<8x64xf32>
    %217 = arith.mulf %216, %216 : vector<8x64xf32>
    %cst_64 = arith.constant dense<0.000000e+00> : vector<8xf32>
    %218 = vector.multi_reduction <add>, %217, %cst_64 [1] : vector<8x64xf32> to vector<8xf32>
    %219 = vector.shape_cast %218 : vector<8xf32> to vector<8x1xf32>
    %cst_65 = arith.constant 6.400000e+01 : f32
    %220 = vector.broadcast %cst_65 : f32 to vector<8x1xf32>
    %221 = arith.divf %219, %220 : vector<8x1xf32>
    %222 = vector.broadcast %214 : vector<8x1xf32> to vector<8x64xf32>
    %223 = arith.subf %208, %222 : vector<8x64xf32>
    %cst_66 = arith.constant 9.99999974E-6 : f32
    %224 = vector.broadcast %cst_66 : f32 to vector<8x1xf32>
    %225 = arith.addf %221, %224 : vector<8x1xf32>
    %226 = math.rsqrt %225 : vector<8x1xf32>
    %227 = vector.broadcast %226 : vector<8x1xf32> to vector<8x64xf32>
    %228 = arith.mulf %223, %227 : vector<8x64xf32>
    %229 = vector.broadcast %209 : vector<1x64xf32> to vector<8x64xf32>
    %230 = arith.mulf %228, %229 : vector<8x64xf32>
    %231 = vector.broadcast %210 : vector<1x64xf32> to vector<8x64xf32>
    %232 = arith.addf %230, %231 : vector<8x64xf32>
    %233 = arith.truncf %232 : vector<8x64xf32> to vector<8x64xbf16>
    %c1_67 = arith.constant 1 : index
    %c0_68 = arith.constant 0 : index
    %c0_69 = arith.constant 0 : index
    %234 = vector.load %arg7[%c1_67, %c0_68, %c0_69] : memref<2x64x2048xbf16, #tpu.memory_space<vmem>>, vector<1x64x2048xbf16>
    %235 = vector.shape_cast %234 : vector<1x64x2048xbf16> to vector<64x2048xbf16>
    %cst_70 = arith.constant dense<0.000000e+00> : vector<8x2048xf32>
    %236 = tpu.matmul %233, %235, %cst_70 {dimension_numbers = #tpu.dot_dimension_numbers<[1], [0], [0], [1], [0, 0, 1, 1], [], []>} : vector<8x64xbf16>, vector<64x2048xbf16>, vector<8x2048xf32> -> vector<8x2048xf32>
    %c14 = arith.constant 14 : index
    %c0_71 = arith.constant 0 : index
    %237 = vector.load %arg3[%c14, %c0_71] : memref<18x2048xf32, #tpu.memory_space<vmem>>, vector<1x2048xf32>
    %238 = vector.broadcast %237 : vector<1x2048xf32> to vector<8x2048xf32>
    %239 = arith.addf %236, %238 : vector<8x2048xf32>
    %cst_72 = arith.constant 0.000000e+00 : f32
    %240 = vector.broadcast %cst_72 : f32 to vector<8x2048xf32>
    %241 = arith.maximumf %239, %240 : vector<8x2048xf32>
    %242 = arith.truncf %241 : vector<8x2048xf32> to vector<8x2048xbf16>
    %c1_73 = arith.constant 1 : index
    %c0_74 = arith.constant 0 : index
    %c0_75 = arith.constant 0 : index
    %243 = vector.load %arg8[%c1_73, %c0_74, %c0_75] : memref<2x2048x64xbf16, #tpu.memory_space<vmem>>, vector<1x2048x64xbf16>
    %244 = vector.shape_cast %243 : vector<1x2048x64xbf16> to vector<2048x64xbf16>
    %cst_76 = arith.constant dense<0.000000e+00> : vector<8x64xf32>
    %245 = tpu.matmul %242, %244, %cst_76 {dimension_numbers = #tpu.dot_dimension_numbers<[1], [0], [0], [1], [0, 0, 1, 1], [], []>} : vector<8x2048xbf16>, vector<2048x64xbf16>, vector<8x64xf32> -> vector<8x64xf32>
    %c15 = arith.constant 15 : index
    %c0_77 = arith.constant 0 : index
    %246 = vector.load %arg3[%c15, %c0_77] : memref<18x2048xf32, #tpu.memory_space<vmem>>, vector<1x64xf32>
    %247 = vector.broadcast %246 : vector<1x64xf32> to vector<8x64xf32>
    %248 = arith.addf %245, %247 : vector<8x64xf32>
    %249 = arith.addf %232, %248 : vector<8x64xf32>
    %c16 = arith.constant 16 : index
    %c0_78 = arith.constant 0 : index
    %250 = vector.load %arg3[%c16, %c0_78] : memref<18x2048xf32, #tpu.memory_space<vmem>>, vector<1x64xf32>
    %c17 = arith.constant 17 : index
    %c0_79 = arith.constant 0 : index
    %251 = vector.load %arg3[%c17, %c0_79] : memref<18x2048xf32, #tpu.memory_space<vmem>>, vector<1x64xf32>
    %cst_80 = arith.constant dense<0.000000e+00> : vector<8xf32>
    %252 = vector.multi_reduction <add>, %249, %cst_80 [1] : vector<8x64xf32> to vector<8xf32>
    %253 = vector.shape_cast %252 : vector<8xf32> to vector<8x1xf32>
    %cst_81 = arith.constant 6.400000e+01 : f32
    %254 = vector.broadcast %cst_81 : f32 to vector<8x1xf32>
    %255 = arith.divf %253, %254 : vector<8x1xf32>
    %256 = vector.broadcast %255 : vector<8x1xf32> to vector<8x64xf32>
    %257 = arith.subf %249, %256 : vector<8x64xf32>
    %258 = arith.mulf %257, %257 : vector<8x64xf32>
    %cst_82 = arith.constant dense<0.000000e+00> : vector<8xf32>
    %259 = vector.multi_reduction <add>, %258, %cst_82 [1] : vector<8x64xf32> to vector<8xf32>
    %260 = vector.shape_cast %259 : vector<8xf32> to vector<8x1xf32>
    %cst_83 = arith.constant 6.400000e+01 : f32
    %261 = vector.broadcast %cst_83 : f32 to vector<8x1xf32>
    %262 = arith.divf %260, %261 : vector<8x1xf32>
    %263 = vector.broadcast %255 : vector<8x1xf32> to vector<8x64xf32>
    %264 = arith.subf %249, %263 : vector<8x64xf32>
    %cst_84 = arith.constant 9.99999974E-6 : f32
    %265 = vector.broadcast %cst_84 : f32 to vector<8x1xf32>
    %266 = arith.addf %262, %265 : vector<8x1xf32>
    %267 = math.rsqrt %266 : vector<8x1xf32>
    %268 = vector.broadcast %267 : vector<8x1xf32> to vector<8x64xf32>
    %269 = arith.mulf %264, %268 : vector<8x64xf32>
    %270 = vector.broadcast %250 : vector<1x64xf32> to vector<8x64xf32>
    %271 = arith.mulf %269, %270 : vector<8x64xf32>
    %272 = vector.broadcast %251 : vector<1x64xf32> to vector<8x64xf32>
    %273 = arith.addf %271, %272 : vector<8x64xf32>
    %274 = vector.shape_cast %273 : vector<8x64xf32> to vector<1x8x64xf32>
    %cst_85 = arith.constant dense<0.000000e+00> : vector<1x64xf32>
    %275 = vector.multi_reduction <add>, %274, %cst_85 [1] : vector<1x8x64xf32> to vector<1x64xf32>
    %cst_86 = arith.constant 8.000000e+00 : f32
    %276 = vector.broadcast %cst_86 : f32 to vector<1x64xf32>
    %277 = arith.divf %275, %276 : vector<1x64xf32>
    %278 = arith.truncf %277 : vector<1x64xf32> to vector<1x64xbf16>
    %c0_87 = arith.constant 0 : index
    %c0_88 = arith.constant 0 : index
    %279 = vector.load %arg9[%c0_87, %c0_88] : memref<64x128xbf16, #tpu.memory_space<vmem>>, vector<64x128xbf16>
    %cst_89 = arith.constant dense<0.000000e+00> : vector<1x128xf32>
    %280 = tpu.matmul %278, %279, %cst_89 {dimension_numbers = #tpu.dot_dimension_numbers<[1], [0], [0], [1], [0, 0, 1, 1], [], []>} : vector<1x64xbf16>, vector<64x128xbf16>, vector<1x128xf32> -> vector<1x128xf32>
    %c1_90 = arith.constant 1 : index
    %c0_91 = arith.constant 0 : index
    %281 = vector.load %arg3[%c1_90, %c0_91] : memref<18x2048xf32, #tpu.memory_space<vmem>>, vector<1x128xf32>
    %282 = arith.addf %280, %281 : vector<1x128xf32>
    %c0_92 = arith.constant 0 : index
    %c0_93 = arith.constant 0 : index
    %c0_94 = arith.constant 0 : index
    %283 = vector.load %arg10[%c0_92, %c0_93, %c0_94] : memref<1x1x128xf32, #tpu.memory_space<vmem>>, vector<1x1x128xf32>
    %284 = vector.shape_cast %283 : vector<1x1x128xf32> to vector<1x128xf32>
    %285 = vector.shape_cast %282 : vector<1x128xf32> to vector<1x1x128xf32>
    tpu.vector_store %arg10[%c0_92, %c0_93, %c0_94], %285 {strides = array<i32>} : memref<1x1x128xf32, #tpu.memory_space<vmem>>, vector<1x1x128xf32>,
    return
  }
  func.func @transform_0(%arg0: i32) -> (i32, i32, i32) {
    %c0_i32 = arith.constant 0 : i32
    %c0_i32_0 = arith.constant 0 : i32
    %c0_i32_1 = arith.constant 0 : i32
    return %arg0, %c0_i32, %c0_i32_0 : i32, i32, i32
  }
  func.func @transform_1(%arg0: i32) -> (i32, i32) {
    %c0_i32 = arith.constant 0 : i32
    %c0_i32_0 = arith.constant 0 : i32
    %c0_i32_1 = arith.constant 0 : i32
    return %c0_i32, %c0_i32_0 : i32, i32
  }
  func.func @transform_2(%arg0: i32) -> (i32, i32) {
    %c0_i32 = arith.constant 0 : i32
    %c0_i32_0 = arith.constant 0 : i32
    %c0_i32_1 = arith.constant 0 : i32
    return %c0_i32, %c0_i32_0 : i32, i32
  }
  func.func @transform_3(%arg0: i32) -> (i32, i32) {
    %c0_i32 = arith.constant 0 : i32
    %c0_i32_0 = arith.constant 0 : i32
    %c0_i32_1 = arith.constant 0 : i32
    return %c0_i32, %c0_i32_0 : i32, i32
  }
  func.func @transform_4(%arg0: i32) -> (i32, i32, i32) {
    %c0_i32 = arith.constant 0 : i32
    %c0_i32_0 = arith.constant 0 : i32
    %c0_i32_1 = arith.constant 0 : i32
    %c0_i32_2 = arith.constant 0 : i32
    return %c0_i32, %c0_i32_0, %c0_i32_1 : i32, i32, i32
  }
  func.func @transform_5(%arg0: i32) -> (i32, i32, i32) {
    %c0_i32 = arith.constant 0 : i32
    %c0_i32_0 = arith.constant 0 : i32
    %c0_i32_1 = arith.constant 0 : i32
    %c0_i32_2 = arith.constant 0 : i32
    return %c0_i32, %c0_i32_0, %c0_i32_1 : i32, i32, i32
  }
  func.func @transform_6(%arg0: i32) -> (i32, i32, i32) {
    %c0_i32 = arith.constant 0 : i32
    %c0_i32_0 = arith.constant 0 : i32
    %c0_i32_1 = arith.constant 0 : i32
    %c0_i32_2 = arith.constant 0 : i32
    return %c0_i32, %c0_i32_0, %c0_i32_1 : i32, i32, i32
  }
  func.func @transform_7(%arg0: i32) -> (i32, i32, i32) {
    %c0_i32 = arith.constant 0 : i32
    %c0_i32_0 = arith.constant 0 : i32
    %c0_i32_1 = arith.constant 0 : i32
    %c0_i32_2 = arith.constant 0 : i32
    return %c0_i32, %c0_i32_0, %c0_i32_1 : i32, i32, i32
  }
  func.func @transform_8(%arg0: i32) -> (i32, i32) {
    %c0_i32 = arith.constant 0 : i32
    %c0_i32_0 = arith.constant 0 : i32
    %c0_i32_1 = arith.constant 0 : i32
    return %c0_i32, %c0_i32_0 : i32, i32
  }
  func.func @transform_9(%arg0: i32) -> (i32, i32, i32) {
    %c0_i32 = arith.constant 0 : i32
    %c0_i32_0 = arith.constant 0 : i32
    %c0_i32_1 = arith.constant 0 : i32
    return %arg0, %c0_i32, %c0_i32_0 : i32, i32, i32
  }
}

module attributes {stable_mosaic.version = 11 : i64} {
  func.func @transformer_kernel(%arg0: i32, %arg1: memref<1x8x8xf32, #tpu.memory_space<vmem>>, %arg2: memref<8x64xf32, #tpu.memory_space<vmem>>, %arg3: memref<18x2048xf32, #tpu.memory_space<vmem>>, %arg4: memref<8x64xbf16, #tpu.memory_space<vmem>>, %arg5: memref<2x64x192xbf16, #tpu.memory_space<vmem>>, %arg6: memref<2x64x64xbf16, #tpu.memory_space<vmem>>, %arg7: memref<2x64x2048xbf16, #tpu.memory_space<vmem>>, %arg8: memref<2x2048x64xbf16, #tpu.memory_space<vmem>>, %arg9: memref<64x128xbf16, #tpu.memory_space<vmem>>, %arg10: memref<1x1x128xf32, #tpu.memory_space<vmem>>) attributes {dimension_semantics = [#tpu.dimension_semantics<parallel>], iteration_bounds = array<i64: 2>, scalar_prefetch = 0 : i64, scratch_operands = 0 : i64, tpu.core_type = #tpu.core_type<tc>, window_params = [{transform_indices = @transform_0, window_bounds = array<i64: 1, 8, 8>}, {pipeline_mode = #tpu.pipeline_mode<synchronous>, transform_indices = @transform_1, window_bounds = array<i64: 8, 64>}, {pipeline_mode = #tpu.pipeline_mode<synchronous>, transform_indices = @transform_2, window_bounds = array<i64: 18, 2048>}, {pipeline_mode = #tpu.pipeline_mode<synchronous>, transform_indices = @transform_3, window_bounds = array<i64: 8, 64>}, {pipeline_mode = #tpu.pipeline_mode<synchronous>, transform_indices = @transform_4, window_bounds = array<i64: 2, 64, 192>}, {pipeline_mode = #tpu.pipeline_mode<synchronous>, transform_indices = @transform_5, window_bounds = array<i64: 2, 64, 64>}, {pipeline_mode = #tpu.pipeline_mode<synchronous>, transform_indices = @transform_6, window_bounds = array<i64: 2, 64, 2048>}, {pipeline_mode = #tpu.pipeline_mode<synchronous>, transform_indices = @transform_7, window_bounds = array<i64: 2, 2048, 64>}, {pipeline_mode = #tpu.pipeline_mode<synchronous>, transform_indices = @transform_8, window_bounds = array<i64: 64, 128>}, {transform_indices = @transform_9, window_bounds = array<i64: 1, 1, 128>}]} {
    %c0 = arith.constant 0 : index
    %c0_0 = arith.constant 0 : index
    %c0_1 = arith.constant 0 : index
    %0 = vector.load %arg1[%c0, %c0_0, %c0_1] : memref<1x8x8xf32, #tpu.memory_space<vmem>>, vector<1x8x8xf32>
    %1 = vector.shape_cast %0 : vector<1x8x8xf32> to vector<8x8xf32>
    %2 = arith.truncf %1 : vector<8x8xf32> to vector<8x8xbf16>
    %c0_2 = arith.constant 0 : index
    %c0_3 = arith.constant 0 : index
    %3 = vector.load %arg4[%c0_2, %c0_3] : memref<8x64xbf16, #tpu.memory_space<vmem>>, vector<8x64xbf16>
    %cst = arith.constant dense<0.000000e+00> : vector<8x64xf32>
    %4 = tpu.matmul %2, %3, %cst {dimension_numbers = #tpu.dot_dimension_numbers<[1], [0], [0], [1], [0, 0, 1, 1], [], []>} : vector<8x8xbf16>, vector<8x64xbf16>, vector<8x64xf32> -> vector<8x64xf32>
    %c0_4 = arith.constant 0 : index
    %c0_5 = arith.constant 0 : index
    %5 = vector.load %arg3[%c0_4, %c0_5] : memref<18x2048xf32, #tpu.memory_space<vmem>>, vector<1x64xf32>
    %6 = vector.broadcast %5 : vector<1x64xf32> to vector<8x64xf32>
    %7 = arith.addf %4, %6 : vector<8x64xf32>
    %c0_6 = arith.constant 0 : index
    %c0_7 = arith.constant 0 : index
    %8 = vector.load %arg2[%c0_6, %c0_7] : memref<8x64xf32, #tpu.memory_space<vmem>>, vector<8x64xf32>
    %9 = arith.addf %7, %8 : vector<8x64xf32>
    %10 = arith.truncf %9 : vector<8x64xf32> to vector<8x64xbf16>
    %c0_8 = arith.constant 0 : index
    %c0_9 = arith.constant 0 : index
    %c0_10 = arith.constant 0 : index
    %11 = vector.load %arg5[%c0_8, %c0_9, %c0_10] : memref<2x64x192xbf16, #tpu.memory_space<vmem>>, vector<1x64x192xbf16>
    %12 = vector.shape_cast %11 : vector<1x64x192xbf16> to vector<64x192xbf16>
    %cst_11 = arith.constant dense<0.000000e+00> : vector<8x192xf32>
    %13 = tpu.matmul %10, %12, %cst_11 {dimension_numbers = #tpu.dot_dimension_numbers<[1], [0], [0], [1], [0, 0, 1, 1], [], []>} : vector<8x64xbf16>, vector<64x192xbf16>, vector<8x192xf32> -> vector<8x192xf32>
    %c2 = arith.constant 2 : index
    %c0_12 = arith.constant 0 : index
    %14 = vector.load %arg3[%c2, %c0_12] : memref<18x2048xf32, #tpu.memory_space<vmem>>, vector<1x192xf32>
    %15 = vector.broadcast %14 : vector<1x192xf32> to vector<8x192xf32>
    %16 = arith.addf %13, %15 : vector<8x192xf32>
    %17 = vector.extract_strided_slice %16 {offsets = [0, 0], sizes = [8, 16], strides = [1, 1]} : vector<8x192xf32> to vector<8x16xf32>
    %18 = vector.shape_cast %17 : vector<8x16xf32> to vector<1x8x16xf32>
    %19 = vector.extract_strided_slice %16 {offsets = [0, 16], sizes = [8, 16], strides = [1, 1]} : vector<8x192xf32> to vector<8x16xf32>
    %20 = vector.shape_cast %19 : vector<8x16xf32> to vector<1x8x16xf32>
    %21 = vector.extract_strided_slice %16 {offsets = [0, 32], sizes = [8, 16], strides = [1, 1]} : vector<8x192xf32> to vector<8x16xf32>
    %22 = vector.shape_cast %21 : vector<8x16xf32> to vector<1x8x16xf32>
    %23 = vector.extract_strided_slice %16 {offsets = [0, 48], sizes = [8, 16], strides = [1, 1]} : vector<8x192xf32> to vector<8x16xf32>
    %24 = vector.shape_cast %23 : vector<8x16xf32> to vector<1x8x16xf32>
    %25 = tpu.concatenate %18, %20, %22, %24 in 0 : vector<1x8x16xf32>, vector<1x8x16xf32>, vector<1x8x16xf32>, vector<1x8x16xf32> -> vector<4x8x16xf32>
    %26 = arith.truncf %25 : vector<4x8x16xf32> to vector<4x8x16xbf16>
    %27 = vector.extract_strided_slice %16 {offsets = [0, 64], sizes = [8, 16], strides = [1, 1]} : vector<8x192xf32> to vector<8x16xf32>
    %28 = vector.shape_cast %27 : vector<8x16xf32> to vector<1x8x16xf32>
    %29 = vector.extract_strided_slice %16 {offsets = [0, 80], sizes = [8, 16], strides = [1, 1]} : vector<8x192xf32> to vector<8x16xf32>
    %30 = vector.shape_cast %29 : vector<8x16xf32> to vector<1x8x16xf32>
    %31 = vector.extract_strided_slice %16 {offsets = [0, 96], sizes = [8, 16], strides = [1, 1]} : vector<8x192xf32> to vector<8x16xf32>
    %32 = vector.shape_cast %31 : vector<8x16xf32> to vector<1x8x16xf32>
    %33 = vector.extract_strided_slice %16 {offsets = [0, 112], sizes = [8, 16], strides = [1, 1]} : vector<8x192xf32> to vector<8x16xf32>
    %34 = vector.shape_cast %33 : vector<8x16xf32> to vector<1x8x16xf32>
    %35 = tpu.concatenate %28, %30, %32, %34 in 0 : vector<1x8x16xf32>, vector<1x8x16xf32>, vector<1x8x16xf32>, vector<1x8x16xf32> -> vector<4x8x16xf32>
    %36 = arith.truncf %35 : vector<4x8x16xf32> to vector<4x8x16xbf16>
    %37 = vector.extract_strided_slice %16 {offsets = [0, 128], sizes = [8, 16], strides = [1, 1]} : vector<8x192xf32> to vector<8x16xf32>
    %38 = vector.shape_cast %37 : vector<8x16xf32> to vector<1x8x16xf32>
    %39 = vector.extract_strided_slice %16 {offsets = [0, 144], sizes = [8, 16], strides = [1, 1]} : vector<8x192xf32> to vector<8x16xf32>
    %40 = vector.shape_cast %39 : vector<8x16xf32> to vector<1x8x16xf32>
    %41 = vector.extract_strided_slice %16 {offsets = [0, 160], sizes = [8, 16], strides = [1, 1]} : vector<8x192xf32> to vector<8x16xf32>
    %42 = vector.shape_cast %41 : vector<8x16xf32> to vector<1x8x16xf32>
    %43 = vector.extract_strided_slice %16 {offsets = [0, 176], sizes = [8, 16], strides = [1, 1]} : vector<8x192xf32> to vector<8x16xf32>
    %44 = vector.shape_cast %43 : vector<8x16xf32> to vector<1x8x16xf32>
    %45 = tpu.concatenate %38, %40, %42, %44 in 0 : vector<1x8x16xf32>, vector<1x8x16xf32>, vector<1x8x16xf32>, vector<1x8x16xf32> -> vector<4x8x16xf32>
    %46 = arith.truncf %45 : vector<4x8x16xf32> to vector<4x8x16xbf16>
    "tpu.trace_start"() <{level = 10 : i32, message = "gqe,gke->gqk"}> : () -> ()
    %cst_13 = arith.constant dense<0.000000e+00> : vector<4x8x8xf32>
    %47 = tpu.matmul %26, %36, %cst_13 {dimension_numbers = #tpu.dot_dimension_numbers<[2], [2], [1], [1], [0, 0, 0, 1, 1, 1], [0], [0]>} : vector<4x8x16xbf16>, vector<4x8x16xbf16>, vector<4x8x8xf32> -> vector<4x8x8xf32>
    "tpu.trace_stop"() : () -> ()
    %cst_14 = arith.constant dense<0xFF800000> : vector<4x8xf32>
    %48 = vector.multi_reduction <maximumf>, %47, %cst_14 [2] : vector<4x8x8xf32> to vector<4x8xf32>
    %49 = vector.shape_cast %48 : vector<4x8xf32> to vector<4x8x1xf32>
    %50 = vector.broadcast %49 : vector<4x8x1xf32> to vector<4x8x8xf32>
    %51 = arith.subf %47, %50 : vector<4x8x8xf32>
    %52 = math.exp %51 : vector<4x8x8xf32>
    %cst_15 = arith.constant dense<0.000000e+00> : vector<4x8xf32>
    %53 = vector.multi_reduction <add>, %52, %cst_15 [2] : vector<4x8x8xf32> to vector<4x8xf32>
    %54 = vector.shape_cast %53 : vector<4x8xf32> to vector<4x8x1xf32>
    %55 = tpu.reciprocal %54 {approx = true} : vector<4x8x1xf32> -> vector<4x8x1xf32>
    %56 = vector.broadcast %55 : vector<4x8x1xf32> to vector<4x8x8xf32>
    %57 = arith.mulf %52, %56 : vector<4x8x8xf32>
    %58 = arith.truncf %57 : vector<4x8x8xf32> to vector<4x8x8xbf16>
    "tpu.trace_start"() <{level = 10 : i32, message = "gqk,gke->gqe"}> : () -> ()
    %cst_16 = arith.constant dense<0.000000e+00> : vector<4x8x16xf32>
    %59 = tpu.matmul %58, %46, %cst_16 {dimension_numbers = #tpu.dot_dimension_numbers<[2], [1], [1], [2], [0, 0, 0, 1, 1, 2], [0], [0]>} : vector<4x8x8xbf16>, vector<4x8x16xbf16>, vector<4x8x16xf32> -> vector<4x8x16xf32>
    "tpu.trace_stop"() : () -> ()
    %60 = vector.extract_strided_slice %59 {offsets = [0, 0, 0], sizes = [1, 8, 16], strides = [1, 1, 1]} : vector<4x8x16xf32> to vector<1x8x16xf32>
    %61 = vector.shape_cast %60 : vector<1x8x16xf32> to vector<8x16xf32>
    %62 = vector.extract_strided_slice %59 {offsets = [1, 0, 0], sizes = [1, 8, 16], strides = [1, 1, 1]} : vector<4x8x16xf32> to vector<1x8x16xf32>
    %63 = vector.shape_cast %62 : vector<1x8x16xf32> to vector<8x16xf32>
    %64 = vector.extract_strided_slice %59 {offsets = [2, 0, 0], sizes = [1, 8, 16], strides = [1, 1, 1]} : vector<4x8x16xf32> to vector<1x8x16xf32>
    %65 = vector.shape_cast %64 : vector<1x8x16xf32> to vector<8x16xf32>
    %66 = vector.extract_strided_slice %59 {offsets = [3, 0, 0], sizes = [1, 8, 16], strides = [1, 1, 1]} : vector<4x8x16xf32> to vector<1x8x16xf32>
    %67 = vector.shape_cast %66 : vector<1x8x16xf32> to vector<8x16xf32>
    %68 = tpu.concatenate %61, %63, %65, %67 in 1 : vector<8x16xf32>, vector<8x16xf32>, vector<8x16xf32>, vector<8x16xf32> -> vector<8x64xf32>
    %69 = arith.truncf %68 : vector<8x64xf32> to vector<8x64xbf16>
    %c0_17 = arith.constant 0 : index
    %c0_18 = arith.constant 0 : index
    %c0_19 = arith.constant 0 : index
    %70 = vector.load %arg6[%c0_17, %c0_18, %c0_19] : memref<2x64x64xbf16, #tpu.memory_space<vmem>>, vector<1x64x64xbf16>
    %71 = vector.shape_cast %70 : vector<1x64x64xbf16> to vector<64x64xbf16>
    %cst_20 = arith.constant dense<0.000000e+00> : vector<8x64xf32>
    %72 = tpu.matmul %69, %71, %cst_20 {dimension_numbers = #tpu.dot_dimension_numbers<[1], [0], [0], [1], [0, 0, 1, 1], [], []>} : vector<8x64xbf16>, vector<64x64xbf16>, vector<8x64xf32> -> vector<8x64xf32>
    %c3 = arith.constant 3 : index
    %c0_21 = arith.constant 0 : index
    %73 = vector.load %arg3[%c3, %c0_21] : memref<18x2048xf32, #tpu.memory_space<vmem>>, vector<1x64xf32>
    %74 = vector.broadcast %73 : vector<1x64xf32> to vector<8x64xf32>
    %75 = arith.addf %72, %74 : vector<8x64xf32>
    %76 = arith.addf %9, %75 : vector<8x64xf32>
    %c4 = arith.constant 4 : index
    %c0_22 = arith.constant 0 : index
    %77 = vector.load %arg3[%c4, %c0_22] : memref<18x2048xf32, #tpu.memory_space<vmem>>, vector<1x64xf32>
    %c5 = arith.constant 5 : index
    %c0_23 = arith.constant 0 : index
    %78 = vector.load %arg3[%c5, %c0_23] : memref<18x2048xf32, #tpu.memory_space<vmem>>, vector<1x64xf32>
    %cst_24 = arith.constant dense<0.000000e+00> : vector<8xf32>
    %79 = vector.multi_reduction <add>, %76, %cst_24 [1] : vector<8x64xf32> to vector<8xf32>
    %80 = vector.shape_cast %79 : vector<8xf32> to vector<8x1xf32>
    %cst_25 = arith.constant 6.400000e+01 : f32
    %81 = vector.broadcast %cst_25 : f32 to vector<8x1xf32>
    %82 = arith.divf %80, %81 : vector<8x1xf32>
    %83 = vector.broadcast %82 : vector<8x1xf32> to vector<8x64xf32>
    %84 = arith.subf %76, %83 : vector<8x64xf32>
    %85 = arith.mulf %84, %84 : vector<8x64xf32>
    %cst_26 = arith.constant dense<0.000000e+00> : vector<8xf32>
    %86 = vector.multi_reduction <add>, %85, %cst_26 [1] : vector<8x64xf32> to vector<8xf32>
    %87 = vector.shape_cast %86 : vector<8xf32> to vector<8x1xf32>
    %cst_27 = arith.constant 6.400000e+01 : f32
    %88 = vector.broadcast %cst_27 : f32 to vector<8x1xf32>
    %89 = arith.divf %87, %88 : vector<8x1xf32>
    %90 = vector.broadcast %82 : vector<8x1xf32> to vector<8x64xf32>
    %91 = arith.subf %76, %90 : vector<8x64xf32>
    %cst_28 = arith.constant 9.99999974E-6 : f32
    %92 = vector.broadcast %cst_28 : f32 to vector<8x1xf32>
    %93 = arith.addf %89, %92 : vector<8x1xf32>
    %94 = math.rsqrt %93 : vector<8x1xf32>
    %95 = vector.broadcast %94 : vector<8x1xf32> to vector<8x64xf32>
    %96 = arith.mulf %91, %95 : vector<8x64xf32>
    %97 = vector.broadcast %77 : vector<1x64xf32> to vector<8x64xf32>
    %98 = arith.mulf %96, %97 : vector<8x64xf32>
    %99 = vector.broadcast %78 : vector<1x64xf32> to vector<8x64xf32>
    %100 = arith.addf %98, %99 : vector<8x64xf32>
    %101 = arith.truncf %100 : vector<8x64xf32> to vector<8x64xbf16>
    %c0_29 = arith.constant 0 : index
    %c0_30 = arith.constant 0 : index
    %c0_31 = arith.constant 0 : index
    %102 = vector.load %arg7[%c0_29, %c0_30, %c0_31] : memref<2x64x2048xbf16, #tpu.memory_space<vmem>>, vector<1x64x2048xbf16>
    %103 = vector.shape_cast %102 : vector<1x64x2048xbf16> to vector<64x2048xbf16>
    %cst_32 = arith.constant dense<0.000000e+00> : vector<8x2048xf32>
    %104 = tpu.matmul %101, %103, %cst_32 {dimension_numbers = #tpu.dot_dimension_numbers<[1], [0], [0], [1], [0, 0, 1, 1], [], []>} : vector<8x64xbf16>, vector<64x2048xbf16>, vector<8x2048xf32> -> vector<8x2048xf32>
    %c6 = arith.constant 6 : index
    %c0_33 = arith.constant 0 : index
    %105 = vector.load %arg3[%c6, %c0_33] : memref<18x2048xf32, #tpu.memory_space<vmem>>, vector<1x2048xf32>
    %106 = vector.broadcast %105 : vector<1x2048xf32> to vector<8x2048xf32>
    %107 = arith.addf %104, %106 : vector<8x2048xf32>
    %cst_34 = arith.constant 0.000000e+00 : f32
    %108 = vector.broadcast %cst_34 : f32 to vector<8x2048xf32>
    %109 = arith.maximumf %107, %108 : vector<8x2048xf32>
    %110 = arith.truncf %109 : vector<8x2048xf32> to vector<8x2048xbf16>
    %c0_35 = arith.constant 0 : index
    %c0_36 = arith.constant 0 : index
    %c0_37 = arith.constant 0 : index
    %111 = vector.load %arg8[%c0_35, %c0_36, %c0_37] : memref<2x2048x64xbf16, #tpu.memory_space<vmem>>, vector<1x2048x64xbf16>
    %112 = vector.shape_cast %111 : vector<1x2048x64xbf16> to vector<2048x64xbf16>
    %cst_38 = arith.constant dense<0.000000e+00> : vector<8x64xf32>
    %113 = tpu.matmul %110, %112, %cst_38 {dimension_numbers = #tpu.dot_dimension_numbers<[1], [0], [0], [1], [0, 0, 1, 1], [], []>} : vector<8x2048xbf16>, vector<2048x64xbf16>, vector<8x64xf32> -> vector<8x64xf32>
    %c7 = arith.constant 7 : index
    %c0_39 = arith.constant 0 : index
    %114 = vector.load %arg3[%c7, %c0_39] : memref<18x2048xf32, #tpu.memory_space<vmem>>, vector<1x64xf32>
    %115 = vector.broadcast %114 : vector<1x64xf32> to vector<8x64xf32>
    %116 = arith.addf %113, %115 : vector<8x64xf32>
    %117 = arith.addf %100, %116 : vector<8x64xf32>
    %c8 = arith.constant 8 : index
    %c0_40 = arith.constant 0 : index
    %118 = vector.load %arg3[%c8, %c0_40] : memref<18x2048xf32, #tpu.memory_space<vmem>>, vector<1x64xf32>
    %c9 = arith.constant 9 : index
    %c0_41 = arith.constant 0 : index
    %119 = vector.load %arg3[%c9, %c0_41] : memref<18x2048xf32, #tpu.memory_space<vmem>>, vector<1x64xf32>
    %cst_42 = arith.constant dense<0.000000e+00> : vector<8xf32>
    %120 = vector.multi_reduction <add>, %117, %cst_42 [1] : vector<8x64xf32> to vector<8xf32>
    %121 = vector.shape_cast %120 : vector<8xf32> to vector<8x1xf32>
    %cst_43 = arith.constant 6.400000e+01 : f32
    %122 = vector.broadcast %cst_43 : f32 to vector<8x1xf32>
    %123 = arith.divf %121, %122 : vector<8x1xf32>
    %124 = vector.broadcast %123 : vector<8x1xf32> to vector<8x64xf32>
    %125 = arith.subf %117, %124 : vector<8x64xf32>
    %126 = arith.mulf %125, %125 : vector<8x64xf32>
    %cst_44 = arith.constant dense<0.000000e+00> : vector<8xf32>
    %127 = vector.multi_reduction <add>, %126, %cst_44 [1] : vector<8x64xf32> to vector<8xf32>
    %128 = vector.shape_cast %127 : vector<8xf32> to vector<8x1xf32>
    %cst_45 = arith.constant 6.400000e+01 : f32
    %129 = vector.broadcast %cst_45 : f32 to vector<8x1xf32>
    %130 = arith.divf %128, %129 : vector<8x1xf32>
    %131 = vector.broadcast %123 : vector<8x1xf32> to vector<8x64xf32>
    %132 = arith.subf %117, %131 : vector<8x64xf32>
    %cst_46 = arith.constant 9.99999974E-6 : f32
    %133 = vector.broadcast %cst_46 : f32 to vector<8x1xf32>
    %134 = arith.addf %130, %133 : vector<8x1xf32>
    %135 = math.rsqrt %134 : vector<8x1xf32>
    %136 = vector.broadcast %135 : vector<8x1xf32> to vector<8x64xf32>
    %137 = arith.mulf %132, %136 : vector<8x64xf32>
    %138 = vector.broadcast %118 : vector<1x64xf32> to vector<8x64xf32>
    %139 = arith.mulf %137, %138 : vector<8x64xf32>
    %140 = vector.broadcast %119 : vector<1x64xf32> to vector<8x64xf32>
    %141 = arith.addf %139, %140 : vector<8x64xf32>
    %142 = arith.truncf %141 : vector<8x64xf32> to vector<8x64xbf16>
    %c1 = arith.constant 1 : index
    %c0_47 = arith.constant 0 : index
    %c0_48 = arith.constant 0 : index
    %143 = vector.load %arg5[%c1, %c0_47, %c0_48] : memref<2x64x192xbf16, #tpu.memory_space<vmem>>, vector<1x64x192xbf16>
    %144 = vector.shape_cast %143 : vector<1x64x192xbf16> to vector<64x192xbf16>
    %cst_49 = arith.constant dense<0.000000e+00> : vector<8x192xf32>
    %145 = tpu.matmul %142, %144, %cst_49 {dimension_numbers = #tpu.dot_dimension_numbers<[1], [0], [0], [1], [0, 0, 1, 1], [], []>} : vector<8x64xbf16>, vector<64x192xbf16>, vector<8x192xf32> -> vector<8x192xf32>
    %c10 = arith.constant 10 : index
    %c0_50 = arith.constant 0 : index
    %146 = vector.load %arg3[%c10, %c0_50] : memref<18x2048xf32, #tpu.memory_space<vmem>>, vector<1x192xf32>
    %147 = vector.broadcast %146 : vector<1x192xf32> to vector<8x192xf32>
    %148 = arith.addf %145, %147 : vector<8x192xf32>
    %149 = vector.extract_strided_slice %148 {offsets = [0, 0], sizes = [8, 16], strides = [1, 1]} : vector<8x192xf32> to vector<8x16xf32>
    %150 = vector.shape_cast %149 : vector<8x16xf32> to vector<1x8x16xf32>
    %151 = vector.extract_strided_slice %148 {offsets = [0, 16], sizes = [8, 16], strides = [1, 1]} : vector<8x192xf32> to vector<8x16xf32>
    %152 = vector.shape_cast %151 : vector<8x16xf32> to vector<1x8x16xf32>
    %153 = vector.extract_strided_slice %148 {offsets = [0, 32], sizes = [8, 16], strides = [1, 1]} : vector<8x192xf32> to vector<8x16xf32>
    %154 = vector.shape_cast %153 : vector<8x16xf32> to vector<1x8x16xf32>
    %155 = vector.extract_strided_slice %148 {offsets = [0, 48], sizes = [8, 16], strides = [1, 1]} : vector<8x192xf32> to vector<8x16xf32>
    %156 = vector.shape_cast %155 : vector<8x16xf32> to vector<1x8x16xf32>
    %157 = tpu.concatenate %150, %152, %154, %156 in 0 : vector<1x8x16xf32>, vector<1x8x16xf32>, vector<1x8x16xf32>, vector<1x8x16xf32> -> vector<4x8x16xf32>
    %158 = arith.truncf %157 : vector<4x8x16xf32> to vector<4x8x16xbf16>
    %159 = vector.extract_strided_slice %148 {offsets = [0, 64], sizes = [8, 16], strides = [1, 1]} : vector<8x192xf32> to vector<8x16xf32>
    %160 = vector.shape_cast %159 : vector<8x16xf32> to vector<1x8x16xf32>
    %161 = vector.extract_strided_slice %148 {offsets = [0, 80], sizes = [8, 16], strides = [1, 1]} : vector<8x192xf32> to vector<8x16xf32>
    %162 = vector.shape_cast %161 : vector<8x16xf32> to vector<1x8x16xf32>
    %163 = vector.extract_strided_slice %148 {offsets = [0, 96], sizes = [8, 16], strides = [1, 1]} : vector<8x192xf32> to vector<8x16xf32>
    %164 = vector.shape_cast %163 : vector<8x16xf32> to vector<1x8x16xf32>
    %165 = vector.extract_strided_slice %148 {offsets = [0, 112], sizes = [8, 16], strides = [1, 1]} : vector<8x192xf32> to vector<8x16xf32>
    %166 = vector.shape_cast %165 : vector<8x16xf32> to vector<1x8x16xf32>
    %167 = tpu.concatenate %160, %162, %164, %166 in 0 : vector<1x8x16xf32>, vector<1x8x16xf32>, vector<1x8x16xf32>, vector<1x8x16xf32> -> vector<4x8x16xf32>
    %168 = arith.truncf %167 : vector<4x8x16xf32> to vector<4x8x16xbf16>
    %169 = vector.extract_strided_slice %148 {offsets = [0, 128], sizes = [8, 16], strides = [1, 1]} : vector<8x192xf32> to vector<8x16xf32>
    %170 = vector.shape_cast %169 : vector<8x16xf32> to vector<1x8x16xf32>
    %171 = vector.extract_strided_slice %148 {offsets = [0, 144], sizes = [8, 16], strides = [1, 1]} : vector<8x192xf32> to vector<8x16xf32>
    %172 = vector.shape_cast %171 : vector<8x16xf32> to vector<1x8x16xf32>
    %173 = vector.extract_strided_slice %148 {offsets = [0, 160], sizes = [8, 16], strides = [1, 1]} : vector<8x192xf32> to vector<8x16xf32>
    %174 = vector.shape_cast %173 : vector<8x16xf32> to vector<1x8x16xf32>
    %175 = vector.extract_strided_slice %148 {offsets = [0, 176], sizes = [8, 16], strides = [1, 1]} : vector<8x192xf32> to vector<8x16xf32>
    %176 = vector.shape_cast %175 : vector<8x16xf32> to vector<1x8x16xf32>
    %177 = tpu.concatenate %170, %172, %174, %176 in 0 : vector<1x8x16xf32>, vector<1x8x16xf32>, vector<1x8x16xf32>, vector<1x8x16xf32> -> vector<4x8x16xf32>
    %178 = arith.truncf %177 : vector<4x8x16xf32> to vector<4x8x16xbf16>
    "tpu.trace_start"() <{level = 10 : i32, message = "gqe,gke->gqk"}> : () -> ()
    %cst_51 = arith.constant dense<0.000000e+00> : vector<4x8x8xf32>
    %179 = tpu.matmul %158, %168, %cst_51 {dimension_numbers = #tpu.dot_dimension_numbers<[2], [2], [1], [1], [0, 0, 0, 1, 1, 1], [0], [0]>} : vector<4x8x16xbf16>, vector<4x8x16xbf16>, vector<4x8x8xf32> -> vector<4x8x8xf32>
    "tpu.trace_stop"() : () -> ()
    %cst_52 = arith.constant dense<0xFF800000> : vector<4x8xf32>
    %180 = vector.multi_reduction <maximumf>, %179, %cst_52 [2] : vector<4x8x8xf32> to vector<4x8xf32>
    %181 = vector.shape_cast %180 : vector<4x8xf32> to vector<4x8x1xf32>
    %182 = vector.broadcast %181 : vector<4x8x1xf32> to vector<4x8x8xf32>
    %183 = arith.subf %179, %182 : vector<4x8x8xf32>
    %184 = math.exp %183 : vector<4x8x8xf32>
    %cst_53 = arith.constant dense<0.000000e+00> : vector<4x8xf32>
    %185 = vector.multi_reduction <add>, %184, %cst_53 [2] : vector<4x8x8xf32> to vector<4x8xf32>
    %186 = vector.shape_cast %185 : vector<4x8xf32> to vector<4x8x1xf32>
    %187 = tpu.reciprocal %186 {approx = true} : vector<4x8x1xf32> -> vector<4x8x1xf32>
    %188 = vector.broadcast %187 : vector<4x8x1xf32> to vector<4x8x8xf32>
    %189 = arith.mulf %184, %188 : vector<4x8x8xf32>
    %190 = arith.truncf %189 : vector<4x8x8xf32> to vector<4x8x8xbf16>
    "tpu.trace_start"() <{level = 10 : i32, message = "gqk,gke->gqe"}> : () -> ()
    %cst_54 = arith.constant dense<0.000000e+00> : vector<4x8x16xf32>
    %191 = tpu.matmul %190, %178, %cst_54 {dimension_numbers = #tpu.dot_dimension_numbers<[2], [1], [1], [2], [0, 0, 0, 1, 1, 2], [0], [0]>} : vector<4x8x8xbf16>, vector<4x8x16xbf16>, vector<4x8x16xf32> -> vector<4x8x16xf32>
    "tpu.trace_stop"() : () -> ()
    %192 = vector.extract_strided_slice %191 {offsets = [0, 0, 0], sizes = [1, 8, 16], strides = [1, 1, 1]} : vector<4x8x16xf32> to vector<1x8x16xf32>
    %193 = vector.shape_cast %192 : vector<1x8x16xf32> to vector<8x16xf32>
    %194 = vector.extract_strided_slice %191 {offsets = [1, 0, 0], sizes = [1, 8, 16], strides = [1, 1, 1]} : vector<4x8x16xf32> to vector<1x8x16xf32>
    %195 = vector.shape_cast %194 : vector<1x8x16xf32> to vector<8x16xf32>
    %196 = vector.extract_strided_slice %191 {offsets = [2, 0, 0], sizes = [1, 8, 16], strides = [1, 1, 1]} : vector<4x8x16xf32> to vector<1x8x16xf32>
    %197 = vector.shape_cast %196 : vector<1x8x16xf32> to vector<8x16xf32>
    %198 = vector.extract_strided_slice %191 {offsets = [3, 0, 0], sizes = [1, 8, 16], strides = [1, 1, 1]} : vector<4x8x16xf32> to vector<1x8x16xf32>
    %199 = vector.shape_cast %198 : vector<1x8x16xf32> to vector<8x16xf32>
    %200 = tpu.concatenate %193, %195, %197, %199 in 1 : vector<8x16xf32>, vector<8x16xf32>, vector<8x16xf32>, vector<8x16xf32> -> vector<8x64xf32>
    %201 = arith.truncf %200 : vector<8x64xf32> to vector<8x64xbf16>
    %c1_55 = arith.constant 1 : index
    %c0_56 = arith.constant 0 : index
    %c0_57 = arith.constant 0 : index
    %202 = vector.load %arg6[%c1_55, %c0_56, %c0_57] : memref<2x64x64xbf16, #tpu.memory_space<vmem>>, vector<1x64x64xbf16>
    %203 = vector.shape_cast %202 : vector<1x64x64xbf16> to vector<64x64xbf16>
    %cst_58 = arith.constant dense<0.000000e+00> : vector<8x64xf32>
    %204 = tpu.matmul %201, %203, %cst_58 {dimension_numbers = #tpu.dot_dimension_numbers<[1], [0], [0], [1], [0, 0, 1, 1], [], []>} : vector<8x64xbf16>, vector<64x64xbf16>, vector<8x64xf32> -> vector<8x64xf32>
    %c11 = arith.constant 11 : index
    %c0_59 = arith.constant 0 : index
    %205 = vector.load %arg3[%c11, %c0_59] : memref<18x2048xf32, #tpu.memory_space<vmem>>, vector<1x64xf32>
    %206 = vector.broadcast %205 : vector<1x64xf32> to vector<8x64xf32>
    %207 = arith.addf %204, %206 : vector<8x64xf32>
    %208 = arith.addf %141, %207 : vector<8x64xf32>
    %c12 = arith.constant 12 : index
    %c0_60 = arith.constant 0 : index
    %209 = vector.load %arg3[%c12, %c0_60] : memref<18x2048xf32, #tpu.memory_space<vmem>>, vector<1x64xf32>
    %c13 = arith.constant 13 : index
    %c0_61 = arith.constant 0 : index
    %210 = vector.load %arg3[%c13, %c0_61] : memref<18x2048xf32, #tpu.memory_space<vmem>>, vector<1x64xf32>
    %cst_62 = arith.constant dense<0.000000e+00> : vector<8xf32>
    %211 = vector.multi_reduction <add>, %208, %cst_62 [1] : vector<8x64xf32> to vector<8xf32>
    %212 = vector.shape_cast %211 : vector<8xf32> to vector<8x1xf32>
    %cst_63 = arith.constant 6.400000e+01 : f32
    %213 = vector.broadcast %cst_63 : f32 to vector<8x1xf32>
    %214 = arith.divf %212, %213 : vector<8x1xf32>
    %215 = vector.broadcast %214 : vector<8x1xf32> to vector<8x64xf32>
    %216 = arith.subf %208, %215 : vector<8x64xf32>
    %217 = arith.mulf %216, %216 : vector<8x64xf32>
    %cst_64 = arith.constant dense<0.000000e+00> : vector<8xf32>
    %218 = vector.multi_reduction <add>, %217, %cst_64 [1] : vector<8x64xf32> to vector<8xf32>
    %219 = vector.shape_cast %218 : vector<8xf32> to vector<8x1xf32>
    %cst_65 = arith.constant 6.400000e+01 : f32
    %220 = vector.broadcast %cst_65 : f32 to vector<8x1xf32>
    %221 = arith.divf %219, %220 : vector<8x1xf32>
    %222 = vector.broadcast %214 : vector<8x1xf32> to vector<8x64xf32>
    %223 = arith.subf %208, %222 : vector<8x64xf32>
    %cst_66 = arith.constant 9.99999974E-6 : f32
    %224 = vector.broadcast %cst_66 : f32 to vector<8x1xf32>
    %225 = arith.addf %221, %224 : vector<8x1xf32>
    %226 = math.rsqrt %225 : vector<8x1xf32>
    %227 = vector.broadcast %226 : vector<8x1xf32> to vector<8x64xf32>
    %228 = arith.mulf %223, %227 : vector<8x64xf32>
    %229 = vector.broadcast %209 : vector<1x64xf32> to vector<8x64xf32>
    %230 = arith.mulf %228, %229 : vector<8x64xf32>
    %231 = vector.broadcast %210 : vector<1x64xf32> to vector<8x64xf32>
    %232 = arith.addf %230, %231 : vector<8x64xf32>
    %233 = arith.truncf %232 : vector<8x64xf32> to vector<8x64xbf16>
    %c1_67 = arith.constant 1 : index
    %c0_68 = arith.constant 0 : index
    %c0_69 = arith.constant 0 : index
    %234 = vector.load %arg7[%c1_67, %c0_68, %c0_69] : memref<2x64x2048xbf16, #tpu.memory_space<vmem>>, vector<1x64x2048xbf16>
    %235 = vector.shape_cast %234 : vector<1x64x2048xbf16> to vector<64x2048xbf16>
    %cst_70 = arith.constant dense<0.000000e+00> : vector<8x2048xf32>
    %236 = tpu.matmul %233, %235, %cst_70 {dimension_numbers = #tpu.dot_dimension_numbers<[1], [0], [0], [1], [0, 0, 1, 1], [], []>} : vector<8x64xbf16>, vector<64x2048xbf16>, vector<8x2048xf32> -> vector<8x2048xf32>
    %c14 = arith.constant 14 : index
    %c0_71 = arith.constant 0 : index
    %237 = vector.load %arg3[%c14, %c0_71] : memref<18x2048xf32, #tpu.memory_space<vmem>>, vector<1x2048xf32>
    %238 = vector.broadcast %237 : vector<1x2048xf32> to vector<8x2048xf32>
    %239 = arith.addf %236, %238 : vector<8x2048xf32>
    %cst_72 = arith.constant 0.000000e+00 : f32
    %240 = vector.broadcast %cst_72 : f32 to vector<8x2048xf32>
    %241 = arith.maximumf %239, %240 : vector<8x2048xf32>
    %242 = arith.truncf %241 : vector<8x2048xf32> to vector<8x2048xbf16>
    %c1_73 = arith.constant 1 : index
    %c0_74 = arith.constant 0 : index
    %c0_75 = arith.constant 0 : index
    %243 = vector.load %arg8[%c1_73, %c0_74, %c0_75] : memref<2x2048x64xbf16, #tpu.memory_space<vmem>>, vector<1x2048x64xbf16>
    %244 = vector.shape_cast %243 : vector<1x2048x64xbf16> to vector<2048x64xbf16>
    %cst_76 = arith.constant dense<0.000000e+00> : vector<8x64xf32>
    %245 = tpu.matmul %242, %244, %cst_76 {dimension_numbers = #tpu.dot_dimension_numbers<[1], [0], [0], [1], [0, 0, 1, 1], [], []>} : vector<8x2048xbf16>, vector<2048x64xbf16>, vector<8x64xf32> -> vector<8x64xf32>
    %c15 = arith.constant 15 : index
    %c0_77 = arith.constant 0 : index
    %246 = vector.load %arg3[%c15, %c0_77] : memref<18x2048xf32, #tpu.memory_space<vmem>>, vector<1x64xf32>
    %247 = vector.broadcast %246 : vector<1x64xf32> to vector<8x64xf32>
    %248 = arith.addf %245, %247 : vector<8x64xf32>
    %249 = arith.addf %232, %248 : vector<8x64xf32>
    %c16 = arith.constant 16 : index
    %c0_78 = arith.constant 0 : index
    %250 = vector.load %arg3[%c16, %c0_78] : memref<18x2048xf32, #tpu.memory_space<vmem>>, vector<1x64xf32>
    %c17 = arith.constant 17 : index
    %c0_79 = arith.constant 0 : index
    %251 = vector.load %arg3[%c17, %c0_79] : memref<18x2048xf32, #tpu.memory_space<vmem>>, vector<1x64xf32>
    %cst_80 = arith.constant dense<0.000000e+00> : vector<8xf32>
    %252 = vector.multi_reduction <add>, %249, %cst_80 [1] : vector<8x64xf32> to vector<8xf32>
    %253 = vector.shape_cast %252 : vector<8xf32> to vector<8x1xf32>
    %cst_81 = arith.constant 6.400000e+01 : f32
    %254 = vector.broadcast %cst_81 : f32 to vector<8x1xf32>
    %255 = arith.divf %253, %254 : vector<8x1xf32>
    %256 = vector.broadcast %255 : vector<8x1xf32> to vector<8x64xf32>
    %257 = arith.subf %249, %256 : vector<8x64xf32>
    %258 = arith.mulf %257, %257 : vector<8x64xf32>
    %cst_82 = arith.constant dense<0.000000e+00> : vector<8xf32>
    %259 = vector.multi_reduction <add>, %258, %cst_82 [1] : vector<8x64xf32> to vector<8xf32>
    %260 = vector.shape_cast %259 : vector<8xf32> to vector<8x1xf32>
    %cst_83 = arith.constant 6.400000e+01 : f32
    %261 = vector.broadcast %cst_83 : f32 to vector<8x1xf32>
    %262 = arith.divf %260, %261 : vector<8x1xf32>
    %263 = vector.broadcast %255 : vector<8x1xf32> to vector<8x64xf32>
    %264 = arith.subf %249, %263 : vector<8x64xf32>
    %cst_84 = arith.constant 9.99999974E-6 : f32
    %265 = vector.broadcast %cst_84 : f32 to vector<8x1xf32>
    %266 = arith.addf %262, %265 : vector<8x1xf32>
    %267 = math.rsqrt %266 : vector<8x1xf32>
    %268 = vector.broadcast %267 : vector<8x1xf32> to vector<8x64xf32>
    %269 = arith.mulf %264, %268 : vector<8x64xf32>
    %270 = vector.broadcast %250 : vector<1x64xf32> to vector<8x64xf32>
    %271 = arith.mulf %269, %270 : vector<8x64xf32>
    %272 = vector.broadcast %251 : vector<1x64xf32> to vector<8x64xf32>
    %273 = arith.addf %271, %272 : vector<8x64xf32>
    %274 = vector.shape_cast %273 : vector<8x64xf32> to vector<1x8x64xf32>
    %cst_85 = arith.constant dense<0.000000e+00> : vector<1x64xf32>
    %275 = vector.multi_reduction <add>, %274, %cst_85 [1] : vector<1x8x64xf32> to vector<1x64xf32>
    %cst_86 = arith.constant 8.000000e+00 : f32
    %276 = vector.broadcast %cst_86 : f32 to vector<1x64xf32>
    %277 = arith.divf %275, %276 : vector<1x64xf32>
    %278 = arith.truncf %277 : vector<1x64xf32> to vector<1x64xbf16>
    %c0_87 = arith.constant 0 : index
    %c0_88 = arith.constant 0 : index
    %279 = vector.load %arg9[%c0_87, %c0_88] : memref<64x128xbf16, #tpu.memory_space<vmem>>, vector<64x128xbf16>
    %cst_89 = arith.constant dense<0.000000e+00> : vector<1x128xf32>
    %280 = tpu.matmul %278, %279, %cst_89 {dimension_numbers = #tpu.dot_dimension_numbers<[1], [0], [0], [1], [0, 0, 1, 1], [], []>} : vector<1x64xbf16>, vector<64x128xbf16>, vector<1x128xf32> -> vector<1x128xf32>
    %c1_90 = arith.constant 1 : index
    %c0_91 = arith.constant 0 : index
    %281 = vector.load %arg3[%c1_90, %c0_91] : memref<18x2048xf32, #tpu.memory_space<vmem>>, vector<1x128xf32>
    %282 = arith.addf %280, %281 : vector<1x128xf32>
    %c0_92 = arith.constant 0 : index
    %c0_93 = arith.constant 0 : index
    %c0_94 = arith.constant 0 : index
    %283 = vector.load %arg10[%c0_92, %c0_93, %c0_94] : memref<1x1x128xf32, #tpu.memory_space<vmem>>, vector<1x1x128xf32>
    %284 = vector.shape_cast %283 : vector<1x1x128xf32> to vector<1x128xf32>
    %285 = vector.shape_cast %282 : vector<1x128xf32> to vector<1x1x128xf32>
    tpu.vector_store %arg10[%c0_92, %c0_93, %c0_94], %285 {strides = array<i32>} : memref<1x1x128xf32, #tpu.memory_space<vmem>>, vector<1x1x128xf32>,
    return
  }
  func.func @transform_0(%arg0: i32) -> (i32, i32, i32) {
    %c0_i32 = arith.constant 0 : i32
    %c0_i32_0 = arith.constant 0 : i32
    %c0_i32_1 = arith.constant 0 : i32
    return %arg0, %c0_i32, %c0_i32_0 : i32, i32, i32
  }
  func.func @transform_1(%arg0: i32) -> (i32, i32) {
    %c0_i32 = arith.constant 0 : i32
    %c0_i32_0 = arith.constant 0 : i32
    %c0_i32_1 = arith.constant 0 : i32
    return %c0_i32, %c0_i32_0 : i32, i32
  }
  func.func @transform_2(%arg0: i32) -> (i32, i32) {
    %c0_i32 = arith.constant 0 : i32
    %c0_i32_0 = arith.constant 0 : i32
    %c0_i32_1 = arith.constant 0 : i32
    return %c0_i32, %c0_i32_0 : i32, i32
  }
  func.func @transform_3(%arg0: i32) -> (i32, i32) {
    %c0_i32 = arith.constant 0 : i32
    %c0_i32_0 = arith.constant 0 : i32
    %c0_i32_1 = arith.constant 0 : i32
    return %c0_i32, %c0_i32_0 : i32, i32
  }
  func.func @transform_4(%arg0: i32) -> (i32, i32, i32) {
    %c0_i32 = arith.constant 0 : i32
    %c0_i32_0 = arith.constant 0 : i32
    %c0_i32_1 = arith.constant 0 : i32
    %c0_i32_2 = arith.constant 0 : i32
    return %c0_i32, %c0_i32_0, %c0_i32_1 : i32, i32, i32
  }
  func.func @transform_5(%arg0: i32) -> (i32, i32, i32) {
    %c0_i32 = arith.constant 0 : i32
    %c0_i32_0 = arith.constant 0 : i32
    %c0_i32_1 = arith.constant 0 : i32
    %c0_i32_2 = arith.constant 0 : i32
    return %c0_i32, %c0_i32_0, %c0_i32_1 : i32, i32, i32
  }
  func.func @transform_6(%arg0: i32) -> (i32, i32, i32) {
    %c0_i32 = arith.constant 0 : i32
    %c0_i32_0 = arith.constant 0 : i32
    %c0_i32_1 = arith.constant 0 : i32
    %c0_i32_2 = arith.constant 0 : i32
    return %c0_i32, %c0_i32_0, %c0_i32_1 : i32, i32, i32
  }
  func.func @transform_7(%arg0: i32) -> (i32, i32, i32) {
    %c0_i32 = arith.constant 0 : i32
    %c0_i32_0 = arith.constant 0 : i32
    %c0_i32_1 = arith.constant 0 : i32
    %c0_i32_2 = arith.constant 0 : i32
    return %c0_i32, %c0_i32_0, %c0_i32_1 : i32, i32, i32
  }
  func.func @transform_8(%arg0: i32) -> (i32, i32) {
    %c0_i32 = arith.constant 0 : i32
    %c0_i32_0 = arith.constant 0 : i32
    %c0_i32_1 = arith.constant 0 : i32
    return %c0_i32, %c0_i32_0 : i32, i32
  }
  func.func @transform_9(%arg0: i32) -> (i32, i32, i32) {
    %c0_i32 = arith.constant 0 : i32
    %c0_i32_0 = arith.constant 0 : i32
    %c0_i32_1 = arith.constant 0 : i32
    return %arg0, %c0_i32, %c0_i32_0 : i32, i32, i32
  }
}

</mosaic_0001>

<bundles_post_ra>
// kernel: tpu_custom_call.1
= control target key start
LH: loop header
LB: loop body
LE: loop exit
PB: predicated region body
PF: predicated region fallthrough
CT: control target
= control target key end

     0   :  { %14 = vsyncpa [#allocation3], 0  ;;  %s9944_s0 = inlined_call_operand.vmem [shape: f32[2,8,8], index: 0, kind: input, shape index: {}]   ;;  %s9945_s1 = inlined_call_operand.vmem [shape: f32[8,64], index: 1, kind: input, shape index: {}]   ;;  %s9946_s2 = inlined_call_operand.vmem [shape: f32[18,2048], index: 2, kind: input, shape index: {}]   ;;  %s9947_s3 = inlined_call_operand.vmem [shape: bf16[8,64], index: 3, kind: input, shape index: {}]   ;;  %s9948_s4 = inlined_call_operand.vmem [shape: bf16[2,64,192], index: 4, kind: input, shape index: {}]   ;;  %s9949_s5 = inlined_call_operand.vmem [shape: bf16[2,64,64], index: 5, kind: input, shape index: {}]   ;;  %s9950_s6 = inlined_call_operand.vmem [shape: bf16[2,64,2048], index: 6, kind: input, shape index: {}]   ;;  %s9951_s7 = inlined_call_operand.vmem [shape: bf16[2,2048,64], index: 7, kind: input, shape index: {}]   ;;  %s9952_s8 = inlined_call_operand.vmem [shape: bf16[64,128], index: 8, kind: input, shape index: {}]   ;;  %s9953_s9 = inlined_call_operand.hbm [shape: f32[2,1,128], index: 9, kind: output, shape index: {}]  }
   0x1   :  { %16 = vsyncpa [#allocation3 + $0x1], 0  ;;  %s8141_s30 = smov 0   ;;  %s8143_s10 = smov 0  }
   0x2   :  { %s8145_s11 = smov 0   ;;  %s8147_s12 = smov 0  }
   0x3 LB: > { %s8162_s13 = sadd.s32 4294967295, %s8078_s12   ;;  %s6292_s14 = sadd.s32 4294967294, %s8078_s12   ;;  %s8078_s12 = sphi %s8147_s12, %s9971_s12   ;;  %s8074_s11 = sphi %s8145_s11, %s9970_s11   ;;  %s8070_s10 = sphi %s8143_s10, %s9969_s10   ;;  %s8066_s30 = sphi %s8141_s30, %s9968_s30  }
   0x4   : > { %s8166_s15 = sadd.s32 1, %s8078_s12   ;;  %s223_s16 = sadd.s32 1, %s8074_s11 }
   0x5   : > { %s220_s17 = ssub.s32 %s8078_s12, %s8166_s15  ;;  %p233_p0 = scmp.ne.s32.totalorder %s8074_s11, %s8070_s10 }
   0x6   : > { %p221_p1 = scmp.eq.s32.totalorder %s220_s17, 0  ;;  %p234_p2 = scmp.eq.s32.totalorder %s8162_s13, 1 }
   0x7   : > { %p239_p3 = scmp.ne.s32.totalorder %s8070_s10, %s8066_s30  ;;  %p240_p4 = scmp.eq.s32.totalorder %s6292_s14, 1 }
   0x8   : > { %s8177_s18 = scalar_select %p221_p1, %s8074_s11, %s223_s16  }
   0x9   : > { %p8179_p5 = por %p234_p2, %p233_p0  ;;  %p8183_p6 = por %p240_p4, %p239_p3 }
   0xa   : > { %p6295_p7 = scmp.ge.s32.totalorder %s8078_s12, 1  ;;  %p289_p8 = scmp.lt.s32.totalorder %s8078_s12, 3 }
   0xc   : > { %p290_p9 = pnand %p6295_p7, %p289_p8 }
   0xd   : > { %v330_v0 = vld [vmem:[%s9947_s3] sm:$0xf] (!%p290_p9)  ;;  %vm336_vm0 = vcmask (!%p290_p9), 1043456   ;;  %p323_p10 = scmp.lt.s32.totalorder (!%p290_p9), %s8162_s13, 1  ;;  %v8080_v1 = vmov (!%p290_p9), 0.0   ;;  %vm8081_vm1 = vmmov (!%p290_p9), 0   ;;  %v394_v23 = vlaneseq (!%p290_p9) }
   0xe   : > { %293 = sbr.rel (%p290_p9) target bundleno = 5940 (0x1734), region = 56  ;;  %7497 = vmatprep.subr.bf16.mxu0 (!%p290_p9), %v8080_v1  ;;  %v338_v2 = vsel (!%p290_p9), %vm336_vm0, %v330_v0, 0  ;;  %7499 = vmatprep.mubr.msk.bf16.mxu0 (!%p290_p9), %vm8081_vm1, %v8080_v1  ;;  %v7684_v3 = vld [vmem:[%s9948_s4 + $0x4] ss:$8 sps:$4 sm:$0xff] (!%p290_p9)   ;;  %v7686_v4 = vld [vmem:[%s9948_s4] ss:$8 sps:$4 sm:$0xff] (!%p290_p9)  }
   0xf   : > { %7498 = vmatpush3.bf16.msra.mxu0 (!%p290_p9), %v338_v2  ;;  %448 = vmatprep.subr.bf16.mxu1 (!%p290_p9), %v7684_v3  ;;  %v7687_v5 = vld [vmem:[%s9948_s4 + $0x14] ss:$8 sps:$4 sm:$0xff] (!%p290_p9)   ;;  %v7689_v6 = vld [vmem:[%s9948_s4 + $0x10] ss:$8 sps:$4 sm:$0xff] (!%p290_p9)   ;;  %v7690_v7 = vld [vmem:[%s9948_s4 + $0x24] ss:$8 sps:$4 sm:$0xff] (!%p290_p9)  }
  0x10   : > { %7503 = vmatprep.subr.bf16.mxu0 (!%p290_p9), %v8080_v1  ;;  %449 = vmatpush1.bf16.msra.mxu1 (!%p290_p9), %v7686_v4  ;;  %vm332_vm2 = vcmask (!%p290_p9), 64512   ;;  %v7692_v10 = vld [vmem:[%s9948_s4 + $0x20] ss:$8 sps:$4 sm:$0xff] (!%p290_p9)   ;;  %v7693_v11 = vld [vmem:[%s9948_s4 + $0x34] ss:$8 sps:$4 sm:$0xff] (!%p290_p9)   ;;  %v8082_v13 = vmov (!%p290_p9), 0  }
  0x11   : > { %450 = vmatprep.subr.bf16.mxu1 (!%p290_p9), %v7687_v5  ;;  %v7695_v12 = vld [vmem:[%s9948_s4 + $0x30] ss:$8 sps:$4 sm:$0xff] (!%p290_p9)   ;;  %480 = vmatprep.mubr.bf16.mxu1 (!%p290_p9), %v8082_v13  ;;  %v331_v14 = vld [vmem:[%s9946_s2] ss:$0 sm:$0xff] (!%p290_p9)  ;;  %vm444_vm3 = vcmask (!%p290_p9), 523264   ;;  %v8244_v24 = vshrl.u32 (!%p290_p9), %v394_v23, 7 }
  0x12   : > { %v380_v16 = vld [vmem:[%s9945_s1] sm:$0xff] (!%p290_p9)  ;;  %s8084_s27 = smov (!%p290_p9), 112   ;;  %s8085_s28 = smov (!%p290_p9), 96   ;;  %vm520_vm4 = vcmask (!%p290_p9), 130048   ;;  %vm959_vm5 = vcmask (!%p290_p9), 261120   ;;  %vm961_vm6 = vcmask (!%p290_p9), 392192  }
  0x13   : > { %v8247_v25 = vsub.s32 (!%p290_p9), 0, %v8244_v24  ;;  %v6298_v26 = vld [vmem:[%s9946_s2 + $0x2] ss:$8 sm:$0x3] (!%p290_p9)  ;;  %s9957_s29 = smov (!%p290_p9), 64   ;;  %v8266_v42 = vsub.s32 (!%p290_p9), 1, %v8244_v24 }
  0x14   : > { %451 = vmatpush1.bf16.msra.mxu1 (!%p290_p9), %v7689_v6  ;;  %s9956_s24 = smov (!%p290_p9), 16   ;;  %s9954_s17 = smov (!%p290_p9), 48  }
  0x15   : > { %s324_s25 = scalar_select %p323_p10, %s8162_s13, 1  ;;  %452 = vmatprep.subr.bf16.mxu1 %v7690_v7  ;;  %v397_v27 = vrot.slane %v6298_v26, %v8247_v25  ;;  %v401_v44 = vrot.slane %v6298_v26, %v8266_v42 }
  0x16   : > { %s9963_s23 = smov 80   ;;  %s321_s21 = sand.u32 1, %s8070_s10  }
  0x17   : > { %s6296_s14 = sshll.u32 %s324_s25, 3  ;;  %s9959_s25 = smov 80  }
  0x18   : > { %s326_s26 = scalar_lea.vmem %s9944_s0, %s6296_s14  ;;  %453 = vmatpush1.bf16.msra.mxu1 %v7692_v10  ;;  %s9964_s14 = smov 64  }
  0x19   : > { %v328_v8 = vld [vmem:[%s326_s26] sm:$0xff]  ;;  %454 = vmatprep.subr.bf16.mxu1 %v7693_v11  ;;  %s9955_s26 = smov 32  }
  0x1a   : > { %v329_v9 = vpack.c.bf16 %v328_v8, %v328_v8 }
  0x1c   : > { %7500 = vmatmul.mubr.msk.bf16.vlgmr.msra.gmra.mrb[0].mxu0 %vm332_vm2, %v329_v9  ;;  %455 = vmatpush1.bf16.msra.mxu1 %v7695_v12 }
  0x1d   : > { %7505 = vmatprep.mubr.msk.bf16.mxu0 %vm8081_vm1, %v8080_v1  ;;  %7515 = vmatprep.subr.bf16.mxu1 %v8080_v1 }
  0xef   : > { %v374_v15 = vpop.f32.mrb[0].mxu0 }
  0xf0   : > { %v375_v17 = vadd.f32 %v374_v15, %v331_v14  ;;  %v7501_v18 = vpop.f32.mrb[1].mxu0 }
  0xf1   : > { %v377_v19 = vpop.f32.mrb[2].mxu0 }
  0xf2   : > { %v8237_v20 = vadd.f32 %v380_v16, %v375_v17  ;;  %v7502_v21 = vpop.f32.mrb[3].mxu0 }
  0xf4   : > { %v382_v22 = vpack.c.bf16 %v8237_v20, %v8237_v20 }
  0xf6   : > { %6307 = vmatmul.mubr.msk.bf16.vlgmr.msra.gmra.mrb[0].mxu1 %vm444_vm3, %v382_v22 }
  0xf7   : > { %7517 = vmatprep.mubr.msk.bf16.mxu1 %vm8081_vm1, %v8080_v1 }
 0x1c9   : > { %v482_v28 = vpop.f32.mrb[0].mxu1 }
 0x1ca   : > { %v483_v29 = vadd.f32 %v482_v28, %v397_v27  ;;  %v484_v30 = vpop.f32.mrb[1].mxu1 }
 0x1cb   : > { %v486_v31 = vpop.f32.mrb[2].mxu1  ;;  %v8271_v47 = vadd.f32 %v484_v30, %v401_v44 }
 0x1cc   : > { %v487_v32 = vpop.f32.mrb[3].mxu1  ;;  %496 = vrot.lane.b32.xlu1 %v483_v29, %s9959_s25  ;;  %490 = vrot.lane.b32.xlu0 %v483_v29, %s8084_s27  ;;  %v499_v33 = vpack.c.bf16 %v483_v29, %v483_v29 }
 0x1cd   : > { %v513_v51 = vpack.c.bf16 %v8271_v47, %v8271_v47 }
 0x1cf   : > { %v766_v52 = vsel %vm336_vm0, %v513_v51, 0 }
 0x1d0   : > { %493 = vrot.lane.b32.xlu0 %v483_v29, %s8085_s28  ;;  %518 = vrot.lane.b32.xlu1 %v499_v33, %s9957_s29 }
 0x23e   : > { %v497_v34 = vpop.permute.xlu1 %496  ;;  %v491_v35 = vpop.permute.xlu0 %490 }
 0x23f   : > { %v500_v36 = vpack.c.bf16 %v491_v35, %v491_v35  ;;  %v502_v39 = vpack.c.bf16 %v497_v34, %v497_v34 }
 0x241   : > { %568 = vrot.lane.b32.xlu0 %v500_v36, %s9957_s29 }
 0x242   : > { %v494_v37 = vpop.permute.xlu0 %493  ;;  %v519_v38 = vpop.permute.xlu1 %518 }
 0x243   : > { %v501_v40 = vpack.c.bf16 %v494_v37, %v494_v37  ;;  %v525_v41 = vsel %vm520_vm4, %v519_v38, 0 }
 0x244   : > { %7504 = vmatpush3.bf16.xpose.msra.mxu0 %v525_v41 }
 0x245   : > { %666 = vrot.lane.b32.xlu0 %v502_v39, %s9957_s29  ;;  %617 = vrot.lane.b32.xlu1 %v501_v40, %s9957_s29  ;;  %s322_s29 = scalar_lea.vmem [#allocation2], %s321_s21 }
 0x246   : > { %7509 = vmatprep.subr.bf16.mxu0 %v8080_v1 }
 0x24b   : > { %7506 = vmatmul.mubr.msk.bf16.vlgmr.msra.gmra.mrb[4].mxu0 %vm520_vm4, %v499_v33 }
 0x24c   : > { %7511 = vmatprep.mubr.msk.bf16.mxu0 %vm8081_vm1, %v8080_v1 }
 0x2b3   : > { %v569_v43 = vpop.permute.xlu0 %568 }
 0x2b4   : > { %v574_v45 = vsel %vm520_vm4, %v569_v43, 0 }
 0x2b5   : > { %7510 = vmatpush3.bf16.xpose.msra.mxu0 %v574_v45 }
 0x2b6   : > { %7521 = vmatprep.subr.bf16.mxu0 %v8080_v1 }
 0x2b7   : > { %v618_v46 = vpop.permute.xlu1 %617  ;;  %v667_v49 = vpop.permute.xlu0 %666 }
 0x2b8   : > { %v623_v48 = vsel %vm520_vm4, %v618_v46, 0  ;;  %v672_v50 = vsel %vm520_vm4, %v667_v49, 0 }
 0x2b9   : > { %7516 = vmatpush3.bf16.xpose.msra.mxu1 %v623_v48 }
 0x2ba   : > { %7527 = vmatprep.subr.bf16.mxu1 %v8080_v1 }
 0x2bc   : > { %7512 = vmatmul.mubr.msk.bf16.vlgmr.msra.gmra.mrb[8].mxu0 %vm520_vm4, %v500_v36 }
 0x2bd   : > { %7522 = vmatpush3.bf16.xpose.msra.mxu0 %v672_v50  ;;  %7523 = vmatprep.mubr.msk.bf16.mxu0 %vm8081_vm1, %v8080_v1 }
 0x2be   : > { %7533 = vmatprep.subr.bf16.mxu0 %v8080_v1 }
 0x2c0   : > { %7518 = vmatmul.mubr.msk.bf16.vlgmr.msra.gmra.mrb[4].mxu1 %vm520_vm4, %v501_v40 }
 0x2c1   : > { %7528 = vmatpush3.bf16.msra.mxu1 %v766_v52  ;;  %7529 = vmatprep.mubr.msk.bf16.mxu1 %vm8081_vm1, %v8080_v1 }
 0x2c2   : > { %7539 = vmatprep.subr.bf16.mxu1 %v8080_v1 }
 0x2c4   : > { %7524 = vmatmul.mubr.msk.bf16.vlgmr.msra.gmra.mrb[12].mxu0 %vm520_vm4, %v502_v39 }
 0x2c5   : > { %7535 = vmatprep.mubr.msk.bf16.mxu0 %vm8081_vm1, %v8080_v1 }
 0x31e   : > { %v561_v53 = vpop.f32.mrb[4].mxu0 }
 0x31f   : > { %v7507_v54 = vpop.f32.mrb[5].mxu0  ;;  %v714_v55 = vsel %vm332_vm2, %v561_v53, -inf }
 0x320   : > { %715 = vmax.xlane.f32.xlu1 %v714_v55  ;;  %v564_v56 = vpop.f32.mrb[6].mxu0 }
 0x321   : > { %v7508_v57 = vpop.f32.mrb[7].mxu0 }
 0x38f   : > { %v610_v58 = vpop.f32.mrb[8].mxu0 }
 0x390   : > { %v7513_v59 = vpop.f32.mrb[9].mxu0  ;;  %v717_v60 = vsel %vm332_vm2, %v610_v58, -inf }
 0x391   : > { %718 = vmax.xlane.f32.xlu0 %v717_v60  ;;  %v613_v61 = vpop.f32.mrb[10].mxu0 }
 0x392   : > { %v7514_v62 = vpop.f32.mrb[11].mxu0 }
 0x393   : > { %v659_v63 = vpop.f32.mrb[4].mxu1 }
 0x394   : > { %v7519_v0 = vpop.f32.mrb[5].mxu1  ;;  %v720_v2 = vsel %vm332_vm2, %v659_v63, -inf }
 0x395   : > { %v662_v3 = vpop.f32.mrb[6].mxu1  ;;  %721 = vmax.xlane.f32.xlu0 %v720_v2  ;;  %v7696_v0 = vld [vmem:[%s9949_s5] sm:$0xff]   ;;  %v7697_v2 = vld [vmem:[%s9949_s5 + $0x8] sm:$0xff]  }
 0x396   : > { %v7520_v4 = vpop.f32.mrb[7].mxu1  ;;  %v7698_v3 = vld [vmem:[%s9949_s5 + $0x10] sm:$0xff]  }
 0x397   : > { %v708_v5 = vpop.f32.mrb[12].mxu0 }
 0x398   : > { %v7525_v6 = vpop.f32.mrb[13].mxu0  ;;  %v723_v7 = vsel %vm332_vm2, %v708_v5, -inf }
 0x399   : > { %724 = vmax.xlane.f32.xlu1 %v723_v7  ;;  %v711_v8 = vpop.f32.mrb[14].mxu0 }
 0x39a   : > { %v7526_v9 = vpop.f32.mrb[15].mxu0 }
 0x3ad   : > { %v716_v10 = vpop.xlane.xlu1 %715 }
 0x3ae   : > { %v726_v11 = vsub.f32 %v561_v53, %v716_v10 }
 0x3b0   : > { %v730_v12 = vmul.f32 1.442695, %v726_v11 }
 0x3b2   : > { %7976 = vpow2.f32 %v730_v12  ;;  %v7699_v12 = vld [vmem:[%s9949_s5 + $0x18] sm:$0xff]  }
 0x3bc   : > { %v7977_v14 = vpop.eup %7976 }
 0x3bd   : > { %v738_v15 = vsel %vm332_vm2, %v7977_v14, 0.0 }
 0x3be   : > { %739 = vadd.xlane.f32.xlu0 %v738_v15 }
 0x41e   : > { %v719_v16 = vpop.xlane.xlu0 %718 }
 0x41f   : > { %v727_v17 = vsub.f32 %v610_v58, %v719_v16 }
 0x421   : > { %v732_v18 = vmul.f32 1.442695, %v727_v17 }
 0x422   : > { %v722_v19 = vpop.xlane.xlu0 %721 }
 0x423   : > { %7978 = vpow2.f32 %v732_v18  ;;  %v728_v21 = vsub.f32 %v659_v63, %v722_v19 }
 0x425   : > { %v734_v22 = vmul.f32 1.442695, %v728_v21 }
 0x426   : > { %v725_v29 = vpop.xlane.xlu1 %724 }
 0x427   : > { %7980 = vpow2.f32 %v734_v22  ;;  %v729_v31 = vsub.f32 %v708_v5, %v725_v29 }
 0x429   : > { %v736_v32 = vmul.f32 1.442695, %v729_v31 }
 0x42d   : > { %v7979_v23 = vpop.eup %7978 }
 0x42e   : > { %v741_v26 = vsel %vm332_vm2, %v7979_v23, 0.0 }
 0x42f   : > { %742 = vadd.xlane.f32.xlu1 %v741_v26 }
 0x431   : > { %v7981_v27 = vpop.eup %7980 }
 0x432   : > { %v744_v28 = vsel %vm332_vm2, %v7981_v27, 0.0 }
 0x433   : > { %745 = vadd.xlane.f32.xlu0 %v744_v28  ;;  %v972_v28 = vld [vmem:[%s9946_s2 + $0x3] ss:$0 sm:$0xff] }
 0x440   : > { %507 = vrot.lane.b32.xlu1 %v8271_v47, %s8085_s28 }
 0x449   : > { %504 = vrot.lane.b32.xlu0 %v8271_v47, %s8084_s27 }
 0x44b   : > { %v740_v30 = vpop.xlane.xlu0 %739 }
 0x44c   : > { %7982 = vrcp.f32 %v740_v30 }
 0x44d   : > { %7984 = vpow2.f32 %v736_v32 }
 0x456   : > { %v7983_v33 = vpop.eup %7982 }
 0x457   : > { %v754_v34 = vmul.f32 %v7983_v33, %v7977_v14  ;;  %v7985_v36 = vpop.eup %7984 }
 0x458   : > { %v747_v37 = vsel %vm332_vm2, %v7985_v36, 0.0 }
 0x459   : > { %v758_v35 = vpack.c.bf16 %v754_v34, %v754_v34 }
 0x45b   : > { %7530 = vmatmul.mubr.msk.bf16.vlgmr.msra.gmra.mrb[8].mxu1 %vm332_vm2, %v758_v35 }
 0x45c   : > { %7541 = vmatprep.mubr.msk.bf16.mxu1 %vm8081_vm1, %v8080_v1 }
 0x464   : > { %748 = vadd.xlane.f32.xlu1 %v747_v37 }
 0x475   : > { %510 = vrot.lane.b32.xlu1 %v8271_v47, %s9959_s25  ;;  %s7093_s25 = sshll.u32 %s8162_s13, 4 }
 0x4bc   : > { %v743_v38 = vpop.xlane.xlu1 %742 }
 0x4bd   : > { %7986 = vrcp.f32 %v743_v38 }
 0x4c0   : > { %v746_v39 = vpop.xlane.xlu0 %745  ;;  %v508_v40 = vpop.permute.xlu1 %507 }
 0x4c1   : > { %7988 = vrcp.f32 %v746_v39  ;;  %v515_v41 = vpack.c.bf16 %v508_v40, %v508_v40 }
 0x4c3   : > { %v858_v43 = vsel %vm336_vm0, %v515_v41, 0  ;;  %v1060_v41 = vld [vmem:[%s9950_s6] sm:$0xff] }
 0x4c4   : > { %v505_v44 = vpop.permute.xlu0 %504  ;;  %7540 = vmatpush3.bf16.msra.mxu1 %v858_v43  ;;  %v1061_v43 = vld [vmem:[%s9950_s6 + $0x8] sm:$0xff] }
 0x4c5   : > { %v514_v45 = vpack.c.bf16 %v505_v44, %v505_v44  ;;  %7551 = vmatprep.subr.bf16.mxu1 %v8080_v1 }
 0x4c7   : > { %v7987_v46 = vpop.eup %7986  ;;  %v812_v48 = vsel %vm336_vm0, %v514_v45, 0  ;;  %v1069_v45 = vld [vmem:[%s9950_s6 + $0x48] sm:$0xff] }
 0x4c8   : > { %v755_v49 = vmul.f32 %v7987_v46, %v7979_v23  ;;  %7534 = vmatpush3.bf16.msra.mxu0 %v812_v48  ;;  %v6327_v48 = vcombine.low %v1061_v43, %v1069_v45 }
 0x4c9   : > { %7545 = vmatprep.subr.bf16.mxu0 %v8080_v1 }
 0x4ca   : > { %v759_v47 = vpack.c.bf16 %v755_v49, %v755_v49  ;;  %v6328_v49 = vcombine.high %v1061_v43, %v1069_v45 }
 0x4cb   : > { %v7989_v50 = vpop.eup %7988 }
 0x4cc   : > { %v756_v51 = vmul.f32 %v7989_v50, %v7981_v27  ;;  %7536 = vmatmul.mubr.msk.bf16.vlgmr.msra.gmra.mrb[16].mxu0 %vm332_vm2, %v759_v47  ;;  %v1076_v47 = vld [vmem:[%s9950_s6 + $0x80] sm:$0xff] }
 0x4cd   : > { %7547 = vmatprep.mubr.msk.bf16.mxu0 %vm8081_vm1, %v8080_v1  ;;  %v1084_v50 = vld [vmem:[%s9950_s6 + $0xc0] sm:$0xff] }
 0x4ce   : > { %v760_v52 = vpack.c.bf16 %v756_v51, %v756_v51  ;;  %v1077_v51 = vld [vmem:[%s9950_s6 + $0x88] sm:$0xff] }
 0x4d0   : > { %7542 = vmatmul.mubr.msk.bf16.vlgmr.msra.gmra.mrb[12].mxu1 %vm332_vm2, %v760_v52  ;;  %v6342_v52 = vcombine.high %v1076_v47, %v1084_v50 }
 0x4d1   : > { %7559 = vmatprep.mubr.msk.bf16.mxu1 %vm8081_vm1, %v8080_v1  ;;  %7552 = vmatpush3.bf16.msra.mxu1 %v7696_v0 }
 0x4d2   : > { %7553 = vmatprep.subr.bf16.mxu1 %v8080_v1 }
 0x4d5   : > { %7554 = vmatpush3.bf16.msra.mxu1 %v7697_v2  ;;  %v1108_v2 = vld [vmem:[%s9950_s6 + $0x180] sm:$0xff] }
 0x4d6   : > { %7555 = vmatprep.subr.bf16.mxu1 %v8080_v1 }
 0x4d9   : > { %7556 = vmatpush3.bf16.msra.mxu1 %v7698_v3  ;;  %v1116_v3 = vld [vmem:[%s9950_s6 + $0x1c0] sm:$0xff] }
 0x4da   : > { %7557 = vmatprep.subr.bf16.mxu1 %v8080_v1 }
 0x4dd   : > { %7558 = vmatpush3.bf16.msra.mxu1 %v7699_v12  ;;  %v1063_v12 = vld [vmem:[%s9950_s6 + $0x18] sm:$0xff] }
 0x4de   : > { %1578 = vmatprep.subr.bf16.mxu1 %v6328_v49  ;;  %v1111_v49 = vld [vmem:[%s9950_s6 + $0x198] sm:$0xff] }
 0x4f1   : > { %v749_v53 = vpop.xlane.xlu1 %748 }
 0x4f2   : > { %7990 = vrcp.f32 %v749_v53  ;;  %v1085_v53 = vld [vmem:[%s9950_s6 + $0xc8] sm:$0xff] }
 0x4f5   : > { %v511_v54 = vpop.permute.xlu1 %510 }
 0x4f6   : > { %v516_v55 = vpack.c.bf16 %v511_v54, %v511_v54  ;;  %v6341_v54 = vcombine.low %v1076_v47, %v1084_v50  ;;  %v1119_v47 = vld [vmem:[%s9950_s6 + $0x1d8] sm:$0xff] }
 0x4f8   : > { %v904_v56 = vsel %vm336_vm0, %v516_v55, 0  ;;  %v6343_v55 = vcombine.low %v1077_v51, %v1085_v53 }
 0x4f9   : > { %7546 = vmatpush3.bf16.msra.mxu0 %v904_v56  ;;  %v6344_v56 = vcombine.high %v1077_v51, %v1085_v53  ;;  %v6380_v53 = vcombine.high %v1111_v49, %v1119_v47 }
 0x4fc   : > { %v7991_v57 = vpop.eup %7990 }
 0x4fd   : > { %v757_v58 = vmul.f32 %v7991_v57, %v7985_v36  ;;  %v1092_v57 = vld [vmem:[%s9950_s6 + $0x100] sm:$0xff] }
 0x4ff   : > { %v761_v59 = vpack.c.bf16 %v757_v58, %v757_v58  ;;  %v1100_v58 = vld [vmem:[%s9950_s6 + $0x140] sm:$0xff] }
 0x501   : > { %7548 = vmatmul.mubr.msk.bf16.vlgmr.msra.gmra.mrb[20].mxu0 %vm332_vm2, %v761_v59  ;;  %v1093_v59 = vld [vmem:[%s9950_s6 + $0x108] sm:$0xff] }
 0x502   : > { %1569 = vmatprep.mubr.bf16.mxu0 %v8082_v13 }
 0x52e   : > { %v802_v60 = vpop.f32.mrb[8].mxu1 }
 0x52f   : > { %v7531_v61 = vpop.f32.mrb[9].mxu1 }
 0x530   : > { %v805_v62 = vpop.f32.mrb[10].mxu1  ;;  %v1101_v61 = vld [vmem:[%s9950_s6 + $0x148] sm:$0xff] }
 0x531   : > { %v7532_v63 = vpop.f32.mrb[11].mxu1  ;;  %v6357_v62 = vcombine.low %v1092_v57, %v1100_v58  ;;  %v6360_v0 = vcombine.high %v1093_v59, %v1101_v61 }
 0x532   : > { %v6359_v63 = vcombine.low %v1093_v59, %v1101_v61  ;;  %v6379_v59 = vcombine.low %v1111_v49, %v1119_v47  ;;  %v1107_v49 = vld [vmem:[%s9950_s6 + $0x178] sm:$0xff] }
 0x59f   : > { %v848_v4 = vpop.f32.mrb[16].mxu0 }
 0x5a0   : > { %947 = vrot.lane.b32.xlu0 %v848_v4, %s9956_s24  ;;  %v7537_v5 = vpop.f32.mrb[17].mxu0  ;;  %v1109_v4 = vld [vmem:[%s9950_s6 + $0x188] sm:$0xff]  ;;  %s9965_s24 = smov 16  }
 0x5a1   : > { %v851_v6 = vpop.f32.mrb[18].mxu0  ;;  %v6374_v5 = vcombine.high %v1108_v2, %v1116_v3 }
 0x5a2   : > { %v7538_v7 = vpop.f32.mrb[19].mxu0  ;;  %v1117_v6 = vld [vmem:[%s9950_s6 + $0x1c8] sm:$0xff] }
 0x5a3   : > { %v894_v8 = vpop.f32.mrb[12].mxu1  ;;  %v6373_v7 = vcombine.low %v1108_v2, %v1116_v3  ;;  %v1089_v2 = vld [vmem:[%s9950_s6 + $0xe8] sm:$0xff] }
 0x5a4   : > { %951 = vrot.lane.b32.xlu1 %v894_v8, %s9955_s26  ;;  %v7543_v9 = vpop.f32.mrb[13].mxu1  ;;  %v6375_v8 = vcombine.low %v1109_v4, %v1117_v6  ;;  %s9966_s26 = smov 32  }
 0x5a5   : > { %v897_v10 = vpop.f32.mrb[14].mxu1  ;;  %v6376_v9 = vcombine.high %v1109_v4, %v1117_v6 }
 0x5a6   : > { %v7544_v11 = vpop.f32.mrb[15].mxu1  ;;  %v1062_v10 = vld [vmem:[%s9950_s6 + $0x10] sm:$0xff] }
 0x5a7   : > { %v1070_v11 = vld [vmem:[%s9950_s6 + $0x50] sm:$0xff] }
 0x5d4   : > { %v940_v14 = vpop.f32.mrb[20].mxu0 }
 0x5d5   : > { %955 = vrot.lane.b32.xlu0 %v940_v14, %s9954_s17  ;;  %v7549_v15 = vpop.f32.mrb[21].mxu0  ;;  %v6330_v14 = vcombine.high %v1062_v10, %v1070_v11 }
 0x5d6   : > { %v943_v16 = vpop.f32.mrb[22].mxu0  ;;  %v1071_v15 = vld [vmem:[%s9950_s6 + $0x58] sm:$0xff] }
 0x5d7   : > { %v7550_v17 = vpop.f32.mrb[23].mxu0  ;;  %v6329_v16 = vcombine.low %v1062_v10, %v1070_v11  ;;  %v1105_v10 = vld [vmem:[%s9950_s6 + $0x168] sm:$0xff] }
 0x5d8   : > { %v6331_v17 = vcombine.low %v1063_v12, %v1071_v15 }
 0x612   : > { %v948_v18 = vpop.permute.xlu0 %947 }
 0x613   : > { %v958_v21 = vsel %vm520_vm4, %v802_v60, %v948_v18  ;;  %v6358_v60 = vcombine.high %v1092_v57, %v1100_v58  ;;  %v6332_v18 = vcombine.high %v1063_v12, %v1071_v15  ;;  %v1073_v57 = vld [vmem:[%s9950_s6 + $0x68] sm:$0xff] }
 0x616   : > { %v952_v19 = vpop.permute.xlu1 %951 }
 0x617   : > { %v960_v22 = vsel %vm959_vm5, %v958_v21, %v952_v19 }
 0x647   : > { %v956_v23 = vpop.permute.xlu0 %955 }
 0x648   : > { %v962_v26 = vsel %vm961_vm6, %v960_v22, %v956_v23 }
 0x649   : > { %v963_v27 = vpack.c.bf16 %v962_v26, %v962_v26  ;;  %v1041_v26 = vld [vmem:[%s9946_s2 + $0x4] ss:$0 sm:$0xff] }
 0x64b   : > { %7560 = vmatmul.mubr.msk.bf16.vlgmr.msra.gmra.mrb[16].mxu1 %vm444_vm3, %v963_v27 }
 0x64c   : > { %1610 = vmatprep.mubr.bf16.mxu1 %v8082_v13  ;;  %1579 = vmatpush1.bf16.msra.mxu1 %v6327_v48  ;;  %v1118_v48 = vld [vmem:[%s9950_s6 + $0x1d0] sm:$0xff] }
 0x64d   : > { %1580 = vmatprep.subr.bf16.mxu1 %v6344_v56  ;;  %v1065_v56 = vld [vmem:[%s9950_s6 + $0x28] sm:$0xff] }
 0x64e   : > { %v6336_v61 = vcombine.high %v1065_v56, %v1073_v57  ;;  %v6335_v4 = vcombine.low %v1065_v56, %v1073_v57  ;;  %v1123_v56 = vld [vmem:[%s9950_s6 + $0x1f8] sm:$0xff] }
 0x650   : > { %1581 = vmatpush1.bf16.msra.mxu1 %v6343_v55  ;;  %v1072_v55 = vld [vmem:[%s9950_s6 + $0x60] sm:$0xff] }
 0x651   : > { %1582 = vmatprep.subr.bf16.mxu1 %v6360_v0  ;;  %v1081_v0 = vld [vmem:[%s9950_s6 + $0xa8] sm:$0xff] }
 0x652   : > { %v6352_v6 = vcombine.high %v1081_v0, %v1089_v2  ;;  %v6351_v12 = vcombine.low %v1081_v0, %v1089_v2  ;;  %v7701_v0 = vld [vmem:[%s9951_s7 + $0xc0] sm:$0xff]  }
 0x653   : > { %v7702_v2 = vld [vmem:[%s9951_s7] sm:$0xff]  }
 0x654   : > { %1583 = vmatpush1.bf16.msra.mxu1 %v6359_v63  ;;  %v1088_v63 = vld [vmem:[%s9950_s6 + $0xe0] sm:$0xff] }
 0x655   : > { %1584 = vmatprep.subr.bf16.mxu1 %v6376_v9  ;;  %v1097_v9 = vld [vmem:[%s9950_s6 + $0x128] sm:$0xff] }
 0x656   : > { %v6368_v15 = vcombine.high %v1097_v9, %v1105_v10 }
 0x658   : > { %1585 = vmatpush1.bf16.msra.mxu1 %v6375_v8  ;;  %v1104_v8 = vld [vmem:[%s9950_s6 + $0x160] sm:$0xff] }
 0x659   : > { %1660 = vmatprep.subr.bf16.mxu1 %v6332_v18  ;;  %v1113_v18 = vld [vmem:[%s9950_s6 + $0x1a8] sm:$0xff] }
 0x71e   : > { %v1034_v29 = vpop.f32.mrb[16].mxu1 }
 0x71f   : > { %v1035_v30 = vadd.f32 %v1034_v29, %v972_v28  ;;  %v7561_v31 = vpop.f32.mrb[17].mxu1  ;;  %v1042_v28 = vld [vmem:[%s9946_s2 + $0x5] ss:$0 sm:$0xff] }
 0x720   : > { %v1037_v32 = vpop.f32.mrb[18].mxu1  ;;  %v1086_v31 = vld [vmem:[%s9950_s6 + $0xd0] sm:$0xff] }
 0x721   : > { %v7562_v33 = vpop.f32.mrb[19].mxu1  ;;  %v1040_v34 = vadd.f32 %v1035_v30, %v8237_v20  ;;  %v1068_v20 = vld [vmem:[%s9950_s6 + $0x40] sm:$0xff]  ;;  %v1078_v30 = vld [vmem:[%s9950_s6 + $0x90] sm:$0xff]  ;;  %v1079_v32 = vld [vmem:[%s9950_s6 + $0x98] sm:$0xff] }
 0x722   : > { %v6326_v44 = vcombine.high %v1060_v41, %v1068_v20  ;;  %v6325_v46 = vcombine.low %v1060_v41, %v1068_v20  ;;  %v1087_v33 = vld [vmem:[%s9950_s6 + $0xd8] sm:$0xff]  ;;  %v6345_v20 = vcombine.low %v1078_v30, %v1086_v31 }
 0x723   : > { %v1043_v35 = vsel %vm444_vm3, %v1040_v34, 0.0  ;;  %v1103_v41 = vld [vmem:[%s9950_s6 + $0x158] sm:$0xff]  ;;  %v6347_v43 = vcombine.low %v1079_v32, %v1087_v33 }
 0x724   : > { %1044 = vadd.xlane.f32.xlu1 %v1043_v35  ;;  %1537 = vmatprep.subr.bf16.mxu0 %v6326_v44 }
 0x725   : > { %1538 = vmatpush1.bf16.msra.mxu0 %v6325_v46  ;;  %v1110_v46 = vld [vmem:[%s9950_s6 + $0x190] sm:$0xff] }
 0x726   : > { %1539 = vmatprep.subr.bf16.mxu0 %v6342_v52  ;;  %v6378_v52 = vcombine.high %v1110_v46, %v1118_v48  ;;  %v6377_v58 = vcombine.low %v1110_v46, %v1118_v48  ;;  %v1106_v46 = vld [vmem:[%s9950_s6 + $0x170] sm:$0xff]  ;;  %v1099_v48 = vld [vmem:[%s9950_s6 + $0x138] sm:$0xff] }
 0x729   : > { %1540 = vmatpush1.bf16.msra.mxu0 %v6341_v54  ;;  %v1064_v54 = vld [vmem:[%s9950_s6 + $0x20] sm:$0xff] }
 0x72a   : > { %1541 = vmatprep.subr.bf16.mxu0 %v6358_v60  ;;  %v6334_v60 = vcombine.high %v1064_v54, %v1072_v55  ;;  %v6333_v3 = vcombine.low %v1064_v54, %v1072_v55  ;;  %v1122_v54 = vld [vmem:[%s9950_s6 + $0x1f0] sm:$0xff]  ;;  %v1115_v55 = vld [vmem:[%s9950_s6 + $0x1b8] sm:$0xff] }
 0x72d   : > { %1542 = vmatpush1.bf16.msra.mxu0 %v6357_v62  ;;  %v1080_v62 = vld [vmem:[%s9950_s6 + $0xa0] sm:$0xff] }
 0x72e   : > { %1543 = vmatprep.subr.bf16.mxu0 %v6374_v5  ;;  %v6350_v5 = vcombine.high %v1080_v62, %v1088_v63  ;;  %v6349_v11 = vcombine.low %v1080_v62, %v1088_v63  ;;  %v6387_v62 = vcombine.low %v1115_v55, %v1123_v56  ;;  %v7700_v63 = vld [vmem:[%s9951_s7 + $0x40] sm:$0xff]  }
 0x731   : > { %1544 = vmatpush1.bf16.msra.mxu0 %v6373_v7  ;;  %v1096_v7 = vld [vmem:[%s9950_s6 + $0x120] sm:$0xff] }
 0x732   : > { %1619 = vmatprep.subr.bf16.mxu0 %v6330_v14  ;;  %v6366_v14 = vcombine.high %v1096_v7, %v1104_v8 }
 0x7b1   : > { %v1045_v36 = vpop.xlane.xlu1 %1044 }
 0x7b2   : > { %v1047_v37 = vmul.f32 0.015625, %v1045_v36  ;;  %v6346_v36 = vcombine.high %v1078_v30, %v1086_v31  ;;  %v1075_v30 = vld [vmem:[%s9950_s6 + $0x78] sm:$0xff] }
 0x7b4   : > { %v8348_v38 = vsub.f32 %v1040_v34, %v1047_v37  ;;  %v6348_v37 = vcombine.high %v1079_v32, %v1087_v33 }
 0x7b6   : > { %v1049_v39 = vmul.f32 %v8348_v38, %v8348_v38 }
 0x7b8   : > { %v1050_v40 = vsel %vm444_vm3, %v1049_v39, 0.0  ;;  %v1102_v39 = vld [vmem:[%s9950_s6 + $0x150] sm:$0xff] }
 0x7b9   : > { %1051 = vadd.xlane.f32.xlu0 %v1050_v40  ;;  %v1095_v40 = vld [vmem:[%s9950_s6 + $0x118] sm:$0xff] }
 0x7ba   : > { %v6364_v45 = vcombine.high %v1095_v40, %v1103_v41  ;;  %v6363_v51 = vcombine.low %v1095_v40, %v1103_v41  ;;  %v1091_v40 = vld [vmem:[%s9950_s6 + $0xf8] sm:$0xff] }
 0x846   : > { %v1052_v19 = vpop.xlane.xlu0 %1051 }
 0x847   : > { %v1053_v21 = vmul.f32 0.015625, %v1052_v19  ;;  %v1121_v19 = vld [vmem:[%s9950_s6 + $0x1e8] sm:$0xff] }
 0x848   : > { %v6383_v32 = vcombine.low %v1113_v18, %v1121_v19 }
 0x849   : > { %v1054_v22 = vadd.f32 1e-05, %v1053_v21  ;;  %v6365_v21 = vcombine.low %v1096_v7, %v1104_v8  ;;  %v7707_v7 = vld [vmem:[%s9951_s7 + $0x88] sm:$0xff]   ;;  %v7708_v8 = vld [vmem:[%s9951_s7 + $0x50] sm:$0xff]  }
 0x84b   : > { %7992 = vrsqrt.f32 %v1054_v22  ;;  %v6367_v22 = vcombine.low %v1097_v9, %v1105_v10  ;;  %v7710_v9 = vld [vmem:[%s9951_s7 + $0x10] sm:$0xff]  }
 0x84c   : > { %v7711_v10 = vld [vmem:[%s9951_s7 + $0x90] sm:$0xff]  }
 0x855   : > { %v7993_v23 = vpop.eup %7992 }
 0x856   : > { %v1056_v27 = vmul.f32 %v7993_v23, %v8348_v38  ;;  %v1094_v38 = vld [vmem:[%s9950_s6 + $0x110] sm:$0xff] }
 0x857   : > { %v6362_v44 = vcombine.high %v1094_v38, %v1102_v39  ;;  %v6361_v50 = vcombine.low %v1094_v38, %v1102_v39  ;;  %v1090_v38 = vld [vmem:[%s9950_s6 + $0xf0] sm:$0xff]  ;;  %v1083_v39 = vld [vmem:[%s9950_s6 + $0xb8] sm:$0xff] }
 0x858   : > { %v1057_v29 = vmul.f32 %v1056_v27, %v1041_v26  ;;  %v6384_v26 = vcombine.high %v1113_v18, %v1121_v19  ;;  %v1066_v27 = vld [vmem:[%s9950_s6 + $0x30] sm:$0xff]  ;;  %v7718_v18 = vld [vmem:[%s9951_s7 + $0x20] sm:$0xff]  }
 0x859   : > { %v7719_v19 = vld [vmem:[%s9951_s7 + $0xa0] sm:$0xff]  }
 0x85a   : > { %v8432_v34 = vadd.f32 %v1057_v29, %v1042_v28  ;;  %v1074_v28 = vld [vmem:[%s9950_s6 + $0x70] sm:$0xff]  ;;  %v1067_v29 = vld [vmem:[%s9950_s6 + $0x38] sm:$0xff] }
 0x85b   : > { %v6338_v33 = vcombine.high %v1066_v27, %v1074_v28  ;;  %v6337_v41 = vcombine.low %v1066_v27, %v1074_v28  ;;  %v7724_v27 = vld [vmem:[%s9951_s7 + $0x70] sm:$0xff]  }
 0x85c   : > { %v8436_v35 = vpack.c.bf16 %v8432_v34, %v8432_v34  ;;  %v7725_v28 = vld [vmem:[%s9951_s7 + $0xf0] sm:$0xff]  }
 0x85e   : > { %6389 = vmatmul.mubr.msk.bf16.vlgmr.msra.gmra.mrb[24].mxu0 %vm444_vm3, %v8436_v35  ;;  %6390 = vmatmul.mubr.msk.bf16.vlgmr.msra.gmra.mrb[20].mxu1 %vm444_vm3, %v8436_v35 }
 0x85f   : > { %1620 = vmatpush1.bf16.msra.mxu0 %v6329_v16  ;;  %1661 = vmatpush1.bf16.msra.mxu1 %v6331_v17  ;;  %v1112_v16 = vld [vmem:[%s9950_s6 + $0x1a0] sm:$0xff] }
 0x860   : > { %1621 = vmatprep.subr.bf16.mxu0 %v6346_v36  ;;  %1662 = vmatprep.subr.bf16.mxu1 %v6348_v37  ;;  %v1120_v17 = vld [vmem:[%s9950_s6 + $0x1e0] sm:$0xff]  ;;  %v6340_v36 = vcombine.high %v1067_v29, %v1075_v30  ;;  %v1082_v37 = vld [vmem:[%s9950_s6 + $0xb0] sm:$0xff] }
 0x861   : > { %1651 = vmatprep.mubr.bf16.mxu0 %v8082_v13  ;;  %1692 = vmatprep.mubr.bf16.mxu1 %v8082_v13  ;;  %v6382_v23 = vcombine.high %v1112_v16, %v1120_v17  ;;  %v6381_v31 = vcombine.low %v1112_v16, %v1120_v17  ;;  %v6353_v47 = vcombine.low %v1082_v37, %v1090_v38  ;;  %v7716_v16 = vld [vmem:[%s9951_s7 + $0x60] sm:$0xff]  }
 0x862   : > { %v7717_v17 = vld [vmem:[%s9951_s7 + $0xe0] sm:$0xff]  }
 0x863   : > { %1622 = vmatpush1.bf16.msra.mxu0 %v6345_v20  ;;  %1663 = vmatpush1.bf16.msra.mxu1 %v6347_v43  ;;  %v6339_v20 = vcombine.low %v1067_v29, %v1075_v30  ;;  %v6354_v43 = vcombine.high %v1082_v37, %v1090_v38  ;;  %v7726_v29 = vld [vmem:[%s9951_s7 + $0x30] sm:$0xff]   ;;  %v7732_v37 = vld [vmem:[%s9951_s7 + $0x140] sm:$0xff]  }
 0x864   : > { %1623 = vmatprep.subr.bf16.mxu0 %v6362_v44  ;;  %1664 = vmatprep.subr.bf16.mxu1 %v6364_v45  ;;  %v6356_v44 = vcombine.high %v1083_v39, %v1091_v40  ;;  %v1098_v45 = vld [vmem:[%s9950_s6 + $0x130] sm:$0xff]  ;;  %v7733_v38 = vld [vmem:[%s9951_s7 + $0x1c0] sm:$0xff]  }
 0x865   : > { %v6369_v57 = vcombine.low %v1098_v45, %v1106_v46  ;;  %v7727_v30 = vld [vmem:[%s9951_s7 + $0xb0] sm:$0xff]  }
 0x867   : > { %1624 = vmatpush1.bf16.msra.mxu0 %v6361_v50  ;;  %1665 = vmatpush1.bf16.msra.mxu1 %v6363_v51  ;;  %v6355_v50 = vcombine.low %v1083_v39, %v1091_v40  ;;  %v6370_v51 = vcombine.high %v1098_v45, %v1106_v46  ;;  %v6321_v39 = vld [vmem:[%s9946_s2 + $0x6] ss:$8 sm:$0xf] }
 0x868   : > { %1625 = vmatprep.subr.bf16.mxu0 %v6378_v52  ;;  %1666 = vmatprep.subr.bf16.mxu1 %v6380_v53  ;;  %v6372_v52 = vcombine.high %v1099_v48, %v1107_v49  ;;  %v1114_v53 = vld [vmem:[%s9950_s6 + $0x1b0] sm:$0xff] }
 0x869   : > { %v6322_v40 = vld [vmem:[%s9946_s2 + $0x6] ss:$8 sm:$0xf0] }
 0x86b   : > { %1626 = vmatpush1.bf16.msra.mxu0 %v6377_v58  ;;  %1667 = vmatpush1.bf16.msra.mxu1 %v6379_v59  ;;  %v6371_v58 = vcombine.low %v1099_v48, %v1107_v49  ;;  %v6386_v59 = vcombine.high %v1114_v53, %v1122_v54 }
 0x86c   : > { %1701 = vmatprep.subr.bf16.mxu0 %v6334_v60  ;;  %1742 = vmatprep.subr.bf16.mxu1 %v6336_v61  ;;  %v6388_v60 = vcombine.high %v1115_v55, %v1123_v56  ;;  %v6385_v61 = vcombine.low %v1114_v53, %v1122_v54 }
 0x86e   : > { %6391 = vmatmul.mubr.msk.bf16.vlgmr.msra.gmra.mrb[28].mxu0 %vm444_vm3, %v8436_v35  ;;  %6392 = vmatmul.mubr.msk.bf16.vlgmr.msra.gmra.mrb[24].mxu1 %vm444_vm3, %v8436_v35 }
 0x86f   : > { %1702 = vmatpush1.bf16.msra.mxu0 %v6333_v3  ;;  %1743 = vmatpush1.bf16.msra.mxu1 %v6335_v4  ;;  %v7703_v3 = vld [vmem:[%s9951_s7 + $0x80] sm:$0xff]   ;;  %v7704_v4 = vld [vmem:[%s9951_s7 + $0x48] sm:$0xff]  }
 0x870   : > { %1703 = vmatprep.subr.bf16.mxu0 %v6350_v5  ;;  %1744 = vmatprep.subr.bf16.mxu1 %v6352_v6  ;;  %v7705_v5 = vld [vmem:[%s9951_s7 + $0xc8] sm:$0xff]  }
 0x871   : > { %1733 = vmatprep.mubr.bf16.mxu0 %v8082_v13  ;;  %1774 = vmatprep.mubr.bf16.mxu1 %v8082_v13  ;;  %v7706_v6 = vld [vmem:[%s9951_s7 + $0x8] sm:$0xff]  }
 0x873   : > { %1704 = vmatpush1.bf16.msra.mxu0 %v6349_v11  ;;  %1745 = vmatpush1.bf16.msra.mxu1 %v6351_v12  ;;  %v7712_v11 = vld [vmem:[%s9951_s7 + $0x58] sm:$0xff]  }
 0x874   : > { %1705 = vmatprep.subr.bf16.mxu0 %v6366_v14  ;;  %1746 = vmatprep.subr.bf16.mxu1 %v6368_v15  ;;  %v7713_v12 = vld [vmem:[%s9951_s7 + $0xd8] sm:$0xff]  }
 0x875   : > { %v7714_v14 = vld [vmem:[%s9951_s7 + $0x18] sm:$0xff]  }
 0x876   : > { %v7715_v15 = vld [vmem:[%s9951_s7 + $0x98] sm:$0xff]  }
 0x877   : > { %1706 = vmatpush1.bf16.msra.mxu0 %v6365_v21  ;;  %1747 = vmatpush1.bf16.msra.mxu1 %v6367_v22  ;;  %v7720_v21 = vld [vmem:[%s9951_s7 + $0x68] sm:$0xff]  }
 0x878   : > { %1707 = vmatprep.subr.bf16.mxu0 %v6382_v23  ;;  %1748 = vmatprep.subr.bf16.mxu1 %v6384_v26  ;;  %v7721_v22 = vld [vmem:[%s9951_s7 + $0xe8] sm:$0xff]  }
 0x879   : > { %v7722_v23 = vld [vmem:[%s9951_s7 + $0x28] sm:$0xff]  }
 0x87a   : > { %v7723_v26 = vld [vmem:[%s9951_s7 + $0xa8] sm:$0xff]  }
 0x87b   : > { %1708 = vmatpush1.bf16.msra.mxu0 %v6381_v31  ;;  %1749 = vmatpush1.bf16.msra.mxu1 %v6383_v32  ;;  %v7728_v31 = vld [vmem:[%s9951_s7 + $0x78] sm:$0xff]  }
 0x87c   : > { %1783 = vmatprep.subr.bf16.mxu0 %v6338_v33  ;;  %1824 = vmatprep.subr.bf16.mxu1 %v6340_v36  ;;  %v7729_v32 = vld [vmem:[%s9951_s7 + $0xf8] sm:$0xff]  }
 0x87d   : > { %v7730_v33 = vld [vmem:[%s9951_s7 + $0x38] sm:$0xff]  }
 0x87e   : > { %6393 = vmatmul.mubr.msk.bf16.vlgmr.msra.gmra.mrb[32].mxu0 %vm444_vm3, %v8436_v35  ;;  %6394 = vmatmul.mubr.msk.bf16.vlgmr.msra.gmra.mrb[28].mxu1 %vm444_vm3, %v8436_v35  ;;  %v7731_v36 = vld [vmem:[%s9951_s7 + $0xb8] sm:$0xff]  }
 0x87f   : > { %1784 = vmatpush1.bf16.msra.mxu0 %v6337_v41  ;;  %1825 = vmatpush1.bf16.msra.mxu1 %v6339_v20  ;;  %v8688_v41 = vor.u32 %v6322_v40, %v6321_v39  ;;  %v8691_v20 = vsub.s32 2, %v8244_v24  ;;  %v7749_v39 = vld [vmem:[%s9951_s7 + $0x1e0] sm:$0xff]  }
 0x880   : > { %1785 = vmatprep.subr.bf16.mxu0 %v6354_v43  ;;  %1826 = vmatprep.subr.bf16.mxu1 %v6356_v44  ;;  %v8694_v43 = vsub.s32 3, %v8244_v24 }
 0x881   : > { %1815 = vmatprep.mubr.bf16.mxu0 %v8082_v13  ;;  %1856 = vmatprep.mubr.bf16.mxu1 %v8082_v13  ;;  %v1137_v44 = vrot.slane %v8688_v41, %v8247_v25  ;;  %v1145_v45 = vrot.slane %v8688_v41, %v8691_v20  ;;  %v1141_v46 = vrot.slane %v8688_v41, %v8266_v42 }
 0x882   : > { %v1149_v48 = vrot.slane %v8688_v41, %v8694_v43 }
 0x883   : > { %1786 = vmatpush1.bf16.msra.mxu0 %v6353_v47  ;;  %1827 = vmatpush1.bf16.msra.mxu1 %v6355_v50 }
 0x884   : > { %1787 = vmatprep.subr.bf16.mxu0 %v6370_v51  ;;  %1828 = vmatprep.subr.bf16.mxu1 %v6372_v52 }
 0x887   : > { %1788 = vmatpush1.bf16.msra.mxu0 %v6369_v57  ;;  %1829 = vmatpush1.bf16.msra.mxu1 %v6371_v58 }
 0x888   : > { %1789 = vmatprep.subr.bf16.mxu0 %v6386_v59  ;;  %1830 = vmatprep.subr.bf16.mxu1 %v6388_v60 }
 0x88b   : > { %1790 = vmatpush1.bf16.msra.mxu0 %v6385_v61  ;;  %1831 = vmatpush1.bf16.msra.mxu1 %v6387_v62 }
 0x88c   : > { %7119 = vmatprep.subr.bf16.mxu0 %v7700_v63  ;;  %7141 = vmatprep.subr.bf16.mxu1 %v7701_v0 }
 0x88e   : > { %6395 = vmatmul.mubr.msk.bf16.vlgmr.msra.gmra.mrb[36].mxu0 %vm444_vm3, %v8436_v35  ;;  %6396 = vmatmul.mubr.msk.bf16.vlgmr.msra.gmra.mrb[32].mxu1 %vm444_vm3, %v8436_v35  ;;  %v7709_v35 = vld [vmem:[%s9951_s7 + $0xd0] sm:$0xff]  }
 0x88f   : > { %7120 = vmatpush3.bf16.msra.mxu0 %v7702_v2  ;;  %7142 = vmatpush3.bf16.msra.mxu1 %v7703_v3  ;;  %v7734_v3 = vld [vmem:[%s9951_s7 + $0x100] sm:$0xff]  }
 0x890   : > { %7121 = vmatprep.subr.bf16.mxu0 %v7704_v4  ;;  %7143 = vmatprep.subr.bf16.mxu1 %v7705_v5  ;;  %v7735_v4 = vld [vmem:[%s9951_s7 + $0x180] sm:$0xff]  }
 0x893   : > { %7122 = vmatpush3.bf16.msra.mxu0 %v7706_v6  ;;  %7144 = vmatpush3.bf16.msra.mxu1 %v7707_v7  ;;  %v7736_v7 = vld [vmem:[%s9951_s7 + $0x148] sm:$0xff]  }
 0x894   : > { %7123 = vmatprep.subr.bf16.mxu0 %v7708_v8  ;;  %7145 = vmatprep.subr.bf16.mxu1 %v7709_v35  ;;  %v7737_v8 = vld [vmem:[%s9951_s7 + $0x1c8] sm:$0xff]  }
 0x895   : > { %v7738_v35 = vld [vmem:[%s9951_s7 + $0x108] sm:$0xff]  }
 0x897   : > { %7124 = vmatpush3.bf16.msra.mxu0 %v7710_v9  ;;  %7146 = vmatpush3.bf16.msra.mxu1 %v7711_v10  ;;  %v7739_v9 = vld [vmem:[%s9951_s7 + $0x188] sm:$0xff]   ;;  %v8723_v10 = vsub.s32 5, %v8244_v24 }
 0x898   : > { %7125 = vmatprep.subr.bf16.mxu0 %v7712_v11  ;;  %7147 = vmatprep.subr.bf16.mxu1 %v7713_v12  ;;  %v8726_v11 = vsub.s32 7, %v8244_v24  ;;  %v7740_v12 = vld [vmem:[%s9951_s7 + $0x150] sm:$0xff]  }
 0x89b   : > { %7126 = vmatpush3.bf16.msra.mxu0 %v7714_v14  ;;  %7148 = vmatpush3.bf16.msra.mxu1 %v7715_v15  ;;  %v7741_v14 = vld [vmem:[%s9951_s7 + $0x1d0] sm:$0xff]   ;;  %v1157_v15 = vrot.slane %v8688_v41, %v8723_v10 }
 0x89c   : > { %7127 = vmatprep.subr.bf16.mxu0 %v7716_v16  ;;  %7149 = vmatprep.subr.bf16.mxu1 %v7717_v17  ;;  %v1165_v16 = vrot.slane %v8688_v41, %v8726_v11  ;;  %v7742_v17 = vld [vmem:[%s9951_s7 + $0x110] sm:$0xff]  }
 0x89f   : > { %7128 = vmatpush3.bf16.msra.mxu0 %v7718_v18  ;;  %7150 = vmatpush3.bf16.msra.mxu1 %v7719_v19  ;;  %v7743_v18 = vld [vmem:[%s9951_s7 + $0x190] sm:$0xff]   ;;  %v7744_v19 = vld [vmem:[%s9951_s7 + $0x158] sm:$0xff]  }
 0x8a0   : > { %7129 = vmatprep.subr.bf16.mxu0 %v7720_v21  ;;  %7151 = vmatprep.subr.bf16.mxu1 %v7721_v22  ;;  %v7745_v21 = vld [vmem:[%s9951_s7 + $0x1d8] sm:$0xff]  }
 0x8a3   : > { %7130 = vmatpush3.bf16.msra.mxu0 %v7722_v23  ;;  %7152 = vmatpush3.bf16.msra.mxu1 %v7723_v26 }
 0x8a4   : > { %7131 = vmatprep.subr.bf16.mxu0 %v7724_v27  ;;  %7153 = vmatprep.subr.bf16.mxu1 %v7725_v28 }
 0x8a7   : > { %7132 = vmatpush3.bf16.msra.mxu0 %v7726_v29  ;;  %7154 = vmatpush3.bf16.msra.mxu1 %v7727_v30 }
 0x8a8   : > { %7133 = vmatprep.subr.bf16.mxu0 %v7728_v31  ;;  %7155 = vmatprep.subr.bf16.mxu1 %v7729_v32  ;;  %v7746_v32 = vld [vmem:[%s9951_s7 + $0x118] sm:$0xff]  }
 0x8ab   : > { %7134 = vmatpush3.bf16.msra.mxu0 %v7730_v33  ;;  %7156 = vmatpush3.bf16.msra.mxu1 %v7731_v36  ;;  %v7747_v33 = vld [vmem:[%s9951_s7 + $0x198] sm:$0xff]  }
 0x8ac   : > { %7163 = vmatprep.subr.bf16.mxu0 %v7732_v37  ;;  %7185 = vmatprep.subr.bf16.mxu1 %v7733_v38  ;;  %v7748_v38 = vld [vmem:[%s9951_s7 + $0x160] sm:$0xff]  }
 0x931   : > { %v1571_v49 = vpop.f32.mrb[24].mxu0  ;;  %v1612_v47 = vpop.f32.mrb[20].mxu1 }
 0x932   : > { %v1572_v50 = vadd.f32 %v1571_v49, %v1137_v44  ;;  %v1613_v51 = vadd.f32 %v1612_v47, %v1145_v45  ;;  %v1573_v52 = vpop.f32.mrb[25].mxu0  ;;  %v1614_v53 = vpop.f32.mrb[21].mxu1  ;;  %v7750_v45 = vld [vmem:[%s9951_s7 + $0x120] sm:$0xff]  }
 0x933   : > { %v1574_v54 = vadd.f32 %v1573_v52, %v1141_v46  ;;  %v1615_v55 = vadd.f32 %v1614_v53, %v1149_v48  ;;  %v1575_v56 = vpop.f32.mrb[26].mxu0  ;;  %v1616_v57 = vpop.f32.mrb[22].mxu1  ;;  %v8766_v46 = vsub.s32 4, %v8244_v24  ;;  %v8769_v48 = vsub.s32 6, %v8244_v24  ;;  %v7753_v52 = vld [vmem:[%s9951_s7 + $0x1e8] sm:$0xff]  }
 0x934   : > { %v1865_v58 = vmax.f32 %v1572_v50, 0.0  ;;  %v1867_v59 = vmax.f32 %v1613_v51, 0.0  ;;  %v1576_v60 = vpop.f32.mrb[27].mxu0  ;;  %v1617_v61 = vpop.f32.mrb[23].mxu1  ;;  %v7751_v50 = vld [vmem:[%s9951_s7 + $0x1a0] sm:$0xff]   ;;  %v7752_v51 = vld [vmem:[%s9951_s7 + $0x168] sm:$0xff]  }
 0x935   : > { %v1866_v62 = vmax.f32 %v1574_v54, 0.0  ;;  %v1868_v63 = vmax.f32 %v1615_v55, 0.0  ;;  %v6323_v24 = vld [vmem:[%s9946_s2 + $0x46] ss:$8 sm:$0xf]  ;;  %v1153_v57 = vrot.slane %v8688_v41, %v8766_v46 }
 0x936   : > { %v1881_v5 = vpack.c.bf16 %v1865_v58, %v1865_v58  ;;  %v1883_v6 = vpack.c.bf16 %v1867_v59, %v1867_v59  ;;  %v6324_v53 = vld [vmem:[%s9946_s2 + $0x46] ss:$8 sm:$0xf0]  ;;  %v1161_v58 = vrot.slane %v8688_v41, %v8769_v48 }
 0x937   : > { %v1882_v0 = vpack.c.bf16 %v1866_v62, %v1866_v62  ;;  %v1884_v2 = vpack.c.bf16 %v1868_v63, %v1868_v63  ;;  %v7754_v54 = vld [vmem:[%s9951_s7 + $0x128] sm:$0xff]   ;;  %v8792_v56 = vor.u32 %v6324_v53, %v6323_v24  ;;  %v7756_v59 = vld [vmem:[%s9951_s7 + $0x170] sm:$0xff]   ;;  %v7777_v53 = vld [vmem:[%s9951_s7 + $0x2d8] sm:$0xff]  }
 0x938   : > { %v7755_v55 = vld [vmem:[%s9951_s7 + $0x1a8] sm:$0xff]   ;;  %v7757_v60 = vld [vmem:[%s9951_s7 + $0x1f0] sm:$0xff]  }
 0x939   : > { %2954 = vmatprep.mubr.bf16.mxu0 %v1882_v0  ;;  %2994 = vmatprep.mubr.bf16.mxu1 %v1884_v2  ;;  %v1173_v61 = vrot.slane %v8792_v56, %v8266_v42  ;;  %v1181_v62 = vrot.slane %v8792_v56, %v8694_v43  ;;  %v7758_v41 = vld [vmem:[%s9951_s7 + $0x130] sm:$0xff]  }
 0x93a   : > { %2955 = vmatmul.mubr.bf16.vlgmr.msra.gmra.mrb[40].mxu0 %v1881_v5  ;;  %2995 = vmatmul.mubr.bf16.vlgmr.msra.gmra.mrb[36].mxu1 %v1883_v6  ;;  %v7759_v63 = vld [vmem:[%s9951_s7 + $0x1b0] sm:$0xff]  }
 0x93b   : > { %7164 = vmatpush3.bf16.msra.mxu0 %v7734_v3  ;;  %7186 = vmatpush3.bf16.msra.mxu1 %v7735_v4  ;;  %v7760_v3 = vld [vmem:[%s9951_s7 + $0x178] sm:$0xff]  }
 0x93c   : > { %7165 = vmatprep.subr.bf16.mxu0 %v7736_v7  ;;  %7187 = vmatprep.subr.bf16.mxu1 %v7737_v8  ;;  %v7761_v4 = vld [vmem:[%s9951_s7 + $0x1f8] sm:$0xff]  }
 0x93f   : > { %7166 = vmatpush3.bf16.msra.mxu0 %v7738_v35  ;;  %7188 = vmatpush3.bf16.msra.mxu1 %v7739_v9 }
 0x940   : > { %7167 = vmatprep.subr.bf16.mxu0 %v7740_v12  ;;  %7189 = vmatprep.subr.bf16.mxu1 %v7741_v14 }
 0x941   : > { %v1653_v22 = vpop.f32.mrb[28].mxu0  ;;  %v1694_v23 = vpop.f32.mrb[24].mxu1 }
 0x942   : > { %v1655_v26 = vpop.f32.mrb[29].mxu0  ;;  %v1696_v27 = vpop.f32.mrb[25].mxu1  ;;  %v1654_v0 = vadd.f32 %v1653_v22, %v1153_v57  ;;  %v1695_v2 = vadd.f32 %v1694_v23, %v1161_v58  ;;  %v7764_v22 = vld [vmem:[%s9951_s7 + $0x240] sm:$0xff]  }
 0x943   : > { %v1656_v28 = vadd.f32 %v1655_v26, %v1157_v15  ;;  %v1697_v29 = vadd.f32 %v1696_v27, %v1165_v16  ;;  %v1657_v30 = vpop.f32.mrb[30].mxu0  ;;  %v1698_v31 = vpop.f32.mrb[26].mxu1  ;;  %7168 = vmatpush3.bf16.msra.mxu0 %v7742_v17  ;;  %7190 = vmatpush3.bf16.msra.mxu1 %v7743_v18  ;;  %v7762_v15 = vld [vmem:[%s9951_s7 + $0x138] sm:$0xff]   ;;  %v7765_v23 = vld [vmem:[%s9951_s7 + $0x2c0] sm:$0xff]  }
 0x944   : > { %v1658_v36 = vpop.f32.mrb[31].mxu0  ;;  %v1699_v37 = vpop.f32.mrb[27].mxu1  ;;  %7169 = vmatprep.subr.bf16.mxu0 %v7744_v19  ;;  %7191 = vmatprep.subr.bf16.mxu1 %v7745_v21  ;;  %v7763_v16 = vld [vmem:[%s9951_s7 + $0x1b8] sm:$0xff]   ;;  %v1869_v17 = vmax.f32 %v1654_v0, 0.0  ;;  %v1871_v18 = vmax.f32 %v1695_v2, 0.0  ;;  %v7767_v31 = vld [vmem:[%s9951_s7 + $0x280] sm:$0xff]  }
 0x945   : > { %v1870_v40 = vmax.f32 %v1656_v28, 0.0  ;;  %v1872_v44 = vmax.f32 %v1697_v29, 0.0  ;;  %v7766_v28 = vld [vmem:[%s9951_s7 + $0x200] sm:$0xff]   ;;  %v7769_v36 = vld [vmem:[%s9951_s7 + $0x2c8] sm:$0xff]  }
 0x946   : > { %v1885_v29 = vpack.c.bf16 %v1869_v17, %v1869_v17  ;;  %v1887_v30 = vpack.c.bf16 %v1871_v18, %v1871_v18  ;;  %v7780_v0 = vld [vmem:[%s9951_s7 + $0x260] sm:$0xff]   ;;  %v1189_v17 = vrot.slane %v8792_v56, %v8723_v10  ;;  %v1197_v18 = vrot.slane %v8792_v56, %v8726_v11 }
 0x947   : > { %v1886_v49 = vpack.c.bf16 %v1870_v40, %v1870_v40  ;;  %v1888_v47 = vpack.c.bf16 %v1872_v44, %v1872_v44  ;;  %7170 = vmatpush3.bf16.msra.mxu0 %v7746_v32  ;;  %7192 = vmatpush3.bf16.msra.mxu1 %v7747_v33  ;;  %v7768_v33 = vld [vmem:[%s9951_s7 + $0x248] sm:$0xff]   ;;  %v7772_v40 = vld [vmem:[%s9951_s7 + $0x250] sm:$0xff]   ;;  %v7781_v2 = vld [vmem:[%s9951_s7 + $0x2e0] sm:$0xff]  }
 0x948   : > { %7171 = vmatprep.subr.bf16.mxu0 %v7748_v38  ;;  %7193 = vmatprep.subr.bf16.mxu1 %v7749_v39  ;;  %v7770_v38 = vld [vmem:[%s9951_s7 + $0x208] sm:$0xff]   ;;  %v7773_v44 = vld [vmem:[%s9951_s7 + $0x2d0] sm:$0xff]  }
 0x949   : > { %3034 = vmatprep.mubr.bf16.mxu0 %v1886_v49  ;;  %3074 = vmatprep.mubr.bf16.mxu1 %v1888_v47  ;;  %v7771_v39 = vld [vmem:[%s9951_s7 + $0x288] sm:$0xff]   ;;  %v1193_v49 = vrot.slane %v8792_v56, %v8769_v48  ;;  %v7774_v47 = vld [vmem:[%s9951_s7 + $0x210] sm:$0xff]  }
 0x94b   : > { %7172 = vmatpush3.bf16.msra.mxu0 %v7750_v45  ;;  %7194 = vmatpush3.bf16.msra.mxu1 %v7751_v50  ;;  %v1185_v45 = vrot.slane %v8792_v56, %v8766_v46  ;;  %v7775_v50 = vld [vmem:[%s9951_s7 + $0x290] sm:$0xff]  }
 0x94c   : > { %7173 = vmatprep.subr.bf16.mxu0 %v7752_v51  ;;  %7195 = vmatprep.subr.bf16.mxu1 %v7753_v52  ;;  %v7776_v51 = vld [vmem:[%s9951_s7 + $0x258] sm:$0xff]  }
 0x94f   : > { %7174 = vmatpush3.bf16.msra.mxu0 %v7754_v54  ;;  %7196 = vmatpush3.bf16.msra.mxu1 %v7755_v55 }
 0x950   : > { %7175 = vmatprep.subr.bf16.mxu0 %v7756_v59  ;;  %7197 = vmatprep.subr.bf16.mxu1 %v7757_v60 }
 0x951   : > { %v8820_v5 = vpop.f32.mrb[32].mxu0  ;;  %v8822_v6 = vpop.f32.mrb[28].mxu1 }
 0x952   : > { %v1737_v7 = vpop.f32.mrb[33].mxu0  ;;  %v1778_v8 = vpop.f32.mrb[29].mxu1 }
 0x953   : > { %v1738_v35 = vadd.f32 %v1737_v7, %v1173_v61  ;;  %v1779_v9 = vadd.f32 %v1778_v8, %v1181_v62  ;;  %v1739_v12 = vpop.f32.mrb[34].mxu0  ;;  %v1780_v14 = vpop.f32.mrb[30].mxu1  ;;  %7176 = vmatpush3.bf16.msra.mxu0 %v7758_v41  ;;  %7198 = vmatpush3.bf16.msra.mxu1 %v7759_v63  ;;  %v7778_v61 = vld [vmem:[%s9951_s7 + $0x218] sm:$0xff]   ;;  %v7784_v7 = vld [vmem:[%s9951_s7 + $0x268] sm:$0xff]  }
 0x954   : > { %v1740_v19 = vpop.f32.mrb[35].mxu0  ;;  %v1781_v21 = vpop.f32.mrb[31].mxu1  ;;  %7177 = vmatprep.subr.bf16.mxu0 %v7760_v3  ;;  %7199 = vmatprep.subr.bf16.mxu1 %v7761_v4  ;;  %v7779_v63 = vld [vmem:[%s9951_s7 + $0x298] sm:$0xff]   ;;  %v7782_v3 = vld [vmem:[%s9951_s7 + $0x220] sm:$0xff]   ;;  %v7785_v8 = vld [vmem:[%s9951_s7 + $0x2e8] sm:$0xff]  }
 0x955   : > { %v1874_v26 = vmax.f32 %v1738_v35, 0.0  ;;  %v1876_v27 = vmax.f32 %v1779_v9, 0.0  ;;  %v7783_v4 = vld [vmem:[%s9951_s7 + $0x2a0] sm:$0xff]   ;;  %v7786_v35 = vld [vmem:[%s9951_s7 + $0x228] sm:$0xff]   ;;  %v1169_v9 = vrot.slane %v8792_v56, %v8247_v25  ;;  %v7788_v14 = vld [vmem:[%s9951_s7 + $0x270] sm:$0xff]  }
 0x956   : > { %v7787_v12 = vld [vmem:[%s9951_s7 + $0x2a8] sm:$0xff]   ;;  %v7790_v19 = vld [vmem:[%s9951_s7 + $0x230] sm:$0xff]  }
 0x957   : > { %7178 = vmatpush3.bf16.msra.mxu0 %v7762_v15  ;;  %7200 = vmatpush3.bf16.msra.mxu1 %v7763_v16  ;;  %v1890_v32 = vpack.c.bf16 %v1874_v26, %v1874_v26  ;;  %v1892_v37 = vpack.c.bf16 %v1876_v27, %v1876_v27  ;;  %v1177_v15 = vrot.slane %v8792_v56, %v8691_v20  ;;  %v7789_v16 = vld [vmem:[%s9951_s7 + $0x2f0] sm:$0xff]   ;;  %v7793_v56 = vld [vmem:[%s9951_s7 + $0x2f8] sm:$0xff]  }
 0x958   : > { %7207 = vmatprep.subr.bf16.mxu0 %v7764_v22  ;;  %7229 = vmatprep.subr.bf16.mxu1 %v7765_v23  ;;  %v1736_v21 = vadd.f32 %v8820_v5, %v1169_v9  ;;  %v7791_v22 = vld [vmem:[%s9951_s7 + $0x2b0] sm:$0xff]   ;;  %v7792_v23 = vld [vmem:[%s9951_s7 + $0x278] sm:$0xff]  }
 0x959   : > { %v1777_v26 = vadd.f32 %v8822_v6, %v1177_v15  ;;  %v7794_v5 = vld [vmem:[%s9951_s7 + $0x238] sm:$0xff]   ;;  %v7796_v6 = vld [vmem:[%s9951_s7 + $0x340] sm:$0xff]   ;;  %v7822_v9 = vld [vmem:[%s9951_s7 + $0x330] sm:$0xff]  }
 0x95a   : > { %3035 = vmatmul.mubr.bf16.vlgmr.msra.gmra.mrb[44].mxu0 %v1885_v29  ;;  %3075 = vmatmul.mubr.bf16.vlgmr.msra.gmra.mrb[40].mxu1 %v1887_v30  ;;  %v1873_v29 = vmax.f32 %v1736_v21, 0.0  ;;  %v7795_v30 = vld [vmem:[%s9951_s7 + $0x2b8] sm:$0xff]  }
 0x95b   : > { %7208 = vmatpush3.bf16.msra.mxu0 %v7766_v28  ;;  %3114 = vmatprep.mubr.bf16.mxu0 %v1890_v32  ;;  %v7797_v32 = vld [vmem:[%s9951_s7 + $0x3c0] sm:$0xff]   ;;  %v7825_v15 = vld [vmem:[%s9951_s7 + $0x3f8] sm:$0xff]  }
 0x95c   : > { %7230 = vmatpush3.bf16.msra.mxu1 %v7767_v31  ;;  %3154 = vmatprep.mubr.bf16.mxu1 %v1892_v37  ;;  %v1875_v31 = vmax.f32 %v1777_v26, 0.0  ;;  %v7798_v37 = vld [vmem:[%s9951_s7 + $0x300] sm:$0xff]  }
 0x95d   : > { %7209 = vmatprep.subr.bf16.mxu0 %v7768_v33  ;;  %7231 = vmatprep.subr.bf16.mxu1 %v7769_v36 }
 0x95f   : > { %7210 = vmatpush3.bf16.msra.mxu0 %v7770_v38  ;;  %v1889_v38 = vpack.c.bf16 %v1873_v29, %v1873_v29 }
 0x960   : > { %7232 = vmatpush3.bf16.msra.mxu1 %v7771_v39  ;;  %7211 = vmatprep.subr.bf16.mxu0 %v7772_v40  ;;  %v7799_v39 = vld [vmem:[%s9951_s7 + $0x380] sm:$0xff]   ;;  %v1891_v40 = vpack.c.bf16 %v1875_v31, %v1875_v31 }
 0x961   : > { %v1817_v52 = vpop.f32.mrb[36].mxu0  ;;  %v1858_v24 = vpop.f32.mrb[32].mxu1  ;;  %7233 = vmatprep.subr.bf16.mxu1 %v7773_v44  ;;  %v7800_v44 = vld [vmem:[%s9951_s7 + $0x348] sm:$0xff]  }
 0x962   : > { %v8876_v54 = vadd.f32 %v1817_v52, %v1185_v45  ;;  %v8878_v55 = vadd.f32 %v1858_v24, %v1193_v49  ;;  %v1819_v57 = vpop.f32.mrb[37].mxu0  ;;  %v1860_v58 = vpop.f32.mrb[33].mxu1  ;;  %v7801_v49 = vld [vmem:[%s9951_s7 + $0x3c8] sm:$0xff]   ;;  %v7804_v52 = vld [vmem:[%s9951_s7 + $0x350] sm:$0xff]  }
 0x963   : > { %v1821_v59 = vpop.f32.mrb[38].mxu0  ;;  %v1862_v60 = vpop.f32.mrb[34].mxu1  ;;  %7212 = vmatpush3.bf16.msra.mxu0 %v7774_v47  ;;  %v1820_v27 = vadd.f32 %v1819_v57, %v1189_v17  ;;  %v1861_v28 = vadd.f32 %v1860_v58, %v1197_v18  ;;  %v7805_v24 = vld [vmem:[%s9951_s7 + $0x3d0] sm:$0xff]   ;;  %v7808_v58 = vld [vmem:[%s9951_s7 + $0x358] sm:$0xff]  }
 0x964   : > { %7234 = vmatpush3.bf16.msra.mxu1 %v7775_v50  ;;  %v1822_v62 = vpop.f32.mrb[39].mxu0  ;;  %v1863_v41 = vpop.f32.mrb[35].mxu1  ;;  %7213 = vmatprep.subr.bf16.mxu0 %v7776_v51  ;;  %v7802_v50 = vld [vmem:[%s9951_s7 + $0x308] sm:$0xff]   ;;  %v7807_v57 = vld [vmem:[%s9951_s7 + $0x390] sm:$0xff]   ;;  %v7809_v59 = vld [vmem:[%s9951_s7 + $0x3d8] sm:$0xff]   ;;  %v1877_v17 = vmax.f32 %v8876_v54, 0.0 }
 0x965   : > { %7235 = vmatprep.subr.bf16.mxu1 %v7777_v53  ;;  %v1878_v33 = vmax.f32 %v1820_v27, 0.0  ;;  %v1880_v36 = vmax.f32 %v1861_v28, 0.0  ;;  %v7803_v51 = vld [vmem:[%s9951_s7 + $0x388] sm:$0xff]   ;;  %v7806_v53 = vld [vmem:[%s9951_s7 + $0x310] sm:$0xff]   ;;  %v7810_v60 = vld [vmem:[%s9951_s7 + $0x318] sm:$0xff]  }
 0x966   : > { %v7812_v62 = vld [vmem:[%s9951_s7 + $0x360] sm:$0xff]   ;;  %v7827_v18 = vld [vmem:[%s9951_s7 + $0x3b8] sm:$0xff]   ;;  %v1893_v21 = vpack.c.bf16 %v1877_v17, %v1877_v17 }
 0x967   : > { %7214 = vmatpush3.bf16.msra.mxu0 %v7778_v61  ;;  %v1894_v45 = vpack.c.bf16 %v1878_v33, %v1878_v33  ;;  %v1896_v47 = vpack.c.bf16 %v1880_v36, %v1880_v36  ;;  %v7811_v61 = vld [vmem:[%s9951_s7 + $0x398] sm:$0xff]   ;;  %v7813_v41 = vld [vmem:[%s9951_s7 + $0x3e0] sm:$0xff]  }
 0x968   : > { %7236 = vmatpush3.bf16.msra.mxu1 %v7779_v63  ;;  %7215 = vmatprep.subr.bf16.mxu0 %v7780_v0  ;;  %v7814_v63 = vld [vmem:[%s9951_s7 + $0x320] sm:$0xff]  }
 0x969   : > { %7237 = vmatprep.subr.bf16.mxu1 %v7781_v2  ;;  %v7815_v0 = vld [vmem:[%s9951_s7 + $0x3a0] sm:$0xff]   ;;  %v7816_v2 = vld [vmem:[%s9951_s7 + $0x368] sm:$0xff]  }
 0x96b   : > { %7216 = vmatpush3.bf16.msra.mxu0 %v7782_v3  ;;  %v7817_v3 = vld [vmem:[%s9951_s7 + $0x3e8] sm:$0xff]  }
 0x96c   : > { %7238 = vmatpush3.bf16.msra.mxu1 %v7783_v4  ;;  %7217 = vmatprep.subr.bf16.mxu0 %v7784_v7  ;;  %v7818_v4 = vld [vmem:[%s9951_s7 + $0x328] sm:$0xff]  }
 0x96d   : > { %7239 = vmatprep.subr.bf16.mxu1 %v7785_v8  ;;  %v7819_v7 = vld [vmem:[%s9951_s7 + $0x3a8] sm:$0xff]   ;;  %v7820_v8 = vld [vmem:[%s9951_s7 + $0x370] sm:$0xff]  }
 0x96f   : > { %7218 = vmatpush3.bf16.msra.mxu0 %v7786_v35  ;;  %v7821_v35 = vld [vmem:[%s9951_s7 + $0x3f0] sm:$0xff]  }
 0x970   : > { %7240 = vmatpush3.bf16.msra.mxu1 %v7787_v12  ;;  %7219 = vmatprep.subr.bf16.mxu0 %v7788_v14  ;;  %v7823_v12 = vld [vmem:[%s9951_s7 + $0x3b0] sm:$0xff]   ;;  %v7824_v14 = vld [vmem:[%s9951_s7 + $0x378] sm:$0xff]  }
 0x971   : > { %7241 = vmatprep.subr.bf16.mxu1 %v7789_v16  ;;  %v7826_v16 = vld [vmem:[%s9951_s7 + $0x338] sm:$0xff]  }
 0x973   : > { %7220 = vmatpush3.bf16.msra.mxu0 %v7790_v19  ;;  %v1879_v19 = vmax.f32 %v8878_v55, 0.0  ;;  %v2153_v55 = vld [vmem:[%s9946_s2 + $0x7] ss:$0 sm:$0xff] }
 0x974   : > { %7242 = vmatpush3.bf16.msra.mxu1 %v7791_v22  ;;  %7221 = vmatprep.subr.bf16.mxu0 %v7792_v23 }
 0x975   : > { %7243 = vmatprep.subr.bf16.mxu1 %v7793_v56  ;;  %v1895_v22 = vpack.c.bf16 %v1879_v19, %v1879_v19 }
 0x977   : > { %7222 = vmatpush3.bf16.msra.mxu0 %v7794_v5 }
 0x978   : > { %7244 = vmatpush3.bf16.msra.mxu1 %v7795_v30  ;;  %7251 = vmatprep.subr.bf16.mxu0 %v7796_v6 }
 0x979   : > { %7273 = vmatprep.subr.bf16.mxu1 %v7797_v32 }
 0x97a   : > { %3115 = vmatmul.mubr.bf16.vlgmr.msra.gmra.mrb[48].mxu0 %v1889_v38 }
 0x97b   : > { %3155 = vmatmul.mubr.bf16.vlgmr.msra.gmra.mrb[44].mxu1 %v1891_v40  ;;  %7252 = vmatpush3.bf16.msra.mxu0 %v7798_v37 }
 0x97c   : > { %3194 = vmatprep.mubr.bf16.mxu0 %v1894_v45  ;;  %7274 = vmatpush3.bf16.msra.mxu1 %v7799_v39 }
 0x97d   : > { %3234 = vmatprep.mubr.bf16.mxu1 %v1896_v47  ;;  %7253 = vmatprep.subr.bf16.mxu0 %v7800_v44 }
 0x97e   : > { %7275 = vmatprep.subr.bf16.mxu1 %v7801_v49 }
 0x97f   : > { %7254 = vmatpush3.bf16.msra.mxu0 %v7802_v50 }
 0x980   : > { %7276 = vmatpush3.bf16.msra.mxu1 %v7803_v51  ;;  %7255 = vmatprep.subr.bf16.mxu0 %v7804_v52 }
 0x981   : > { %7277 = vmatprep.subr.bf16.mxu1 %v7805_v24 }
 0x983   : > { %7256 = vmatpush3.bf16.msra.mxu0 %v7806_v53 }
 0x984   : > { %7278 = vmatpush3.bf16.msra.mxu1 %v7807_v57  ;;  %7257 = vmatprep.subr.bf16.mxu0 %v7808_v58 }
 0x985   : > { %7279 = vmatprep.subr.bf16.mxu1 %v7809_v59 }
 0x987   : > { %7258 = vmatpush3.bf16.msra.mxu0 %v7810_v60 }
 0x988   : > { %7280 = vmatpush3.bf16.msra.mxu1 %v7811_v61  ;;  %7259 = vmatprep.subr.bf16.mxu0 %v7812_v62 }
 0x989   : > { %7281 = vmatprep.subr.bf16.mxu1 %v7813_v41 }
 0x98b   : > { %7260 = vmatpush3.bf16.msra.mxu0 %v7814_v63 }
 0x98c   : > { %7282 = vmatpush3.bf16.msra.mxu1 %v7815_v0  ;;  %7261 = vmatprep.subr.bf16.mxu0 %v7816_v2 }
 0x98d   : > { %7283 = vmatprep.subr.bf16.mxu1 %v7817_v3 }
 0x98f   : > { %7262 = vmatpush3.bf16.msra.mxu0 %v7818_v4 }
 0x990   : > { %7284 = vmatpush3.bf16.msra.mxu1 %v7819_v7  ;;  %7263 = vmatprep.subr.bf16.mxu0 %v7820_v8 }
 0x991   : > { %7285 = vmatprep.subr.bf16.mxu1 %v7821_v35 }
 0x993   : > { %7264 = vmatpush3.bf16.msra.mxu0 %v7822_v9 }
 0x994   : > { %7286 = vmatpush3.bf16.msra.mxu1 %v7823_v12  ;;  %7265 = vmatprep.subr.bf16.mxu0 %v7824_v14 }
 0x995   : > { %7287 = vmatprep.subr.bf16.mxu1 %v7825_v15 }
 0x997   : > { %7266 = vmatpush3.bf16.msra.mxu0 %v7826_v16 }
 0x998   : > { %7288 = vmatpush3.bf16.msra.mxu1 %v7827_v18 }
 0x999   : > { %7563 = vmatprep.subr.bf16.mxu1 %v8080_v1 }
 0x99a   : > { %3195 = vmatmul.mubr.bf16.vlgmr.msra.gmra.mrb[52].mxu0 %v1893_v21 }
 0x99b   : > { %3235 = vmatmul.mubr.bf16.vlgmr.msra.gmra.mrb[48].mxu1 %v1895_v22  ;;  %3358 = vmatprep.mubr.bf16.mxu0 %v8082_v13 }
 0x99c   : > { %7565 = vmatprep.mubr.msk.bf16.mxu1 %vm8081_vm1, %v8080_v1 }
 0xa0d   : > { %v7135_v54 = vpop.f32.mrb[40].mxu0  ;;  %v7157_v23 = vpop.f32.mrb[36].mxu1 }
 0xa0e   : > { %v7136_v26 = vpop.f32.mrb[41].mxu0  ;;  %v7158_v56 = vpop.f32.mrb[37].mxu1 }
 0xa0f   : > { %v7137_v27 = vadd.f32 %v7136_v26, %v7135_v54  ;;  %v7159_v28 = vadd.f32 %v7158_v56, %v7157_v23  ;;  %v7138_v5 = vpop.f32.mrb[42].mxu0  ;;  %v7160_v29 = vpop.f32.mrb[38].mxu1  ;;  %v7830_v26 = vld [vmem:[%s9948_s4 + $0x44] ss:$8 sps:$4 sm:$0xff]   ;;  %v7828_v56 = vld [vmem:[%s9948_s4 + $0x40] ss:$8 sps:$4 sm:$0xff]  }
 0xa10   : > { %v7139_v30 = vpop.f32.mrb[43].mxu0  ;;  %v7161_v6 = vpop.f32.mrb[39].mxu1  ;;  %3326 = vmatprep.subr.bf16.mxu0 %v7830_v26  ;;  %v7834_v5 = vld [vmem:[%s9948_s4 + $0x60] ss:$8 sps:$4 sm:$0xff]   ;;  %v7839_v29 = vld [vmem:[%s9948_s4 + $0x74] ss:$8 sps:$4 sm:$0xff]  }
 0xa11   : > { %v2957_v31 = vadd.f32 %v7137_v27, %v2153_v55  ;;  %3327 = vmatpush1.bf16.msra.mxu0 %v7828_v56  ;;  %v7831_v27 = vld [vmem:[%s9948_s4 + $0x50] ss:$8 sps:$4 sm:$0xff]  }
 0xa12   : > { %v7837_v30 = vld [vmem:[%s9948_s4 + $0x70] ss:$8 sps:$4 sm:$0xff]  }
 0xa13   : > { %v2997_v32 = vadd.f32 %v7159_v28, %v2957_v31  ;;  %v7836_v28 = vld [vmem:[%s9948_s4 + $0x64] ss:$8 sps:$4 sm:$0xff]  }
 0xa2d   : > { %v7179_v33 = vpop.f32.mrb[44].mxu0  ;;  %v7201_v36 = vpop.f32.mrb[40].mxu1 }
 0xa2e   : > { %v7180_v37 = vpop.f32.mrb[45].mxu0  ;;  %v7202_v38 = vpop.f32.mrb[41].mxu1 }
 0xa2f   : > { %v7181_v39 = vadd.f32 %v7180_v37, %v7179_v33  ;;  %v7203_v40 = vadd.f32 %v7202_v38, %v7201_v36  ;;  %v7182_v44 = vpop.f32.mrb[46].mxu0  ;;  %v7204_v45 = vpop.f32.mrb[42].mxu1  ;;  %v3243_v36 = vld [vmem:[%s9946_s2 + $0x80] ss:$0 sm:$0xff]  ;;  %v3244_v38 = vld [vmem:[%s9946_s2 + $0x81] ss:$0 sm:$0xff] }
 0xa30   : > { %v7183_v49 = vpop.f32.mrb[47].mxu0  ;;  %v7205_v47 = vpop.f32.mrb[43].mxu1  ;;  %v6533_v45 = vld [vmem:[%s9946_s2 + $0x82] ss:$8 sm:$0x3] }
 0xa31   : > { %v3037_v50 = vadd.f32 %v7181_v39, %v2997_v32  ;;  %v3276_v49 = vrot.slane %v6533_v45, %v8247_v25 }
 0xa33   : > { %v3077_v51 = vadd.f32 %v7203_v40, %v3037_v50 }
 0xa4d   : > { %v7223_v52 = vpop.f32.mrb[48].mxu0 }
 0xa4e   : > { %v7245_v24 = vpop.f32.mrb[44].mxu1  ;;  %v7224_v53 = vpop.f32.mrb[49].mxu0 }
 0xa4f   : > { %v7225_v57 = vadd.f32 %v7224_v53, %v7223_v52  ;;  %v7246_v58 = vpop.f32.mrb[45].mxu1  ;;  %v7226_v59 = vpop.f32.mrb[50].mxu0 }
 0xa50   : > { %v7247_v60 = vadd.f32 %v7246_v58, %v7245_v24  ;;  %v7248_v61 = vpop.f32.mrb[46].mxu1  ;;  %v7227_v62 = vpop.f32.mrb[51].mxu0 }
 0xa51   : > { %v3117_v41 = vadd.f32 %v7225_v57, %v3077_v51  ;;  %v7249_v63 = vpop.f32.mrb[47].mxu1 }
 0xa53   : > { %v3157_v0 = vadd.f32 %v7247_v60, %v3117_v41 }
 0xa6d   : > { %v7267_v2 = vpop.f32.mrb[52].mxu0 }
 0xa6e   : > { %v7289_v3 = vpop.f32.mrb[48].mxu1  ;;  %v7268_v4 = vpop.f32.mrb[53].mxu0 }
 0xa6f   : > { %v7269_v7 = vadd.f32 %v7268_v4, %v7267_v2  ;;  %v7290_v8 = vpop.f32.mrb[49].mxu1  ;;  %v7270_v35 = vpop.f32.mrb[54].mxu0 }
 0xa70   : > { %v7291_v9 = vadd.f32 %v7290_v8, %v7289_v3  ;;  %v7292_v12 = vpop.f32.mrb[50].mxu1  ;;  %v7271_v14 = vpop.f32.mrb[55].mxu0 }
 0xa71   : > { %v3197_v15 = vadd.f32 %v7269_v7, %v3157_v0  ;;  %v7293_v16 = vpop.f32.mrb[51].mxu1  ;;  %v3280_v0 = vrot.slane %v6533_v45, %v8266_v42 }
 0xa73   : > { %v3237_v17 = vadd.f32 %v7291_v9, %v3197_v15 }
 0xa75   : > { %v3242_v18 = vadd.f32 %v3237_v17, %v8432_v34  ;;  %v7833_v34 = vld [vmem:[%s9948_s4 + $0x54] ss:$8 sps:$4 sm:$0xff]  }
 0xa76   : > { %3328 = vmatprep.subr.bf16.mxu0 %v7833_v34 }
 0xa77   : > { %v3245_v19 = vsel %vm444_vm3, %v3242_v18, 0.0  ;;  %3329 = vmatpush1.bf16.msra.mxu0 %v7831_v27 }
 0xa78   : > { %3246 = vadd.xlane.f32.xlu0 %v3245_v19  ;;  %3330 = vmatprep.subr.bf16.mxu0 %v7836_v28 }
 0xa7b   : > { %3331 = vmatpush1.bf16.msra.mxu0 %v7834_v5 }
 0xa7c   : > { %3332 = vmatprep.subr.bf16.mxu0 %v7839_v29 }
 0xa7f   : > { %3333 = vmatpush1.bf16.msra.mxu0 %v7837_v30 }
 0xa80   : > { %7569 = vmatprep.subr.bf16.mxu0 %v8080_v1 }
 0xb05   : > { %v3247_v21 = vpop.xlane.xlu0 %3246 }
 0xb06   : > { %v3248_v22 = vmul.f32 0.015625, %v3247_v21 }
 0xb08   : > { %v3249_v54 = vsub.f32 %v3242_v18, %v3248_v22 }
 0xb0a   : > { %v3250_v23 = vmul.f32 %v3249_v54, %v3249_v54 }
 0xb0c   : > { %v3251_v55 = vsel %vm444_vm3, %v3250_v23, 0.0 }
 0xb0d   : > { %3252 = vadd.xlane.f32.xlu1 %v3251_v55 }
 0xb9a   : > { %v3253_v6 = vpop.xlane.xlu1 %3252 }
 0xb9b   : > { %v3254_v31 = vmul.f32 0.015625, %v3253_v6 }
 0xb9d   : > { %v3255_v32 = vadd.f32 1e-05, %v3254_v31 }
 0xb9f   : > { %7994 = vrsqrt.f32 %v3255_v32 }
 0xba9   : > { %v7995_v33 = vpop.eup %7994 }
 0xbaa   : > { %v3257_v37 = vmul.f32 %v7995_v33, %v3249_v54 }
 0xbac   : > { %v3258_v39 = vmul.f32 %v3257_v37, %v3243_v36 }
 0xbae   : > { %v9083_v40 = vadd.f32 %v3258_v39, %v3244_v38 }
 0xbb0   : > { %v3260_v44 = vpack.c.bf16 %v9083_v40, %v9083_v40 }
 0xbb2   : > { %6542 = vmatmul.mubr.msk.bf16.vlgmr.msra.gmra.mrb[56].mxu0 %vm444_vm3, %v3260_v44 }
 0xbb3   : > { %7571 = vmatprep.mubr.msk.bf16.mxu0 %vm8081_vm1, %v8080_v1 }
 0xc85   : > { %v3360_v47 = vpop.f32.mrb[56].mxu0 }
 0xc86   : > { %v3361_v50 = vadd.f32 %v3360_v47, %v3276_v49  ;;  %v3362_v51 = vpop.f32.mrb[57].mxu0 }
 0xc87   : > { %v3364_v52 = vpop.f32.mrb[58].mxu0  ;;  %v9107_v4 = vadd.f32 %v3362_v51, %v3280_v0 }
 0xc88   : > { %v3365_v24 = vpop.f32.mrb[59].mxu0  ;;  %3371 = vrot.lane.b32.xlu1 %v3361_v50, %s8085_s28  ;;  %3368 = vrot.lane.b32.xlu0 %v3361_v50, %s8084_s27  ;;  %v3377_v53 = vpack.c.bf16 %v3361_v50, %v3361_v50 }
 0xc89   : > { %v3391_v35 = vpack.c.bf16 %v9107_v4, %v9107_v4 }
 0xc8b   : > { %v3643_v14 = vsel %vm336_vm0, %v3391_v35, 0 }
 0xc8c   : > { %3374 = vrot.lane.b32.xlu1 %v3361_v50, %s9963_s23  ;;  %3396 = vrot.lane.b32.xlu0 %v3377_v53, %s9964_s14 }
 0xcfa   : > { %v3372_v57 = vpop.permute.xlu1 %3371  ;;  %v3369_v58 = vpop.permute.xlu0 %3368 }
 0xcfb   : > { %v3379_v59 = vpack.c.bf16 %v3372_v57, %v3372_v57  ;;  %v3378_v60 = vpack.c.bf16 %v3369_v58, %v3369_v58 }
 0xcfd   : > { %3445 = vrot.lane.b32.xlu1 %v3378_v60, %s9964_s14  ;;  %3494 = vrot.lane.b32.xlu0 %v3379_v59, %s9964_s14 }
 0xcfe   : > { %v3375_v61 = vpop.permute.xlu1 %3374  ;;  %v3397_v62 = vpop.permute.xlu0 %3396 }
 0xcff   : > { %v3380_v41 = vpack.c.bf16 %v3375_v61, %v3375_v61  ;;  %v3402_v63 = vsel %vm520_vm4, %v3397_v62, 0 }
 0xd00   : > { %7564 = vmatpush3.bf16.xpose.msra.mxu1 %v3402_v63 }
 0xd01   : > { %3543 = vrot.lane.b32.xlu1 %v3380_v41, %s9964_s14  ;;  %7575 = vmatprep.subr.bf16.mxu1 %v8080_v1  ;;  %s9902_s14 = scalar_lea.hbm %s9953_s9, %s7093_s25 }
 0xd07   : > { %7566 = vmatmul.mubr.msk.bf16.vlgmr.msra.gmra.mrb[52].mxu1 %vm520_vm4, %v3377_v53 }
 0xd08   : > { %7577 = vmatprep.mubr.msk.bf16.mxu1 %vm8081_vm1, %v8080_v1 }
 0xd6f   : > { %v3446_v2 = vpop.permute.xlu1 %3445  ;;  %v3495_v3 = vpop.permute.xlu0 %3494 }
 0xd70   : > { %v3451_v7 = vsel %vm520_vm4, %v3446_v2, 0  ;;  %v3500_v8 = vsel %vm520_vm4, %v3495_v3, 0 }
 0xd71   : > { %7570 = vmatpush3.bf16.xpose.msra.mxu0 %v3451_v7  ;;  %7576 = vmatpush3.bf16.xpose.msra.mxu1 %v3500_v8 }
 0xd72   : > { %7581 = vmatprep.subr.bf16.mxu0 %v8080_v1  ;;  %7587 = vmatprep.subr.bf16.mxu1 %v8080_v1 }
 0xd73   : > { %v3544_v9 = vpop.permute.xlu1 %3543 }
 0xd74   : > { %v3549_v12 = vsel %vm520_vm4, %v3544_v9, 0 }
 0xd78   : > { %7572 = vmatmul.mubr.msk.bf16.vlgmr.msra.gmra.mrb[60].mxu0 %vm520_vm4, %v3378_v60  ;;  %7578 = vmatmul.mubr.msk.bf16.vlgmr.msra.gmra.mrb[56].mxu1 %vm520_vm4, %v3379_v59 }
 0xd79   : > { %7582 = vmatpush3.bf16.xpose.msra.mxu0 %v3549_v12  ;;  %7588 = vmatpush3.bf16.msra.mxu1 %v3643_v14 }
 0xd7a   : > { %7583 = vmatprep.mubr.msk.bf16.mxu0 %vm8081_vm1, %v8080_v1  ;;  %7593 = vmatprep.subr.bf16.mxu0 %v8080_v1 }
 0xd7b   : > { %7589 = vmatprep.mubr.msk.bf16.mxu1 %vm8081_vm1, %v8080_v1  ;;  %7599 = vmatprep.subr.bf16.mxu1 %v8080_v1 }
 0xd80   : > { %7584 = vmatmul.mubr.msk.bf16.vlgmr.msra.gmra.mrb[64].mxu0 %vm520_vm4, %v3380_v41 }
 0xd81   : > { %7595 = vmatprep.mubr.msk.bf16.mxu0 %vm8081_vm1, %v8080_v1 }
 0xdda   : > { %v3438_v15 = vpop.f32.mrb[52].mxu1 }
 0xddb   : > { %v7567_v16 = vpop.f32.mrb[53].mxu1  ;;  %v3591_v17 = vsel %vm332_vm2, %v3438_v15, -inf }
 0xddc   : > { %3592 = vmax.xlane.f32.xlu0 %v3591_v17  ;;  %v3441_v18 = vpop.f32.mrb[54].mxu1 }
 0xddd   : > { %v7568_v19 = vpop.f32.mrb[55].mxu1 }
 0xe4b   : > { %v3487_v21 = vpop.f32.mrb[60].mxu0  ;;  %v3536_v22 = vpop.f32.mrb[56].mxu1 }
 0xe4c   : > { %v7573_v54 = vpop.f32.mrb[61].mxu0  ;;  %v7579_v23 = vpop.f32.mrb[57].mxu1  ;;  %v3594_v55 = vsel %vm332_vm2, %v3487_v21, -inf  ;;  %v3597_v26 = vsel %vm332_vm2, %v3536_v22, -inf }
 0xe4d   : > { %3595 = vmax.xlane.f32.xlu1 %v3594_v55  ;;  %v3490_v56 = vpop.f32.mrb[62].mxu0  ;;  %3598 = vmax.xlane.f32.xlu0 %v3597_v26  ;;  %v3539_v34 = vpop.f32.mrb[58].mxu1 }
 0xe4e   : > { %v7574_v27 = vpop.f32.mrb[63].mxu0  ;;  %v7580_v28 = vpop.f32.mrb[59].mxu1  ;;  %v7840_v34 = vld [vmem:[%s9949_s5 + $0x20] sm:$0xff]  }
 0xe53   : > { %v3585_v5 = vpop.f32.mrb[64].mxu0 }
 0xe54   : > { %v7585_v29 = vpop.f32.mrb[65].mxu0  ;;  %v3600_v30 = vsel %vm332_vm2, %v3585_v5, -inf }
 0xe55   : > { %v3588_v6 = vpop.f32.mrb[66].mxu0  ;;  %3601 = vmax.xlane.f32.xlu0 %v3600_v30  ;;  %v7841_v30 = vld [vmem:[%s9949_s5 + $0x28] sm:$0xff]  }
 0xe56   : > { %v7586_v31 = vpop.f32.mrb[67].mxu0  ;;  %v7842_v6 = vld [vmem:[%s9949_s5 + $0x30] sm:$0xff]  }
 0xe57   : > { %v7843_v31 = vld [vmem:[%s9949_s5 + $0x38] sm:$0xff]  }
 0xe5e   : > { %3382 = vrot.lane.b32.xlu1 %v9107_v4, %s8084_s27  ;;  %s6225_s27 = scalar_lea.sflag [#allocation3], %s321_s21 }
 0xe69   : > { %v3593_v32 = vpop.xlane.xlu0 %3592 }
 0xe6a   : > { %v3603_v33 = vsub.f32 %v3438_v15, %v3593_v32 }
 0xe6c   : > { %v3607_v36 = vmul.f32 1.442695, %v3603_v33 }
 0xe6e   : > { %7996 = vpow2.f32 %v3607_v36 }
 0xe78   : > { %v7997_v37 = vpop.eup %7996 }
 0xe79   : > { %v3615_v38 = vsel %vm332_vm2, %v7997_v37, 0.0 }
 0xe82   : > { %3616 = vadd.xlane.f32.xlu1 %v3615_v38 }
 0xeda   : > { %v3596_v39 = vpop.xlane.xlu1 %3595  ;;  %v3599_v44 = vpop.xlane.xlu0 %3598 }
 0xedb   : > { %v3604_v45 = vsub.f32 %v3487_v21, %v3596_v39  ;;  %v3605_v49 = vsub.f32 %v3536_v22, %v3599_v44 }
 0xedd   : > { %v3609_v47 = vmul.f32 1.442695, %v3604_v45  ;;  %v3611_v50 = vmul.f32 1.442695, %v3605_v49 }
 0xede   : > { %v3383_v51 = vpop.permute.xlu1 %3382 }
 0xedf   : > { %7998 = vpow2.f32 %v3609_v47  ;;  %v3392_v52 = vpack.c.bf16 %v3383_v51, %v3383_v51 }
 0xee0   : > { %8000 = vpow2.f32 %v3611_v50 }
 0xee1   : > { %v3689_v24 = vsel %vm336_vm0, %v3392_v52, 0 }
 0xee2   : > { %7594 = vmatpush3.bf16.msra.mxu0 %v3689_v24  ;;  %v3602_v53 = vpop.xlane.xlu0 %3601 }
 0xee3   : > { %v3606_v57 = vsub.f32 %v3585_v5, %v3602_v53  ;;  %7605 = vmatprep.subr.bf16.mxu0 %v8080_v1 }
 0xee5   : > { %v3613_v58 = vmul.f32 1.442695, %v3606_v57 }
 0xee7   : > { %8002 = vpow2.f32 %v3613_v58 }
 0xee9   : > { %v7999_v59 = vpop.eup %7998 }
 0xeea   : > { %v8001_v60 = vpop.eup %8000  ;;  %v3618_v61 = vsel %vm332_vm2, %v7999_v59, 0.0 }
 0xeeb   : > { %3619 = vadd.xlane.f32.xlu0 %v3618_v61  ;;  %v3621_v62 = vsel %vm332_vm2, %v8001_v60, 0.0  ;;  %v3848_v61 = vld [vmem:[%s9946_s2 + $0x83] ss:$0 sm:$0xff] }
 0xeec   : > { %3622 = vadd.xlane.f32.xlu1 %v3621_v62 }
 0xef1   : > { %v8003_v41 = vpop.eup %8002 }
 0xef2   : > { %v3624_v63 = vsel %vm332_vm2, %v8003_v41, 0.0 }
 0xef3   : > { %3625 = vadd.xlane.f32.xlu0 %v3624_v63 }
 0xefd   : > { %3388 = vrot.lane.b32.xlu1 %v9107_v4, %s9963_s23  ;;  %s9967_s23 = smov 48  }
 0xf09   : > { %3385 = vrot.lane.b32.xlu0 %v9107_v4, %s8085_s28  ;;  %s8090_s28 = smov [#allocation2]  }
 0xf0a   : > { %s8020_s16 = sshll.u32 %s8090_s28, 4  ;;  %s8021_s16 = int_to_ptr.vmem [resolvable:$false] %s8020_s16 }
 0xf0b   : > { %s8022_s17 = scalar_lea.vmem %s8021_s16, 32 }
 0xf0f   : > { %v3617_v0 = vpop.xlane.xlu1 %3616 }
 0xf10   : > { %8004 = vrcp.f32 %v3617_v0 }
 0xf1a   : > { %v8005_v2 = vpop.eup %8004 }
 0xf1b   : > { %v3631_v3 = vmul.f32 %v8005_v2, %v7997_v37 }
 0xf1d   : > { %v3635_v7 = vpack.c.bf16 %v3631_v3, %v3631_v3 }
 0xf1f   : > { %7590 = vmatmul.mubr.msk.bf16.vlgmr.msra.gmra.mrb[60].mxu1 %vm332_vm2, %v3635_v7 }
 0xf20   : > { %7601 = vmatprep.mubr.msk.bf16.mxu1 %vm8081_vm1, %v8080_v1 }
 0xf78   : > { %v3620_v8 = vpop.xlane.xlu0 %3619 }
 0xf79   : > { %v3623_v35 = vpop.xlane.xlu1 %3622  ;;  %8006 = vrcp.f32 %v3620_v8 }
 0xf7a   : > { %8008 = vrcp.f32 %v3623_v35 }
 0xf7d   : > { %v3389_v12 = vpop.permute.xlu1 %3388 }
 0xf7e   : > { %v3394_v16 = vpack.c.bf16 %v3389_v12, %v3389_v12 }
 0xf80   : > { %v3626_v9 = vpop.xlane.xlu0 %3625  ;;  %v3781_v54 = vsel %vm336_vm0, %v3394_v16, 0 }
 0xf81   : > { %8010 = vrcp.f32 %v3626_v9 }
 0xf83   : > { %v8007_v14 = vpop.eup %8006 }
 0xf84   : > { %v8009_v15 = vpop.eup %8008  ;;  %v3632_v4 = vmul.f32 %v8007_v14, %v7999_v59  ;;  %v3386_v17 = vpop.permute.xlu0 %3385 }
 0xf85   : > { %v3633_v18 = vmul.f32 %v8009_v15, %v8001_v60  ;;  %v3393_v19 = vpack.c.bf16 %v3386_v17, %v3386_v17  ;;  %v6564_v15 = vld [vmem:[%s9950_s6 + $0x200] sm:$0xff]  ;;  %v6573_v17 = vld [vmem:[%s9950_s6 + $0x248] sm:$0xff] }
 0xf86   : > { %v3636_v21 = vpack.c.bf16 %v3632_v4, %v3632_v4  ;;  %v6565_v4 = vld [vmem:[%s9950_s6 + $0x208] sm:$0xff] }
 0xf87   : > { %v3735_v22 = vsel %vm336_vm0, %v3393_v19, 0  ;;  %v3637_v23 = vpack.c.bf16 %v3633_v18, %v3633_v18  ;;  %v6634_v19 = vcombine.low %v6565_v4, %v6573_v17 }
 0xf88   : > { %7596 = vmatmul.mubr.msk.bf16.vlgmr.msra.gmra.mrb[68].mxu0 %vm332_vm2, %v3636_v21  ;;  %7600 = vmatpush3.bf16.msra.mxu1 %v3735_v22  ;;  %v6635_v21 = vcombine.high %v6565_v4, %v6573_v17  ;;  %v6580_v22 = vld [vmem:[%s9950_s6 + $0x280] sm:$0xff]  ;;  %v6598_v4 = vld [vmem:[%s9950_s6 + $0x310] sm:$0xff]  ;;  %v6599_v17 = vld [vmem:[%s9950_s6 + $0x318] sm:$0xff] }
 0xf89   : > { %7606 = vmatpush3.bf16.msra.mxu0 %v3781_v54  ;;  %7607 = vmatprep.mubr.msk.bf16.mxu0 %vm8081_vm1, %v8080_v1  ;;  %v6588_v54 = vld [vmem:[%s9950_s6 + $0x2c0] sm:$0xff] }
 0xf8a   : > { %7611 = vmatprep.subr.bf16.mxu1 %v8080_v1 }
 0xf8b   : > { %v8011_v55 = vpop.eup %8010  ;;  %7602 = vmatmul.mubr.msk.bf16.vlgmr.msra.gmra.mrb[64].mxu1 %vm332_vm2, %v3637_v23  ;;  %v6581_v23 = vld [vmem:[%s9950_s6 + $0x288] sm:$0xff] }
 0xf8c   : > { %v3634_v26 = vmul.f32 %v8011_v55, %v8003_v41  ;;  %7619 = vmatprep.mubr.msk.bf16.mxu1 %vm8081_vm1, %v8080_v1  ;;  %7612 = vmatpush3.bf16.msra.mxu1 %v7840_v34  ;;  %v6649_v55 = vcombine.high %v6580_v22, %v6588_v54 }
 0xf8d   : > { %7613 = vmatprep.subr.bf16.mxu1 %v8080_v1 }
 0xf8e   : > { %v3638_v56 = vpack.c.bf16 %v3634_v26, %v3634_v26  ;;  %v6589_v26 = vld [vmem:[%s9950_s6 + $0x2c8] sm:$0xff] }
 0xf8f   : > { %v6650_v34 = vcombine.low %v6581_v23, %v6589_v26 }
 0xf90   : > { %7608 = vmatmul.mubr.msk.bf16.vlgmr.msra.gmra.mrb[72].mxu0 %vm332_vm2, %v3638_v56  ;;  %7614 = vmatpush3.bf16.msra.mxu1 %v7841_v30  ;;  %v6648_v56 = vcombine.low %v6580_v22, %v6588_v54 }
 0xf91   : > { %4445 = vmatprep.mubr.bf16.mxu0 %v8082_v13  ;;  %7615 = vmatprep.subr.bf16.mxu1 %v8080_v1 }
 0xf94   : > { %7616 = vmatpush3.bf16.msra.mxu1 %v7842_v6  ;;  %v6605_v6 = vld [vmem:[%s9950_s6 + $0x348] sm:$0xff] }
 0xf95   : > { %7617 = vmatprep.subr.bf16.mxu1 %v8080_v1 }
 0xf98   : > { %7618 = vmatpush3.bf16.msra.mxu1 %v7843_v31 }
 0xf99   : > { %4454 = vmatprep.subr.bf16.mxu1 %v6635_v21 }
 0xff2   : > { %v3679_v27 = vpop.f32.mrb[60].mxu1 }
 0xff3   : > { %v7591_v28 = vpop.f32.mrb[61].mxu1 }
 0xff4   : > { %v3682_v5 = vpop.f32.mrb[62].mxu1  ;;  %v6596_v28 = vld [vmem:[%s9950_s6 + $0x300] sm:$0xff] }
 0xff5   : > { %v7592_v29 = vpop.f32.mrb[63].mxu1  ;;  %v6604_v5 = vld [vmem:[%s9950_s6 + $0x340] sm:$0xff] }
 0xff6   : > { %v6597_v29 = vld [vmem:[%s9950_s6 + $0x308] sm:$0xff]  ;;  %v6665_v30 = vcombine.high %v6596_v28, %v6604_v5  ;;  %v6664_v31 = vcombine.low %v6596_v28, %v6604_v5 }
0x105b   : > { %v3725_v32 = vpop.f32.mrb[68].mxu0 }
0x105c   : > { %3824 = vrot.lane.b32.xlu1 %v3725_v32, %s9965_s24  ;;  %v7597_v33 = vpop.f32.mrb[69].mxu0  ;;  %v6666_v32 = vcombine.low %v6597_v29, %v6605_v6  ;;  %s6237_s24 = sshll.u32 %s322_s29, 4  ;;  %s9904_s24 = int_to_ptr.vmem [resolvable:$true] %s6237_s24 }
0x105d   : > { %v3728_v36 = vpop.f32.mrb[70].mxu0  ;;  %v6667_v33 = vcombine.high %v6597_v29, %v6605_v6  ;;  %v6568_v29 = vld [vmem:[%s9950_s6 + $0x220] sm:$0xff]  ;;  %v6569_v6 = vld [vmem:[%s9950_s6 + $0x228] sm:$0xff]  ;;  %s8016_s13 = scalar_lea.vmem %s9904_s24, 16  ;;  %p8023_p0 = scmp.lt.s32.totalorder %s9904_s24, %s8021_s16 }
0x105e   : > { %v7598_v37 = vpop.f32.mrb[71].mxu0  ;;  %v3771_v38 = vpop.f32.mrb[64].mxu1  ;;  %v6612_v36 = vld [vmem:[%s9950_s6 + $0x380] sm:$0xff]  ;;  %p8017_p11 = scmp.ne.s32.totalorder %s9904_s24, %s8016_s13  ;;  %p8024_p1 = scmp.lt.s32.totalorder %s8022_s17, %s8016_s13 }
0x105f   : > { %3828 = vrot.lane.b32.xlu0 %v3771_v38, %s9966_s26  ;;  %v7603_v39 = vpop.f32.mrb[65].mxu1  ;;  %v6620_v37 = vld [vmem:[%s9950_s6 + $0x3c0] sm:$0xff]  ;;  %v6613_v38 = vld [vmem:[%s9950_s6 + $0x388] sm:$0xff] }
0x1060   : > { %v3774_v44 = vpop.f32.mrb[66].mxu1  ;;  %v6681_v39 = vcombine.high %v6612_v36, %v6620_v37  ;;  %p8018_p12 = pnand %p8017_p11, %p8179_p5  ;;  %p8025_p2 = por %p8024_p1, %p8023_p0 }
0x1061   : > { %v7604_v45 = vpop.f32.mrb[67].mxu1  ;;  %v6621_v44 = vld [vmem:[%s9950_s6 + $0x3c8] sm:$0xff] }
0x1062   : > { %v6680_v45 = vcombine.low %v6612_v36, %v6620_v37  ;;  %p8019_p13 = pneg %p8018_p12 }
0x1063   : > { %v3817_v49 = vpop.f32.mrb[72].mxu0 }
0x1064   : > { %3832 = vrot.lane.b32.xlu1 %v3817_v49, %s9967_s23  ;;  %v7609_v47 = vpop.f32.mrb[73].mxu0  ;;  %v6682_v49 = vcombine.low %v6613_v38, %v6621_v44  ;;  %p8026_p3 = pnand %p8025_p2, %p8019_p13 }
0x1065   : > { %v3820_v50 = vpop.f32.mrb[74].mxu0  ;;  %v6683_v47 = vcombine.high %v6613_v38, %v6621_v44  ;;  %v6584_v38 = vld [vmem:[%s9950_s6 + $0x2a0] sm:$0xff]  ;;  %v6585_v44 = vld [vmem:[%s9950_s6 + $0x2a8] sm:$0xff] }
0x1066   : > { %v7610_v51 = vpop.f32.mrb[75].mxu0  ;;  %v6566_v50 = vld [vmem:[%s9950_s6 + $0x210] sm:$0xff] }
0x1067   : > { %v6574_v51 = vld [vmem:[%s9950_s6 + $0x250] sm:$0xff] }
0x10ce   : > { %v3825_v52 = vpop.permute.xlu1 %3824 }
0x10cf   : > { %v3835_v53 = vsel %vm520_vm4, %v3679_v27, %v3825_v52  ;;  %v6651_v27 = vcombine.high %v6581_v23, %v6589_v26  ;;  %v6567_v52 = vld [vmem:[%s9950_s6 + $0x218] sm:$0xff]  ;;  %v6614_v23 = vld [vmem:[%s9950_s6 + $0x390] sm:$0xff] }
0x10d0   : > { %v6615_v26 = vld [vmem:[%s9950_s6 + $0x398] sm:$0xff] }
0x10d1   : > { %v3829_v24 = vpop.permute.xlu0 %3828 }
0x10d2   : > { %v3836_v57 = vsel %vm959_vm5, %v3835_v53, %v3829_v24  ;;  %v6636_v24 = vcombine.low %v6566_v50, %v6574_v51  ;;  %v6637_v53 = vcombine.high %v6566_v50, %v6574_v51 }
0x10d6   : > { %v3833_v58 = vpop.permute.xlu1 %3832 }
0x10d7   : > { %v3837_v59 = vsel %vm961_vm6, %v3836_v57, %v3833_v58  ;;  %v6575_v57 = vld [vmem:[%s9950_s6 + $0x258] sm:$0xff] }
0x10d8   : > { %v3838_v60 = vpack.c.bf16 %v3837_v59, %v3837_v59  ;;  %v6638_v58 = vcombine.low %v6567_v52, %v6575_v57  ;;  %v6639_v59 = vcombine.high %v6567_v52, %v6575_v57  ;;  %v6600_v52 = vld [vmem:[%s9950_s6 + $0x320] sm:$0xff]  ;;  %v6609_v57 = vld [vmem:[%s9950_s6 + $0x368] sm:$0xff] }
0x10da   : > { %7620 = vmatmul.mubr.msk.bf16.vlgmr.msra.gmra.mrb[68].mxu1 %vm444_vm3, %v3838_v60 }
0x10db   : > { %4486 = vmatprep.mubr.bf16.mxu1 %v8082_v13  ;;  %4455 = vmatpush1.bf16.msra.mxu1 %v6634_v19 }
0x10dc   : > { %4456 = vmatprep.subr.bf16.mxu1 %v6651_v27 }
0x10df   : > { %4457 = vmatpush1.bf16.msra.mxu1 %v6650_v34 }
0x10e0   : > { %4458 = vmatprep.subr.bf16.mxu1 %v6667_v33 }
0x10e3   : > { %4459 = vmatpush1.bf16.msra.mxu1 %v6666_v32 }
0x10e4   : > { %4460 = vmatprep.subr.bf16.mxu1 %v6683_v47 }
0x10e7   : > { %4461 = vmatpush1.bf16.msra.mxu1 %v6682_v49 }
0x10e8   : > { %4536 = vmatprep.subr.bf16.mxu1 %v6639_v59 }
0x11ad   : > { %v3910_v62 = vpop.f32.mrb[68].mxu1 }
0x11ae   : > { %v3911_v41 = vadd.f32 %v3910_v62, %v3848_v61  ;;  %v7621_v63 = vpop.f32.mrb[69].mxu1 }
0x11af   : > { %v3913_v0 = vpop.f32.mrb[70].mxu1  ;;  %v3917_v63 = vld [vmem:[%s9946_s2 + $0x84] ss:$0 sm:$0xff] }
0x11b0   : > { %v7622_v2 = vpop.f32.mrb[71].mxu1  ;;  %v3916_v3 = vadd.f32 %v3911_v41, %v9083_v40  ;;  %v6572_v40 = vld [vmem:[%s9950_s6 + $0x240] sm:$0xff] }
0x11b1   : > { %v6633_v16 = vcombine.high %v6564_v15, %v6572_v40  ;;  %v6632_v18 = vcombine.low %v6564_v15, %v6572_v40  ;;  %v3918_v2 = vld [vmem:[%s9946_s2 + $0x85] ss:$0 sm:$0xff] }
0x11b2   : > { %v3919_v7 = vsel %vm444_vm3, %v3916_v3, 0.0 }
0x11b3   : > { %3920 = vadd.xlane.f32.xlu0 %v3919_v7  ;;  %4413 = vmatprep.subr.bf16.mxu0 %v6633_v16  ;;  %v6582_v7 = vld [vmem:[%s9950_s6 + $0x290] sm:$0xff] }
0x11b4   : > { %4414 = vmatpush1.bf16.msra.mxu0 %v6632_v18  ;;  %v6606_v16 = vld [vmem:[%s9950_s6 + $0x350] sm:$0xff]  ;;  %v6607_v18 = vld [vmem:[%s9950_s6 + $0x358] sm:$0xff] }
0x11b5   : > { %4415 = vmatprep.subr.bf16.mxu0 %v6649_v55  ;;  %v6669_v22 = vcombine.high %v6598_v4, %v6606_v16  ;;  %v6671_v54 = vcombine.high %v6599_v17, %v6607_v18  ;;  %v6622_v55 = vld [vmem:[%s9950_s6 + $0x3d0] sm:$0xff]  ;;  %v6668_v34 = vcombine.low %v6598_v4, %v6606_v16  ;;  %v6670_v27 = vcombine.low %v6599_v17, %v6607_v18 }
0x11b6   : > { %v6685_v28 = vcombine.high %v6614_v23, %v6622_v55  ;;  %v6684_v32 = vcombine.low %v6614_v23, %v6622_v55 }
0x11b8   : > { %4416 = vmatpush1.bf16.msra.mxu0 %v6648_v56  ;;  %v6623_v56 = vld [vmem:[%s9950_s6 + $0x3d8] sm:$0xff] }
0x11b9   : > { %4417 = vmatprep.subr.bf16.mxu0 %v6665_v30  ;;  %v6687_v5 = vcombine.high %v6615_v26, %v6623_v56  ;;  %v6576_v30 = vld [vmem:[%s9950_s6 + $0x260] sm:$0xff]  ;;  %v6686_v33 = vcombine.low %v6615_v26, %v6623_v56 }
0x11ba   : > { %v6641_v36 = vcombine.high %v6568_v29, %v6576_v30  ;;  %v6640_v49 = vcombine.low %v6568_v29, %v6576_v30 }
0x11bc   : > { %4418 = vmatpush1.bf16.msra.mxu0 %v6664_v31  ;;  %v6577_v31 = vld [vmem:[%s9950_s6 + $0x268] sm:$0xff] }
0x11bd   : > { %4419 = vmatprep.subr.bf16.mxu0 %v6681_v39  ;;  %v6643_v37 = vcombine.high %v6569_v6, %v6577_v31  ;;  %v6592_v39 = vld [vmem:[%s9950_s6 + $0x2e0] sm:$0xff]  ;;  %v6642_v47 = vcombine.low %v6569_v6, %v6577_v31 }
0x11be   : > { %v6657_v50 = vcombine.high %v6584_v38, %v6592_v39 }
0x11c0   : > { %4420 = vmatpush1.bf16.msra.mxu0 %v6680_v45  ;;  %v6593_v45 = vld [vmem:[%s9950_s6 + $0x2e8] sm:$0xff] }
0x11c1   : > { %4495 = vmatprep.subr.bf16.mxu0 %v6637_v53  ;;  %v6659_v51 = vcombine.high %v6585_v44, %v6593_v45  ;;  %v6601_v53 = vld [vmem:[%s9950_s6 + $0x328] sm:$0xff]  ;;  %v6658_v59 = vcombine.low %v6585_v44, %v6593_v45 }
0x1240   : > { %v3921_v8 = vpop.xlane.xlu0 %3920 }
0x1241   : > { %v3922_v35 = vmul.f32 0.015625, %v3921_v8  ;;  %v6590_v8 = vld [vmem:[%s9950_s6 + $0x2d0] sm:$0xff] }
0x1242   : > { %v6653_v15 = vcombine.high %v6582_v7, %v6590_v8  ;;  %v6652_v19 = vcombine.low %v6582_v7, %v6590_v8 }
0x1243   : > { %v9186_v9 = vsub.f32 %v3916_v3, %v3922_v35  ;;  %v6583_v35 = vld [vmem:[%s9950_s6 + $0x298] sm:$0xff] }
0x1245   : > { %v3924_v12 = vmul.f32 %v9186_v9, %v9186_v9 }
0x1247   : > { %v3925_v14 = vsel %vm444_vm3, %v3924_v12, 0.0 }
0x1248   : > { %3926 = vadd.xlane.f32.xlu1 %v3925_v14 }
0x12d5   : > { %v3927_v60 = vpop.xlane.xlu1 %3926 }
0x12d6   : > { %v3928_v61 = vmul.f32 0.015625, %v3927_v60 }
0x12d8   : > { %v3929_v62 = vadd.f32 1e-05, %v3928_v61  ;;  %v6675_v61 = vcombine.high %v6601_v53, %v6609_v57 }
0x12da   : > { %8012 = vrsqrt.f32 %v3929_v62  ;;  %v6616_v62 = vld [vmem:[%s9950_s6 + $0x3a0] sm:$0xff] }
0x12e4   : > { %v8013_v41 = vpop.eup %8012 }
0x12e5   : > { %v3931_v0 = vmul.f32 %v8013_v41, %v9186_v9  ;;  %v6591_v9 = vld [vmem:[%s9950_s6 + $0x2d8] sm:$0xff]  ;;  %v6624_v41 = vld [vmem:[%s9950_s6 + $0x3e0] sm:$0xff] }
0x12e6   : > { %v6655_v40 = vcombine.high %v6583_v35, %v6591_v9  ;;  %v6654_v21 = vcombine.low %v6583_v35, %v6591_v9  ;;  %v6689_v7 = vcombine.high %v6616_v62, %v6624_v41  ;;  %v6570_v35 = vld [vmem:[%s9950_s6 + $0x230] sm:$0xff]  ;;  %v6688_v4 = vcombine.low %v6616_v62, %v6624_v41  ;;  %v7856_v62 = vld [vmem:[%s9951_s7 + $0x458] sm:$0xff]  }
0x12e7   : > { %v3932_v3 = vmul.f32 %v3931_v0, %v3917_v63  ;;  %v6617_v63 = vld [vmem:[%s9950_s6 + $0x3a8] sm:$0xff]  ;;  %v6578_v9 = vld [vmem:[%s9950_s6 + $0x270] sm:$0xff]  ;;  %v7857_v41 = vld [vmem:[%s9951_s7 + $0x4d8] sm:$0xff]  }
0x12e8   : > { %v6625_v0 = vld [vmem:[%s9950_s6 + $0x3e8] sm:$0xff]  ;;  %v6645_v17 = vcombine.high %v6570_v35, %v6578_v9  ;;  %v6644_v23 = vcombine.low %v6570_v35, %v6578_v9 }
0x12e9   : > { %v9270_v12 = vadd.f32 %v3932_v3, %v3918_v2  ;;  %v6674_v3 = vcombine.low %v6601_v53, %v6609_v57  ;;  %v6691_v8 = vcombine.high %v6617_v63, %v6625_v0  ;;  %v6690_v16 = vcombine.low %v6617_v63, %v6625_v0  ;;  %v7849_v53 = vld [vmem:[%s9951_s7 + $0x4c8] sm:$0xff]   ;;  %v7858_v63 = vld [vmem:[%s9951_s7 + $0x418] sm:$0xff]  }
0x12ea   : > { %v7850_v57 = vld [vmem:[%s9951_s7 + $0x408] sm:$0xff]   ;;  %v7859_v0 = vld [vmem:[%s9951_s7 + $0x498] sm:$0xff]  }
0x12eb   : > { %v9274_v14 = vpack.c.bf16 %v9270_v12, %v9270_v12  ;;  %v7864_v35 = vld [vmem:[%s9951_s7 + $0x468] sm:$0xff]  }
0x12ec   : > { %v7865_v9 = vld [vmem:[%s9951_s7 + $0x4e8] sm:$0xff]  }
0x12ed   : > { %6696 = vmatmul.mubr.msk.bf16.vlgmr.msra.gmra.mrb[76].mxu0 %vm444_vm3, %v9274_v14  ;;  %6697 = vmatmul.mubr.msk.bf16.vlgmr.msra.gmra.mrb[72].mxu1 %vm444_vm3, %v9274_v14 }
0x12ee   : > { %4496 = vmatpush1.bf16.msra.mxu0 %v6636_v24  ;;  %4537 = vmatpush1.bf16.msra.mxu1 %v6638_v58  ;;  %v6608_v24 = vld [vmem:[%s9950_s6 + $0x360] sm:$0xff]  ;;  %v6656_v58 = vcombine.low %v6584_v38, %v6592_v39 }
0x12ef   : > { %4497 = vmatprep.subr.bf16.mxu0 %v6653_v15  ;;  %4538 = vmatprep.subr.bf16.mxu1 %v6655_v40  ;;  %v6673_v60 = vcombine.high %v6600_v52, %v6608_v24  ;;  %v6672_v2 = vcombine.low %v6600_v52, %v6608_v24  ;;  %v6571_v15 = vld [vmem:[%s9950_s6 + $0x238] sm:$0xff]  ;;  %v7847_v52 = vld [vmem:[%s9951_s7 + $0x480] sm:$0xff]   ;;  %v7848_v24 = vld [vmem:[%s9951_s7 + $0x448] sm:$0xff]  }
0x12f0   : > { %4527 = vmatprep.mubr.bf16.mxu0 %v8082_v13  ;;  %4568 = vmatprep.mubr.bf16.mxu1 %v8082_v13  ;;  %v6579_v40 = vld [vmem:[%s9950_s6 + $0x278] sm:$0xff] }
0x12f1   : > { %v6647_v18 = vcombine.high %v6571_v15, %v6579_v40  ;;  %v6646_v55 = vcombine.low %v6571_v15, %v6579_v40  ;;  %v7866_v15 = vld [vmem:[%s9951_s7 + $0x428] sm:$0xff]  }
0x12f2   : > { %4498 = vmatpush1.bf16.msra.mxu0 %v6652_v19  ;;  %4539 = vmatpush1.bf16.msra.mxu1 %v6654_v21  ;;  %v6586_v19 = vld [vmem:[%s9950_s6 + $0x2b0] sm:$0xff]  ;;  %v7867_v40 = vld [vmem:[%s9951_s7 + $0x4a8] sm:$0xff]  }
0x12f3   : > { %4499 = vmatprep.subr.bf16.mxu0 %v6669_v22  ;;  %4540 = vmatprep.subr.bf16.mxu1 %v6671_v54  ;;  %v6594_v21 = vld [vmem:[%s9950_s6 + $0x2f0] sm:$0xff]  ;;  %v6587_v22 = vld [vmem:[%s9950_s6 + $0x2b8] sm:$0xff] }
0x12f4   : > { %v6595_v54 = vld [vmem:[%s9950_s6 + $0x2f8] sm:$0xff]  ;;  %v6661_v26 = vcombine.high %v6586_v19, %v6594_v21  ;;  %v6660_v29 = vcombine.low %v6586_v19, %v6594_v21 }
0x12f5   : > { %v6663_v56 = vcombine.high %v6587_v22, %v6595_v54  ;;  %v6662_v30 = vcombine.low %v6587_v22, %v6595_v54  ;;  %v7872_v19 = vld [vmem:[%s9951_s7 + $0x478] sm:$0xff]  }
0x12f6   : > { %4500 = vmatpush1.bf16.msra.mxu0 %v6668_v34  ;;  %4541 = vmatpush1.bf16.msra.mxu1 %v6670_v27  ;;  %v6602_v34 = vld [vmem:[%s9950_s6 + $0x330] sm:$0xff]  ;;  %v7873_v21 = vld [vmem:[%s9951_s7 + $0x4f8] sm:$0xff]  }
0x12f7   : > { %4501 = vmatprep.subr.bf16.mxu0 %v6685_v28  ;;  %4542 = vmatprep.subr.bf16.mxu1 %v6687_v5  ;;  %v6610_v27 = vld [vmem:[%s9950_s6 + $0x370] sm:$0xff]  ;;  %v6603_v28 = vld [vmem:[%s9950_s6 + $0x338] sm:$0xff] }
0x12f8   : > { %v6611_v5 = vld [vmem:[%s9950_s6 + $0x378] sm:$0xff]  ;;  %v6677_v6 = vcombine.high %v6602_v34, %v6610_v27  ;;  %v6676_v38 = vcombine.low %v6602_v34, %v6610_v27 }
0x12f9   : > { %v6679_v31 = vcombine.high %v6603_v28, %v6611_v5  ;;  %v6678_v39 = vcombine.low %v6603_v28, %v6611_v5  ;;  %v7874_v22 = vld [vmem:[%s9951_s7 + $0x438] sm:$0xff]  }
0x12fa   : > { %4502 = vmatpush1.bf16.msra.mxu0 %v6684_v32  ;;  %4543 = vmatpush1.bf16.msra.mxu1 %v6686_v33  ;;  %v6618_v32 = vld [vmem:[%s9950_s6 + $0x3b0] sm:$0xff]  ;;  %v7875_v54 = vld [vmem:[%s9951_s7 + $0x4b8] sm:$0xff]  }
0x12fb   : > { %4577 = vmatprep.subr.bf16.mxu0 %v6641_v36  ;;  %4618 = vmatprep.subr.bf16.mxu1 %v6643_v37  ;;  %v6626_v33 = vld [vmem:[%s9950_s6 + $0x3f0] sm:$0xff]  ;;  %v6619_v36 = vld [vmem:[%s9950_s6 + $0x3b8] sm:$0xff] }
0x12fc   : > { %v6627_v37 = vld [vmem:[%s9950_s6 + $0x3f8] sm:$0xff]  ;;  %v6693_v44 = vcombine.high %v6618_v32, %v6626_v33 }
0x12fd   : > { %6698 = vmatmul.mubr.msk.bf16.vlgmr.msra.gmra.mrb[80].mxu0 %vm444_vm3, %v9274_v14  ;;  %6699 = vmatmul.mubr.msk.bf16.vlgmr.msra.gmra.mrb[76].mxu1 %vm444_vm3, %v9274_v14  ;;  %v6695_v45 = vcombine.high %v6619_v36, %v6627_v37 }
0x12fe   : > { %4578 = vmatpush1.bf16.msra.mxu0 %v6640_v49  ;;  %4619 = vmatpush1.bf16.msra.mxu1 %v6642_v47  ;;  %v6692_v49 = vcombine.low %v6618_v32, %v6626_v33  ;;  %v6694_v47 = vcombine.low %v6619_v36, %v6627_v37 }
0x12ff   : > { %4579 = vmatprep.subr.bf16.mxu0 %v6657_v50  ;;  %4620 = vmatprep.subr.bf16.mxu1 %v6659_v51  ;;  %v7844_v50 = vld [vmem:[%s9951_s7 + $0x440] sm:$0xff]  }
0x1300   : > { %4609 = vmatprep.mubr.bf16.mxu0 %v8082_v13  ;;  %4650 = vmatprep.mubr.bf16.mxu1 %v8082_v13  ;;  %v7846_v51 = vld [vmem:[%s9951_s7 + $0x400] sm:$0xff]  }
0x1302   : > { %4580 = vmatpush1.bf16.msra.mxu0 %v6656_v58  ;;  %4621 = vmatpush1.bf16.msra.mxu1 %v6658_v59  ;;  %v7851_v58 = vld [vmem:[%s9951_s7 + $0x488] sm:$0xff]   ;;  %v7852_v59 = vld [vmem:[%s9951_s7 + $0x450] sm:$0xff]  }
0x1303   : > { %4581 = vmatprep.subr.bf16.mxu0 %v6673_v60  ;;  %4622 = vmatprep.subr.bf16.mxu1 %v6675_v61  ;;  %v7854_v60 = vld [vmem:[%s9951_s7 + $0x410] sm:$0xff]  }
0x1304   : > { %v7855_v61 = vld [vmem:[%s9951_s7 + $0x490] sm:$0xff]  }
0x1306   : > { %4582 = vmatpush1.bf16.msra.mxu0 %v6672_v2  ;;  %4623 = vmatpush1.bf16.msra.mxu1 %v6674_v3  ;;  %v7860_v2 = vld [vmem:[%s9951_s7 + $0x460] sm:$0xff]  }
0x1307   : > { %4583 = vmatprep.subr.bf16.mxu0 %v6689_v7  ;;  %4624 = vmatprep.subr.bf16.mxu1 %v6691_v8  ;;  %v7861_v3 = vld [vmem:[%s9951_s7 + $0x4e0] sm:$0xff]  }
0x1308   : > { %v7862_v7 = vld [vmem:[%s9951_s7 + $0x420] sm:$0xff]  }
0x1309   : > { %v7863_v8 = vld [vmem:[%s9951_s7 + $0x4a0] sm:$0xff]  }
0x130a   : > { %4584 = vmatpush1.bf16.msra.mxu0 %v6688_v4  ;;  %4625 = vmatpush1.bf16.msra.mxu1 %v6690_v16  ;;  %v7868_v4 = vld [vmem:[%s9951_s7 + $0x470] sm:$0xff]  }
0x130b   : > { %4659 = vmatprep.subr.bf16.mxu0 %v6645_v17  ;;  %4700 = vmatprep.subr.bf16.mxu1 %v6647_v18  ;;  %v7869_v16 = vld [vmem:[%s9951_s7 + $0x4f0] sm:$0xff]  }
0x130c   : > { %v7870_v17 = vld [vmem:[%s9951_s7 + $0x430] sm:$0xff]  }
0x130d   : > { %6700 = vmatmul.mubr.msk.bf16.vlgmr.msra.gmra.mrb[84].mxu0 %vm444_vm3, %v9274_v14  ;;  %6701 = vmatmul.mubr.msk.bf16.vlgmr.msra.gmra.mrb[80].mxu1 %vm444_vm3, %v9274_v14  ;;  %v7871_v18 = vld [vmem:[%s9951_s7 + $0x4b0] sm:$0xff]  }
0x130e   : > { %4660 = vmatpush1.bf16.msra.mxu0 %v6644_v23  ;;  %4701 = vmatpush1.bf16.msra.mxu1 %v6646_v55  ;;  %v7876_v23 = vld [vmem:[%s9951_s7 + $0x540] sm:$0xff]  }
0x130f   : > { %4661 = vmatprep.subr.bf16.mxu0 %v6661_v26  ;;  %4702 = vmatprep.subr.bf16.mxu1 %v6663_v56  ;;  %v7877_v55 = vld [vmem:[%s9951_s7 + $0x5c0] sm:$0xff]  }
0x1310   : > { %4691 = vmatprep.mubr.bf16.mxu0 %v8082_v13  ;;  %4732 = vmatprep.mubr.bf16.mxu1 %v8082_v13  ;;  %v7845_v13 = vld [vmem:[%s9951_s7 + $0x4c0] sm:$0xff]  }
0x1311   : > { %v6628_v26 = vld [vmem:[%s9946_s2 + $0x86] ss:$8 sm:$0xf] }
0x1312   : > { %4662 = vmatpush1.bf16.msra.mxu0 %v6660_v29  ;;  %4703 = vmatpush1.bf16.msra.mxu1 %v6662_v30  ;;  %v6629_v56 = vld [vmem:[%s9946_s2 + $0x86] ss:$8 sm:$0xf0] }
0x1313   : > { %4663 = vmatprep.subr.bf16.mxu0 %v6677_v6  ;;  %4704 = vmatprep.subr.bf16.mxu1 %v6679_v31  ;;  %v9526_v34 = vor.u32 %v6629_v56, %v6628_v26  ;;  %v7893_v26 = vld [vmem:[%s9951_s7 + $0x5e0] sm:$0xff]  }
0x1315   : > { %v4013_v27 = vrot.slane %v9526_v34, %v8247_v25  ;;  %v4021_v28 = vrot.slane %v9526_v34, %v8691_v20  ;;  %v4017_v5 = vrot.slane %v9526_v34, %v8266_v42  ;;  %v4025_v29 = vrot.slane %v9526_v34, %v8694_v43 }
0x1316   : > { %4664 = vmatpush1.bf16.msra.mxu0 %v6676_v38  ;;  %4705 = vmatpush1.bf16.msra.mxu1 %v6678_v39 }
0x1317   : > { %4665 = vmatprep.subr.bf16.mxu0 %v6693_v44  ;;  %4706 = vmatprep.subr.bf16.mxu1 %v6695_v45 }
0x131a   : > { %4666 = vmatpush1.bf16.msra.mxu0 %v6692_v49  ;;  %4707 = vmatpush1.bf16.msra.mxu1 %v6694_v47 }
0x131b   : > { %7316 = vmatprep.subr.bf16.mxu0 %v7844_v50  ;;  %7338 = vmatprep.subr.bf16.mxu1 %v7845_v13 }
0x131d   : > { %6702 = vmatmul.mubr.msk.bf16.vlgmr.msra.gmra.mrb[88].mxu0 %vm444_vm3, %v9274_v14  ;;  %6703 = vmatmul.mubr.msk.bf16.vlgmr.msra.gmra.mrb[84].mxu1 %vm444_vm3, %v9274_v14  ;;  %v7853_v14 = vld [vmem:[%s9951_s7 + $0x4d0] sm:$0xff]  }
0x131e   : > { %7317 = vmatpush3.bf16.msra.mxu0 %v7846_v51  ;;  %7339 = vmatpush3.bf16.msra.mxu1 %v7847_v52 }
0x131f   : > { %7318 = vmatprep.subr.bf16.mxu0 %v7848_v24  ;;  %7340 = vmatprep.subr.bf16.mxu1 %v7849_v53  ;;  %v7878_v53 = vld [vmem:[%s9951_s7 + $0x500] sm:$0xff]  }
0x1322   : > { %7319 = vmatpush3.bf16.msra.mxu0 %v7850_v57  ;;  %7341 = vmatpush3.bf16.msra.mxu1 %v7851_v58  ;;  %v7879_v57 = vld [vmem:[%s9951_s7 + $0x580] sm:$0xff]  }
0x1323   : > { %7320 = vmatprep.subr.bf16.mxu0 %v7852_v59  ;;  %7342 = vmatprep.subr.bf16.mxu1 %v7853_v14  ;;  %v7880_v14 = vld [vmem:[%s9951_s7 + $0x548] sm:$0xff]  }
0x1326   : > { %7321 = vmatpush3.bf16.msra.mxu0 %v7854_v60  ;;  %7343 = vmatpush3.bf16.msra.mxu1 %v7855_v61  ;;  %v7881_v60 = vld [vmem:[%s9951_s7 + $0x5c8] sm:$0xff]  }
0x1327   : > { %7322 = vmatprep.subr.bf16.mxu0 %v7856_v62  ;;  %7344 = vmatprep.subr.bf16.mxu1 %v7857_v41  ;;  %v7882_v61 = vld [vmem:[%s9951_s7 + $0x508] sm:$0xff]   ;;  %v7884_v41 = vld [vmem:[%s9951_s7 + $0x550] sm:$0xff]  }
0x1328   : > { %v7883_v62 = vld [vmem:[%s9951_s7 + $0x588] sm:$0xff]  }
0x132a   : > { %7323 = vmatpush3.bf16.msra.mxu0 %v7858_v63  ;;  %7345 = vmatpush3.bf16.msra.mxu1 %v7859_v0  ;;  %v7885_v63 = vld [vmem:[%s9951_s7 + $0x5d0] sm:$0xff]   ;;  %v4033_v0 = vrot.slane %v9526_v34, %v8723_v10 }
0x132b   : > { %7324 = vmatprep.subr.bf16.mxu0 %v7860_v2  ;;  %7346 = vmatprep.subr.bf16.mxu1 %v7861_v3  ;;  %v4041_v2 = vrot.slane %v9526_v34, %v8726_v11  ;;  %v7886_v3 = vld [vmem:[%s9951_s7 + $0x510] sm:$0xff]  }
0x132e   : > { %7325 = vmatpush3.bf16.msra.mxu0 %v7862_v7  ;;  %7347 = vmatpush3.bf16.msra.mxu1 %v7863_v8  ;;  %v7887_v7 = vld [vmem:[%s9951_s7 + $0x590] sm:$0xff]   ;;  %v7888_v8 = vld [vmem:[%s9951_s7 + $0x558] sm:$0xff]  }
0x132f   : > { %7326 = vmatprep.subr.bf16.mxu0 %v7864_v35  ;;  %7348 = vmatprep.subr.bf16.mxu1 %v7865_v9  ;;  %v7889_v35 = vld [vmem:[%s9951_s7 + $0x5d8] sm:$0xff]  }
0x1332   : > { %7327 = vmatpush3.bf16.msra.mxu0 %v7866_v15  ;;  %7349 = vmatpush3.bf16.msra.mxu1 %v7867_v40 }
0x1333   : > { %7328 = vmatprep.subr.bf16.mxu0 %v7868_v4  ;;  %7350 = vmatprep.subr.bf16.mxu1 %v7869_v16 }
0x1336   : > { %7329 = vmatpush3.bf16.msra.mxu0 %v7870_v17  ;;  %7351 = vmatpush3.bf16.msra.mxu1 %v7871_v18 }
0x1337   : > { %7330 = vmatprep.subr.bf16.mxu0 %v7872_v19  ;;  %7352 = vmatprep.subr.bf16.mxu1 %v7873_v21  ;;  %v7890_v21 = vld [vmem:[%s9951_s7 + $0x518] sm:$0xff]  }
0x133a   : > { %7331 = vmatpush3.bf16.msra.mxu0 %v7874_v22  ;;  %7353 = vmatpush3.bf16.msra.mxu1 %v7875_v54  ;;  %v7891_v22 = vld [vmem:[%s9951_s7 + $0x598] sm:$0xff]  }
0x133b   : > { %7360 = vmatprep.subr.bf16.mxu0 %v7876_v23  ;;  %7382 = vmatprep.subr.bf16.mxu1 %v7877_v55  ;;  %v7892_v55 = vld [vmem:[%s9951_s7 + $0x560] sm:$0xff]  }
0x13c0   : > { %v4447_v30 = vpop.f32.mrb[76].mxu0  ;;  %v4488_v6 = vpop.f32.mrb[72].mxu1 }
0x13c1   : > { %v4448_v31 = vadd.f32 %v4447_v30, %v4013_v27  ;;  %v4489_v32 = vadd.f32 %v4488_v6, %v4021_v28  ;;  %v4449_v33 = vpop.f32.mrb[77].mxu0  ;;  %v4490_v36 = vpop.f32.mrb[73].mxu1  ;;  %v7894_v28 = vld [vmem:[%s9951_s7 + $0x520] sm:$0xff]   ;;  %v7896_v6 = vld [vmem:[%s9951_s7 + $0x568] sm:$0xff]  }
0x13c2   : > { %v4450_v37 = vadd.f32 %v4449_v33, %v4017_v5  ;;  %v4491_v38 = vadd.f32 %v4490_v36, %v4025_v29  ;;  %v4451_v39 = vpop.f32.mrb[78].mxu0  ;;  %v4492_v44 = vpop.f32.mrb[74].mxu1  ;;  %v7895_v30 = vld [vmem:[%s9951_s7 + $0x5a0] sm:$0xff]   ;;  %v7898_v36 = vld [vmem:[%s9951_s7 + $0x528] sm:$0xff]  }
0x13c3   : > { %v4741_v45 = vmax.f32 %v4448_v31, 0.0  ;;  %v4743_v49 = vmax.f32 %v4489_v32, 0.0  ;;  %v4452_v47 = vpop.f32.mrb[79].mxu0  ;;  %v4493_v50 = vpop.f32.mrb[75].mxu1  ;;  %v7897_v31 = vld [vmem:[%s9951_s7 + $0x5e8] sm:$0xff]   ;;  %v4029_v39 = vrot.slane %v9526_v34, %v8766_v46  ;;  %v4037_v44 = vrot.slane %v9526_v34, %v8769_v48  ;;  %v7902_v34 = vld [vmem:[%s9951_s7 + $0x530] sm:$0xff]  }
0x13c4   : > { %v4742_v13 = vmax.f32 %v4450_v37, 0.0  ;;  %v4744_v51 = vmax.f32 %v4491_v38, 0.0  ;;  %v6630_v32 = vld [vmem:[%s9946_s2 + $0xc6] ss:$8 sm:$0xf] }
0x13c5   : > { %v4757_v58 = vpack.c.bf16 %v4741_v45, %v4741_v45  ;;  %v4759_v59 = vpack.c.bf16 %v4743_v49, %v4743_v49  ;;  %v6631_v33 = vld [vmem:[%s9946_s2 + $0xc6] ss:$8 sm:$0xf0] }
0x13c6   : > { %v4758_v52 = vpack.c.bf16 %v4742_v13, %v4742_v13  ;;  %v4760_v24 = vpack.c.bf16 %v4744_v51, %v4744_v51  ;;  %v7899_v37 = vld [vmem:[%s9951_s7 + $0x5a8] sm:$0xff]   ;;  %v9612_v38 = vor.u32 %v6631_v33, %v6630_v32  ;;  %v7900_v45 = vld [vmem:[%s9951_s7 + $0x570] sm:$0xff]  }
0x13c7   : > { %v7901_v49 = vld [vmem:[%s9951_s7 + $0x5f0] sm:$0xff]  }
0x13c8   : > { %5831 = vmatprep.mubr.bf16.mxu0 %v4758_v52  ;;  %5871 = vmatprep.mubr.bf16.mxu1 %v4760_v24  ;;  %v4049_v47 = vrot.slane %v9612_v38, %v8266_v42  ;;  %v4057_v50 = vrot.slane %v9612_v38, %v8694_v43  ;;  %v7903_v13 = vld [vmem:[%s9951_s7 + $0x5b0] sm:$0xff]   ;;  %v7904_v24 = vld [vmem:[%s9951_s7 + $0x578] sm:$0xff]  }
0x13c9   : > { %5832 = vmatmul.mubr.bf16.vlgmr.msra.gmra.mrb[92].mxu0 %v4757_v58  ;;  %5872 = vmatmul.mubr.bf16.vlgmr.msra.gmra.mrb[88].mxu1 %v4759_v59  ;;  %v7905_v42 = vld [vmem:[%s9951_s7 + $0x5f8] sm:$0xff]  }
0x13ca   : > { %7361 = vmatpush3.bf16.msra.mxu0 %v7878_v53  ;;  %7383 = vmatpush3.bf16.msra.mxu1 %v7879_v57 }
0x13cb   : > { %7362 = vmatprep.subr.bf16.mxu0 %v7880_v14  ;;  %7384 = vmatprep.subr.bf16.mxu1 %v7881_v60 }
0x13ce   : > { %7363 = vmatpush3.bf16.msra.mxu0 %v7882_v61  ;;  %7385 = vmatpush3.bf16.msra.mxu1 %v7883_v62  ;;  %v7906_v62 = vld [vmem:[%s9951_s7 + $0x538] sm:$0xff]  }
0x13cf   : > { %7364 = vmatprep.subr.bf16.mxu0 %v7884_v41  ;;  %7386 = vmatprep.subr.bf16.mxu1 %v7885_v63  ;;  %v7907_v41 = vld [vmem:[%s9951_s7 + $0x5b8] sm:$0xff]  }
0x13d0   : > { %v4529_v9 = vpop.f32.mrb[80].mxu0  ;;  %v4570_v15 = vpop.f32.mrb[76].mxu1 }
0x13d1   : > { %v4531_v40 = vpop.f32.mrb[81].mxu0  ;;  %v4572_v4 = vpop.f32.mrb[77].mxu1  ;;  %v4530_v51 = vadd.f32 %v4529_v9, %v4029_v39  ;;  %v4571_v52 = vadd.f32 %v4570_v15, %v4037_v44  ;;  %v7910_v15 = vld [vmem:[%s9951_s7 + $0x600] sm:$0xff]  }
0x13d2   : > { %v4532_v16 = vadd.f32 %v4531_v40, %v4033_v0  ;;  %v4573_v17 = vadd.f32 %v4572_v4, %v4041_v2  ;;  %v4533_v18 = vpop.f32.mrb[82].mxu0  ;;  %v4574_v19 = vpop.f32.mrb[78].mxu1  ;;  %7365 = vmatpush3.bf16.msra.mxu0 %v7886_v3  ;;  %7387 = vmatpush3.bf16.msra.mxu1 %v7887_v7  ;;  %v7908_v7 = vld [vmem:[%s9951_s7 + $0x640] sm:$0xff]  }
0x13d3   : > { %v4534_v54 = vpop.f32.mrb[83].mxu0  ;;  %v4575_v23 = vpop.f32.mrb[79].mxu1  ;;  %7366 = vmatprep.subr.bf16.mxu0 %v7888_v8  ;;  %7388 = vmatprep.subr.bf16.mxu1 %v7889_v35  ;;  %v4745_v63 = vmax.f32 %v4530_v51, 0.0  ;;  %v4747_v0 = vmax.f32 %v4571_v52, 0.0  ;;  %v7909_v8 = vld [vmem:[%s9951_s7 + $0x6c0] sm:$0xff]   ;;  %v7912_v18 = vld [vmem:[%s9951_s7 + $0x648] sm:$0xff]  }
0x13d4   : > { %v4746_v56 = vmax.f32 %v4532_v16, 0.0  ;;  %v4748_v27 = vmax.f32 %v4573_v17, 0.0  ;;  %v7911_v16 = vld [vmem:[%s9951_s7 + $0x680] sm:$0xff]   ;;  %v7913_v19 = vld [vmem:[%s9951_s7 + $0x6c8] sm:$0xff]   ;;  %v7916_v23 = vld [vmem:[%s9951_s7 + $0x650] sm:$0xff]  }
0x13d5   : > { %v4761_v40 = vpack.c.bf16 %v4745_v63, %v4745_v63  ;;  %v4763_v4 = vpack.c.bf16 %v4747_v0, %v4747_v0  ;;  %v7915_v54 = vld [vmem:[%s9951_s7 + $0x688] sm:$0xff]   ;;  %v7939_v0 = vld [vmem:[%s9951_s7 + $0x6b8] sm:$0xff]  }
0x13d6   : > { %v4762_v5 = vpack.c.bf16 %v4746_v56, %v4746_v56  ;;  %v4764_v29 = vpack.c.bf16 %v4748_v27, %v4748_v27  ;;  %7367 = vmatpush3.bf16.msra.mxu0 %v7890_v21  ;;  %7389 = vmatpush3.bf16.msra.mxu1 %v7891_v22  ;;  %v7914_v22 = vld [vmem:[%s9951_s7 + $0x608] sm:$0xff]   ;;  %v4069_v56 = vrot.slane %v9612_v38, %v8769_v48  ;;  %v7918_v27 = vld [vmem:[%s9951_s7 + $0x610] sm:$0xff]   ;;  %v7921_v48 = vld [vmem:[%s9951_s7 + $0x6d8] sm:$0xff]  }
0x13d7   : > { %7368 = vmatprep.subr.bf16.mxu0 %v7892_v55  ;;  %7390 = vmatprep.subr.bf16.mxu1 %v7893_v26  ;;  %v7917_v55 = vld [vmem:[%s9951_s7 + $0x6d0] sm:$0xff]   ;;  %v4061_v26 = vrot.slane %v9612_v38, %v8766_v46  ;;  %v7929_v51 = vld [vmem:[%s9951_s7 + $0x6e8] sm:$0xff]  }
0x13d8   : > { %5911 = vmatprep.mubr.bf16.mxu0 %v4762_v5  ;;  %5951 = vmatprep.mubr.bf16.mxu1 %v4764_v29  ;;  %v7920_v5 = vld [vmem:[%s9951_s7 + $0x658] sm:$0xff]   ;;  %v7930_v52 = vld [vmem:[%s9951_s7 + $0x628] sm:$0xff]  }
0x13da   : > { %7369 = vmatpush3.bf16.msra.mxu0 %v7894_v28  ;;  %7391 = vmatpush3.bf16.msra.mxu1 %v7895_v30  ;;  %v7919_v28 = vld [vmem:[%s9951_s7 + $0x690] sm:$0xff]  }
0x13db   : > { %7370 = vmatprep.subr.bf16.mxu0 %v7896_v6  ;;  %7392 = vmatprep.subr.bf16.mxu1 %v7897_v31 }
0x13de   : > { %7371 = vmatpush3.bf16.msra.mxu0 %v7898_v36  ;;  %7393 = vmatpush3.bf16.msra.mxu1 %v7899_v37  ;;  %v7922_v37 = vld [vmem:[%s9951_s7 + $0x618] sm:$0xff]  }
0x13df   : > { %7372 = vmatprep.subr.bf16.mxu0 %v7900_v45  ;;  %7394 = vmatprep.subr.bf16.mxu1 %v7901_v49  ;;  %v7923_v45 = vld [vmem:[%s9951_s7 + $0x698] sm:$0xff]   ;;  %v7924_v49 = vld [vmem:[%s9951_s7 + $0x660] sm:$0xff]  }
0x13e0   : > { %v9640_v43 = vpop.f32.mrb[84].mxu0  ;;  %v9642_v53 = vpop.f32.mrb[80].mxu1 }
0x13e1   : > { %v4613_v57 = vpop.f32.mrb[85].mxu0  ;;  %v4654_v58 = vpop.f32.mrb[81].mxu1 }
0x13e2   : > { %v4614_v59 = vadd.f32 %v4613_v57, %v4049_v47  ;;  %v4655_v14 = vadd.f32 %v4654_v58, %v4057_v50  ;;  %v4615_v60 = vpop.f32.mrb[86].mxu0  ;;  %v4656_v61 = vpop.f32.mrb[82].mxu1  ;;  %7373 = vmatpush3.bf16.msra.mxu0 %v7902_v34  ;;  %7395 = vmatpush3.bf16.msra.mxu1 %v7903_v13  ;;  %v7925_v47 = vld [vmem:[%s9951_s7 + $0x6e0] sm:$0xff]   ;;  %v7928_v13 = vld [vmem:[%s9951_s7 + $0x668] sm:$0xff]   ;;  %v7932_v57 = vld [vmem:[%s9951_s7 + $0x670] sm:$0xff]   ;;  %v4053_v58 = vrot.slane %v9612_v38, %v8691_v20 }
0x13e3   : > { %v4616_v2 = vpop.f32.mrb[87].mxu0  ;;  %v4657_v3 = vpop.f32.mrb[83].mxu1  ;;  %7374 = vmatprep.subr.bf16.mxu0 %v7904_v24  ;;  %7396 = vmatprep.subr.bf16.mxu1 %v7905_v42  ;;  %v7926_v50 = vld [vmem:[%s9951_s7 + $0x620] sm:$0xff]   ;;  %v4045_v24 = vrot.slane %v9612_v38, %v8247_v25  ;;  %v7931_v42 = vld [vmem:[%s9951_s7 + $0x6a8] sm:$0xff]   ;;  %v4065_v25 = vrot.slane %v9612_v38, %v8723_v10  ;;  %v7934_v60 = vld [vmem:[%s9951_s7 + $0x630] sm:$0xff]  }
0x13e4   : > { %v4750_v35 = vmax.f32 %v4614_v59, 0.0  ;;  %v4752_v9 = vmax.f32 %v4655_v14, 0.0  ;;  %v7927_v34 = vld [vmem:[%s9951_s7 + $0x6a0] sm:$0xff]   ;;  %v7933_v59 = vld [vmem:[%s9951_s7 + $0x6f0] sm:$0xff]   ;;  %v4073_v14 = vrot.slane %v9612_v38, %v8726_v11  ;;  %v7936_v10 = vld [vmem:[%s9951_s7 + $0x678] sm:$0xff]  }
0x13e5   : > { %v4612_v61 = vadd.f32 %v9640_v43, %v4045_v24  ;;  %v7935_v20 = vld [vmem:[%s9951_s7 + $0x6b0] sm:$0xff]   ;;  %v7937_v11 = vld [vmem:[%s9951_s7 + $0x6f8] sm:$0xff]   ;;  %v7941_v3 = vld [vmem:[%s9951_s7 + $0x7c0] sm:$0xff]  }
0x13e6   : > { %7375 = vmatpush3.bf16.msra.mxu0 %v7906_v62  ;;  %7397 = vmatpush3.bf16.msra.mxu1 %v7907_v41  ;;  %v4766_v17 = vpack.c.bf16 %v4750_v35, %v4750_v35  ;;  %v4768_v21 = vpack.c.bf16 %v4752_v9, %v4752_v9  ;;  %v4653_v62 = vadd.f32 %v9642_v53, %v4053_v58  ;;  %v7938_v43 = vld [vmem:[%s9951_s7 + $0x638] sm:$0xff]   ;;  %v7940_v53 = vld [vmem:[%s9951_s7 + $0x740] sm:$0xff]  }
0x13e7   : > { %7404 = vmatprep.subr.bf16.mxu0 %v7908_v7  ;;  %7426 = vmatprep.subr.bf16.mxu1 %v7909_v8  ;;  %v4749_v63 = vmax.f32 %v4612_v61, 0.0  ;;  %v7942_v35 = vld [vmem:[%s9951_s7 + $0x700] sm:$0xff]  }
0x13e8   : > { %v4751_v2 = vmax.f32 %v4653_v62, 0.0 }
0x13e9   : > { %5912 = vmatmul.mubr.bf16.vlgmr.msra.gmra.mrb[96].mxu0 %v4761_v40  ;;  %5952 = vmatmul.mubr.bf16.vlgmr.msra.gmra.mrb[92].mxu1 %v4763_v4  ;;  %v4765_v9 = vpack.c.bf16 %v4749_v63, %v4749_v63  ;;  %v7944_v4 = vld [vmem:[%s9951_s7 + $0x748] sm:$0xff]  }
0x13ea   : > { %7405 = vmatpush3.bf16.msra.mxu0 %v7910_v15  ;;  %5991 = vmatprep.mubr.bf16.mxu0 %v4766_v17  ;;  %v7943_v15 = vld [vmem:[%s9951_s7 + $0x780] sm:$0xff]   ;;  %v4767_v40 = vpack.c.bf16 %v4751_v2, %v4751_v2  ;;  %v7945_v17 = vld [vmem:[%s9951_s7 + $0x7c8] sm:$0xff]  }
0x13eb   : > { %7427 = vmatpush3.bf16.msra.mxu1 %v7911_v16  ;;  %6031 = vmatprep.mubr.bf16.mxu1 %v4768_v21  ;;  %v7947_v21 = vld [vmem:[%s9951_s7 + $0x788] sm:$0xff]  }
0x13ec   : > { %7406 = vmatprep.subr.bf16.mxu0 %v7912_v18  ;;  %7428 = vmatprep.subr.bf16.mxu1 %v7913_v19  ;;  %v7946_v19 = vld [vmem:[%s9951_s7 + $0x708] sm:$0xff]  }
0x13ee   : > { %7407 = vmatpush3.bf16.msra.mxu0 %v7914_v22  ;;  %v7948_v22 = vld [vmem:[%s9951_s7 + $0x750] sm:$0xff]  }
0x13ef   : > { %7429 = vmatpush3.bf16.msra.mxu1 %v7915_v54  ;;  %7408 = vmatprep.subr.bf16.mxu0 %v7916_v23  ;;  %v7949_v54 = vld [vmem:[%s9951_s7 + $0x7d0] sm:$0xff]  }
0x13f0   : > { %v4693_v29 = vpop.f32.mrb[88].mxu0  ;;  %v4734_v46 = vpop.f32.mrb[84].mxu1  ;;  %7430 = vmatprep.subr.bf16.mxu1 %v7917_v55  ;;  %v7950_v23 = vld [vmem:[%s9951_s7 + $0x710] sm:$0xff]  }
0x13f1   : > { %v9696_v30 = vadd.f32 %v4693_v29, %v4061_v26  ;;  %v9698_v6 = vadd.f32 %v4734_v46, %v4069_v56  ;;  %v4695_v31 = vpop.f32.mrb[89].mxu0  ;;  %v4736_v32 = vpop.f32.mrb[85].mxu1  ;;  %v7951_v55 = vld [vmem:[%s9951_s7 + $0x790] sm:$0xff]   ;;  %v7952_v26 = vld [vmem:[%s9951_s7 + $0x758] sm:$0xff]   ;;  %v7957_v29 = vld [vmem:[%s9951_s7 + $0x7e0] sm:$0xff]  }
0x13f2   : > { %v4697_v33 = vpop.f32.mrb[90].mxu0  ;;  %v4738_v36 = vpop.f32.mrb[86].mxu1  ;;  %7409 = vmatpush3.bf16.msra.mxu0 %v7918_v27  ;;  %v4696_v38 = vadd.f32 %v4695_v31, %v4065_v25  ;;  %v4737_v41 = vadd.f32 %v4736_v32, %v4073_v14  ;;  %v7953_v56 = vld [vmem:[%s9951_s7 + $0x7d8] sm:$0xff]   ;;  %v7958_v46 = vld [vmem:[%s9951_s7 + $0x720] sm:$0xff]   ;;  %v7960_v31 = vld [vmem:[%s9951_s7 + $0x768] sm:$0xff]  }
0x13f3   : > { %7431 = vmatpush3.bf16.msra.mxu1 %v7919_v28  ;;  %v4698_v39 = vpop.f32.mrb[91].mxu0  ;;  %v4739_v44 = vpop.f32.mrb[87].mxu1  ;;  %7410 = vmatprep.subr.bf16.mxu0 %v7920_v5  ;;  %v7954_v27 = vld [vmem:[%s9951_s7 + $0x718] sm:$0xff]   ;;  %v7956_v5 = vld [vmem:[%s9951_s7 + $0x760] sm:$0xff]   ;;  %v7961_v32 = vld [vmem:[%s9951_s7 + $0x7e8] sm:$0xff]  }
0x13f4   : > { %7432 = vmatprep.subr.bf16.mxu1 %v7921_v48  ;;  %v4754_v7 = vmax.f32 %v4696_v38, 0.0  ;;  %v4756_v8 = vmax.f32 %v4737_v41, 0.0  ;;  %v7955_v28 = vld [vmem:[%s9951_s7 + $0x798] sm:$0xff]   ;;  %v7959_v48 = vld [vmem:[%s9951_s7 + $0x7a0] sm:$0xff]   ;;  %v7962_v33 = vld [vmem:[%s9951_s7 + $0x728] sm:$0xff]  }
0x13f5   : > { %v7963_v36 = vld [vmem:[%s9951_s7 + $0x7a8] sm:$0xff]   ;;  %v7965_v39 = vld [vmem:[%s9951_s7 + $0x7f0] sm:$0xff]  }
0x13f6   : > { %7411 = vmatpush3.bf16.msra.mxu0 %v7922_v37  ;;  %v4770_v16 = vpack.c.bf16 %v4754_v7, %v4754_v7  ;;  %v4772_v18 = vpack.c.bf16 %v4756_v8, %v4756_v8  ;;  %v7964_v37 = vld [vmem:[%s9951_s7 + $0x770] sm:$0xff]  }
0x13f7   : > { %7433 = vmatpush3.bf16.msra.mxu1 %v7923_v45  ;;  %7412 = vmatprep.subr.bf16.mxu0 %v7924_v49  ;;  %v7966_v44 = vld [vmem:[%s9951_s7 + $0x730] sm:$0xff]   ;;  %v7968_v49 = vld [vmem:[%s9951_s7 + $0x778] sm:$0xff]  }
0x13f8   : > { %7434 = vmatprep.subr.bf16.mxu1 %v7925_v47  ;;  %v7967_v45 = vld [vmem:[%s9951_s7 + $0x7b0] sm:$0xff]   ;;  %v7969_v47 = vld [vmem:[%s9951_s7 + $0x7f8] sm:$0xff]  }
0x13fa   : > { %7413 = vmatpush3.bf16.msra.mxu0 %v7926_v50  ;;  %v7970_v50 = vld [vmem:[%s9951_s7 + $0x738] sm:$0xff]  }
0x13fb   : > { %7435 = vmatpush3.bf16.msra.mxu1 %v7927_v34  ;;  %7414 = vmatprep.subr.bf16.mxu0 %v7928_v13  ;;  %v4753_v34 = vmax.f32 %v9696_v30, 0.0  ;;  %v7971_v13 = vld [vmem:[%s9951_s7 + $0x7b8] sm:$0xff]  }
0x13fc   : > { %7436 = vmatprep.subr.bf16.mxu1 %v7929_v51  ;;  %v4755_v51 = vmax.f32 %v9698_v6, 0.0 }
0x13fe   : > { %7415 = vmatpush3.bf16.msra.mxu0 %v7930_v52  ;;  %v4769_v52 = vpack.c.bf16 %v4753_v34, %v4753_v34  ;;  %v4771_v24 = vpack.c.bf16 %v4755_v51, %v4755_v51  ;;  %v7973_v34 = vld [vmem:[%s9952_s8 + $0x8] sm:$0xff]  }
0x13ff   : > { %7437 = vmatpush3.bf16.msra.mxu1 %v7931_v42  ;;  %7416 = vmatprep.subr.bf16.mxu0 %v7932_v57  ;;  %v5030_v57 = vld [vmem:[%s9946_s2 + $0x87] ss:$0 sm:$0xff] }
0x1400   : > { %7438 = vmatprep.subr.bf16.mxu1 %v7933_v59 }
0x1402   : > { %7417 = vmatpush3.bf16.msra.mxu0 %v7934_v60 }
0x1403   : > { %7439 = vmatpush3.bf16.msra.mxu1 %v7935_v20  ;;  %7418 = vmatprep.subr.bf16.mxu0 %v7936_v10 }
0x1404   : > { %7440 = vmatprep.subr.bf16.mxu1 %v7937_v11 }
0x1406   : > { %7419 = vmatpush3.bf16.msra.mxu0 %v7938_v43 }
0x1407   : > { %7441 = vmatpush3.bf16.msra.mxu1 %v7939_v0  ;;  %7448 = vmatprep.subr.bf16.mxu0 %v7940_v53 }
0x1408   : > { %7470 = vmatprep.subr.bf16.mxu1 %v7941_v3 }
0x1409   : > { %5992 = vmatmul.mubr.bf16.vlgmr.msra.gmra.mrb[100].mxu0 %v4765_v9 }
0x140a   : > { %6032 = vmatmul.mubr.bf16.vlgmr.msra.gmra.mrb[96].mxu1 %v4767_v40  ;;  %7449 = vmatpush3.bf16.msra.mxu0 %v7942_v35 }
0x140b   : > { %6071 = vmatprep.mubr.bf16.mxu0 %v4770_v16  ;;  %7471 = vmatpush3.bf16.msra.mxu1 %v7943_v15 }
0x140c   : > { %6111 = vmatprep.mubr.bf16.mxu1 %v4772_v18  ;;  %7450 = vmatprep.subr.bf16.mxu0 %v7944_v4 }
0x140d   : > { %7472 = vmatprep.subr.bf16.mxu1 %v7945_v17 }
0x140e   : > { %7451 = vmatpush3.bf16.msra.mxu0 %v7946_v19 }
0x140f   : > { %7473 = vmatpush3.bf16.msra.mxu1 %v7947_v21  ;;  %7452 = vmatprep.subr.bf16.mxu0 %v7948_v22 }
0x1410   : > { %7474 = vmatprep.subr.bf16.mxu1 %v7949_v54 }
0x1412   : > { %7453 = vmatpush3.bf16.msra.mxu0 %v7950_v23 }
0x1413   : > { %7475 = vmatpush3.bf16.msra.mxu1 %v7951_v55  ;;  %7454 = vmatprep.subr.bf16.mxu0 %v7952_v26 }
0x1414   : > { %7476 = vmatprep.subr.bf16.mxu1 %v7953_v56 }
0x1416   : > { %7455 = vmatpush3.bf16.msra.mxu0 %v7954_v27 }
0x1417   : > { %7477 = vmatpush3.bf16.msra.mxu1 %v7955_v28  ;;  %7456 = vmatprep.subr.bf16.mxu0 %v7956_v5 }
0x1418   : > { %7478 = vmatprep.subr.bf16.mxu1 %v7957_v29 }
0x141a   : > { %7457 = vmatpush3.bf16.msra.mxu0 %v7958_v46 }
0x141b   : > { %7479 = vmatpush3.bf16.msra.mxu1 %v7959_v48  ;;  %7458 = vmatprep.subr.bf16.mxu0 %v7960_v31 }
0x141c   : > { %7480 = vmatprep.subr.bf16.mxu1 %v7961_v32 }
0x141e   : > { %7459 = vmatpush3.bf16.msra.mxu0 %v7962_v33 }
0x141f   : > { %7481 = vmatpush3.bf16.msra.mxu1 %v7963_v36  ;;  %7460 = vmatprep.subr.bf16.mxu0 %v7964_v37 }
0x1420   : > { %7482 = vmatprep.subr.bf16.mxu1 %v7965_v39 }
0x1422   : > { %7461 = vmatpush3.bf16.msra.mxu0 %v7966_v44 }
0x1423   : > { %7483 = vmatpush3.bf16.msra.mxu1 %v7967_v45  ;;  %7462 = vmatprep.subr.bf16.mxu0 %v7968_v49 }
0x1424   : > { %7484 = vmatprep.subr.bf16.mxu1 %v7969_v47 }
0x1426   : > { %7463 = vmatpush3.bf16.msra.mxu0 %v7970_v50  ;;  %v7972_v50 = vld [vmem:[%s9952_s8] sm:$0xff]  }
0x1427   : > { %7485 = vmatpush3.bf16.msra.mxu1 %v7971_v13  ;;  %7623 = vmatprep.subr.bf16.mxu0 %v8080_v1  ;;  %v7975_v13 = vld [vmem:[%s9952_s8 + $0x18] sm:$0xff]  }
0x1429   : > { %6072 = vmatmul.mubr.bf16.vlgmr.msra.gmra.mrb[104].mxu0 %v4769_v52 }
0x142a   : > { %6112 = vmatmul.mubr.bf16.vlgmr.msra.gmra.mrb[100].mxu1 %v4771_v24  ;;  %7631 = vmatprep.mubr.msk.bf16.mxu0 %vm8081_vm1, %v8080_v1 }
0x142b   : > { %7624 = vmatpush3.bf16.msra.mxu0 %v7972_v50 }
0x142c   : > { %7625 = vmatprep.subr.bf16.mxu0 %v8080_v1 }
0x142f   : > { %7626 = vmatpush3.bf16.msra.mxu0 %v7973_v34 }
0x1430   : > { %7627 = vmatprep.subr.bf16.mxu0 %v8080_v1 }
0x149c   : > { %v7332_v30 = vpop.f32.mrb[92].mxu0  ;;  %v7354_v42 = vpop.f32.mrb[88].mxu1 }
0x149d   : > { %v7333_v58 = vpop.f32.mrb[93].mxu0  ;;  %v7355_v6 = vpop.f32.mrb[89].mxu1 }
0x149e   : > { %v7334_v59 = vadd.f32 %v7333_v58, %v7332_v30  ;;  %v7356_v25 = vadd.f32 %v7355_v6, %v7354_v42  ;;  %v7335_v14 = vpop.f32.mrb[94].mxu0  ;;  %v7357_v60 = vpop.f32.mrb[90].mxu1  ;;  %v6120_v42 = vld [vmem:[%s9946_s2 + $0x100] ss:$0 sm:$0xff]  ;;  %v6121_v58 = vld [vmem:[%s9946_s2 + $0x101] ss:$0 sm:$0xff] }
0x149f   : > { %v7336_v61 = vpop.f32.mrb[95].mxu0  ;;  %v7358_v20 = vpop.f32.mrb[91].mxu1 }
0x14a0   : > { %v5834_v10 = vadd.f32 %v7334_v59, %v5030_v57 }
0x14a2   : > { %v5874_v62 = vadd.f32 %v7356_v25, %v5834_v10 }
0x14bc   : > { %v7376_v11 = vpop.f32.mrb[96].mxu0  ;;  %v7398_v38 = vpop.f32.mrb[92].mxu1 }
0x14bd   : > { %v7377_v41 = vpop.f32.mrb[97].mxu0  ;;  %v7399_v43 = vpop.f32.mrb[93].mxu1 }
0x14be   : > { %v7378_v63 = vadd.f32 %v7377_v41, %v7376_v11  ;;  %v7400_v0 = vadd.f32 %v7399_v43, %v7398_v38  ;;  %v7379_v53 = vpop.f32.mrb[98].mxu0  ;;  %v7401_v2 = vpop.f32.mrb[94].mxu1  ;;  %v6155_v38 = vld [vmem:[%s9946_s2 + $0x1] ss:$0 sm:$0xff] }
0x14bf   : > { %v7380_v3 = vpop.f32.mrb[99].mxu0  ;;  %v7402_v7 = vpop.f32.mrb[95].mxu1 }
0x14c0   : > { %v5914_v8 = vadd.f32 %v7378_v63, %v5874_v62 }
0x14c2   : > { %v5954_v35 = vadd.f32 %v7400_v0, %v5914_v8 }
0x14dc   : > { %v7420_v9 = vpop.f32.mrb[100].mxu0 }
0x14dd   : > { %v7442_v15 = vpop.f32.mrb[96].mxu1  ;;  %v7421_v40 = vpop.f32.mrb[101].mxu0 }
0x14de   : > { %v7422_v4 = vadd.f32 %v7421_v40, %v7420_v9  ;;  %v7443_v16 = vpop.f32.mrb[97].mxu1  ;;  %v7423_v17 = vpop.f32.mrb[102].mxu0 }
0x14df   : > { %v7444_v18 = vadd.f32 %v7443_v16, %v7442_v15  ;;  %v7445_v19 = vpop.f32.mrb[98].mxu1  ;;  %v7424_v21 = vpop.f32.mrb[103].mxu0 }
0x14e0   : > { %v5994_v22 = vadd.f32 %v7422_v4, %v5954_v35  ;;  %v7446_v54 = vpop.f32.mrb[99].mxu1 }
0x14e2   : > { %v6034_v23 = vadd.f32 %v7444_v18, %v5994_v22 }
0x14fc   : > { %v7464_v55 = vpop.f32.mrb[104].mxu0 }
0x14fd   : > { %v7486_v26 = vpop.f32.mrb[100].mxu1  ;;  %v7465_v56 = vpop.f32.mrb[105].mxu0 }
0x14fe   : > { %v7466_v27 = vadd.f32 %v7465_v56, %v7464_v55  ;;  %v7487_v28 = vpop.f32.mrb[101].mxu1  ;;  %v7467_v5 = vpop.f32.mrb[106].mxu0 }
0x14ff   : > { %v7488_v29 = vadd.f32 %v7487_v28, %v7486_v26  ;;  %v7489_v46 = vpop.f32.mrb[102].mxu1  ;;  %v7468_v48 = vpop.f32.mrb[107].mxu0 }
0x1500   : > { %v6074_v31 = vadd.f32 %v7466_v27, %v6034_v23  ;;  %v7490_v32 = vpop.f32.mrb[103].mxu1 }
0x1502   : > { %v6114_v33 = vadd.f32 %v7488_v29, %v6074_v31 }
0x1504   : > { %v6119_v36 = vadd.f32 %v6114_v33, %v9270_v12  ;;  %v7974_v12 = vld [vmem:[%s9952_s8 + $0x10] sm:$0xff]  }
0x1505   : > { %7628 = vmatpush3.bf16.msra.mxu0 %v7974_v12 }
0x1506   : > { %v6122_v37 = vsel %vm444_vm3, %v6119_v36, 0.0  ;;  %7629 = vmatprep.subr.bf16.mxu0 %v8080_v1 }
0x1507   : > { %6123 = vadd.xlane.f32.xlu0 %v6122_v37 }
0x1509   : > { %7630 = vmatpush3.bf16.msra.mxu0 %v7975_v13 }
0x1594   : > { %v6124_v39 = vpop.xlane.xlu0 %6123 }
0x1595   : > { %v6125_v44 = vmul.f32 0.015625, %v6124_v39 }
0x1597   : > { %v6126_v45 = vsub.f32 %v6119_v36, %v6125_v44 }
0x1599   : > { %v6127_v49 = vmul.f32 %v6126_v45, %v6126_v45 }
0x159b   : > { %v6128_v47 = vsel %vm444_vm3, %v6127_v49, 0.0 }
0x159c   : > { %6129 = vadd.xlane.f32.xlu0 %v6128_v47 }
0x1629   : > { %v6130_v51 = vpop.xlane.xlu0 %6129 }
0x162a   : > { %v6131_v52 = vmul.f32 0.015625, %v6130_v51 }
0x162c   : > { %v6132_v24 = vadd.f32 1e-05, %v6131_v52 }
0x162e   : > { %8014 = vrsqrt.f32 %v6132_v24 }
0x1638   : > { %v8015_v30 = vpop.eup %8014 }
0x1639   : > { %v6134_v57 = vmul.f32 %v8015_v30, %v6126_v45 }
0x163b   : > { %v6135_v6 = vmul.f32 %v6134_v57, %v6120_v42 }
0x163d   : > { %v6136_v59 = vadd.f32 %v6135_v6, %v6121_v58 }
0x163f   : > { %v6137_v1 = vsel %vm444_vm3, %v6136_v59, 0.0 }
0x1640   : > { %v6138_v25 = vrot.slane %v6137_v1, 4 }
0x1642   : > { %v6139_v14 = vadd.f32 %v6138_v25, %v6137_v1 }
0x1644   : > { %v6140_v60 = vrot.slane %v6139_v14, 2 }
0x1646   : > { %v6141_v61 = vadd.f32 %v6140_v60, %v6139_v14 }
0x1648   : > { %v6142_v20 = vrot.slane %v6141_v61, 1 }
0x164a   : > { %v6143_v10 = vadd.f32 %v6142_v20, %v6141_v61 }
0x164c   : > { %v6145_v62 = vmul.f32 0.125, %v6143_v10 }
0x164e   : > { %v6146_v11 = vpack.c.bf16 %v6145_v62, %v6145_v62 }
0x1650   : > { %7632 = vmatmul.mubr.msk.bf16.vlgmr.msra.gmra.mrb[108].mxu0 %vm444_vm3, %v6146_v11 }
0x1723   : > { %v6217_v41 = vpop.f32.mrb[108].mxu0 }
0x1724   : > { %v6218_v43 = vadd.f32 %v6217_v41, %v6155_v38  ;;  %v7633_v63 = vpop.f32.mrb[109].mxu0 }
0x1725   : > { %v6220_v0 = vpop.f32.mrb[110].mxu0 }
0x1726   : > { %6223 = vst [vmem:[%s322_s29] sm:$0x1] %v6218_v43  ;;  %v7634_v53 = vpop.f32.mrb[111].mxu0 }
0x1727   : > { %8029 = shalt.err (!%p8026_p3)
}
0x1728   : > { %s8030_s21 = scalar_lea.hbm %s9902_s14, 16  ;;  %s8034_s29 = scalar_lea.hbm %s9953_s9, 32 }
0x1729   : > { %p8031_p4 = scmp.ne.s32.totalorder %s9902_s14, %s8030_s21  ;;  %p8035_p9 = scmp.lt.u32.totalorder %s9902_s14, %s9953_s9 }
0x172a   : > { %p8036_p10 = scmp.lt.u32.totalorder %s8034_s29, %s8030_s21  ;;  %p8038_p12 = scmp.lt.u32.totalorder %s8030_s21, %s9902_s14 }
0x172b   : > { %p8032_p7 = pnand %p8031_p4, %p8179_p5 }
0x172c   : > { %p8037_p11 = por %p8036_p10, %p8035_p9 }
0x172d   : > { %p8033_p8 = pneg %p8032_p7 }
0x172e   : > { %p8039_p13 = por %p8038_p12, %p8037_p11 }
0x1730   : > { %p8040_p0 = pnand %p8039_p13, %p8033_p8 }
0x1732   : > { %8043 = shalt.err (!%p8040_p0)
}
0x1733   : > { %7635 = dma.vmem_to_hbm [thread:$0]  (%p8179_p5), %s9904_s24, 16, %s9902_s14, %s6225_s27  }
0x1734 PF: > { %p7641_p1 = scmp.ge.s32.totalorder %s8078_s12, 2  ;;  %s6249_s13 = sand.u32 1, %s8066_s30  }
0x1735   : > { %s6250_s28 = scalar_lea.sflag [#allocation3], %s6249_s13 }
0x1736   : > { %p7638_p2 = pnand %p7641_p1, %p8183_p6 }
0x1738   : > { %8061 = dma.done.wait (!%p7638_p2), %s6250_s28, 16  }
0x1739   : > { %8063 = vsyncadd (!%p7638_p2), %s6250_s28, 4294967280  ;;  %p19_p3 = scmp.ge.s32.totalorder %s8166_s15, 4   ;;  %s9968_s30 = smov %s8070_s10 }
0x173a   : > { %s9969_s10 = smov %s8074_s11  ;;  %s9970_s11 = smov %s8177_s18 }
0x173b   : > { %s9971_s12 = smov %s8166_s15  ;;  %21 = sbr.rel (!%p19_p3) target bundleno = 3 (0x3), region = 101 }
0x1742   :  { %6254 = vsyncpa [#allocation3], 1 }
0x1743   :  { %6256 = vsyncpa [#allocation3 + $0x1], 1 }

// kernel: tpu_custom_call.1
= control target key start
LH: loop header
LB: loop body
LE: loop exit
PB: predicated region body
PF: predicated region fallthrough
CT: control target
= control target key end

     0   :  { %14 = vsyncpa [#allocation3], 0  ;;  %s9944_s0 = inlined_call_operand.vmem [shape: f32[2,8,8], index: 0, kind: input, shape index: {}]   ;;  %s9945_s1 = inlined_call_operand.vmem [shape: f32[8,64], index: 1, kind: input, shape index: {}]   ;;  %s9946_s2 = inlined_call_operand.vmem [shape: f32[18,2048], index: 2, kind: input, shape index: {}]   ;;  %s9947_s3 = inlined_call_operand.vmem [shape: bf16[8,64], index: 3, kind: input, shape index: {}]   ;;  %s9948_s4 = inlined_call_operand.vmem [shape: bf16[2,64,192], index: 4, kind: input, shape index: {}]   ;;  %s9949_s5 = inlined_call_operand.vmem [shape: bf16[2,64,64], index: 5, kind: input, shape index: {}]   ;;  %s9950_s6 = inlined_call_operand.vmem [shape: bf16[2,64,2048], index: 6, kind: input, shape index: {}]   ;;  %s9951_s7 = inlined_call_operand.vmem [shape: bf16[2,2048,64], index: 7, kind: input, shape index: {}]   ;;  %s9952_s8 = inlined_call_operand.vmem [shape: bf16[64,128], index: 8, kind: input, shape index: {}]   ;;  %s9953_s9 = inlined_call_operand.hbm [shape: f32[2,1,128], index: 9, kind: output, shape index: {}]  }
   0x1   :  { %16 = vsyncpa [#allocation3 + $0x1], 0  ;;  %s8141_s30 = smov 0   ;;  %s8143_s10 = smov 0  }
   0x2   :  { %s8145_s11 = smov 0   ;;  %s8147_s12 = smov 0  }
   0x3 LB: > { %s8162_s13 = sadd.s32 4294967295, %s8078_s12   ;;  %s6292_s14 = sadd.s32 4294967294, %s8078_s12   ;;  %s8078_s12 = sphi %s8147_s12, %s9971_s12   ;;  %s8074_s11 = sphi %s8145_s11, %s9970_s11   ;;  %s8070_s10 = sphi %s8143_s10, %s9969_s10   ;;  %s8066_s30 = sphi %s8141_s30, %s9968_s30  }
   0x4   : > { %s8166_s15 = sadd.s32 1, %s8078_s12   ;;  %s223_s16 = sadd.s32 1, %s8074_s11 }
   0x5   : > { %s220_s17 = ssub.s32 %s8078_s12, %s8166_s15  ;;  %p233_p0 = scmp.ne.s32.totalorder %s8074_s11, %s8070_s10 }
   0x6   : > { %p221_p1 = scmp.eq.s32.totalorder %s220_s17, 0  ;;  %p234_p2 = scmp.eq.s32.totalorder %s8162_s13, 1 }
   0x7   : > { %p239_p3 = scmp.ne.s32.totalorder %s8070_s10, %s8066_s30  ;;  %p240_p4 = scmp.eq.s32.totalorder %s6292_s14, 1 }
   0x8   : > { %s8177_s18 = scalar_select %p221_p1, %s8074_s11, %s223_s16  }
   0x9   : > { %p8179_p5 = por %p234_p2, %p233_p0  ;;  %p8183_p6 = por %p240_p4, %p239_p3 }
   0xa   : > { %p6295_p7 = scmp.ge.s32.totalorder %s8078_s12, 1  ;;  %p289_p8 = scmp.lt.s32.totalorder %s8078_s12, 3 }
   0xc   : > { %p290_p9 = pnand %p6295_p7, %p289_p8 }
   0xd   : > { %v330_v0 = vld [vmem:[%s9947_s3] sm:$0xf] (!%p290_p9)  ;;  %vm336_vm0 = vcmask (!%p290_p9), 1043456   ;;  %p323_p10 = scmp.lt.s32.totalorder (!%p290_p9), %s8162_s13, 1  ;;  %v8080_v1 = vmov (!%p290_p9), 0.0   ;;  %vm8081_vm1 = vmmov (!%p290_p9), 0   ;;  %v394_v23 = vlaneseq (!%p290_p9) }
   0xe   : > { %293 = sbr.rel (%p290_p9) target bundleno = 5940 (0x1734), region = 56  ;;  %7497 = vmatprep.subr.bf16.mxu0 (!%p290_p9), %v8080_v1  ;;  %v338_v2 = vsel (!%p290_p9), %vm336_vm0, %v330_v0, 0  ;;  %7499 = vmatprep.mubr.msk.bf16.mxu0 (!%p290_p9), %vm8081_vm1, %v8080_v1  ;;  %v7684_v3 = vld [vmem:[%s9948_s4 + $0x4] ss:$8 sps:$4 sm:$0xff] (!%p290_p9)   ;;  %v7686_v4 = vld [vmem:[%s9948_s4] ss:$8 sps:$4 sm:$0xff] (!%p290_p9)  }
   0xf   : > { %7498 = vmatpush3.bf16.msra.mxu0 (!%p290_p9), %v338_v2  ;;  %448 = vmatprep.subr.bf16.mxu1 (!%p290_p9), %v7684_v3  ;;  %v7687_v5 = vld [vmem:[%s9948_s4 + $0x14] ss:$8 sps:$4 sm:$0xff] (!%p290_p9)   ;;  %v7689_v6 = vld [vmem:[%s9948_s4 + $0x10] ss:$8 sps:$4 sm:$0xff] (!%p290_p9)   ;;  %v7690_v7 = vld [vmem:[%s9948_s4 + $0x24] ss:$8 sps:$4 sm:$0xff] (!%p290_p9)  }
  0x10   : > { %7503 = vmatprep.subr.bf16.mxu0 (!%p290_p9), %v8080_v1  ;;  %449 = vmatpush1.bf16.msra.mxu1 (!%p290_p9), %v7686_v4  ;;  %vm332_vm2 = vcmask (!%p290_p9), 64512   ;;  %v7692_v10 = vld [vmem:[%s9948_s4 + $0x20] ss:$8 sps:$4 sm:$0xff] (!%p290_p9)   ;;  %v7693_v11 = vld [vmem:[%s9948_s4 + $0x34] ss:$8 sps:$4 sm:$0xff] (!%p290_p9)   ;;  %v8082_v13 = vmov (!%p290_p9), 0  }
  0x11   : > { %450 = vmatprep.subr.bf16.mxu1 (!%p290_p9), %v7687_v5  ;;  %v7695_v12 = vld [vmem:[%s9948_s4 + $0x30] ss:$8 sps:$4 sm:$0xff] (!%p290_p9)   ;;  %480 = vmatprep.mubr.bf16.mxu1 (!%p290_p9), %v8082_v13  ;;  %v331_v14 = vld [vmem:[%s9946_s2] ss:$0 sm:$0xff] (!%p290_p9)  ;;  %vm444_vm3 = vcmask (!%p290_p9), 523264   ;;  %v8244_v24 = vshrl.u32 (!%p290_p9), %v394_v23, 7 }
  0x12   : > { %v380_v16 = vld [vmem:[%s9945_s1] sm:$0xff] (!%p290_p9)  ;;  %s8084_s27 = smov (!%p290_p9), 112   ;;  %s8085_s28 = smov (!%p290_p9), 96   ;;  %vm520_vm4 = vcmask (!%p290_p9), 130048   ;;  %vm959_vm5 = vcmask (!%p290_p9), 261120   ;;  %vm961_vm6 = vcmask (!%p290_p9), 392192  }
  0x13   : > { %v8247_v25 = vsub.s32 (!%p290_p9), 0, %v8244_v24  ;;  %v6298_v26 = vld [vmem:[%s9946_s2 + $0x2] ss:$8 sm:$0x3] (!%p290_p9)  ;;  %s9957_s29 = smov (!%p290_p9), 64   ;;  %v8266_v42 = vsub.s32 (!%p290_p9), 1, %v8244_v24 }
  0x14   : > { %451 = vmatpush1.bf16.msra.mxu1 (!%p290_p9), %v7689_v6  ;;  %s9956_s24 = smov (!%p290_p9), 16   ;;  %s9954_s17 = smov (!%p290_p9), 48  }
  0x15   : > { %s324_s25 = scalar_select %p323_p10, %s8162_s13, 1  ;;  %452 = vmatprep.subr.bf16.mxu1 %v7690_v7  ;;  %v397_v27 = vrot.slane %v6298_v26, %v8247_v25  ;;  %v401_v44 = vrot.slane %v6298_v26, %v8266_v42 }
  0x16   : > { %s9963_s23 = smov 80   ;;  %s321_s21 = sand.u32 1, %s8070_s10  }
  0x17   : > { %s6296_s14 = sshll.u32 %s324_s25, 3  ;;  %s9959_s25 = smov 80  }
  0x18   : > { %s326_s26 = scalar_lea.vmem %s9944_s0, %s6296_s14  ;;  %453 = vmatpush1.bf16.msra.mxu1 %v7692_v10  ;;  %s9964_s14 = smov 64  }
  0x19   : > { %v328_v8 = vld [vmem:[%s326_s26] sm:$0xff]  ;;  %454 = vmatprep.subr.bf16.mxu1 %v7693_v11  ;;  %s9955_s26 = smov 32  }
  0x1a   : > { %v329_v9 = vpack.c.bf16 %v328_v8, %v328_v8 }
  0x1c   : > { %7500 = vmatmul.mubr.msk.bf16.vlgmr.msra.gmra.mrb[0].mxu0 %vm332_vm2, %v329_v9  ;;  %455 = vmatpush1.bf16.msra.mxu1 %v7695_v12 }
  0x1d   : > { %7505 = vmatprep.mubr.msk.bf16.mxu0 %vm8081_vm1, %v8080_v1  ;;  %7515 = vmatprep.subr.bf16.mxu1 %v8080_v1 }
  0xef   : > { %v374_v15 = vpop.f32.mrb[0].mxu0 }
  0xf0   : > { %v375_v17 = vadd.f32 %v374_v15, %v331_v14  ;;  %v7501_v18 = vpop.f32.mrb[1].mxu0 }
  0xf1   : > { %v377_v19 = vpop.f32.mrb[2].mxu0 }
  0xf2   : > { %v8237_v20 = vadd.f32 %v380_v16, %v375_v17  ;;  %v7502_v21 = vpop.f32.mrb[3].mxu0 }
  0xf4   : > { %v382_v22 = vpack.c.bf16 %v8237_v20, %v8237_v20 }
  0xf6   : > { %6307 = vmatmul.mubr.msk.bf16.vlgmr.msra.gmra.mrb[0].mxu1 %vm444_vm3, %v382_v22 }
  0xf7   : > { %7517 = vmatprep.mubr.msk.bf16.mxu1 %vm8081_vm1, %v8080_v1 }
 0x1c9   : > { %v482_v28 = vpop.f32.mrb[0].mxu1 }
 0x1ca   : > { %v483_v29 = vadd.f32 %v482_v28, %v397_v27  ;;  %v484_v30 = vpop.f32.mrb[1].mxu1 }
 0x1cb   : > { %v486_v31 = vpop.f32.mrb[2].mxu1  ;;  %v8271_v47 = vadd.f32 %v484_v30, %v401_v44 }
 0x1cc   : > { %v487_v32 = vpop.f32.mrb[3].mxu1  ;;  %496 = vrot.lane.b32.xlu1 %v483_v29, %s9959_s25  ;;  %490 = vrot.lane.b32.xlu0 %v483_v29, %s8084_s27  ;;  %v499_v33 = vpack.c.bf16 %v483_v29, %v483_v29 }
 0x1cd   : > { %v513_v51 = vpack.c.bf16 %v8271_v47, %v8271_v47 }
 0x1cf   : > { %v766_v52 = vsel %vm336_vm0, %v513_v51, 0 }
 0x1d0   : > { %493 = vrot.lane.b32.xlu0 %v483_v29, %s8085_s28  ;;  %518 = vrot.lane.b32.xlu1 %v499_v33, %s9957_s29 }
 0x23e   : > { %v497_v34 = vpop.permute.xlu1 %496  ;;  %v491_v35 = vpop.permute.xlu0 %490 }
 0x23f   : > { %v500_v36 = vpack.c.bf16 %v491_v35, %v491_v35  ;;  %v502_v39 = vpack.c.bf16 %v497_v34, %v497_v34 }
 0x241   : > { %568 = vrot.lane.b32.xlu0 %v500_v36, %s9957_s29 }
 0x242   : > { %v494_v37 = vpop.permute.xlu0 %493  ;;  %v519_v38 = vpop.permute.xlu1 %518 }
 0x243   : > { %v501_v40 = vpack.c.bf16 %v494_v37, %v494_v37  ;;  %v525_v41 = vsel %vm520_vm4, %v519_v38, 0 }
 0x244   : > { %7504 = vmatpush3.bf16.xpose.msra.mxu0 %v525_v41 }
 0x245   : > { %666 = vrot.lane.b32.xlu0 %v502_v39, %s9957_s29  ;;  %617 = vrot.lane.b32.xlu1 %v501_v40, %s9957_s29  ;;  %s322_s29 = scalar_lea.vmem [#allocation2], %s321_s21 }
 0x246   : > { %7509 = vmatprep.subr.bf16.mxu0 %v8080_v1 }
 0x24b   : > { %7506 = vmatmul.mubr.msk.bf16.vlgmr.msra.gmra.mrb[4].mxu0 %vm520_vm4, %v499_v33 }
 0x24c   : > { %7511 = vmatprep.mubr.msk.bf16.mxu0 %vm8081_vm1, %v8080_v1 }
 0x2b3   : > { %v569_v43 = vpop.permute.xlu0 %568 }
 0x2b4   : > { %v574_v45 = vsel %vm520_vm4, %v569_v43, 0 }
 0x2b5   : > { %7510 = vmatpush3.bf16.xpose.msra.mxu0 %v574_v45 }
 0x2b6   : > { %7521 = vmatprep.subr.bf16.mxu0 %v8080_v1 }
 0x2b7   : > { %v618_v46 = vpop.permute.xlu1 %617  ;;  %v667_v49 = vpop.permute.xlu0 %666 }
 0x2b8   : > { %v623_v48 = vsel %vm520_vm4, %v618_v46, 0  ;;  %v672_v50 = vsel %vm520_vm4, %v667_v49, 0 }
 0x2b9   : > { %7516 = vmatpush3.bf16.xpose.msra.mxu1 %v623_v48 }
 0x2ba   : > { %7527 = vmatprep.subr.bf16.mxu1 %v8080_v1 }
 0x2bc   : > { %7512 = vmatmul.mubr.msk.bf16.vlgmr.msra.gmra.mrb[8].mxu0 %vm520_vm4, %v500_v36 }
 0x2bd   : > { %7522 = vmatpush3.bf16.xpose.msra.mxu0 %v672_v50  ;;  %7523 = vmatprep.mubr.msk.bf16.mxu0 %vm8081_vm1, %v8080_v1 }
 0x2be   : > { %7533 = vmatprep.subr.bf16.mxu0 %v8080_v1 }
 0x2c0   : > { %7518 = vmatmul.mubr.msk.bf16.vlgmr.msra.gmra.mrb[4].mxu1 %vm520_vm4, %v501_v40 }
 0x2c1   : > { %7528 = vmatpush3.bf16.msra.mxu1 %v766_v52  ;;  %7529 = vmatprep.mubr.msk.bf16.mxu1 %vm8081_vm1, %v8080_v1 }
 0x2c2   : > { %7539 = vmatprep.subr.bf16.mxu1 %v8080_v1 }
 0x2c4   : > { %7524 = vmatmul.mubr.msk.bf16.vlgmr.msra.gmra.mrb[12].mxu0 %vm520_vm4, %v502_v39 }
 0x2c5   : > { %7535 = vmatprep.mubr.msk.bf16.mxu0 %vm8081_vm1, %v8080_v1 }
 0x31e   : > { %v561_v53 = vpop.f32.mrb[4].mxu0 }
 0x31f   : > { %v7507_v54 = vpop.f32.mrb[5].mxu0  ;;  %v714_v55 = vsel %vm332_vm2, %v561_v53, -inf }
 0x320   : > { %715 = vmax.xlane.f32.xlu1 %v714_v55  ;;  %v564_v56 = vpop.f32.mrb[6].mxu0 }
 0x321   : > { %v7508_v57 = vpop.f32.mrb[7].mxu0 }
 0x38f   : > { %v610_v58 = vpop.f32.mrb[8].mxu0 }
 0x390   : > { %v7513_v59 = vpop.f32.mrb[9].mxu0  ;;  %v717_v60 = vsel %vm332_vm2, %v610_v58, -inf }
 0x391   : > { %718 = vmax.xlane.f32.xlu0 %v717_v60  ;;  %v613_v61 = vpop.f32.mrb[10].mxu0 }
 0x392   : > { %v7514_v62 = vpop.f32.mrb[11].mxu0 }
 0x393   : > { %v659_v63 = vpop.f32.mrb[4].mxu1 }
 0x394   : > { %v7519_v0 = vpop.f32.mrb[5].mxu1  ;;  %v720_v2 = vsel %vm332_vm2, %v659_v63, -inf }
 0x395   : > { %v662_v3 = vpop.f32.mrb[6].mxu1  ;;  %721 = vmax.xlane.f32.xlu0 %v720_v2  ;;  %v7696_v0 = vld [vmem:[%s9949_s5] sm:$0xff]   ;;  %v7697_v2 = vld [vmem:[%s9949_s5 + $0x8] sm:$0xff]  }
 0x396   : > { %v7520_v4 = vpop.f32.mrb[7].mxu1  ;;  %v7698_v3 = vld [vmem:[%s9949_s5 + $0x10] sm:$0xff]  }
 0x397   : > { %v708_v5 = vpop.f32.mrb[12].mxu0 }
 0x398   : > { %v7525_v6 = vpop.f32.mrb[13].mxu0  ;;  %v723_v7 = vsel %vm332_vm2, %v708_v5, -inf }
 0x399   : > { %724 = vmax.xlane.f32.xlu1 %v723_v7  ;;  %v711_v8 = vpop.f32.mrb[14].mxu0 }
 0x39a   : > { %v7526_v9 = vpop.f32.mrb[15].mxu0 }
 0x3ad   : > { %v716_v10 = vpop.xlane.xlu1 %715 }
 0x3ae   : > { %v726_v11 = vsub.f32 %v561_v53, %v716_v10 }
 0x3b0   : > { %v730_v12 = vmul.f32 1.442695, %v726_v11 }
 0x3b2   : > { %7976 = vpow2.f32 %v730_v12  ;;  %v7699_v12 = vld [vmem:[%s9949_s5 + $0x18] sm:$0xff]  }
 0x3bc   : > { %v7977_v14 = vpop.eup %7976 }
 0x3bd   : > { %v738_v15 = vsel %vm332_vm2, %v7977_v14, 0.0 }
 0x3be   : > { %739 = vadd.xlane.f32.xlu0 %v738_v15 }
 0x41e   : > { %v719_v16 = vpop.xlane.xlu0 %718 }
 0x41f   : > { %v727_v17 = vsub.f32 %v610_v58, %v719_v16 }
 0x421   : > { %v732_v18 = vmul.f32 1.442695, %v727_v17 }
 0x422   : > { %v722_v19 = vpop.xlane.xlu0 %721 }
 0x423   : > { %7978 = vpow2.f32 %v732_v18  ;;  %v728_v21 = vsub.f32 %v659_v63, %v722_v19 }
 0x425   : > { %v734_v22 = vmul.f32 1.442695, %v728_v21 }
 0x426   : > { %v725_v29 = vpop.xlane.xlu1 %724 }
 0x427   : > { %7980 = vpow2.f32 %v734_v22  ;;  %v729_v31 = vsub.f32 %v708_v5, %v725_v29 }
 0x429   : > { %v736_v32 = vmul.f32 1.442695, %v729_v31 }
 0x42d   : > { %v7979_v23 = vpop.eup %7978 }
 0x42e   : > { %v741_v26 = vsel %vm332_vm2, %v7979_v23, 0.0 }
 0x42f   : > { %742 = vadd.xlane.f32.xlu1 %v741_v26 }
 0x431   : > { %v7981_v27 = vpop.eup %7980 }
 0x432   : > { %v744_v28 = vsel %vm332_vm2, %v7981_v27, 0.0 }
 0x433   : > { %745 = vadd.xlane.f32.xlu0 %v744_v28  ;;  %v972_v28 = vld [vmem:[%s9946_s2 + $0x3] ss:$0 sm:$0xff] }
 0x440   : > { %507 = vrot.lane.b32.xlu1 %v8271_v47, %s8085_s28 }
 0x449   : > { %504 = vrot.lane.b32.xlu0 %v8271_v47, %s8084_s27 }
 0x44b   : > { %v740_v30 = vpop.xlane.xlu0 %739 }
 0x44c   : > { %7982 = vrcp.f32 %v740_v30 }
 0x44d   : > { %7984 = vpow2.f32 %v736_v32 }
 0x456   : > { %v7983_v33 = vpop.eup %7982 }
 0x457   : > { %v754_v34 = vmul.f32 %v7983_v33, %v7977_v14  ;;  %v7985_v36 = vpop.eup %7984 }
 0x458   : > { %v747_v37 = vsel %vm332_vm2, %v7985_v36, 0.0 }
 0x459   : > { %v758_v35 = vpack.c.bf16 %v754_v34, %v754_v34 }
 0x45b   : > { %7530 = vmatmul.mubr.msk.bf16.vlgmr.msra.gmra.mrb[8].mxu1 %vm332_vm2, %v758_v35 }
 0x45c   : > { %7541 = vmatprep.mubr.msk.bf16.mxu1 %vm8081_vm1, %v8080_v1 }
 0x464   : > { %748 = vadd.xlane.f32.xlu1 %v747_v37 }
 0x475   : > { %510 = vrot.lane.b32.xlu1 %v8271_v47, %s9959_s25  ;;  %s7093_s25 = sshll.u32 %s8162_s13, 4 }
 0x4bc   : > { %v743_v38 = vpop.xlane.xlu1 %742 }
 0x4bd   : > { %7986 = vrcp.f32 %v743_v38 }
 0x4c0   : > { %v746_v39 = vpop.xlane.xlu0 %745  ;;  %v508_v40 = vpop.permute.xlu1 %507 }
 0x4c1   : > { %7988 = vrcp.f32 %v746_v39  ;;  %v515_v41 = vpack.c.bf16 %v508_v40, %v508_v40 }
 0x4c3   : > { %v858_v43 = vsel %vm336_vm0, %v515_v41, 0  ;;  %v1060_v41 = vld [vmem:[%s9950_s6] sm:$0xff] }
 0x4c4   : > { %v505_v44 = vpop.permute.xlu0 %504  ;;  %7540 = vmatpush3.bf16.msra.mxu1 %v858_v43  ;;  %v1061_v43 = vld [vmem:[%s9950_s6 + $0x8] sm:$0xff] }
 0x4c5   : > { %v514_v45 = vpack.c.bf16 %v505_v44, %v505_v44  ;;  %7551 = vmatprep.subr.bf16.mxu1 %v8080_v1 }
 0x4c7   : > { %v7987_v46 = vpop.eup %7986  ;;  %v812_v48 = vsel %vm336_vm0, %v514_v45, 0  ;;  %v1069_v45 = vld [vmem:[%s9950_s6 + $0x48] sm:$0xff] }
 0x4c8   : > { %v755_v49 = vmul.f32 %v7987_v46, %v7979_v23  ;;  %7534 = vmatpush3.bf16.msra.mxu0 %v812_v48  ;;  %v6327_v48 = vcombine.low %v1061_v43, %v1069_v45 }
 0x4c9   : > { %7545 = vmatprep.subr.bf16.mxu0 %v8080_v1 }
 0x4ca   : > { %v759_v47 = vpack.c.bf16 %v755_v49, %v755_v49  ;;  %v6328_v49 = vcombine.high %v1061_v43, %v1069_v45 }
 0x4cb   : > { %v7989_v50 = vpop.eup %7988 }
 0x4cc   : > { %v756_v51 = vmul.f32 %v7989_v50, %v7981_v27  ;;  %7536 = vmatmul.mubr.msk.bf16.vlgmr.msra.gmra.mrb[16].mxu0 %vm332_vm2, %v759_v47  ;;  %v1076_v47 = vld [vmem:[%s9950_s6 + $0x80] sm:$0xff] }
 0x4cd   : > { %7547 = vmatprep.mubr.msk.bf16.mxu0 %vm8081_vm1, %v8080_v1  ;;  %v1084_v50 = vld [vmem:[%s9950_s6 + $0xc0] sm:$0xff] }
 0x4ce   : > { %v760_v52 = vpack.c.bf16 %v756_v51, %v756_v51  ;;  %v1077_v51 = vld [vmem:[%s9950_s6 + $0x88] sm:$0xff] }
 0x4d0   : > { %7542 = vmatmul.mubr.msk.bf16.vlgmr.msra.gmra.mrb[12].mxu1 %vm332_vm2, %v760_v52  ;;  %v6342_v52 = vcombine.high %v1076_v47, %v1084_v50 }
 0x4d1   : > { %7559 = vmatprep.mubr.msk.bf16.mxu1 %vm8081_vm1, %v8080_v1  ;;  %7552 = vmatpush3.bf16.msra.mxu1 %v7696_v0 }
 0x4d2   : > { %7553 = vmatprep.subr.bf16.mxu1 %v8080_v1 }
 0x4d5   : > { %7554 = vmatpush3.bf16.msra.mxu1 %v7697_v2  ;;  %v1108_v2 = vld [vmem:[%s9950_s6 + $0x180] sm:$0xff] }
 0x4d6   : > { %7555 = vmatprep.subr.bf16.mxu1 %v8080_v1 }
 0x4d9   : > { %7556 = vmatpush3.bf16.msra.mxu1 %v7698_v3  ;;  %v1116_v3 = vld [vmem:[%s9950_s6 + $0x1c0] sm:$0xff] }
 0x4da   : > { %7557 = vmatprep.subr.bf16.mxu1 %v8080_v1 }
 0x4dd   : > { %7558 = vmatpush3.bf16.msra.mxu1 %v7699_v12  ;;  %v1063_v12 = vld [vmem:[%s9950_s6 + $0x18] sm:$0xff] }
 0x4de   : > { %1578 = vmatprep.subr.bf16.mxu1 %v6328_v49  ;;  %v1111_v49 = vld [vmem:[%s9950_s6 + $0x198] sm:$0xff] }
 0x4f1   : > { %v749_v53 = vpop.xlane.xlu1 %748 }
 0x4f2   : > { %7990 = vrcp.f32 %v749_v53  ;;  %v1085_v53 = vld [vmem:[%s9950_s6 + $0xc8] sm:$0xff] }
 0x4f5   : > { %v511_v54 = vpop.permute.xlu1 %510 }
 0x4f6   : > { %v516_v55 = vpack.c.bf16 %v511_v54, %v511_v54  ;;  %v6341_v54 = vcombine.low %v1076_v47, %v1084_v50  ;;  %v1119_v47 = vld [vmem:[%s9950_s6 + $0x1d8] sm:$0xff] }
 0x4f8   : > { %v904_v56 = vsel %vm336_vm0, %v516_v55, 0  ;;  %v6343_v55 = vcombine.low %v1077_v51, %v1085_v53 }
 0x4f9   : > { %7546 = vmatpush3.bf16.msra.mxu0 %v904_v56  ;;  %v6344_v56 = vcombine.high %v1077_v51, %v1085_v53  ;;  %v6380_v53 = vcombine.high %v1111_v49, %v1119_v47 }
 0x4fc   : > { %v7991_v57 = vpop.eup %7990 }
 0x4fd   : > { %v757_v58 = vmul.f32 %v7991_v57, %v7985_v36  ;;  %v1092_v57 = vld [vmem:[%s9950_s6 + $0x100] sm:$0xff] }
 0x4ff   : > { %v761_v59 = vpack.c.bf16 %v757_v58, %v757_v58  ;;  %v1100_v58 = vld [vmem:[%s9950_s6 + $0x140] sm:$0xff] }
 0x501   : > { %7548 = vmatmul.mubr.msk.bf16.vlgmr.msra.gmra.mrb[20].mxu0 %vm332_vm2, %v761_v59  ;;  %v1093_v59 = vld [vmem:[%s9950_s6 + $0x108] sm:$0xff] }
 0x502   : > { %1569 = vmatprep.mubr.bf16.mxu0 %v8082_v13 }
 0x52e   : > { %v802_v60 = vpop.f32.mrb[8].mxu1 }
 0x52f   : > { %v7531_v61 = vpop.f32.mrb[9].mxu1 }
 0x530   : > { %v805_v62 = vpop.f32.mrb[10].mxu1  ;;  %v1101_v61 = vld [vmem:[%s9950_s6 + $0x148] sm:$0xff] }
 0x531   : > { %v7532_v63 = vpop.f32.mrb[11].mxu1  ;;  %v6357_v62 = vcombine.low %v1092_v57, %v1100_v58  ;;  %v6360_v0 = vcombine.high %v1093_v59, %v1101_v61 }
 0x532   : > { %v6359_v63 = vcombine.low %v1093_v59, %v1101_v61  ;;  %v6379_v59 = vcombine.low %v1111_v49, %v1119_v47  ;;  %v1107_v49 = vld [vmem:[%s9950_s6 + $0x178] sm:$0xff] }
 0x59f   : > { %v848_v4 = vpop.f32.mrb[16].mxu0 }
 0x5a0   : > { %947 = vrot.lane.b32.xlu0 %v848_v4, %s9956_s24  ;;  %v7537_v5 = vpop.f32.mrb[17].mxu0  ;;  %v1109_v4 = vld [vmem:[%s9950_s6 + $0x188] sm:$0xff]  ;;  %s9965_s24 = smov 16  }
 0x5a1   : > { %v851_v6 = vpop.f32.mrb[18].mxu0  ;;  %v6374_v5 = vcombine.high %v1108_v2, %v1116_v3 }
 0x5a2   : > { %v7538_v7 = vpop.f32.mrb[19].mxu0  ;;  %v1117_v6 = vld [vmem:[%s9950_s6 + $0x1c8] sm:$0xff] }
 0x5a3   : > { %v894_v8 = vpop.f32.mrb[12].mxu1  ;;  %v6373_v7 = vcombine.low %v1108_v2, %v1116_v3  ;;  %v1089_v2 = vld [vmem:[%s9950_s6 + $0xe8] sm:$0xff] }
 0x5a4   : > { %951 = vrot.lane.b32.xlu1 %v894_v8, %s9955_s26  ;;  %v7543_v9 = vpop.f32.mrb[13].mxu1  ;;  %v6375_v8 = vcombine.low %v1109_v4, %v1117_v6  ;;  %s9966_s26 = smov 32  }
 0x5a5   : > { %v897_v10 = vpop.f32.mrb[14].mxu1  ;;  %v6376_v9 = vcombine.high %v1109_v4, %v1117_v6 }
 0x5a6   : > { %v7544_v11 = vpop.f32.mrb[15].mxu1  ;;  %v1062_v10 = vld [vmem:[%s9950_s6 + $0x10] sm:$0xff] }
 0x5a7   : > { %v1070_v11 = vld [vmem:[%s9950_s6 + $0x50] sm:$0xff] }
 0x5d4   : > { %v940_v14 = vpop.f32.mrb[20].mxu0 }
 0x5d5   : > { %955 = vrot.lane.b32.xlu0 %v940_v14, %s9954_s17  ;;  %v7549_v15 = vpop.f32.mrb[21].mxu0  ;;  %v6330_v14 = vcombine.high %v1062_v10, %v1070_v11 }
 0x5d6   : > { %v943_v16 = vpop.f32.mrb[22].mxu0  ;;  %v1071_v15 = vld [vmem:[%s9950_s6 + $0x58] sm:$0xff] }
 0x5d7   : > { %v7550_v17 = vpop.f32.mrb[23].mxu0  ;;  %v6329_v16 = vcombine.low %v1062_v10, %v1070_v11  ;;  %v1105_v10 = vld [vmem:[%s9950_s6 + $0x168] sm:$0xff] }
 0x5d8   : > { %v6331_v17 = vcombine.low %v1063_v12, %v1071_v15 }
 0x612   : > { %v948_v18 = vpop.permute.xlu0 %947 }
 0x613   : > { %v958_v21 = vsel %vm520_vm4, %v802_v60, %v948_v18  ;;  %v6358_v60 = vcombine.high %v1092_v57, %v1100_v58  ;;  %v6332_v18 = vcombine.high %v1063_v12, %v1071_v15  ;;  %v1073_v57 = vld [vmem:[%s9950_s6 + $0x68] sm:$0xff] }
 0x616   : > { %v952_v19 = vpop.permute.xlu1 %951 }
 0x617   : > { %v960_v22 = vsel %vm959_vm5, %v958_v21, %v952_v19 }
 0x647   : > { %v956_v23 = vpop.permute.xlu0 %955 }
 0x648   : > { %v962_v26 = vsel %vm961_vm6, %v960_v22, %v956_v23 }
 0x649   : > { %v963_v27 = vpack.c.bf16 %v962_v26, %v962_v26  ;;  %v1041_v26 = vld [vmem:[%s9946_s2 + $0x4] ss:$0 sm:$0xff] }
 0x64b   : > { %7560 = vmatmul.mubr.msk.bf16.vlgmr.msra.gmra.mrb[16].mxu1 %vm444_vm3, %v963_v27 }
 0x64c   : > { %1610 = vmatprep.mubr.bf16.mxu1 %v8082_v13  ;;  %1579 = vmatpush1.bf16.msra.mxu1 %v6327_v48  ;;  %v1118_v48 = vld [vmem:[%s9950_s6 + $0x1d0] sm:$0xff] }
 0x64d   : > { %1580 = vmatprep.subr.bf16.mxu1 %v6344_v56  ;;  %v1065_v56 = vld [vmem:[%s9950_s6 + $0x28] sm:$0xff] }
 0x64e   : > { %v6336_v61 = vcombine.high %v1065_v56, %v1073_v57  ;;  %v6335_v4 = vcombine.low %v1065_v56, %v1073_v57  ;;  %v1123_v56 = vld [vmem:[%s9950_s6 + $0x1f8] sm:$0xff] }
 0x650   : > { %1581 = vmatpush1.bf16.msra.mxu1 %v6343_v55  ;;  %v1072_v55 = vld [vmem:[%s9950_s6 + $0x60] sm:$0xff] }
 0x651   : > { %1582 = vmatprep.subr.bf16.mxu1 %v6360_v0  ;;  %v1081_v0 = vld [vmem:[%s9950_s6 + $0xa8] sm:$0xff] }
 0x652   : > { %v6352_v6 = vcombine.high %v1081_v0, %v1089_v2  ;;  %v6351_v12 = vcombine.low %v1081_v0, %v1089_v2  ;;  %v7701_v0 = vld [vmem:[%s9951_s7 + $0xc0] sm:$0xff]  }
 0x653   : > { %v7702_v2 = vld [vmem:[%s9951_s7] sm:$0xff]  }
 0x654   : > { %1583 = vmatpush1.bf16.msra.mxu1 %v6359_v63  ;;  %v1088_v63 = vld [vmem:[%s9950_s6 + $0xe0] sm:$0xff] }
 0x655   : > { %1584 = vmatprep.subr.bf16.mxu1 %v6376_v9  ;;  %v1097_v9 = vld [vmem:[%s9950_s6 + $0x128] sm:$0xff] }
 0x656   : > { %v6368_v15 = vcombine.high %v1097_v9, %v1105_v10 }
 0x658   : > { %1585 = vmatpush1.bf16.msra.mxu1 %v6375_v8  ;;  %v1104_v8 = vld [vmem:[%s9950_s6 + $0x160] sm:$0xff] }
 0x659   : > { %1660 = vmatprep.subr.bf16.mxu1 %v6332_v18  ;;  %v1113_v18 = vld [vmem:[%s9950_s6 + $0x1a8] sm:$0xff] }
 0x71e   : > { %v1034_v29 = vpop.f32.mrb[16].mxu1 }
 0x71f   : > { %v1035_v30 = vadd.f32 %v1034_v29, %v972_v28  ;;  %v7561_v31 = vpop.f32.mrb[17].mxu1  ;;  %v1042_v28 = vld [vmem:[%s9946_s2 + $0x5] ss:$0 sm:$0xff] }
 0x720   : > { %v1037_v32 = vpop.f32.mrb[18].mxu1  ;;  %v1086_v31 = vld [vmem:[%s9950_s6 + $0xd0] sm:$0xff] }
 0x721   : > { %v7562_v33 = vpop.f32.mrb[19].mxu1  ;;  %v1040_v34 = vadd.f32 %v1035_v30, %v8237_v20  ;;  %v1068_v20 = vld [vmem:[%s9950_s6 + $0x40] sm:$0xff]  ;;  %v1078_v30 = vld [vmem:[%s9950_s6 + $0x90] sm:$0xff]  ;;  %v1079_v32 = vld [vmem:[%s9950_s6 + $0x98] sm:$0xff] }
 0x722   : > { %v6326_v44 = vcombine.high %v1060_v41, %v1068_v20  ;;  %v6325_v46 = vcombine.low %v1060_v41, %v1068_v20  ;;  %v1087_v33 = vld [vmem:[%s9950_s6 + $0xd8] sm:$0xff]  ;;  %v6345_v20 = vcombine.low %v1078_v30, %v1086_v31 }
 0x723   : > { %v1043_v35 = vsel %vm444_vm3, %v1040_v34, 0.0  ;;  %v1103_v41 = vld [vmem:[%s9950_s6 + $0x158] sm:$0xff]  ;;  %v6347_v43 = vcombine.low %v1079_v32, %v1087_v33 }
 0x724   : > { %1044 = vadd.xlane.f32.xlu1 %v1043_v35  ;;  %1537 = vmatprep.subr.bf16.mxu0 %v6326_v44 }
 0x725   : > { %1538 = vmatpush1.bf16.msra.mxu0 %v6325_v46  ;;  %v1110_v46 = vld [vmem:[%s9950_s6 + $0x190] sm:$0xff] }
 0x726   : > { %1539 = vmatprep.subr.bf16.mxu0 %v6342_v52  ;;  %v6378_v52 = vcombine.high %v1110_v46, %v1118_v48  ;;  %v6377_v58 = vcombine.low %v1110_v46, %v1118_v48  ;;  %v1106_v46 = vld [vmem:[%s9950_s6 + $0x170] sm:$0xff]  ;;  %v1099_v48 = vld [vmem:[%s9950_s6 + $0x138] sm:$0xff] }
 0x729   : > { %1540 = vmatpush1.bf16.msra.mxu0 %v6341_v54  ;;  %v1064_v54 = vld [vmem:[%s9950_s6 + $0x20] sm:$0xff] }
 0x72a   : > { %1541 = vmatprep.subr.bf16.mxu0 %v6358_v60  ;;  %v6334_v60 = vcombine.high %v1064_v54, %v1072_v55  ;;  %v6333_v3 = vcombine.low %v1064_v54, %v1072_v55  ;;  %v1122_v54 = vld [vmem:[%s9950_s6 + $0x1f0] sm:$0xff]  ;;  %v1115_v55 = vld [vmem:[%s9950_s6 + $0x1b8] sm:$0xff] }
 0x72d   : > { %1542 = vmatpush1.bf16.msra.mxu0 %v6357_v62  ;;  %v1080_v62 = vld [vmem:[%s9950_s6 + $0xa0] sm:$0xff] }
 0x72e   : > { %1543 = vmatprep.subr.bf16.mxu0 %v6374_v5  ;;  %v6350_v5 = vcombine.high %v1080_v62, %v1088_v63  ;;  %v6349_v11 = vcombine.low %v1080_v62, %v1088_v63  ;;  %v6387_v62 = vcombine.low %v1115_v55, %v1123_v56  ;;  %v7700_v63 = vld [vmem:[%s9951_s7 + $0x40] sm:$0xff]  }
 0x731   : > { %1544 = vmatpush1.bf16.msra.mxu0 %v6373_v7  ;;  %v1096_v7 = vld [vmem:[%s9950_s6 + $0x120] sm:$0xff] }
 0x732   : > { %1619 = vmatprep.subr.bf16.mxu0 %v6330_v14  ;;  %v6366_v14 = vcombine.high %v1096_v7, %v1104_v8 }
 0x7b1   : > { %v1045_v36 = vpop.xlane.xlu1 %1044 }
 0x7b2   : > { %v1047_v37 = vmul.f32 0.015625, %v1045_v36  ;;  %v6346_v36 = vcombine.high %v1078_v30, %v1086_v31  ;;  %v1075_v30 = vld [vmem:[%s9950_s6 + $0x78] sm:$0xff] }
 0x7b4   : > { %v8348_v38 = vsub.f32 %v1040_v34, %v1047_v37  ;;  %v6348_v37 = vcombine.high %v1079_v32, %v1087_v33 }
 0x7b6   : > { %v1049_v39 = vmul.f32 %v8348_v38, %v8348_v38 }
 0x7b8   : > { %v1050_v40 = vsel %vm444_vm3, %v1049_v39, 0.0  ;;  %v1102_v39 = vld [vmem:[%s9950_s6 + $0x150] sm:$0xff] }
 0x7b9   : > { %1051 = vadd.xlane.f32.xlu0 %v1050_v40  ;;  %v1095_v40 = vld [vmem:[%s9950_s6 + $0x118] sm:$0xff] }
 0x7ba   : > { %v6364_v45 = vcombine.high %v1095_v40, %v1103_v41  ;;  %v6363_v51 = vcombine.low %v1095_v40, %v1103_v41  ;;  %v1091_v40 = vld [vmem:[%s9950_s6 + $0xf8] sm:$0xff] }
 0x846   : > { %v1052_v19 = vpop.xlane.xlu0 %1051 }
 0x847   : > { %v1053_v21 = vmul.f32 0.015625, %v1052_v19  ;;  %v1121_v19 = vld [vmem:[%s9950_s6 + $0x1e8] sm:$0xff] }
 0x848   : > { %v6383_v32 = vcombine.low %v1113_v18, %v1121_v19 }
 0x849   : > { %v1054_v22 = vadd.f32 1e-05, %v1053_v21  ;;  %v6365_v21 = vcombine.low %v1096_v7, %v1104_v8  ;;  %v7707_v7 = vld [vmem:[%s9951_s7 + $0x88] sm:$0xff]   ;;  %v7708_v8 = vld [vmem:[%s9951_s7 + $0x50] sm:$0xff]  }
 0x84b   : > { %7992 = vrsqrt.f32 %v1054_v22  ;;  %v6367_v22 = vcombine.low %v1097_v9, %v1105_v10  ;;  %v7710_v9 = vld [vmem:[%s9951_s7 + $0x10] sm:$0xff]  }
 0x84c   : > { %v7711_v10 = vld [vmem:[%s9951_s7 + $0x90] sm:$0xff]  }
 0x855   : > { %v7993_v23 = vpop.eup %7992 }
 0x856   : > { %v1056_v27 = vmul.f32 %v7993_v23, %v8348_v38  ;;  %v1094_v38 = vld [vmem:[%s9950_s6 + $0x110] sm:$0xff] }
 0x857   : > { %v6362_v44 = vcombine.high %v1094_v38, %v1102_v39  ;;  %v6361_v50 = vcombine.low %v1094_v38, %v1102_v39  ;;  %v1090_v38 = vld [vmem:[%s9950_s6 + $0xf0] sm:$0xff]  ;;  %v1083_v39 = vld [vmem:[%s9950_s6 + $0xb8] sm:$0xff] }
 0x858   : > { %v1057_v29 = vmul.f32 %v1056_v27, %v1041_v26  ;;  %v6384_v26 = vcombine.high %v1113_v18, %v1121_v19  ;;  %v1066_v27 = vld [vmem:[%s9950_s6 + $0x30] sm:$0xff]  ;;  %v7718_v18 = vld [vmem:[%s9951_s7 + $0x20] sm:$0xff]  }
 0x859   : > { %v7719_v19 = vld [vmem:[%s9951_s7 + $0xa0] sm:$0xff]  }
 0x85a   : > { %v8432_v34 = vadd.f32 %v1057_v29, %v1042_v28  ;;  %v1074_v28 = vld [vmem:[%s9950_s6 + $0x70] sm:$0xff]  ;;  %v1067_v29 = vld [vmem:[%s9950_s6 + $0x38] sm:$0xff] }
 0x85b   : > { %v6338_v33 = vcombine.high %v1066_v27, %v1074_v28  ;;  %v6337_v41 = vcombine.low %v1066_v27, %v1074_v28  ;;  %v7724_v27 = vld [vmem:[%s9951_s7 + $0x70] sm:$0xff]  }
 0x85c   : > { %v8436_v35 = vpack.c.bf16 %v8432_v34, %v8432_v34  ;;  %v7725_v28 = vld [vmem:[%s9951_s7 + $0xf0] sm:$0xff]  }
 0x85e   : > { %6389 = vmatmul.mubr.msk.bf16.vlgmr.msra.gmra.mrb[24].mxu0 %vm444_vm3, %v8436_v35  ;;  %6390 = vmatmul.mubr.msk.bf16.vlgmr.msra.gmra.mrb[20].mxu1 %vm444_vm3, %v8436_v35 }
 0x85f   : > { %1620 = vmatpush1.bf16.msra.mxu0 %v6329_v16  ;;  %1661 = vmatpush1.bf16.msra.mxu1 %v6331_v17  ;;  %v1112_v16 = vld [vmem:[%s9950_s6 + $0x1a0] sm:$0xff] }
 0x860   : > { %1621 = vmatprep.subr.bf16.mxu0 %v6346_v36  ;;  %1662 = vmatprep.subr.bf16.mxu1 %v6348_v37  ;;  %v1120_v17 = vld [vmem:[%s9950_s6 + $0x1e0] sm:$0xff]  ;;  %v6340_v36 = vcombine.high %v1067_v29, %v1075_v30  ;;  %v1082_v37 = vld [vmem:[%s9950_s6 + $0xb0] sm:$0xff] }
 0x861   : > { %1651 = vmatprep.mubr.bf16.mxu0 %v8082_v13  ;;  %1692 = vmatprep.mubr.bf16.mxu1 %v8082_v13  ;;  %v6382_v23 = vcombine.high %v1112_v16, %v1120_v17  ;;  %v6381_v31 = vcombine.low %v1112_v16, %v1120_v17  ;;  %v6353_v47 = vcombine.low %v1082_v37, %v1090_v38  ;;  %v7716_v16 = vld [vmem:[%s9951_s7 + $0x60] sm:$0xff]  }
 0x862   : > { %v7717_v17 = vld [vmem:[%s9951_s7 + $0xe0] sm:$0xff]  }
 0x863   : > { %1622 = vmatpush1.bf16.msra.mxu0 %v6345_v20  ;;  %1663 = vmatpush1.bf16.msra.mxu1 %v6347_v43  ;;  %v6339_v20 = vcombine.low %v1067_v29, %v1075_v30  ;;  %v6354_v43 = vcombine.high %v1082_v37, %v1090_v38  ;;  %v7726_v29 = vld [vmem:[%s9951_s7 + $0x30] sm:$0xff]   ;;  %v7732_v37 = vld [vmem:[%s9951_s7 + $0x140] sm:$0xff]  }
 0x864   : > { %1623 = vmatprep.subr.bf16.mxu0 %v6362_v44  ;;  %1664 = vmatprep.subr.bf16.mxu1 %v6364_v45  ;;  %v6356_v44 = vcombine.high %v1083_v39, %v1091_v40  ;;  %v1098_v45 = vld [vmem:[%s9950_s6 + $0x130] sm:$0xff]  ;;  %v7733_v38 = vld [vmem:[%s9951_s7 + $0x1c0] sm:$0xff]  }
 0x865   : > { %v6369_v57 = vcombine.low %v1098_v45, %v1106_v46  ;;  %v7727_v30 = vld [vmem:[%s9951_s7 + $0xb0] sm:$0xff]  }
 0x867   : > { %1624 = vmatpush1.bf16.msra.mxu0 %v6361_v50  ;;  %1665 = vmatpush1.bf16.msra.mxu1 %v6363_v51  ;;  %v6355_v50 = vcombine.low %v1083_v39, %v1091_v40  ;;  %v6370_v51 = vcombine.high %v1098_v45, %v1106_v46  ;;  %v6321_v39 = vld [vmem:[%s9946_s2 + $0x6] ss:$8 sm:$0xf] }
 0x868   : > { %1625 = vmatprep.subr.bf16.mxu0 %v6378_v52  ;;  %1666 = vmatprep.subr.bf16.mxu1 %v6380_v53  ;;  %v6372_v52 = vcombine.high %v1099_v48, %v1107_v49  ;;  %v1114_v53 = vld [vmem:[%s9950_s6 + $0x1b0] sm:$0xff] }
 0x869   : > { %v6322_v40 = vld [vmem:[%s9946_s2 + $0x6] ss:$8 sm:$0xf0] }
 0x86b   : > { %1626 = vmatpush1.bf16.msra.mxu0 %v6377_v58  ;;  %1667 = vmatpush1.bf16.msra.mxu1 %v6379_v59  ;;  %v6371_v58 = vcombine.low %v1099_v48, %v1107_v49  ;;  %v6386_v59 = vcombine.high %v1114_v53, %v1122_v54 }
 0x86c   : > { %1701 = vmatprep.subr.bf16.mxu0 %v6334_v60  ;;  %1742 = vmatprep.subr.bf16.mxu1 %v6336_v61  ;;  %v6388_v60 = vcombine.high %v1115_v55, %v1123_v56  ;;  %v6385_v61 = vcombine.low %v1114_v53, %v1122_v54 }
 0x86e   : > { %6391 = vmatmul.mubr.msk.bf16.vlgmr.msra.gmra.mrb[28].mxu0 %vm444_vm3, %v8436_v35  ;;  %6392 = vmatmul.mubr.msk.bf16.vlgmr.msra.gmra.mrb[24].mxu1 %vm444_vm3, %v8436_v35 }
 0x86f   : > { %1702 = vmatpush1.bf16.msra.mxu0 %v6333_v3  ;;  %1743 = vmatpush1.bf16.msra.mxu1 %v6335_v4  ;;  %v7703_v3 = vld [vmem:[%s9951_s7 + $0x80] sm:$0xff]   ;;  %v7704_v4 = vld [vmem:[%s9951_s7 + $0x48] sm:$0xff]  }
 0x870   : > { %1703 = vmatprep.subr.bf16.mxu0 %v6350_v5  ;;  %1744 = vmatprep.subr.bf16.mxu1 %v6352_v6  ;;  %v7705_v5 = vld [vmem:[%s9951_s7 + $0xc8] sm:$0xff]  }
 0x871   : > { %1733 = vmatprep.mubr.bf16.mxu0 %v8082_v13  ;;  %1774 = vmatprep.mubr.bf16.mxu1 %v8082_v13  ;;  %v7706_v6 = vld [vmem:[%s9951_s7 + $0x8] sm:$0xff]  }
 0x873   : > { %1704 = vmatpush1.bf16.msra.mxu0 %v6349_v11  ;;  %1745 = vmatpush1.bf16.msra.mxu1 %v6351_v12  ;;  %v7712_v11 = vld [vmem:[%s9951_s7 + $0x58] sm:$0xff]  }
 0x874   : > { %1705 = vmatprep.subr.bf16.mxu0 %v6366_v14  ;;  %1746 = vmatprep.subr.bf16.mxu1 %v6368_v15  ;;  %v7713_v12 = vld [vmem:[%s9951_s7 + $0xd8] sm:$0xff]  }
 0x875   : > { %v7714_v14 = vld [vmem:[%s9951_s7 + $0x18] sm:$0xff]  }
 0x876   : > { %v7715_v15 = vld [vmem:[%s9951_s7 + $0x98] sm:$0xff]  }
 0x877   : > { %1706 = vmatpush1.bf16.msra.mxu0 %v6365_v21  ;;  %1747 = vmatpush1.bf16.msra.mxu1 %v6367_v22  ;;  %v7720_v21 = vld [vmem:[%s9951_s7 + $0x68] sm:$0xff]  }
 0x878   : > { %1707 = vmatprep.subr.bf16.mxu0 %v6382_v23  ;;  %1748 = vmatprep.subr.bf16.mxu1 %v6384_v26  ;;  %v7721_v22 = vld [vmem:[%s9951_s7 + $0xe8] sm:$0xff]  }
 0x879   : > { %v7722_v23 = vld [vmem:[%s9951_s7 + $0x28] sm:$0xff]  }
 0x87a   : > { %v7723_v26 = vld [vmem:[%s9951_s7 + $0xa8] sm:$0xff]  }
 0x87b   : > { %1708 = vmatpush1.bf16.msra.mxu0 %v6381_v31  ;;  %1749 = vmatpush1.bf16.msra.mxu1 %v6383_v32  ;;  %v7728_v31 = vld [vmem:[%s9951_s7 + $0x78] sm:$0xff]  }
 0x87c   : > { %1783 = vmatprep.subr.bf16.mxu0 %v6338_v33  ;;  %1824 = vmatprep.subr.bf16.mxu1 %v6340_v36  ;;  %v7729_v32 = vld [vmem:[%s9951_s7 + $0xf8] sm:$0xff]  }
 0x87d   : > { %v7730_v33 = vld [vmem:[%s9951_s7 + $0x38] sm:$0xff]  }
 0x87e   : > { %6393 = vmatmul.mubr.msk.bf16.vlgmr.msra.gmra.mrb[32].mxu0 %vm444_vm3, %v8436_v35  ;;  %6394 = vmatmul.mubr.msk.bf16.vlgmr.msra.gmra.mrb[28].mxu1 %vm444_vm3, %v8436_v35  ;;  %v7731_v36 = vld [vmem:[%s9951_s7 + $0xb8] sm:$0xff]  }
 0x87f   : > { %1784 = vmatpush1.bf16.msra.mxu0 %v6337_v41  ;;  %1825 = vmatpush1.bf16.msra.mxu1 %v6339_v20  ;;  %v8688_v41 = vor.u32 %v6322_v40, %v6321_v39  ;;  %v8691_v20 = vsub.s32 2, %v8244_v24  ;;  %v7749_v39 = vld [vmem:[%s9951_s7 + $0x1e0] sm:$0xff]  }
 0x880   : > { %1785 = vmatprep.subr.bf16.mxu0 %v6354_v43  ;;  %1826 = vmatprep.subr.bf16.mxu1 %v6356_v44  ;;  %v8694_v43 = vsub.s32 3, %v8244_v24 }
 0x881   : > { %1815 = vmatprep.mubr.bf16.mxu0 %v8082_v13  ;;  %1856 = vmatprep.mubr.bf16.mxu1 %v8082_v13  ;;  %v1137_v44 = vrot.slane %v8688_v41, %v8247_v25  ;;  %v1145_v45 = vrot.slane %v8688_v41, %v8691_v20  ;;  %v1141_v46 = vrot.slane %v8688_v41, %v8266_v42 }
 0x882   : > { %v1149_v48 = vrot.slane %v8688_v41, %v8694_v43 }
 0x883   : > { %1786 = vmatpush1.bf16.msra.mxu0 %v6353_v47  ;;  %1827 = vmatpush1.bf16.msra.mxu1 %v6355_v50 }
 0x884   : > { %1787 = vmatprep.subr.bf16.mxu0 %v6370_v51  ;;  %1828 = vmatprep.subr.bf16.mxu1 %v6372_v52 }
 0x887   : > { %1788 = vmatpush1.bf16.msra.mxu0 %v6369_v57  ;;  %1829 = vmatpush1.bf16.msra.mxu1 %v6371_v58 }
 0x888   : > { %1789 = vmatprep.subr.bf16.mxu0 %v6386_v59  ;;  %1830 = vmatprep.subr.bf16.mxu1 %v6388_v60 }
 0x88b   : > { %1790 = vmatpush1.bf16.msra.mxu0 %v6385_v61  ;;  %1831 = vmatpush1.bf16.msra.mxu1 %v6387_v62 }
 0x88c   : > { %7119 = vmatprep.subr.bf16.mxu0 %v7700_v63  ;;  %7141 = vmatprep.subr.bf16.mxu1 %v7701_v0 }
 0x88e   : > { %6395 = vmatmul.mubr.msk.bf16.vlgmr.msra.gmra.mrb[36].mxu0 %vm444_vm3, %v8436_v35  ;;  %6396 = vmatmul.mubr.msk.bf16.vlgmr.msra.gmra.mrb[32].mxu1 %vm444_vm3, %v8436_v35  ;;  %v7709_v35 = vld [vmem:[%s9951_s7 + $0xd0] sm:$0xff]  }
 0x88f   : > { %7120 = vmatpush3.bf16.msra.mxu0 %v7702_v2  ;;  %7142 = vmatpush3.bf16.msra.mxu1 %v7703_v3  ;;  %v7734_v3 = vld [vmem:[%s9951_s7 + $0x100] sm:$0xff]  }
 0x890   : > { %7121 = vmatprep.subr.bf16.mxu0 %v7704_v4  ;;  %7143 = vmatprep.subr.bf16.mxu1 %v7705_v5  ;;  %v7735_v4 = vld [vmem:[%s9951_s7 + $0x180] sm:$0xff]  }
 0x893   : > { %7122 = vmatpush3.bf16.msra.mxu0 %v7706_v6  ;;  %7144 = vmatpush3.bf16.msra.mxu1 %v7707_v7  ;;  %v7736_v7 = vld [vmem:[%s9951_s7 + $0x148] sm:$0xff]  }
 0x894   : > { %7123 = vmatprep.subr.bf16.mxu0 %v7708_v8  ;;  %7145 = vmatprep.subr.bf16.mxu1 %v7709_v35  ;;  %v7737_v8 = vld [vmem:[%s9951_s7 + $0x1c8] sm:$0xff]  }
 0x895   : > { %v7738_v35 = vld [vmem:[%s9951_s7 + $0x108] sm:$0xff]  }
 0x897   : > { %7124 = vmatpush3.bf16.msra.mxu0 %v7710_v9  ;;  %7146 = vmatpush3.bf16.msra.mxu1 %v7711_v10  ;;  %v7739_v9 = vld [vmem:[%s9951_s7 + $0x188] sm:$0xff]   ;;  %v8723_v10 = vsub.s32 5, %v8244_v24 }
 0x898   : > { %7125 = vmatprep.subr.bf16.mxu0 %v7712_v11  ;;  %7147 = vmatprep.subr.bf16.mxu1 %v7713_v12  ;;  %v8726_v11 = vsub.s32 7, %v8244_v24  ;;  %v7740_v12 = vld [vmem:[%s9951_s7 + $0x150] sm:$0xff]  }
 0x89b   : > { %7126 = vmatpush3.bf16.msra.mxu0 %v7714_v14  ;;  %7148 = vmatpush3.bf16.msra.mxu1 %v7715_v15  ;;  %v7741_v14 = vld [vmem:[%s9951_s7 + $0x1d0] sm:$0xff]   ;;  %v1157_v15 = vrot.slane %v8688_v41, %v8723_v10 }
 0x89c   : > { %7127 = vmatprep.subr.bf16.mxu0 %v7716_v16  ;;  %7149 = vmatprep.subr.bf16.mxu1 %v7717_v17  ;;  %v1165_v16 = vrot.slane %v8688_v41, %v8726_v11  ;;  %v7742_v17 = vld [vmem:[%s9951_s7 + $0x110] sm:$0xff]  }
 0x89f   : > { %7128 = vmatpush3.bf16.msra.mxu0 %v7718_v18  ;;  %7150 = vmatpush3.bf16.msra.mxu1 %v7719_v19  ;;  %v7743_v18 = vld [vmem:[%s9951_s7 + $0x190] sm:$0xff]   ;;  %v7744_v19 = vld [vmem:[%s9951_s7 + $0x158] sm:$0xff]  }
 0x8a0   : > { %7129 = vmatprep.subr.bf16.mxu0 %v7720_v21  ;;  %7151 = vmatprep.subr.bf16.mxu1 %v7721_v22  ;;  %v7745_v21 = vld [vmem:[%s9951_s7 + $0x1d8] sm:$0xff]  }
 0x8a3   : > { %7130 = vmatpush3.bf16.msra.mxu0 %v7722_v23  ;;  %7152 = vmatpush3.bf16.msra.mxu1 %v7723_v26 }
 0x8a4   : > { %7131 = vmatprep.subr.bf16.mxu0 %v7724_v27  ;;  %7153 = vmatprep.subr.bf16.mxu1 %v7725_v28 }
 0x8a7   : > { %7132 = vmatpush3.bf16.msra.mxu0 %v7726_v29  ;;  %7154 = vmatpush3.bf16.msra.mxu1 %v7727_v30 }
 0x8a8   : > { %7133 = vmatprep.subr.bf16.mxu0 %v7728_v31  ;;  %7155 = vmatprep.subr.bf16.mxu1 %v7729_v32  ;;  %v7746_v32 = vld [vmem:[%s9951_s7 + $0x118] sm:$0xff]  }
 0x8ab   : > { %7134 = vmatpush3.bf16.msra.mxu0 %v7730_v33  ;;  %7156 = vmatpush3.bf16.msra.mxu1 %v7731_v36  ;;  %v7747_v33 = vld [vmem:[%s9951_s7 + $0x198] sm:$0xff]  }
 0x8ac   : > { %7163 = vmatprep.subr.bf16.mxu0 %v7732_v37  ;;  %7185 = vmatprep.subr.bf16.mxu1 %v7733_v38  ;;  %v7748_v38 = vld [vmem:[%s9951_s7 + $0x160] sm:$0xff]  }
 0x931   : > { %v1571_v49 = vpop.f32.mrb[24].mxu0  ;;  %v1612_v47 = vpop.f32.mrb[20].mxu1 }
 0x932   : > { %v1572_v50 = vadd.f32 %v1571_v49, %v1137_v44  ;;  %v1613_v51 = vadd.f32 %v1612_v47, %v1145_v45  ;;  %v1573_v52 = vpop.f32.mrb[25].mxu0  ;;  %v1614_v53 = vpop.f32.mrb[21].mxu1  ;;  %v7750_v45 = vld [vmem:[%s9951_s7 + $0x120] sm:$0xff]  }
 0x933   : > { %v1574_v54 = vadd.f32 %v1573_v52, %v1141_v46  ;;  %v1615_v55 = vadd.f32 %v1614_v53, %v1149_v48  ;;  %v1575_v56 = vpop.f32.mrb[26].mxu0  ;;  %v1616_v57 = vpop.f32.mrb[22].mxu1  ;;  %v8766_v46 = vsub.s32 4, %v8244_v24  ;;  %v8769_v48 = vsub.s32 6, %v8244_v24  ;;  %v7753_v52 = vld [vmem:[%s9951_s7 + $0x1e8] sm:$0xff]  }
 0x934   : > { %v1865_v58 = vmax.f32 %v1572_v50, 0.0  ;;  %v1867_v59 = vmax.f32 %v1613_v51, 0.0  ;;  %v1576_v60 = vpop.f32.mrb[27].mxu0  ;;  %v1617_v61 = vpop.f32.mrb[23].mxu1  ;;  %v7751_v50 = vld [vmem:[%s9951_s7 + $0x1a0] sm:$0xff]   ;;  %v7752_v51 = vld [vmem:[%s9951_s7 + $0x168] sm:$0xff]  }
 0x935   : > { %v1866_v62 = vmax.f32 %v1574_v54, 0.0  ;;  %v1868_v63 = vmax.f32 %v1615_v55, 0.0  ;;  %v6323_v24 = vld [vmem:[%s9946_s2 + $0x46] ss:$8 sm:$0xf]  ;;  %v1153_v57 = vrot.slane %v8688_v41, %v8766_v46 }
 0x936   : > { %v1881_v5 = vpack.c.bf16 %v1865_v58, %v1865_v58  ;;  %v1883_v6 = vpack.c.bf16 %v1867_v59, %v1867_v59  ;;  %v6324_v53 = vld [vmem:[%s9946_s2 + $0x46] ss:$8 sm:$0xf0]  ;;  %v1161_v58 = vrot.slane %v8688_v41, %v8769_v48 }
 0x937   : > { %v1882_v0 = vpack.c.bf16 %v1866_v62, %v1866_v62  ;;  %v1884_v2 = vpack.c.bf16 %v1868_v63, %v1868_v63  ;;  %v7754_v54 = vld [vmem:[%s9951_s7 + $0x128] sm:$0xff]   ;;  %v8792_v56 = vor.u32 %v6324_v53, %v6323_v24  ;;  %v7756_v59 = vld [vmem:[%s9951_s7 + $0x170] sm:$0xff]   ;;  %v7777_v53 = vld [vmem:[%s9951_s7 + $0x2d8] sm:$0xff]  }
 0x938   : > { %v7755_v55 = vld [vmem:[%s9951_s7 + $0x1a8] sm:$0xff]   ;;  %v7757_v60 = vld [vmem:[%s9951_s7 + $0x1f0] sm:$0xff]  }
 0x939   : > { %2954 = vmatprep.mubr.bf16.mxu0 %v1882_v0  ;;  %2994 = vmatprep.mubr.bf16.mxu1 %v1884_v2  ;;  %v1173_v61 = vrot.slane %v8792_v56, %v8266_v42  ;;  %v1181_v62 = vrot.slane %v8792_v56, %v8694_v43  ;;  %v7758_v41 = vld [vmem:[%s9951_s7 + $0x130] sm:$0xff]  }
 0x93a   : > { %2955 = vmatmul.mubr.bf16.vlgmr.msra.gmra.mrb[40].mxu0 %v1881_v5  ;;  %2995 = vmatmul.mubr.bf16.vlgmr.msra.gmra.mrb[36].mxu1 %v1883_v6  ;;  %v7759_v63 = vld [vmem:[%s9951_s7 + $0x1b0] sm:$0xff]  }
 0x93b   : > { %7164 = vmatpush3.bf16.msra.mxu0 %v7734_v3  ;;  %7186 = vmatpush3.bf16.msra.mxu1 %v7735_v4  ;;  %v7760_v3 = vld [vmem:[%s9951_s7 + $0x178] sm:$0xff]  }
 0x93c   : > { %7165 = vmatprep.subr.bf16.mxu0 %v7736_v7  ;;  %7187 = vmatprep.subr.bf16.mxu1 %v7737_v8  ;;  %v7761_v4 = vld [vmem:[%s9951_s7 + $0x1f8] sm:$0xff]  }
 0x93f   : > { %7166 = vmatpush3.bf16.msra.mxu0 %v7738_v35  ;;  %7188 = vmatpush3.bf16.msra.mxu1 %v7739_v9 }
 0x940   : > { %7167 = vmatprep.subr.bf16.mxu0 %v7740_v12  ;;  %7189 = vmatprep.subr.bf16.mxu1 %v7741_v14 }
 0x941   : > { %v1653_v22 = vpop.f32.mrb[28].mxu0  ;;  %v1694_v23 = vpop.f32.mrb[24].mxu1 }
 0x942   : > { %v1655_v26 = vpop.f32.mrb[29].mxu0  ;;  %v1696_v27 = vpop.f32.mrb[25].mxu1  ;;  %v1654_v0 = vadd.f32 %v1653_v22, %v1153_v57  ;;  %v1695_v2 = vadd.f32 %v1694_v23, %v1161_v58  ;;  %v7764_v22 = vld [vmem:[%s9951_s7 + $0x240] sm:$0xff]  }
 0x943   : > { %v1656_v28 = vadd.f32 %v1655_v26, %v1157_v15  ;;  %v1697_v29 = vadd.f32 %v1696_v27, %v1165_v16  ;;  %v1657_v30 = vpop.f32.mrb[30].mxu0  ;;  %v1698_v31 = vpop.f32.mrb[26].mxu1  ;;  %7168 = vmatpush3.bf16.msra.mxu0 %v7742_v17  ;;  %7190 = vmatpush3.bf16.msra.mxu1 %v7743_v18  ;;  %v7762_v15 = vld [vmem:[%s9951_s7 + $0x138] sm:$0xff]   ;;  %v7765_v23 = vld [vmem:[%s9951_s7 + $0x2c0] sm:$0xff]  }
 0x944   : > { %v1658_v36 = vpop.f32.mrb[31].mxu0  ;;  %v1699_v37 = vpop.f32.mrb[27].mxu1  ;;  %7169 = vmatprep.subr.bf16.mxu0 %v7744_v19  ;;  %7191 = vmatprep.subr.bf16.mxu1 %v7745_v21  ;;  %v7763_v16 = vld [vmem:[%s9951_s7 + $0x1b8] sm:$0xff]   ;;  %v1869_v17 = vmax.f32 %v1654_v0, 0.0  ;;  %v1871_v18 = vmax.f32 %v1695_v2, 0.0  ;;  %v7767_v31 = vld [vmem:[%s9951_s7 + $0x280] sm:$0xff]  }
 0x945   : > { %v1870_v40 = vmax.f32 %v1656_v28, 0.0  ;;  %v1872_v44 = vmax.f32 %v1697_v29, 0.0  ;;  %v7766_v28 = vld [vmem:[%s9951_s7 + $0x200] sm:$0xff]   ;;  %v7769_v36 = vld [vmem:[%s9951_s7 + $0x2c8] sm:$0xff]  }
 0x946   : > { %v1885_v29 = vpack.c.bf16 %v1869_v17, %v1869_v17  ;;  %v1887_v30 = vpack.c.bf16 %v1871_v18, %v1871_v18  ;;  %v7780_v0 = vld [vmem:[%s9951_s7 + $0x260] sm:$0xff]   ;;  %v1189_v17 = vrot.slane %v8792_v56, %v8723_v10  ;;  %v1197_v18 = vrot.slane %v8792_v56, %v8726_v11 }
 0x947   : > { %v1886_v49 = vpack.c.bf16 %v1870_v40, %v1870_v40  ;;  %v1888_v47 = vpack.c.bf16 %v1872_v44, %v1872_v44  ;;  %7170 = vmatpush3.bf16.msra.mxu0 %v7746_v32  ;;  %7192 = vmatpush3.bf16.msra.mxu1 %v7747_v33  ;;  %v7768_v33 = vld [vmem:[%s9951_s7 + $0x248] sm:$0xff]   ;;  %v7772_v40 = vld [vmem:[%s9951_s7 + $0x250] sm:$0xff]   ;;  %v7781_v2 = vld [vmem:[%s9951_s7 + $0x2e0] sm:$0xff]  }
 0x948   : > { %7171 = vmatprep.subr.bf16.mxu0 %v7748_v38  ;;  %7193 = vmatprep.subr.bf16.mxu1 %v7749_v39  ;;  %v7770_v38 = vld [vmem:[%s9951_s7 + $0x208] sm:$0xff]   ;;  %v7773_v44 = vld [vmem:[%s9951_s7 + $0x2d0] sm:$0xff]  }
 0x949   : > { %3034 = vmatprep.mubr.bf16.mxu0 %v1886_v49  ;;  %3074 = vmatprep.mubr.bf16.mxu1 %v1888_v47  ;;  %v7771_v39 = vld [vmem:[%s9951_s7 + $0x288] sm:$0xff]   ;;  %v1193_v49 = vrot.slane %v8792_v56, %v8769_v48  ;;  %v7774_v47 = vld [vmem:[%s9951_s7 + $0x210] sm:$0xff]  }
 0x94b   : > { %7172 = vmatpush3.bf16.msra.mxu0 %v7750_v45  ;;  %7194 = vmatpush3.bf16.msra.mxu1 %v7751_v50  ;;  %v1185_v45 = vrot.slane %v8792_v56, %v8766_v46  ;;  %v7775_v50 = vld [vmem:[%s9951_s7 + $0x290] sm:$0xff]  }
 0x94c   : > { %7173 = vmatprep.subr.bf16.mxu0 %v7752_v51  ;;  %7195 = vmatprep.subr.bf16.mxu1 %v7753_v52  ;;  %v7776_v51 = vld [vmem:[%s9951_s7 + $0x258] sm:$0xff]  }
 0x94f   : > { %7174 = vmatpush3.bf16.msra.mxu0 %v7754_v54  ;;  %7196 = vmatpush3.bf16.msra.mxu1 %v7755_v55 }
 0x950   : > { %7175 = vmatprep.subr.bf16.mxu0 %v7756_v59  ;;  %7197 = vmatprep.subr.bf16.mxu1 %v7757_v60 }
 0x951   : > { %v8820_v5 = vpop.f32.mrb[32].mxu0  ;;  %v8822_v6 = vpop.f32.mrb[28].mxu1 }
 0x952   : > { %v1737_v7 = vpop.f32.mrb[33].mxu0  ;;  %v1778_v8 = vpop.f32.mrb[29].mxu1 }
 0x953   : > { %v1738_v35 = vadd.f32 %v1737_v7, %v1173_v61  ;;  %v1779_v9 = vadd.f32 %v1778_v8, %v1181_v62  ;;  %v1739_v12 = vpop.f32.mrb[34].mxu0  ;;  %v1780_v14 = vpop.f32.mrb[30].mxu1  ;;  %7176 = vmatpush3.bf16.msra.mxu0 %v7758_v41  ;;  %7198 = vmatpush3.bf16.msra.mxu1 %v7759_v63  ;;  %v7778_v61 = vld [vmem:[%s9951_s7 + $0x218] sm:$0xff]   ;;  %v7784_v7 = vld [vmem:[%s9951_s7 + $0x268] sm:$0xff]  }
 0x954   : > { %v1740_v19 = vpop.f32.mrb[35].mxu0  ;;  %v1781_v21 = vpop.f32.mrb[31].mxu1  ;;  %7177 = vmatprep.subr.bf16.mxu0 %v7760_v3  ;;  %7199 = vmatprep.subr.bf16.mxu1 %v7761_v4  ;;  %v7779_v63 = vld [vmem:[%s9951_s7 + $0x298] sm:$0xff]   ;;  %v7782_v3 = vld [vmem:[%s9951_s7 + $0x220] sm:$0xff]   ;;  %v7785_v8 = vld [vmem:[%s9951_s7 + $0x2e8] sm:$0xff]  }
 0x955   : > { %v1874_v26 = vmax.f32 %v1738_v35, 0.0  ;;  %v1876_v27 = vmax.f32 %v1779_v9, 0.0  ;;  %v7783_v4 = vld [vmem:[%s9951_s7 + $0x2a0] sm:$0xff]   ;;  %v7786_v35 = vld [vmem:[%s9951_s7 + $0x228] sm:$0xff]   ;;  %v1169_v9 = vrot.slane %v8792_v56, %v8247_v25  ;;  %v7788_v14 = vld [vmem:[%s9951_s7 + $0x270] sm:$0xff]  }
 0x956   : > { %v7787_v12 = vld [vmem:[%s9951_s7 + $0x2a8] sm:$0xff]   ;;  %v7790_v19 = vld [vmem:[%s9951_s7 + $0x230] sm:$0xff]  }
 0x957   : > { %7178 = vmatpush3.bf16.msra.mxu0 %v7762_v15  ;;  %7200 = vmatpush3.bf16.msra.mxu1 %v7763_v16  ;;  %v1890_v32 = vpack.c.bf16 %v1874_v26, %v1874_v26  ;;  %v1892_v37 = vpack.c.bf16 %v1876_v27, %v1876_v27  ;;  %v1177_v15 = vrot.slane %v8792_v56, %v8691_v20  ;;  %v7789_v16 = vld [vmem:[%s9951_s7 + $0x2f0] sm:$0xff]   ;;  %v7793_v56 = vld [vmem:[%s9951_s7 + $0x2f8] sm:$0xff]  }
 0x958   : > { %7207 = vmatprep.subr.bf16.mxu0 %v7764_v22  ;;  %7229 = vmatprep.subr.bf16.mxu1 %v7765_v23  ;;  %v1736_v21 = vadd.f32 %v8820_v5, %v1169_v9  ;;  %v7791_v22 = vld [vmem:[%s9951_s7 + $0x2b0] sm:$0xff]   ;;  %v7792_v23 = vld [vmem:[%s9951_s7 + $0x278] sm:$0xff]  }
 0x959   : > { %v1777_v26 = vadd.f32 %v8822_v6, %v1177_v15  ;;  %v7794_v5 = vld [vmem:[%s9951_s7 + $0x238] sm:$0xff]   ;;  %v7796_v6 = vld [vmem:[%s9951_s7 + $0x340] sm:$0xff]   ;;  %v7822_v9 = vld [vmem:[%s9951_s7 + $0x330] sm:$0xff]  }
 0x95a   : > { %3035 = vmatmul.mubr.bf16.vlgmr.msra.gmra.mrb[44].mxu0 %v1885_v29  ;;  %3075 = vmatmul.mubr.bf16.vlgmr.msra.gmra.mrb[40].mxu1 %v1887_v30  ;;  %v1873_v29 = vmax.f32 %v1736_v21, 0.0  ;;  %v7795_v30 = vld [vmem:[%s9951_s7 + $0x2b8] sm:$0xff]  }
 0x95b   : > { %7208 = vmatpush3.bf16.msra.mxu0 %v7766_v28  ;;  %3114 = vmatprep.mubr.bf16.mxu0 %v1890_v32  ;;  %v7797_v32 = vld [vmem:[%s9951_s7 + $0x3c0] sm:$0xff]   ;;  %v7825_v15 = vld [vmem:[%s9951_s7 + $0x3f8] sm:$0xff]  }
 0x95c   : > { %7230 = vmatpush3.bf16.msra.mxu1 %v7767_v31  ;;  %3154 = vmatprep.mubr.bf16.mxu1 %v1892_v37  ;;  %v1875_v31 = vmax.f32 %v1777_v26, 0.0  ;;  %v7798_v37 = vld [vmem:[%s9951_s7 + $0x300] sm:$0xff]  }
 0x95d   : > { %7209 = vmatprep.subr.bf16.mxu0 %v7768_v33  ;;  %7231 = vmatprep.subr.bf16.mxu1 %v7769_v36 }
 0x95f   : > { %7210 = vmatpush3.bf16.msra.mxu0 %v7770_v38  ;;  %v1889_v38 = vpack.c.bf16 %v1873_v29, %v1873_v29 }
 0x960   : > { %7232 = vmatpush3.bf16.msra.mxu1 %v7771_v39  ;;  %7211 = vmatprep.subr.bf16.mxu0 %v7772_v40  ;;  %v7799_v39 = vld [vmem:[%s9951_s7 + $0x380] sm:$0xff]   ;;  %v1891_v40 = vpack.c.bf16 %v1875_v31, %v1875_v31 }
 0x961   : > { %v1817_v52 = vpop.f32.mrb[36].mxu0  ;;  %v1858_v24 = vpop.f32.mrb[32].mxu1  ;;  %7233 = vmatprep.subr.bf16.mxu1 %v7773_v44  ;;  %v7800_v44 = vld [vmem:[%s9951_s7 + $0x348] sm:$0xff]  }
 0x962   : > { %v8876_v54 = vadd.f32 %v1817_v52, %v1185_v45  ;;  %v8878_v55 = vadd.f32 %v1858_v24, %v1193_v49  ;;  %v1819_v57 = vpop.f32.mrb[37].mxu0  ;;  %v1860_v58 = vpop.f32.mrb[33].mxu1  ;;  %v7801_v49 = vld [vmem:[%s9951_s7 + $0x3c8] sm:$0xff]   ;;  %v7804_v52 = vld [vmem:[%s9951_s7 + $0x350] sm:$0xff]  }
 0x963   : > { %v1821_v59 = vpop.f32.mrb[38].mxu0  ;;  %v1862_v60 = vpop.f32.mrb[34].mxu1  ;;  %7212 = vmatpush3.bf16.msra.mxu0 %v7774_v47  ;;  %v1820_v27 = vadd.f32 %v1819_v57, %v1189_v17  ;;  %v1861_v28 = vadd.f32 %v1860_v58, %v1197_v18  ;;  %v7805_v24 = vld [vmem:[%s9951_s7 + $0x3d0] sm:$0xff]   ;;  %v7808_v58 = vld [vmem:[%s9951_s7 + $0x358] sm:$0xff]  }
 0x964   : > { %7234 = vmatpush3.bf16.msra.mxu1 %v7775_v50  ;;  %v1822_v62 = vpop.f32.mrb[39].mxu0  ;;  %v1863_v41 = vpop.f32.mrb[35].mxu1  ;;  %7213 = vmatprep.subr.bf16.mxu0 %v7776_v51  ;;  %v7802_v50 = vld [vmem:[%s9951_s7 + $0x308] sm:$0xff]   ;;  %v7807_v57 = vld [vmem:[%s9951_s7 + $0x390] sm:$0xff]   ;;  %v7809_v59 = vld [vmem:[%s9951_s7 + $0x3d8] sm:$0xff]   ;;  %v1877_v17 = vmax.f32 %v8876_v54, 0.0 }
 0x965   : > { %7235 = vmatprep.subr.bf16.mxu1 %v7777_v53  ;;  %v1878_v33 = vmax.f32 %v1820_v27, 0.0  ;;  %v1880_v36 = vmax.f32 %v1861_v28, 0.0  ;;  %v7803_v51 = vld [vmem:[%s9951_s7 + $0x388] sm:$0xff]   ;;  %v7806_v53 = vld [vmem:[%s9951_s7 + $0x310] sm:$0xff]   ;;  %v7810_v60 = vld [vmem:[%s9951_s7 + $0x318] sm:$0xff]  }
 0x966   : > { %v7812_v62 = vld [vmem:[%s9951_s7 + $0x360] sm:$0xff]   ;;  %v7827_v18 = vld [vmem:[%s9951_s7 + $0x3b8] sm:$0xff]   ;;  %v1893_v21 = vpack.c.bf16 %v1877_v17, %v1877_v17 }
 0x967   : > { %7214 = vmatpush3.bf16.msra.mxu0 %v7778_v61  ;;  %v1894_v45 = vpack.c.bf16 %v1878_v33, %v1878_v33  ;;  %v1896_v47 = vpack.c.bf16 %v1880_v36, %v1880_v36  ;;  %v7811_v61 = vld [vmem:[%s9951_s7 + $0x398] sm:$0xff]   ;;  %v7813_v41 = vld [vmem:[%s9951_s7 + $0x3e0] sm:$0xff]  }
 0x968   : > { %7236 = vmatpush3.bf16.msra.mxu1 %v7779_v63  ;;  %7215 = vmatprep.subr.bf16.mxu0 %v7780_v0  ;;  %v7814_v63 = vld [vmem:[%s9951_s7 + $0x320] sm:$0xff]  }
 0x969   : > { %7237 = vmatprep.subr.bf16.mxu1 %v7781_v2  ;;  %v7815_v0 = vld [vmem:[%s9951_s7 + $0x3a0] sm:$0xff]   ;;  %v7816_v2 = vld [vmem:[%s9951_s7 + $0x368] sm:$0xff]  }
 0x96b   : > { %7216 = vmatpush3.bf16.msra.mxu0 %v7782_v3  ;;  %v7817_v3 = vld [vmem:[%s9951_s7 + $0x3e8] sm:$0xff]  }
 0x96c   : > { %7238 = vmatpush3.bf16.msra.mxu1 %v7783_v4  ;;  %7217 = vmatprep.subr.bf16.mxu0 %v7784_v7  ;;  %v7818_v4 = vld [vmem:[%s9951_s7 + $0x328] sm:$0xff]  }
 0x96d   : > { %7239 = vmatprep.subr.bf16.mxu1 %v7785_v8  ;;  %v7819_v7 = vld [vmem:[%s9951_s7 + $0x3a8] sm:$0xff]   ;;  %v7820_v8 = vld [vmem:[%s9951_s7 + $0x370] sm:$0xff]  }
 0x96f   : > { %7218 = vmatpush3.bf16.msra.mxu0 %v7786_v35  ;;  %v7821_v35 = vld [vmem:[%s9951_s7 + $0x3f0] sm:$0xff]  }
 0x970   : > { %7240 = vmatpush3.bf16.msra.mxu1 %v7787_v12  ;;  %7219 = vmatprep.subr.bf16.mxu0 %v7788_v14  ;;  %v7823_v12 = vld [vmem:[%s9951_s7 + $0x3b0] sm:$0xff]   ;;  %v7824_v14 = vld [vmem:[%s9951_s7 + $0x378] sm:$0xff]  }
 0x971   : > { %7241 = vmatprep.subr.bf16.mxu1 %v7789_v16  ;;  %v7826_v16 = vld [vmem:[%s9951_s7 + $0x338] sm:$0xff]  }
 0x973   : > { %7220 = vmatpush3.bf16.msra.mxu0 %v7790_v19  ;;  %v1879_v19 = vmax.f32 %v8878_v55, 0.0  ;;  %v2153_v55 = vld [vmem:[%s9946_s2 + $0x7] ss:$0 sm:$0xff] }
 0x974   : > { %7242 = vmatpush3.bf16.msra.mxu1 %v7791_v22  ;;  %7221 = vmatprep.subr.bf16.mxu0 %v7792_v23 }
 0x975   : > { %7243 = vmatprep.subr.bf16.mxu1 %v7793_v56  ;;  %v1895_v22 = vpack.c.bf16 %v1879_v19, %v1879_v19 }
 0x977   : > { %7222 = vmatpush3.bf16.msra.mxu0 %v7794_v5 }
 0x978   : > { %7244 = vmatpush3.bf16.msra.mxu1 %v7795_v30  ;;  %7251 = vmatprep.subr.bf16.mxu0 %v7796_v6 }
 0x979   : > { %7273 = vmatprep.subr.bf16.mxu1 %v7797_v32 }
 0x97a   : > { %3115 = vmatmul.mubr.bf16.vlgmr.msra.gmra.mrb[48].mxu0 %v1889_v38 }
 0x97b   : > { %3155 = vmatmul.mubr.bf16.vlgmr.msra.gmra.mrb[44].mxu1 %v1891_v40  ;;  %7252 = vmatpush3.bf16.msra.mxu0 %v7798_v37 }
 0x97c   : > { %3194 = vmatprep.mubr.bf16.mxu0 %v1894_v45  ;;  %7274 = vmatpush3.bf16.msra.mxu1 %v7799_v39 }
 0x97d   : > { %3234 = vmatprep.mubr.bf16.mxu1 %v1896_v47  ;;  %7253 = vmatprep.subr.bf16.mxu0 %v7800_v44 }
 0x97e   : > { %7275 = vmatprep.subr.bf16.mxu1 %v7801_v49 }
 0x97f   : > { %7254 = vmatpush3.bf16.msra.mxu0 %v7802_v50 }
 0x980   : > { %7276 = vmatpush3.bf16.msra.mxu1 %v7803_v51  ;;  %7255 = vmatprep.subr.bf16.mxu0 %v7804_v52 }
 0x981   : > { %7277 = vmatprep.subr.bf16.mxu1 %v7805_v24 }
 0x983   : > { %7256 = vmatpush3.bf16.msra.mxu0 %v7806_v53 }
 0x984   : > { %7278 = vmatpush3.bf16.msra.mxu1 %v7807_v57  ;;  %7257 = vmatprep.subr.bf16.mxu0 %v7808_v58 }
 0x985   : > { %7279 = vmatprep.subr.bf16.mxu1 %v7809_v59 }
 0x987   : > { %7258 = vmatpush3.bf16.msra.mxu0 %v7810_v60 }
 0x988   : > { %7280 = vmatpush3.bf16.msra.mxu1 %v7811_v61  ;;  %7259 = vmatprep.subr.bf16.mxu0 %v7812_v62 }
 0x989   : > { %7281 = vmatprep.subr.bf16.mxu1 %v7813_v41 }
 0x98b   : > { %7260 = vmatpush3.bf16.msra.mxu0 %v7814_v63 }
 0x98c   : > { %7282 = vmatpush3.bf16.msra.mxu1 %v7815_v0  ;;  %7261 = vmatprep.subr.bf16.mxu0 %v7816_v2 }
 0x98d   : > { %7283 = vmatprep.subr.bf16.mxu1 %v7817_v3 }
 0x98f   : > { %7262 = vmatpush3.bf16.msra.mxu0 %v7818_v4 }
 0x990   : > { %7284 = vmatpush3.bf16.msra.mxu1 %v7819_v7  ;;  %7263 = vmatprep.subr.bf16.mxu0 %v7820_v8 }
 0x991   : > { %7285 = vmatprep.subr.bf16.mxu1 %v7821_v35 }
 0x993   : > { %7264 = vmatpush3.bf16.msra.mxu0 %v7822_v9 }
 0x994   : > { %7286 = vmatpush3.bf16.msra.mxu1 %v7823_v12  ;;  %7265 = vmatprep.subr.bf16.mxu0 %v7824_v14 }
 0x995   : > { %7287 = vmatprep.subr.bf16.mxu1 %v7825_v15 }
 0x997   : > { %7266 = vmatpush3.bf16.msra.mxu0 %v7826_v16 }
 0x998   : > { %7288 = vmatpush3.bf16.msra.mxu1 %v7827_v18 }
 0x999   : > { %7563 = vmatprep.subr.bf16.mxu1 %v8080_v1 }
 0x99a   : > { %3195 = vmatmul.mubr.bf16.vlgmr.msra.gmra.mrb[52].mxu0 %v1893_v21 }
 0x99b   : > { %3235 = vmatmul.mubr.bf16.vlgmr.msra.gmra.mrb[48].mxu1 %v1895_v22  ;;  %3358 = vmatprep.mubr.bf16.mxu0 %v8082_v13 }
 0x99c   : > { %7565 = vmatprep.mubr.msk.bf16.mxu1 %vm8081_vm1, %v8080_v1 }
 0xa0d   : > { %v7135_v54 = vpop.f32.mrb[40].mxu0  ;;  %v7157_v23 = vpop.f32.mrb[36].mxu1 }
 0xa0e   : > { %v7136_v26 = vpop.f32.mrb[41].mxu0  ;;  %v7158_v56 = vpop.f32.mrb[37].mxu1 }
 0xa0f   : > { %v7137_v27 = vadd.f32 %v7136_v26, %v7135_v54  ;;  %v7159_v28 = vadd.f32 %v7158_v56, %v7157_v23  ;;  %v7138_v5 = vpop.f32.mrb[42].mxu0  ;;  %v7160_v29 = vpop.f32.mrb[38].mxu1  ;;  %v7830_v26 = vld [vmem:[%s9948_s4 + $0x44] ss:$8 sps:$4 sm:$0xff]   ;;  %v7828_v56 = vld [vmem:[%s9948_s4 + $0x40] ss:$8 sps:$4 sm:$0xff]  }
 0xa10   : > { %v7139_v30 = vpop.f32.mrb[43].mxu0  ;;  %v7161_v6 = vpop.f32.mrb[39].mxu1  ;;  %3326 = vmatprep.subr.bf16.mxu0 %v7830_v26  ;;  %v7834_v5 = vld [vmem:[%s9948_s4 + $0x60] ss:$8 sps:$4 sm:$0xff]   ;;  %v7839_v29 = vld [vmem:[%s9948_s4 + $0x74] ss:$8 sps:$4 sm:$0xff]  }
 0xa11   : > { %v2957_v31 = vadd.f32 %v7137_v27, %v2153_v55  ;;  %3327 = vmatpush1.bf16.msra.mxu0 %v7828_v56  ;;  %v7831_v27 = vld [vmem:[%s9948_s4 + $0x50] ss:$8 sps:$4 sm:$0xff]  }
 0xa12   : > { %v7837_v30 = vld [vmem:[%s9948_s4 + $0x70] ss:$8 sps:$4 sm:$0xff]  }
 0xa13   : > { %v2997_v32 = vadd.f32 %v7159_v28, %v2957_v31  ;;  %v7836_v28 = vld [vmem:[%s9948_s4 + $0x64] ss:$8 sps:$4 sm:$0xff]  }
 0xa2d   : > { %v7179_v33 = vpop.f32.mrb[44].mxu0  ;;  %v7201_v36 = vpop.f32.mrb[40].mxu1 }
 0xa2e   : > { %v7180_v37 = vpop.f32.mrb[45].mxu0  ;;  %v7202_v38 = vpop.f32.mrb[41].mxu1 }
 0xa2f   : > { %v7181_v39 = vadd.f32 %v7180_v37, %v7179_v33  ;;  %v7203_v40 = vadd.f32 %v7202_v38, %v7201_v36  ;;  %v7182_v44 = vpop.f32.mrb[46].mxu0  ;;  %v7204_v45 = vpop.f32.mrb[42].mxu1  ;;  %v3243_v36 = vld [vmem:[%s9946_s2 + $0x80] ss:$0 sm:$0xff]  ;;  %v3244_v38 = vld [vmem:[%s9946_s2 + $0x81] ss:$0 sm:$0xff] }
 0xa30   : > { %v7183_v49 = vpop.f32.mrb[47].mxu0  ;;  %v7205_v47 = vpop.f32.mrb[43].mxu1  ;;  %v6533_v45 = vld [vmem:[%s9946_s2 + $0x82] ss:$8 sm:$0x3] }
 0xa31   : > { %v3037_v50 = vadd.f32 %v7181_v39, %v2997_v32  ;;  %v3276_v49 = vrot.slane %v6533_v45, %v8247_v25 }
 0xa33   : > { %v3077_v51 = vadd.f32 %v7203_v40, %v3037_v50 }
 0xa4d   : > { %v7223_v52 = vpop.f32.mrb[48].mxu0 }
 0xa4e   : > { %v7245_v24 = vpop.f32.mrb[44].mxu1  ;;  %v7224_v53 = vpop.f32.mrb[49].mxu0 }
 0xa4f   : > { %v7225_v57 = vadd.f32 %v7224_v53, %v7223_v52  ;;  %v7246_v58 = vpop.f32.mrb[45].mxu1  ;;  %v7226_v59 = vpop.f32.mrb[50].mxu0 }
 0xa50   : > { %v7247_v60 = vadd.f32 %v7246_v58, %v7245_v24  ;;  %v7248_v61 = vpop.f32.mrb[46].mxu1  ;;  %v7227_v62 = vpop.f32.mrb[51].mxu0 }
 0xa51   : > { %v3117_v41 = vadd.f32 %v7225_v57, %v3077_v51  ;;  %v7249_v63 = vpop.f32.mrb[47].mxu1 }
 0xa53   : > { %v3157_v0 = vadd.f32 %v7247_v60, %v3117_v41 }
 0xa6d   : > { %v7267_v2 = vpop.f32.mrb[52].mxu0 }
 0xa6e   : > { %v7289_v3 = vpop.f32.mrb[48].mxu1  ;;  %v7268_v4 = vpop.f32.mrb[53].mxu0 }
 0xa6f   : > { %v7269_v7 = vadd.f32 %v7268_v4, %v7267_v2  ;;  %v7290_v8 = vpop.f32.mrb[49].mxu1  ;;  %v7270_v35 = vpop.f32.mrb[54].mxu0 }
 0xa70   : > { %v7291_v9 = vadd.f32 %v7290_v8, %v7289_v3  ;;  %v7292_v12 = vpop.f32.mrb[50].mxu1  ;;  %v7271_v14 = vpop.f32.mrb[55].mxu0 }
 0xa71   : > { %v3197_v15 = vadd.f32 %v7269_v7, %v3157_v0  ;;  %v7293_v16 = vpop.f32.mrb[51].mxu1  ;;  %v3280_v0 = vrot.slane %v6533_v45, %v8266_v42 }
 0xa73   : > { %v3237_v17 = vadd.f32 %v7291_v9, %v3197_v15 }
 0xa75   : > { %v3242_v18 = vadd.f32 %v3237_v17, %v8432_v34  ;;  %v7833_v34 = vld [vmem:[%s9948_s4 + $0x54] ss:$8 sps:$4 sm:$0xff]  }
 0xa76   : > { %3328 = vmatprep.subr.bf16.mxu0 %v7833_v34 }
 0xa77   : > { %v3245_v19 = vsel %vm444_vm3, %v3242_v18, 0.0  ;;  %3329 = vmatpush1.bf16.msra.mxu0 %v7831_v27 }
 0xa78   : > { %3246 = vadd.xlane.f32.xlu0 %v3245_v19  ;;  %3330 = vmatprep.subr.bf16.mxu0 %v7836_v28 }
 0xa7b   : > { %3331 = vmatpush1.bf16.msra.mxu0 %v7834_v5 }
 0xa7c   : > { %3332 = vmatprep.subr.bf16.mxu0 %v7839_v29 }
 0xa7f   : > { %3333 = vmatpush1.bf16.msra.mxu0 %v7837_v30 }
 0xa80   : > { %7569 = vmatprep.subr.bf16.mxu0 %v8080_v1 }
 0xb05   : > { %v3247_v21 = vpop.xlane.xlu0 %3246 }
 0xb06   : > { %v3248_v22 = vmul.f32 0.015625, %v3247_v21 }
 0xb08   : > { %v3249_v54 = vsub.f32 %v3242_v18, %v3248_v22 }
 0xb0a   : > { %v3250_v23 = vmul.f32 %v3249_v54, %v3249_v54 }
 0xb0c   : > { %v3251_v55 = vsel %vm444_vm3, %v3250_v23, 0.0 }
 0xb0d   : > { %3252 = vadd.xlane.f32.xlu1 %v3251_v55 }
 0xb9a   : > { %v3253_v6 = vpop.xlane.xlu1 %3252 }
 0xb9b   : > { %v3254_v31 = vmul.f32 0.015625, %v3253_v6 }
 0xb9d   : > { %v3255_v32 = vadd.f32 1e-05, %v3254_v31 }
 0xb9f   : > { %7994 = vrsqrt.f32 %v3255_v32 }
 0xba9   : > { %v7995_v33 = vpop.eup %7994 }
 0xbaa   : > { %v3257_v37 = vmul.f32 %v7995_v33, %v3249_v54 }
 0xbac   : > { %v3258_v39 = vmul.f32 %v3257_v37, %v3243_v36 }
 0xbae   : > { %v9083_v40 = vadd.f32 %v3258_v39, %v3244_v38 }
 0xbb0   : > { %v3260_v44 = vpack.c.bf16 %v9083_v40, %v9083_v40 }
 0xbb2   : > { %6542 = vmatmul.mubr.msk.bf16.vlgmr.msra.gmra.mrb[56].mxu0 %vm444_vm3, %v3260_v44 }
 0xbb3   : > { %7571 = vmatprep.mubr.msk.bf16.mxu0 %vm8081_vm1, %v8080_v1 }
 0xc85   : > { %v3360_v47 = vpop.f32.mrb[56].mxu0 }
 0xc86   : > { %v3361_v50 = vadd.f32 %v3360_v47, %v3276_v49  ;;  %v3362_v51 = vpop.f32.mrb[57].mxu0 }
 0xc87   : > { %v3364_v52 = vpop.f32.mrb[58].mxu0  ;;  %v9107_v4 = vadd.f32 %v3362_v51, %v3280_v0 }
 0xc88   : > { %v3365_v24 = vpop.f32.mrb[59].mxu0  ;;  %3371 = vrot.lane.b32.xlu1 %v3361_v50, %s8085_s28  ;;  %3368 = vrot.lane.b32.xlu0 %v3361_v50, %s8084_s27  ;;  %v3377_v53 = vpack.c.bf16 %v3361_v50, %v3361_v50 }
 0xc89   : > { %v3391_v35 = vpack.c.bf16 %v9107_v4, %v9107_v4 }
 0xc8b   : > { %v3643_v14 = vsel %vm336_vm0, %v3391_v35, 0 }
 0xc8c   : > { %3374 = vrot.lane.b32.xlu1 %v3361_v50, %s9963_s23  ;;  %3396 = vrot.lane.b32.xlu0 %v3377_v53, %s9964_s14 }
 0xcfa   : > { %v3372_v57 = vpop.permute.xlu1 %3371  ;;  %v3369_v58 = vpop.permute.xlu0 %3368 }
 0xcfb   : > { %v3379_v59 = vpack.c.bf16 %v3372_v57, %v3372_v57  ;;  %v3378_v60 = vpack.c.bf16 %v3369_v58, %v3369_v58 }
 0xcfd   : > { %3445 = vrot.lane.b32.xlu1 %v3378_v60, %s9964_s14  ;;  %3494 = vrot.lane.b32.xlu0 %v3379_v59, %s9964_s14 }
 0xcfe   : > { %v3375_v61 = vpop.permute.xlu1 %3374  ;;  %v3397_v62 = vpop.permute.xlu0 %3396 }
 0xcff   : > { %v3380_v41 = vpack.c.bf16 %v3375_v61, %v3375_v61  ;;  %v3402_v63 = vsel %vm520_vm4, %v3397_v62, 0 }
 0xd00   : > { %7564 = vmatpush3.bf16.xpose.msra.mxu1 %v3402_v63 }
 0xd01   : > { %3543 = vrot.lane.b32.xlu1 %v3380_v41, %s9964_s14  ;;  %7575 = vmatprep.subr.bf16.mxu1 %v8080_v1  ;;  %s9902_s14 = scalar_lea.hbm %s9953_s9, %s7093_s25 }
 0xd07   : > { %7566 = vmatmul.mubr.msk.bf16.vlgmr.msra.gmra.mrb[52].mxu1 %vm520_vm4, %v3377_v53 }
 0xd08   : > { %7577 = vmatprep.mubr.msk.bf16.mxu1 %vm8081_vm1, %v8080_v1 }
 0xd6f   : > { %v3446_v2 = vpop.permute.xlu1 %3445  ;;  %v3495_v3 = vpop.permute.xlu0 %3494 }
 0xd70   : > { %v3451_v7 = vsel %vm520_vm4, %v3446_v2, 0  ;;  %v3500_v8 = vsel %vm520_vm4, %v3495_v3, 0 }
 0xd71   : > { %7570 = vmatpush3.bf16.xpose.msra.mxu0 %v3451_v7  ;;  %7576 = vmatpush3.bf16.xpose.msra.mxu1 %v3500_v8 }
 0xd72   : > { %7581 = vmatprep.subr.bf16.mxu0 %v8080_v1  ;;  %7587 = vmatprep.subr.bf16.mxu1 %v8080_v1 }
 0xd73   : > { %v3544_v9 = vpop.permute.xlu1 %3543 }
 0xd74   : > { %v3549_v12 = vsel %vm520_vm4, %v3544_v9, 0 }
 0xd78   : > { %7572 = vmatmul.mubr.msk.bf16.vlgmr.msra.gmra.mrb[60].mxu0 %vm520_vm4, %v3378_v60  ;;  %7578 = vmatmul.mubr.msk.bf16.vlgmr.msra.gmra.mrb[56].mxu1 %vm520_vm4, %v3379_v59 }
 0xd79   : > { %7582 = vmatpush3.bf16.xpose.msra.mxu0 %v3549_v12  ;;  %7588 = vmatpush3.bf16.msra.mxu1 %v3643_v14 }
 0xd7a   : > { %7583 = vmatprep.mubr.msk.bf16.mxu0 %vm8081_vm1, %v8080_v1  ;;  %7593 = vmatprep.subr.bf16.mxu0 %v8080_v1 }
 0xd7b   : > { %7589 = vmatprep.mubr.msk.bf16.mxu1 %vm8081_vm1, %v8080_v1  ;;  %7599 = vmatprep.subr.bf16.mxu1 %v8080_v1 }
 0xd80   : > { %7584 = vmatmul.mubr.msk.bf16.vlgmr.msra.gmra.mrb[64].mxu0 %vm520_vm4, %v3380_v41 }
 0xd81   : > { %7595 = vmatprep.mubr.msk.bf16.mxu0 %vm8081_vm1, %v8080_v1 }
 0xdda   : > { %v3438_v15 = vpop.f32.mrb[52].mxu1 }
 0xddb   : > { %v7567_v16 = vpop.f32.mrb[53].mxu1  ;;  %v3591_v17 = vsel %vm332_vm2, %v3438_v15, -inf }
 0xddc   : > { %3592 = vmax.xlane.f32.xlu0 %v3591_v17  ;;  %v3441_v18 = vpop.f32.mrb[54].mxu1 }
 0xddd   : > { %v7568_v19 = vpop.f32.mrb[55].mxu1 }
 0xe4b   : > { %v3487_v21 = vpop.f32.mrb[60].mxu0  ;;  %v3536_v22 = vpop.f32.mrb[56].mxu1 }
 0xe4c   : > { %v7573_v54 = vpop.f32.mrb[61].mxu0  ;;  %v7579_v23 = vpop.f32.mrb[57].mxu1  ;;  %v3594_v55 = vsel %vm332_vm2, %v3487_v21, -inf  ;;  %v3597_v26 = vsel %vm332_vm2, %v3536_v22, -inf }
 0xe4d   : > { %3595 = vmax.xlane.f32.xlu1 %v3594_v55  ;;  %v3490_v56 = vpop.f32.mrb[62].mxu0  ;;  %3598 = vmax.xlane.f32.xlu0 %v3597_v26  ;;  %v3539_v34 = vpop.f32.mrb[58].mxu1 }
 0xe4e   : > { %v7574_v27 = vpop.f32.mrb[63].mxu0  ;;  %v7580_v28 = vpop.f32.mrb[59].mxu1  ;;  %v7840_v34 = vld [vmem:[%s9949_s5 + $0x20] sm:$0xff]  }
 0xe53   : > { %v3585_v5 = vpop.f32.mrb[64].mxu0 }
 0xe54   : > { %v7585_v29 = vpop.f32.mrb[65].mxu0  ;;  %v3600_v30 = vsel %vm332_vm2, %v3585_v5, -inf }
 0xe55   : > { %v3588_v6 = vpop.f32.mrb[66].mxu0  ;;  %3601 = vmax.xlane.f32.xlu0 %v3600_v30  ;;  %v7841_v30 = vld [vmem:[%s9949_s5 + $0x28] sm:$0xff]  }
 0xe56   : > { %v7586_v31 = vpop.f32.mrb[67].mxu0  ;;  %v7842_v6 = vld [vmem:[%s9949_s5 + $0x30] sm:$0xff]  }
 0xe57   : > { %v7843_v31 = vld [vmem:[%s9949_s5 + $0x38] sm:$0xff]  }
 0xe5e   : > { %3382 = vrot.lane.b32.xlu1 %v9107_v4, %s8084_s27  ;;  %s6225_s27 = scalar_lea.sflag [#allocation3], %s321_s21 }
 0xe69   : > { %v3593_v32 = vpop.xlane.xlu0 %3592 }
 0xe6a   : > { %v3603_v33 = vsub.f32 %v3438_v15, %v3593_v32 }
 0xe6c   : > { %v3607_v36 = vmul.f32 1.442695, %v3603_v33 }
 0xe6e   : > { %7996 = vpow2.f32 %v3607_v36 }
 0xe78   : > { %v7997_v37 = vpop.eup %7996 }
 0xe79   : > { %v3615_v38 = vsel %vm332_vm2, %v7997_v37, 0.0 }
 0xe82   : > { %3616 = vadd.xlane.f32.xlu1 %v3615_v38 }
 0xeda   : > { %v3596_v39 = vpop.xlane.xlu1 %3595  ;;  %v3599_v44 = vpop.xlane.xlu0 %3598 }
 0xedb   : > { %v3604_v45 = vsub.f32 %v3487_v21, %v3596_v39  ;;  %v3605_v49 = vsub.f32 %v3536_v22, %v3599_v44 }
 0xedd   : > { %v3609_v47 = vmul.f32 1.442695, %v3604_v45  ;;  %v3611_v50 = vmul.f32 1.442695, %v3605_v49 }
 0xede   : > { %v3383_v51 = vpop.permute.xlu1 %3382 }
 0xedf   : > { %7998 = vpow2.f32 %v3609_v47  ;;  %v3392_v52 = vpack.c.bf16 %v3383_v51, %v3383_v51 }
 0xee0   : > { %8000 = vpow2.f32 %v3611_v50 }
 0xee1   : > { %v3689_v24 = vsel %vm336_vm0, %v3392_v52, 0 }
 0xee2   : > { %7594 = vmatpush3.bf16.msra.mxu0 %v3689_v24  ;;  %v3602_v53 = vpop.xlane.xlu0 %3601 }
 0xee3   : > { %v3606_v57 = vsub.f32 %v3585_v5, %v3602_v53  ;;  %7605 = vmatprep.subr.bf16.mxu0 %v8080_v1 }
 0xee5   : > { %v3613_v58 = vmul.f32 1.442695, %v3606_v57 }
 0xee7   : > { %8002 = vpow2.f32 %v3613_v58 }
 0xee9   : > { %v7999_v59 = vpop.eup %7998 }
 0xeea   : > { %v8001_v60 = vpop.eup %8000  ;;  %v3618_v61 = vsel %vm332_vm2, %v7999_v59, 0.0 }
 0xeeb   : > { %3619 = vadd.xlane.f32.xlu0 %v3618_v61  ;;  %v3621_v62 = vsel %vm332_vm2, %v8001_v60, 0.0  ;;  %v3848_v61 = vld [vmem:[%s9946_s2 + $0x83] ss:$0 sm:$0xff] }
 0xeec   : > { %3622 = vadd.xlane.f32.xlu1 %v3621_v62 }
 0xef1   : > { %v8003_v41 = vpop.eup %8002 }
 0xef2   : > { %v3624_v63 = vsel %vm332_vm2, %v8003_v41, 0.0 }
 0xef3   : > { %3625 = vadd.xlane.f32.xlu0 %v3624_v63 }
 0xefd   : > { %3388 = vrot.lane.b32.xlu1 %v9107_v4, %s9963_s23  ;;  %s9967_s23 = smov 48  }
 0xf09   : > { %3385 = vrot.lane.b32.xlu0 %v9107_v4, %s8085_s28  ;;  %s8090_s28 = smov [#allocation2]  }
 0xf0a   : > { %s8020_s16 = sshll.u32 %s8090_s28, 4  ;;  %s8021_s16 = int_to_ptr.vmem [resolvable:$false] %s8020_s16 }
 0xf0b   : > { %s8022_s17 = scalar_lea.vmem %s8021_s16, 32 }
 0xf0f   : > { %v3617_v0 = vpop.xlane.xlu1 %3616 }
 0xf10   : > { %8004 = vrcp.f32 %v3617_v0 }
 0xf1a   : > { %v8005_v2 = vpop.eup %8004 }
 0xf1b   : > { %v3631_v3 = vmul.f32 %v8005_v2, %v7997_v37 }
 0xf1d   : > { %v3635_v7 = vpack.c.bf16 %v3631_v3, %v3631_v3 }
 0xf1f   : > { %7590 = vmatmul.mubr.msk.bf16.vlgmr.msra.gmra.mrb[60].mxu1 %vm332_vm2, %v3635_v7 }
 0xf20   : > { %7601 = vmatprep.mubr.msk.bf16.mxu1 %vm8081_vm1, %v8080_v1 }
 0xf78   : > { %v3620_v8 = vpop.xlane.xlu0 %3619 }
 0xf79   : > { %v3623_v35 = vpop.xlane.xlu1 %3622  ;;  %8006 = vrcp.f32 %v3620_v8 }
 0xf7a   : > { %8008 = vrcp.f32 %v3623_v35 }
 0xf7d   : > { %v3389_v12 = vpop.permute.xlu1 %3388 }
 0xf7e   : > { %v3394_v16 = vpack.c.bf16 %v3389_v12, %v3389_v12 }
 0xf80   : > { %v3626_v9 = vpop.xlane.xlu0 %3625  ;;  %v3781_v54 = vsel %vm336_vm0, %v3394_v16, 0 }
 0xf81   : > { %8010 = vrcp.f32 %v3626_v9 }
 0xf83   : > { %v8007_v14 = vpop.eup %8006 }
 0xf84   : > { %v8009_v15 = vpop.eup %8008  ;;  %v3632_v4 = vmul.f32 %v8007_v14, %v7999_v59  ;;  %v3386_v17 = vpop.permute.xlu0 %3385 }
 0xf85   : > { %v3633_v18 = vmul.f32 %v8009_v15, %v8001_v60  ;;  %v3393_v19 = vpack.c.bf16 %v3386_v17, %v3386_v17  ;;  %v6564_v15 = vld [vmem:[%s9950_s6 + $0x200] sm:$0xff]  ;;  %v6573_v17 = vld [vmem:[%s9950_s6 + $0x248] sm:$0xff] }
 0xf86   : > { %v3636_v21 = vpack.c.bf16 %v3632_v4, %v3632_v4  ;;  %v6565_v4 = vld [vmem:[%s9950_s6 + $0x208] sm:$0xff] }
 0xf87   : > { %v3735_v22 = vsel %vm336_vm0, %v3393_v19, 0  ;;  %v3637_v23 = vpack.c.bf16 %v3633_v18, %v3633_v18  ;;  %v6634_v19 = vcombine.low %v6565_v4, %v6573_v17 }
 0xf88   : > { %7596 = vmatmul.mubr.msk.bf16.vlgmr.msra.gmra.mrb[68].mxu0 %vm332_vm2, %v3636_v21  ;;  %7600 = vmatpush3.bf16.msra.mxu1 %v3735_v22  ;;  %v6635_v21 = vcombine.high %v6565_v4, %v6573_v17  ;;  %v6580_v22 = vld [vmem:[%s9950_s6 + $0x280] sm:$0xff]  ;;  %v6598_v4 = vld [vmem:[%s9950_s6 + $0x310] sm:$0xff]  ;;  %v6599_v17 = vld [vmem:[%s9950_s6 + $0x318] sm:$0xff] }
 0xf89   : > { %7606 = vmatpush3.bf16.msra.mxu0 %v3781_v54  ;;  %7607 = vmatprep.mubr.msk.bf16.mxu0 %vm8081_vm1, %v8080_v1  ;;  %v6588_v54 = vld [vmem:[%s9950_s6 + $0x2c0] sm:$0xff] }
 0xf8a   : > { %7611 = vmatprep.subr.bf16.mxu1 %v8080_v1 }
 0xf8b   : > { %v8011_v55 = vpop.eup %8010  ;;  %7602 = vmatmul.mubr.msk.bf16.vlgmr.msra.gmra.mrb[64].mxu1 %vm332_vm2, %v3637_v23  ;;  %v6581_v23 = vld [vmem:[%s9950_s6 + $0x288] sm:$0xff] }
 0xf8c   : > { %v3634_v26 = vmul.f32 %v8011_v55, %v8003_v41  ;;  %7619 = vmatprep.mubr.msk.bf16.mxu1 %vm8081_vm1, %v8080_v1  ;;  %7612 = vmatpush3.bf16.msra.mxu1 %v7840_v34  ;;  %v6649_v55 = vcombine.high %v6580_v22, %v6588_v54 }
 0xf8d   : > { %7613 = vmatprep.subr.bf16.mxu1 %v8080_v1 }
 0xf8e   : > { %v3638_v56 = vpack.c.bf16 %v3634_v26, %v3634_v26  ;;  %v6589_v26 = vld [vmem:[%s9950_s6 + $0x2c8] sm:$0xff] }
 0xf8f   : > { %v6650_v34 = vcombine.low %v6581_v23, %v6589_v26 }
 0xf90   : > { %7608 = vmatmul.mubr.msk.bf16.vlgmr.msra.gmra.mrb[72].mxu0 %vm332_vm2, %v3638_v56  ;;  %7614 = vmatpush3.bf16.msra.mxu1 %v7841_v30  ;;  %v6648_v56 = vcombine.low %v6580_v22, %v6588_v54 }
 0xf91   : > { %4445 = vmatprep.mubr.bf16.mxu0 %v8082_v13  ;;  %7615 = vmatprep.subr.bf16.mxu1 %v8080_v1 }
 0xf94   : > { %7616 = vmatpush3.bf16.msra.mxu1 %v7842_v6  ;;  %v6605_v6 = vld [vmem:[%s9950_s6 + $0x348] sm:$0xff] }
 0xf95   : > { %7617 = vmatprep.subr.bf16.mxu1 %v8080_v1 }
 0xf98   : > { %7618 = vmatpush3.bf16.msra.mxu1 %v7843_v31 }
 0xf99   : > { %4454 = vmatprep.subr.bf16.mxu1 %v6635_v21 }
 0xff2   : > { %v3679_v27 = vpop.f32.mrb[60].mxu1 }
 0xff3   : > { %v7591_v28 = vpop.f32.mrb[61].mxu1 }
 0xff4   : > { %v3682_v5 = vpop.f32.mrb[62].mxu1  ;;  %v6596_v28 = vld [vmem:[%s9950_s6 + $0x300] sm:$0xff] }
 0xff5   : > { %v7592_v29 = vpop.f32.mrb[63].mxu1  ;;  %v6604_v5 = vld [vmem:[%s9950_s6 + $0x340] sm:$0xff] }
 0xff6   : > { %v6597_v29 = vld [vmem:[%s9950_s6 + $0x308] sm:$0xff]  ;;  %v6665_v30 = vcombine.high %v6596_v28, %v6604_v5  ;;  %v6664_v31 = vcombine.low %v6596_v28, %v6604_v5 }
0x105b   : > { %v3725_v32 = vpop.f32.mrb[68].mxu0 }
0x105c   : > { %3824 = vrot.lane.b32.xlu1 %v3725_v32, %s9965_s24  ;;  %v7597_v33 = vpop.f32.mrb[69].mxu0  ;;  %v6666_v32 = vcombine.low %v6597_v29, %v6605_v6  ;;  %s6237_s24 = sshll.u32 %s322_s29, 4  ;;  %s9904_s24 = int_to_ptr.vmem [resolvable:$true] %s6237_s24 }
0x105d   : > { %v3728_v36 = vpop.f32.mrb[70].mxu0  ;;  %v6667_v33 = vcombine.high %v6597_v29, %v6605_v6  ;;  %v6568_v29 = vld [vmem:[%s9950_s6 + $0x220] sm:$0xff]  ;;  %v6569_v6 = vld [vmem:[%s9950_s6 + $0x228] sm:$0xff]  ;;  %s8016_s13 = scalar_lea.vmem %s9904_s24, 16  ;;  %p8023_p0 = scmp.lt.s32.totalorder %s9904_s24, %s8021_s16 }
0x105e   : > { %v7598_v37 = vpop.f32.mrb[71].mxu0  ;;  %v3771_v38 = vpop.f32.mrb[64].mxu1  ;;  %v6612_v36 = vld [vmem:[%s9950_s6 + $0x380] sm:$0xff]  ;;  %p8017_p11 = scmp.ne.s32.totalorder %s9904_s24, %s8016_s13  ;;  %p8024_p1 = scmp.lt.s32.totalorder %s8022_s17, %s8016_s13 }
0x105f   : > { %3828 = vrot.lane.b32.xlu0 %v3771_v38, %s9966_s26  ;;  %v7603_v39 = vpop.f32.mrb[65].mxu1  ;;  %v6620_v37 = vld [vmem:[%s9950_s6 + $0x3c0] sm:$0xff]  ;;  %v6613_v38 = vld [vmem:[%s9950_s6 + $0x388] sm:$0xff] }
0x1060   : > { %v3774_v44 = vpop.f32.mrb[66].mxu1  ;;  %v6681_v39 = vcombine.high %v6612_v36, %v6620_v37  ;;  %p8018_p12 = pnand %p8017_p11, %p8179_p5  ;;  %p8025_p2 = por %p8024_p1, %p8023_p0 }
0x1061   : > { %v7604_v45 = vpop.f32.mrb[67].mxu1  ;;  %v6621_v44 = vld [vmem:[%s9950_s6 + $0x3c8] sm:$0xff] }
0x1062   : > { %v6680_v45 = vcombine.low %v6612_v36, %v6620_v37  ;;  %p8019_p13 = pneg %p8018_p12 }
0x1063   : > { %v3817_v49 = vpop.f32.mrb[72].mxu0 }
0x1064   : > { %3832 = vrot.lane.b32.xlu1 %v3817_v49, %s9967_s23  ;;  %v7609_v47 = vpop.f32.mrb[73].mxu0  ;;  %v6682_v49 = vcombine.low %v6613_v38, %v6621_v44  ;;  %p8026_p3 = pnand %p8025_p2, %p8019_p13 }
0x1065   : > { %v3820_v50 = vpop.f32.mrb[74].mxu0  ;;  %v6683_v47 = vcombine.high %v6613_v38, %v6621_v44  ;;  %v6584_v38 = vld [vmem:[%s9950_s6 + $0x2a0] sm:$0xff]  ;;  %v6585_v44 = vld [vmem:[%s9950_s6 + $0x2a8] sm:$0xff] }
0x1066   : > { %v7610_v51 = vpop.f32.mrb[75].mxu0  ;;  %v6566_v50 = vld [vmem:[%s9950_s6 + $0x210] sm:$0xff] }
0x1067   : > { %v6574_v51 = vld [vmem:[%s9950_s6 + $0x250] sm:$0xff] }
0x10ce   : > { %v3825_v52 = vpop.permute.xlu1 %3824 }
0x10cf   : > { %v3835_v53 = vsel %vm520_vm4, %v3679_v27, %v3825_v52  ;;  %v6651_v27 = vcombine.high %v6581_v23, %v6589_v26  ;;  %v6567_v52 = vld [vmem:[%s9950_s6 + $0x218] sm:$0xff]  ;;  %v6614_v23 = vld [vmem:[%s9950_s6 + $0x390] sm:$0xff] }
0x10d0   : > { %v6615_v26 = vld [vmem:[%s9950_s6 + $0x398] sm:$0xff] }
0x10d1   : > { %v3829_v24 = vpop.permute.xlu0 %3828 }
0x10d2   : > { %v3836_v57 = vsel %vm959_vm5, %v3835_v53, %v3829_v24  ;;  %v6636_v24 = vcombine.low %v6566_v50, %v6574_v51  ;;  %v6637_v53 = vcombine.high %v6566_v50, %v6574_v51 }
0x10d6   : > { %v3833_v58 = vpop.permute.xlu1 %3832 }
0x10d7   : > { %v3837_v59 = vsel %vm961_vm6, %v3836_v57, %v3833_v58  ;;  %v6575_v57 = vld [vmem:[%s9950_s6 + $0x258] sm:$0xff] }
0x10d8   : > { %v3838_v60 = vpack.c.bf16 %v3837_v59, %v3837_v59  ;;  %v6638_v58 = vcombine.low %v6567_v52, %v6575_v57  ;;  %v6639_v59 = vcombine.high %v6567_v52, %v6575_v57  ;;  %v6600_v52 = vld [vmem:[%s9950_s6 + $0x320] sm:$0xff]  ;;  %v6609_v57 = vld [vmem:[%s9950_s6 + $0x368] sm:$0xff] }
0x10da   : > { %7620 = vmatmul.mubr.msk.bf16.vlgmr.msra.gmra.mrb[68].mxu1 %vm444_vm3, %v3838_v60 }
0x10db   : > { %4486 = vmatprep.mubr.bf16.mxu1 %v8082_v13  ;;  %4455 = vmatpush1.bf16.msra.mxu1 %v6634_v19 }
0x10dc   : > { %4456 = vmatprep.subr.bf16.mxu1 %v6651_v27 }
0x10df   : > { %4457 = vmatpush1.bf16.msra.mxu1 %v6650_v34 }
0x10e0   : > { %4458 = vmatprep.subr.bf16.mxu1 %v6667_v33 }
0x10e3   : > { %4459 = vmatpush1.bf16.msra.mxu1 %v6666_v32 }
0x10e4   : > { %4460 = vmatprep.subr.bf16.mxu1 %v6683_v47 }
0x10e7   : > { %4461 = vmatpush1.bf16.msra.mxu1 %v6682_v49 }
0x10e8   : > { %4536 = vmatprep.subr.bf16.mxu1 %v6639_v59 }
0x11ad   : > { %v3910_v62 = vpop.f32.mrb[68].mxu1 }
0x11ae   : > { %v3911_v41 = vadd.f32 %v3910_v62, %v3848_v61  ;;  %v7621_v63 = vpop.f32.mrb[69].mxu1 }
0x11af   : > { %v3913_v0 = vpop.f32.mrb[70].mxu1  ;;  %v3917_v63 = vld [vmem:[%s9946_s2 + $0x84] ss:$0 sm:$0xff] }
0x11b0   : > { %v7622_v2 = vpop.f32.mrb[71].mxu1  ;;  %v3916_v3 = vadd.f32 %v3911_v41, %v9083_v40  ;;  %v6572_v40 = vld [vmem:[%s9950_s6 + $0x240] sm:$0xff] }
0x11b1   : > { %v6633_v16 = vcombine.high %v6564_v15, %v6572_v40  ;;  %v6632_v18 = vcombine.low %v6564_v15, %v6572_v40  ;;  %v3918_v2 = vld [vmem:[%s9946_s2 + $0x85] ss:$0 sm:$0xff] }
0x11b2   : > { %v3919_v7 = vsel %vm444_vm3, %v3916_v3, 0.0 }
0x11b3   : > { %3920 = vadd.xlane.f32.xlu0 %v3919_v7  ;;  %4413 = vmatprep.subr.bf16.mxu0 %v6633_v16  ;;  %v6582_v7 = vld [vmem:[%s9950_s6 + $0x290] sm:$0xff] }
0x11b4   : > { %4414 = vmatpush1.bf16.msra.mxu0 %v6632_v18  ;;  %v6606_v16 = vld [vmem:[%s9950_s6 + $0x350] sm:$0xff]  ;;  %v6607_v18 = vld [vmem:[%s9950_s6 + $0x358] sm:$0xff] }
0x11b5   : > { %4415 = vmatprep.subr.bf16.mxu0 %v6649_v55  ;;  %v6669_v22 = vcombine.high %v6598_v4, %v6606_v16  ;;  %v6671_v54 = vcombine.high %v6599_v17, %v6607_v18  ;;  %v6622_v55 = vld [vmem:[%s9950_s6 + $0x3d0] sm:$0xff]  ;;  %v6668_v34 = vcombine.low %v6598_v4, %v6606_v16  ;;  %v6670_v27 = vcombine.low %v6599_v17, %v6607_v18 }
0x11b6   : > { %v6685_v28 = vcombine.high %v6614_v23, %v6622_v55  ;;  %v6684_v32 = vcombine.low %v6614_v23, %v6622_v55 }
0x11b8   : > { %4416 = vmatpush1.bf16.msra.mxu0 %v6648_v56  ;;  %v6623_v56 = vld [vmem:[%s9950_s6 + $0x3d8] sm:$0xff] }
0x11b9   : > { %4417 = vmatprep.subr.bf16.mxu0 %v6665_v30  ;;  %v6687_v5 = vcombine.high %v6615_v26, %v6623_v56  ;;  %v6576_v30 = vld [vmem:[%s9950_s6 + $0x260] sm:$0xff]  ;;  %v6686_v33 = vcombine.low %v6615_v26, %v6623_v56 }
0x11ba   : > { %v6641_v36 = vcombine.high %v6568_v29, %v6576_v30  ;;  %v6640_v49 = vcombine.low %v6568_v29, %v6576_v30 }
0x11bc   : > { %4418 = vmatpush1.bf16.msra.mxu0 %v6664_v31  ;;  %v6577_v31 = vld [vmem:[%s9950_s6 + $0x268] sm:$0xff] }
0x11bd   : > { %4419 = vmatprep.subr.bf16.mxu0 %v6681_v39  ;;  %v6643_v37 = vcombine.high %v6569_v6, %v6577_v31  ;;  %v6592_v39 = vld [vmem:[%s9950_s6 + $0x2e0] sm:$0xff]  ;;  %v6642_v47 = vcombine.low %v6569_v6, %v6577_v31 }
0x11be   : > { %v6657_v50 = vcombine.high %v6584_v38, %v6592_v39 }
0x11c0   : > { %4420 = vmatpush1.bf16.msra.mxu0 %v6680_v45  ;;  %v6593_v45 = vld [vmem:[%s9950_s6 + $0x2e8] sm:$0xff] }
0x11c1   : > { %4495 = vmatprep.subr.bf16.mxu0 %v6637_v53  ;;  %v6659_v51 = vcombine.high %v6585_v44, %v6593_v45  ;;  %v6601_v53 = vld [vmem:[%s9950_s6 + $0x328] sm:$0xff]  ;;  %v6658_v59 = vcombine.low %v6585_v44, %v6593_v45 }
0x1240   : > { %v3921_v8 = vpop.xlane.xlu0 %3920 }
0x1241   : > { %v3922_v35 = vmul.f32 0.015625, %v3921_v8  ;;  %v6590_v8 = vld [vmem:[%s9950_s6 + $0x2d0] sm:$0xff] }
0x1242   : > { %v6653_v15 = vcombine.high %v6582_v7, %v6590_v8  ;;  %v6652_v19 = vcombine.low %v6582_v7, %v6590_v8 }
0x1243   : > { %v9186_v9 = vsub.f32 %v3916_v3, %v3922_v35  ;;  %v6583_v35 = vld [vmem:[%s9950_s6 + $0x298] sm:$0xff] }
0x1245   : > { %v3924_v12 = vmul.f32 %v9186_v9, %v9186_v9 }
0x1247   : > { %v3925_v14 = vsel %vm444_vm3, %v3924_v12, 0.0 }
0x1248   : > { %3926 = vadd.xlane.f32.xlu1 %v3925_v14 }
0x12d5   : > { %v3927_v60 = vpop.xlane.xlu1 %3926 }
0x12d6   : > { %v3928_v61 = vmul.f32 0.015625, %v3927_v60 }
0x12d8   : > { %v3929_v62 = vadd.f32 1e-05, %v3928_v61  ;;  %v6675_v61 = vcombine.high %v6601_v53, %v6609_v57 }
0x12da   : > { %8012 = vrsqrt.f32 %v3929_v62  ;;  %v6616_v62 = vld [vmem:[%s9950_s6 + $0x3a0] sm:$0xff] }
0x12e4   : > { %v8013_v41 = vpop.eup %8012 }
0x12e5   : > { %v3931_v0 = vmul.f32 %v8013_v41, %v9186_v9  ;;  %v6591_v9 = vld [vmem:[%s9950_s6 + $0x2d8] sm:$0xff]  ;;  %v6624_v41 = vld [vmem:[%s9950_s6 + $0x3e0] sm:$0xff] }
0x12e6   : > { %v6655_v40 = vcombine.high %v6583_v35, %v6591_v9  ;;  %v6654_v21 = vcombine.low %v6583_v35, %v6591_v9  ;;  %v6689_v7 = vcombine.high %v6616_v62, %v6624_v41  ;;  %v6570_v35 = vld [vmem:[%s9950_s6 + $0x230] sm:$0xff]  ;;  %v6688_v4 = vcombine.low %v6616_v62, %v6624_v41  ;;  %v7856_v62 = vld [vmem:[%s9951_s7 + $0x458] sm:$0xff]  }
0x12e7   : > { %v3932_v3 = vmul.f32 %v3931_v0, %v3917_v63  ;;  %v6617_v63 = vld [vmem:[%s9950_s6 + $0x3a8] sm:$0xff]  ;;  %v6578_v9 = vld [vmem:[%s9950_s6 + $0x270] sm:$0xff]  ;;  %v7857_v41 = vld [vmem:[%s9951_s7 + $0x4d8] sm:$0xff]  }
0x12e8   : > { %v6625_v0 = vld [vmem:[%s9950_s6 + $0x3e8] sm:$0xff]  ;;  %v6645_v17 = vcombine.high %v6570_v35, %v6578_v9  ;;  %v6644_v23 = vcombine.low %v6570_v35, %v6578_v9 }
0x12e9   : > { %v9270_v12 = vadd.f32 %v3932_v3, %v3918_v2  ;;  %v6674_v3 = vcombine.low %v6601_v53, %v6609_v57  ;;  %v6691_v8 = vcombine.high %v6617_v63, %v6625_v0  ;;  %v6690_v16 = vcombine.low %v6617_v63, %v6625_v0  ;;  %v7849_v53 = vld [vmem:[%s9951_s7 + $0x4c8] sm:$0xff]   ;;  %v7858_v63 = vld [vmem:[%s9951_s7 + $0x418] sm:$0xff]  }
0x12ea   : > { %v7850_v57 = vld [vmem:[%s9951_s7 + $0x408] sm:$0xff]   ;;  %v7859_v0 = vld [vmem:[%s9951_s7 + $0x498] sm:$0xff]  }
0x12eb   : > { %v9274_v14 = vpack.c.bf16 %v9270_v12, %v9270_v12  ;;  %v7864_v35 = vld [vmem:[%s9951_s7 + $0x468] sm:$0xff]  }
0x12ec   : > { %v7865_v9 = vld [vmem:[%s9951_s7 + $0x4e8] sm:$0xff]  }
0x12ed   : > { %6696 = vmatmul.mubr.msk.bf16.vlgmr.msra.gmra.mrb[76].mxu0 %vm444_vm3, %v9274_v14  ;;  %6697 = vmatmul.mubr.msk.bf16.vlgmr.msra.gmra.mrb[72].mxu1 %vm444_vm3, %v9274_v14 }
0x12ee   : > { %4496 = vmatpush1.bf16.msra.mxu0 %v6636_v24  ;;  %4537 = vmatpush1.bf16.msra.mxu1 %v6638_v58  ;;  %v6608_v24 = vld [vmem:[%s9950_s6 + $0x360] sm:$0xff]  ;;  %v6656_v58 = vcombine.low %v6584_v38, %v6592_v39 }
0x12ef   : > { %4497 = vmatprep.subr.bf16.mxu0 %v6653_v15  ;;  %4538 = vmatprep.subr.bf16.mxu1 %v6655_v40  ;;  %v6673_v60 = vcombine.high %v6600_v52, %v6608_v24  ;;  %v6672_v2 = vcombine.low %v6600_v52, %v6608_v24  ;;  %v6571_v15 = vld [vmem:[%s9950_s6 + $0x238] sm:$0xff]  ;;  %v7847_v52 = vld [vmem:[%s9951_s7 + $0x480] sm:$0xff]   ;;  %v7848_v24 = vld [vmem:[%s9951_s7 + $0x448] sm:$0xff]  }
0x12f0   : > { %4527 = vmatprep.mubr.bf16.mxu0 %v8082_v13  ;;  %4568 = vmatprep.mubr.bf16.mxu1 %v8082_v13  ;;  %v6579_v40 = vld [vmem:[%s9950_s6 + $0x278] sm:$0xff] }
0x12f1   : > { %v6647_v18 = vcombine.high %v6571_v15, %v6579_v40  ;;  %v6646_v55 = vcombine.low %v6571_v15, %v6579_v40  ;;  %v7866_v15 = vld [vmem:[%s9951_s7 + $0x428] sm:$0xff]  }
0x12f2   : > { %4498 = vmatpush1.bf16.msra.mxu0 %v6652_v19  ;;  %4539 = vmatpush1.bf16.msra.mxu1 %v6654_v21  ;;  %v6586_v19 = vld [vmem:[%s9950_s6 + $0x2b0] sm:$0xff]  ;;  %v7867_v40 = vld [vmem:[%s9951_s7 + $0x4a8] sm:$0xff]  }
0x12f3   : > { %4499 = vmatprep.subr.bf16.mxu0 %v6669_v22  ;;  %4540 = vmatprep.subr.bf16.mxu1 %v6671_v54  ;;  %v6594_v21 = vld [vmem:[%s9950_s6 + $0x2f0] sm:$0xff]  ;;  %v6587_v22 = vld [vmem:[%s9950_s6 + $0x2b8] sm:$0xff] }
0x12f4   : > { %v6595_v54 = vld [vmem:[%s9950_s6 + $0x2f8] sm:$0xff]  ;;  %v6661_v26 = vcombine.high %v6586_v19, %v6594_v21  ;;  %v6660_v29 = vcombine.low %v6586_v19, %v6594_v21 }
0x12f5   : > { %v6663_v56 = vcombine.high %v6587_v22, %v6595_v54  ;;  %v6662_v30 = vcombine.low %v6587_v22, %v6595_v54  ;;  %v7872_v19 = vld [vmem:[%s9951_s7 + $0x478] sm:$0xff]  }
0x12f6   : > { %4500 = vmatpush1.bf16.msra.mxu0 %v6668_v34  ;;  %4541 = vmatpush1.bf16.msra.mxu1 %v6670_v27  ;;  %v6602_v34 = vld [vmem:[%s9950_s6 + $0x330] sm:$0xff]  ;;  %v7873_v21 = vld [vmem:[%s9951_s7 + $0x4f8] sm:$0xff]  }
0x12f7   : > { %4501 = vmatprep.subr.bf16.mxu0 %v6685_v28  ;;  %4542 = vmatprep.subr.bf16.mxu1 %v6687_v5  ;;  %v6610_v27 = vld [vmem:[%s9950_s6 + $0x370] sm:$0xff]  ;;  %v6603_v28 = vld [vmem:[%s9950_s6 + $0x338] sm:$0xff] }
0x12f8   : > { %v6611_v5 = vld [vmem:[%s9950_s6 + $0x378] sm:$0xff]  ;;  %v6677_v6 = vcombine.high %v6602_v34, %v6610_v27  ;;  %v6676_v38 = vcombine.low %v6602_v34, %v6610_v27 }
0x12f9   : > { %v6679_v31 = vcombine.high %v6603_v28, %v6611_v5  ;;  %v6678_v39 = vcombine.low %v6603_v28, %v6611_v5  ;;  %v7874_v22 = vld [vmem:[%s9951_s7 + $0x438] sm:$0xff]  }
0x12fa   : > { %4502 = vmatpush1.bf16.msra.mxu0 %v6684_v32  ;;  %4543 = vmatpush1.bf16.msra.mxu1 %v6686_v33  ;;  %v6618_v32 = vld [vmem:[%s9950_s6 + $0x3b0] sm:$0xff]  ;;  %v7875_v54 = vld [vmem:[%s9951_s7 + $0x4b8] sm:$0xff]  }
0x12fb   : > { %4577 = vmatprep.subr.bf16.mxu0 %v6641_v36  ;;  %4618 = vmatprep.subr.bf16.mxu1 %v6643_v37  ;;  %v6626_v33 = vld [vmem:[%s9950_s6 + $0x3f0] sm:$0xff]  ;;  %v6619_v36 = vld [vmem:[%s9950_s6 + $0x3b8] sm:$0xff] }
0x12fc   : > { %v6627_v37 = vld [vmem:[%s9950_s6 + $0x3f8] sm:$0xff]  ;;  %v6693_v44 = vcombine.high %v6618_v32, %v6626_v33 }
0x12fd   : > { %6698 = vmatmul.mubr.msk.bf16.vlgmr.msra.gmra.mrb[80].mxu0 %vm444_vm3, %v9274_v14  ;;  %6699 = vmatmul.mubr.msk.bf16.vlgmr.msra.gmra.mrb[76].mxu1 %vm444_vm3, %v9274_v14  ;;  %v6695_v45 = vcombine.high %v6619_v36, %v6627_v37 }
0x12fe   : > { %4578 = vmatpush1.bf16.msra.mxu0 %v6640_v49  ;;  %4619 = vmatpush1.bf16.msra.mxu1 %v6642_v47  ;;  %v6692_v49 = vcombine.low %v6618_v32, %v6626_v33  ;;  %v6694_v47 = vcombine.low %v6619_v36, %v6627_v37 }
0x12ff   : > { %4579 = vmatprep.subr.bf16.mxu0 %v6657_v50  ;;  %4620 = vmatprep.subr.bf16.mxu1 %v6659_v51  ;;  %v7844_v50 = vld [vmem:[%s9951_s7 + $0x440] sm:$0xff]  }
0x1300   : > { %4609 = vmatprep.mubr.bf16.mxu0 %v8082_v13  ;;  %4650 = vmatprep.mubr.bf16.mxu1 %v8082_v13  ;;  %v7846_v51 = vld [vmem:[%s9951_s7 + $0x400] sm:$0xff]  }
0x1302   : > { %4580 = vmatpush1.bf16.msra.mxu0 %v6656_v58  ;;  %4621 = vmatpush1.bf16.msra.mxu1 %v6658_v59  ;;  %v7851_v58 = vld [vmem:[%s9951_s7 + $0x488] sm:$0xff]   ;;  %v7852_v59 = vld [vmem:[%s9951_s7 + $0x450] sm:$0xff]  }
0x1303   : > { %4581 = vmatprep.subr.bf16.mxu0 %v6673_v60  ;;  %4622 = vmatprep.subr.bf16.mxu1 %v6675_v61  ;;  %v7854_v60 = vld [vmem:[%s9951_s7 + $0x410] sm:$0xff]  }
0x1304   : > { %v7855_v61 = vld [vmem:[%s9951_s7 + $0x490] sm:$0xff]  }
0x1306   : > { %4582 = vmatpush1.bf16.msra.mxu0 %v6672_v2  ;;  %4623 = vmatpush1.bf16.msra.mxu1 %v6674_v3  ;;  %v7860_v2 = vld [vmem:[%s9951_s7 + $0x460] sm:$0xff]  }
0x1307   : > { %4583 = vmatprep.subr.bf16.mxu0 %v6689_v7  ;;  %4624 = vmatprep.subr.bf16.mxu1 %v6691_v8  ;;  %v7861_v3 = vld [vmem:[%s9951_s7 + $0x4e0] sm:$0xff]  }
0x1308   : > { %v7862_v7 = vld [vmem:[%s9951_s7 + $0x420] sm:$0xff]  }
0x1309   : > { %v7863_v8 = vld [vmem:[%s9951_s7 + $0x4a0] sm:$0xff]  }
0x130a   : > { %4584 = vmatpush1.bf16.msra.mxu0 %v6688_v4  ;;  %4625 = vmatpush1.bf16.msra.mxu1 %v6690_v16  ;;  %v7868_v4 = vld [vmem:[%s9951_s7 + $0x470] sm:$0xff]  }
0x130b   : > { %4659 = vmatprep.subr.bf16.mxu0 %v6645_v17  ;;  %4700 = vmatprep.subr.bf16.mxu1 %v6647_v18  ;;  %v7869_v16 = vld [vmem:[%s9951_s7 + $0x4f0] sm:$0xff]  }
0x130c   : > { %v7870_v17 = vld [vmem:[%s9951_s7 + $0x430] sm:$0xff]  }
0x130d   : > { %6700 = vmatmul.mubr.msk.bf16.vlgmr.msra.gmra.mrb[84].mxu0 %vm444_vm3, %v9274_v14  ;;  %6701 = vmatmul.mubr.msk.bf16.vlgmr.msra.gmra.mrb[80].mxu1 %vm444_vm3, %v9274_v14  ;;  %v7871_v18 = vld [vmem:[%s9951_s7 + $0x4b0] sm:$0xff]  }
0x130e   : > { %4660 = vmatpush1.bf16.msra.mxu0 %v6644_v23  ;;  %4701 = vmatpush1.bf16.msra.mxu1 %v6646_v55  ;;  %v7876_v23 = vld [vmem:[%s9951_s7 + $0x540] sm:$0xff]  }
0x130f   : > { %4661 = vmatprep.subr.bf16.mxu0 %v6661_v26  ;;  %4702 = vmatprep.subr.bf16.mxu1 %v6663_v56  ;;  %v7877_v55 = vld [vmem:[%s9951_s7 + $0x5c0] sm:$0xff]  }
0x1310   : > { %4691 = vmatprep.mubr.bf16.mxu0 %v8082_v13  ;;  %4732 = vmatprep.mubr.bf16.mxu1 %v8082_v13  ;;  %v7845_v13 = vld [vmem:[%s9951_s7 + $0x4c0] sm:$0xff]  }
0x1311   : > { %v6628_v26 = vld [vmem:[%s9946_s2 + $0x86] ss:$8 sm:$0xf] }
0x1312   : > { %4662 = vmatpush1.bf16.msra.mxu0 %v6660_v29  ;;  %4703 = vmatpush1.bf16.msra.mxu1 %v6662_v30  ;;  %v6629_v56 = vld [vmem:[%s9946_s2 + $0x86] ss:$8 sm:$0xf0] }
0x1313   : > { %4663 = vmatprep.subr.bf16.mxu0 %v6677_v6  ;;  %4704 = vmatprep.subr.bf16.mxu1 %v6679_v31  ;;  %v9526_v34 = vor.u32 %v6629_v56, %v6628_v26  ;;  %v7893_v26 = vld [vmem:[%s9951_s7 + $0x5e0] sm:$0xff]  }
0x1315   : > { %v4013_v27 = vrot.slane %v9526_v34, %v8247_v25  ;;  %v4021_v28 = vrot.slane %v9526_v34, %v8691_v20  ;;  %v4017_v5 = vrot.slane %v9526_v34, %v8266_v42  ;;  %v4025_v29 = vrot.slane %v9526_v34, %v8694_v43 }
0x1316   : > { %4664 = vmatpush1.bf16.msra.mxu0 %v6676_v38  ;;  %4705 = vmatpush1.bf16.msra.mxu1 %v6678_v39 }
0x1317   : > { %4665 = vmatprep.subr.bf16.mxu0 %v6693_v44  ;;  %4706 = vmatprep.subr.bf16.mxu1 %v6695_v45 }
0x131a   : > { %4666 = vmatpush1.bf16.msra.mxu0 %v6692_v49  ;;  %4707 = vmatpush1.bf16.msra.mxu1 %v6694_v47 }
0x131b   : > { %7316 = vmatprep.subr.bf16.mxu0 %v7844_v50  ;;  %7338 = vmatprep.subr.bf16.mxu1 %v7845_v13 }
0x131d   : > { %6702 = vmatmul.mubr.msk.bf16.vlgmr.msra.gmra.mrb[88].mxu0 %vm444_vm3, %v9274_v14  ;;  %6703 = vmatmul.mubr.msk.bf16.vlgmr.msra.gmra.mrb[84].mxu1 %vm444_vm3, %v9274_v14  ;;  %v7853_v14 = vld [vmem:[%s9951_s7 + $0x4d0] sm:$0xff]  }
0x131e   : > { %7317 = vmatpush3.bf16.msra.mxu0 %v7846_v51  ;;  %7339 = vmatpush3.bf16.msra.mxu1 %v7847_v52 }
0x131f   : > { %7318 = vmatprep.subr.bf16.mxu0 %v7848_v24  ;;  %7340 = vmatprep.subr.bf16.mxu1 %v7849_v53  ;;  %v7878_v53 = vld [vmem:[%s9951_s7 + $0x500] sm:$0xff]  }
0x1322   : > { %7319 = vmatpush3.bf16.msra.mxu0 %v7850_v57  ;;  %7341 = vmatpush3.bf16.msra.mxu1 %v7851_v58  ;;  %v7879_v57 = vld [vmem:[%s9951_s7 + $0x580] sm:$0xff]  }
0x1323   : > { %7320 = vmatprep.subr.bf16.mxu0 %v7852_v59  ;;  %7342 = vmatprep.subr.bf16.mxu1 %v7853_v14  ;;  %v7880_v14 = vld [vmem:[%s9951_s7 + $0x548] sm:$0xff]  }
0x1326   : > { %7321 = vmatpush3.bf16.msra.mxu0 %v7854_v60  ;;  %7343 = vmatpush3.bf16.msra.mxu1 %v7855_v61  ;;  %v7881_v60 = vld [vmem:[%s9951_s7 + $0x5c8] sm:$0xff]  }
0x1327   : > { %7322 = vmatprep.subr.bf16.mxu0 %v7856_v62  ;;  %7344 = vmatprep.subr.bf16.mxu1 %v7857_v41  ;;  %v7882_v61 = vld [vmem:[%s9951_s7 + $0x508] sm:$0xff]   ;;  %v7884_v41 = vld [vmem:[%s9951_s7 + $0x550] sm:$0xff]  }
0x1328   : > { %v7883_v62 = vld [vmem:[%s9951_s7 + $0x588] sm:$0xff]  }
0x132a   : > { %7323 = vmatpush3.bf16.msra.mxu0 %v7858_v63  ;;  %7345 = vmatpush3.bf16.msra.mxu1 %v7859_v0  ;;  %v7885_v63 = vld [vmem:[%s9951_s7 + $0x5d0] sm:$0xff]   ;;  %v4033_v0 = vrot.slane %v9526_v34, %v8723_v10 }
0x132b   : > { %7324 = vmatprep.subr.bf16.mxu0 %v7860_v2  ;;  %7346 = vmatprep.subr.bf16.mxu1 %v7861_v3  ;;  %v4041_v2 = vrot.slane %v9526_v34, %v8726_v11  ;;  %v7886_v3 = vld [vmem:[%s9951_s7 + $0x510] sm:$0xff]  }
0x132e   : > { %7325 = vmatpush3.bf16.msra.mxu0 %v7862_v7  ;;  %7347 = vmatpush3.bf16.msra.mxu1 %v7863_v8  ;;  %v7887_v7 = vld [vmem:[%s9951_s7 + $0x590] sm:$0xff]   ;;  %v7888_v8 = vld [vmem:[%s9951_s7 + $0x558] sm:$0xff]  }
0x132f   : > { %7326 = vmatprep.subr.bf16.mxu0 %v7864_v35  ;;  %7348 = vmatprep.subr.bf16.mxu1 %v7865_v9  ;;  %v7889_v35 = vld [vmem:[%s9951_s7 + $0x5d8] sm:$0xff]  }
0x1332   : > { %7327 = vmatpush3.bf16.msra.mxu0 %v7866_v15  ;;  %7349 = vmatpush3.bf16.msra.mxu1 %v7867_v40 }
0x1333   : > { %7328 = vmatprep.subr.bf16.mxu0 %v7868_v4  ;;  %7350 = vmatprep.subr.bf16.mxu1 %v7869_v16 }
0x1336   : > { %7329 = vmatpush3.bf16.msra.mxu0 %v7870_v17  ;;  %7351 = vmatpush3.bf16.msra.mxu1 %v7871_v18 }
0x1337   : > { %7330 = vmatprep.subr.bf16.mxu0 %v7872_v19  ;;  %7352 = vmatprep.subr.bf16.mxu1 %v7873_v21  ;;  %v7890_v21 = vld [vmem:[%s9951_s7 + $0x518] sm:$0xff]  }
0x133a   : > { %7331 = vmatpush3.bf16.msra.mxu0 %v7874_v22  ;;  %7353 = vmatpush3.bf16.msra.mxu1 %v7875_v54  ;;  %v7891_v22 = vld [vmem:[%s9951_s7 + $0x598] sm:$0xff]  }
0x133b   : > { %7360 = vmatprep.subr.bf16.mxu0 %v7876_v23  ;;  %7382 = vmatprep.subr.bf16.mxu1 %v7877_v55  ;;  %v7892_v55 = vld [vmem:[%s9951_s7 + $0x560] sm:$0xff]  }
0x13c0   : > { %v4447_v30 = vpop.f32.mrb[76].mxu0  ;;  %v4488_v6 = vpop.f32.mrb[72].mxu1 }
0x13c1   : > { %v4448_v31 = vadd.f32 %v4447_v30, %v4013_v27  ;;  %v4489_v32 = vadd.f32 %v4488_v6, %v4021_v28  ;;  %v4449_v33 = vpop.f32.mrb[77].mxu0  ;;  %v4490_v36 = vpop.f32.mrb[73].mxu1  ;;  %v7894_v28 = vld [vmem:[%s9951_s7 + $0x520] sm:$0xff]   ;;  %v7896_v6 = vld [vmem:[%s9951_s7 + $0x568] sm:$0xff]  }
0x13c2   : > { %v4450_v37 = vadd.f32 %v4449_v33, %v4017_v5  ;;  %v4491_v38 = vadd.f32 %v4490_v36, %v4025_v29  ;;  %v4451_v39 = vpop.f32.mrb[78].mxu0  ;;  %v4492_v44 = vpop.f32.mrb[74].mxu1  ;;  %v7895_v30 = vld [vmem:[%s9951_s7 + $0x5a0] sm:$0xff]   ;;  %v7898_v36 = vld [vmem:[%s9951_s7 + $0x528] sm:$0xff]  }
0x13c3   : > { %v4741_v45 = vmax.f32 %v4448_v31, 0.0  ;;  %v4743_v49 = vmax.f32 %v4489_v32, 0.0  ;;  %v4452_v47 = vpop.f32.mrb[79].mxu0  ;;  %v4493_v50 = vpop.f32.mrb[75].mxu1  ;;  %v7897_v31 = vld [vmem:[%s9951_s7 + $0x5e8] sm:$0xff]   ;;  %v4029_v39 = vrot.slane %v9526_v34, %v8766_v46  ;;  %v4037_v44 = vrot.slane %v9526_v34, %v8769_v48  ;;  %v7902_v34 = vld [vmem:[%s9951_s7 + $0x530] sm:$0xff]  }
0x13c4   : > { %v4742_v13 = vmax.f32 %v4450_v37, 0.0  ;;  %v4744_v51 = vmax.f32 %v4491_v38, 0.0  ;;  %v6630_v32 = vld [vmem:[%s9946_s2 + $0xc6] ss:$8 sm:$0xf] }
0x13c5   : > { %v4757_v58 = vpack.c.bf16 %v4741_v45, %v4741_v45  ;;  %v4759_v59 = vpack.c.bf16 %v4743_v49, %v4743_v49  ;;  %v6631_v33 = vld [vmem:[%s9946_s2 + $0xc6] ss:$8 sm:$0xf0] }
0x13c6   : > { %v4758_v52 = vpack.c.bf16 %v4742_v13, %v4742_v13  ;;  %v4760_v24 = vpack.c.bf16 %v4744_v51, %v4744_v51  ;;  %v7899_v37 = vld [vmem:[%s9951_s7 + $0x5a8] sm:$0xff]   ;;  %v9612_v38 = vor.u32 %v6631_v33, %v6630_v32  ;;  %v7900_v45 = vld [vmem:[%s9951_s7 + $0x570] sm:$0xff]  }
0x13c7   : > { %v7901_v49 = vld [vmem:[%s9951_s7 + $0x5f0] sm:$0xff]  }
0x13c8   : > { %5831 = vmatprep.mubr.bf16.mxu0 %v4758_v52  ;;  %5871 = vmatprep.mubr.bf16.mxu1 %v4760_v24  ;;  %v4049_v47 = vrot.slane %v9612_v38, %v8266_v42  ;;  %v4057_v50 = vrot.slane %v9612_v38, %v8694_v43  ;;  %v7903_v13 = vld [vmem:[%s9951_s7 + $0x5b0] sm:$0xff]   ;;  %v7904_v24 = vld [vmem:[%s9951_s7 + $0x578] sm:$0xff]  }
0x13c9   : > { %5832 = vmatmul.mubr.bf16.vlgmr.msra.gmra.mrb[92].mxu0 %v4757_v58  ;;  %5872 = vmatmul.mubr.bf16.vlgmr.msra.gmra.mrb[88].mxu1 %v4759_v59  ;;  %v7905_v42 = vld [vmem:[%s9951_s7 + $0x5f8] sm:$0xff]  }
0x13ca   : > { %7361 = vmatpush3.bf16.msra.mxu0 %v7878_v53  ;;  %7383 = vmatpush3.bf16.msra.mxu1 %v7879_v57 }
0x13cb   : > { %7362 = vmatprep.subr.bf16.mxu0 %v7880_v14  ;;  %7384 = vmatprep.subr.bf16.mxu1 %v7881_v60 }
0x13ce   : > { %7363 = vmatpush3.bf16.msra.mxu0 %v7882_v61  ;;  %7385 = vmatpush3.bf16.msra.mxu1 %v7883_v62  ;;  %v7906_v62 = vld [vmem:[%s9951_s7 + $0x538] sm:$0xff]  }
0x13cf   : > { %7364 = vmatprep.subr.bf16.mxu0 %v7884_v41  ;;  %7386 = vmatprep.subr.bf16.mxu1 %v7885_v63  ;;  %v7907_v41 = vld [vmem:[%s9951_s7 + $0x5b8] sm:$0xff]  }
0x13d0   : > { %v4529_v9 = vpop.f32.mrb[80].mxu0  ;;  %v4570_v15 = vpop.f32.mrb[76].mxu1 }
0x13d1   : > { %v4531_v40 = vpop.f32.mrb[81].mxu0  ;;  %v4572_v4 = vpop.f32.mrb[77].mxu1  ;;  %v4530_v51 = vadd.f32 %v4529_v9, %v4029_v39  ;;  %v4571_v52 = vadd.f32 %v4570_v15, %v4037_v44  ;;  %v7910_v15 = vld [vmem:[%s9951_s7 + $0x600] sm:$0xff]  }
0x13d2   : > { %v4532_v16 = vadd.f32 %v4531_v40, %v4033_v0  ;;  %v4573_v17 = vadd.f32 %v4572_v4, %v4041_v2  ;;  %v4533_v18 = vpop.f32.mrb[82].mxu0  ;;  %v4574_v19 = vpop.f32.mrb[78].mxu1  ;;  %7365 = vmatpush3.bf16.msra.mxu0 %v7886_v3  ;;  %7387 = vmatpush3.bf16.msra.mxu1 %v7887_v7  ;;  %v7908_v7 = vld [vmem:[%s9951_s7 + $0x640] sm:$0xff]  }
0x13d3   : > { %v4534_v54 = vpop.f32.mrb[83].mxu0  ;;  %v4575_v23 = vpop.f32.mrb[79].mxu1  ;;  %7366 = vmatprep.subr.bf16.mxu0 %v7888_v8  ;;  %7388 = vmatprep.subr.bf16.mxu1 %v7889_v35  ;;  %v4745_v63 = vmax.f32 %v4530_v51, 0.0  ;;  %v4747_v0 = vmax.f32 %v4571_v52, 0.0  ;;  %v7909_v8 = vld [vmem:[%s9951_s7 + $0x6c0] sm:$0xff]   ;;  %v7912_v18 = vld [vmem:[%s9951_s7 + $0x648] sm:$0xff]  }
0x13d4   : > { %v4746_v56 = vmax.f32 %v4532_v16, 0.0  ;;  %v4748_v27 = vmax.f32 %v4573_v17, 0.0  ;;  %v7911_v16 = vld [vmem:[%s9951_s7 + $0x680] sm:$0xff]   ;;  %v7913_v19 = vld [vmem:[%s9951_s7 + $0x6c8] sm:$0xff]   ;;  %v7916_v23 = vld [vmem:[%s9951_s7 + $0x650] sm:$0xff]  }
0x13d5   : > { %v4761_v40 = vpack.c.bf16 %v4745_v63, %v4745_v63  ;;  %v4763_v4 = vpack.c.bf16 %v4747_v0, %v4747_v0  ;;  %v7915_v54 = vld [vmem:[%s9951_s7 + $0x688] sm:$0xff]   ;;  %v7939_v0 = vld [vmem:[%s9951_s7 + $0x6b8] sm:$0xff]  }
0x13d6   : > { %v4762_v5 = vpack.c.bf16 %v4746_v56, %v4746_v56  ;;  %v4764_v29 = vpack.c.bf16 %v4748_v27, %v4748_v27  ;;  %7367 = vmatpush3.bf16.msra.mxu0 %v7890_v21  ;;  %7389 = vmatpush3.bf16.msra.mxu1 %v7891_v22  ;;  %v7914_v22 = vld [vmem:[%s9951_s7 + $0x608] sm:$0xff]   ;;  %v4069_v56 = vrot.slane %v9612_v38, %v8769_v48  ;;  %v7918_v27 = vld [vmem:[%s9951_s7 + $0x610] sm:$0xff]   ;;  %v7921_v48 = vld [vmem:[%s9951_s7 + $0x6d8] sm:$0xff]  }
0x13d7   : > { %7368 = vmatprep.subr.bf16.mxu0 %v7892_v55  ;;  %7390 = vmatprep.subr.bf16.mxu1 %v7893_v26  ;;  %v7917_v55 = vld [vmem:[%s9951_s7 + $0x6d0] sm:$0xff]   ;;  %v4061_v26 = vrot.slane %v9612_v38, %v8766_v46  ;;  %v7929_v51 = vld [vmem:[%s9951_s7 + $0x6e8] sm:$0xff]  }
0x13d8   : > { %5911 = vmatprep.mubr.bf16.mxu0 %v4762_v5  ;;  %5951 = vmatprep.mubr.bf16.mxu1 %v4764_v29  ;;  %v7920_v5 = vld [vmem:[%s9951_s7 + $0x658] sm:$0xff]   ;;  %v7930_v52 = vld [vmem:[%s9951_s7 + $0x628] sm:$0xff]  }
0x13da   : > { %7369 = vmatpush3.bf16.msra.mxu0 %v7894_v28  ;;  %7391 = vmatpush3.bf16.msra.mxu1 %v7895_v30  ;;  %v7919_v28 = vld [vmem:[%s9951_s7 + $0x690] sm:$0xff]  }
0x13db   : > { %7370 = vmatprep.subr.bf16.mxu0 %v7896_v6  ;;  %7392 = vmatprep.subr.bf16.mxu1 %v7897_v31 }
0x13de   : > { %7371 = vmatpush3.bf16.msra.mxu0 %v7898_v36  ;;  %7393 = vmatpush3.bf16.msra.mxu1 %v7899_v37  ;;  %v7922_v37 = vld [vmem:[%s9951_s7 + $0x618] sm:$0xff]  }
0x13df   : > { %7372 = vmatprep.subr.bf16.mxu0 %v7900_v45  ;;  %7394 = vmatprep.subr.bf16.mxu1 %v7901_v49  ;;  %v7923_v45 = vld [vmem:[%s9951_s7 + $0x698] sm:$0xff]   ;;  %v7924_v49 = vld [vmem:[%s9951_s7 + $0x660] sm:$0xff]  }
0x13e0   : > { %v9640_v43 = vpop.f32.mrb[84].mxu0  ;;  %v9642_v53 = vpop.f32.mrb[80].mxu1 }
0x13e1   : > { %v4613_v57 = vpop.f32.mrb[85].mxu0  ;;  %v4654_v58 = vpop.f32.mrb[81].mxu1 }
0x13e2   : > { %v4614_v59 = vadd.f32 %v4613_v57, %v4049_v47  ;;  %v4655_v14 = vadd.f32 %v4654_v58, %v4057_v50  ;;  %v4615_v60 = vpop.f32.mrb[86].mxu0  ;;  %v4656_v61 = vpop.f32.mrb[82].mxu1  ;;  %7373 = vmatpush3.bf16.msra.mxu0 %v7902_v34  ;;  %7395 = vmatpush3.bf16.msra.mxu1 %v7903_v13  ;;  %v7925_v47 = vld [vmem:[%s9951_s7 + $0x6e0] sm:$0xff]   ;;  %v7928_v13 = vld [vmem:[%s9951_s7 + $0x668] sm:$0xff]   ;;  %v7932_v57 = vld [vmem:[%s9951_s7 + $0x670] sm:$0xff]   ;;  %v4053_v58 = vrot.slane %v9612_v38, %v8691_v20 }
0x13e3   : > { %v4616_v2 = vpop.f32.mrb[87].mxu0  ;;  %v4657_v3 = vpop.f32.mrb[83].mxu1  ;;  %7374 = vmatprep.subr.bf16.mxu0 %v7904_v24  ;;  %7396 = vmatprep.subr.bf16.mxu1 %v7905_v42  ;;  %v7926_v50 = vld [vmem:[%s9951_s7 + $0x620] sm:$0xff]   ;;  %v4045_v24 = vrot.slane %v9612_v38, %v8247_v25  ;;  %v7931_v42 = vld [vmem:[%s9951_s7 + $0x6a8] sm:$0xff]   ;;  %v4065_v25 = vrot.slane %v9612_v38, %v8723_v10  ;;  %v7934_v60 = vld [vmem:[%s9951_s7 + $0x630] sm:$0xff]  }
0x13e4   : > { %v4750_v35 = vmax.f32 %v4614_v59, 0.0  ;;  %v4752_v9 = vmax.f32 %v4655_v14, 0.0  ;;  %v7927_v34 = vld [vmem:[%s9951_s7 + $0x6a0] sm:$0xff]   ;;  %v7933_v59 = vld [vmem:[%s9951_s7 + $0x6f0] sm:$0xff]   ;;  %v4073_v14 = vrot.slane %v9612_v38, %v8726_v11  ;;  %v7936_v10 = vld [vmem:[%s9951_s7 + $0x678] sm:$0xff]  }
0x13e5   : > { %v4612_v61 = vadd.f32 %v9640_v43, %v4045_v24  ;;  %v7935_v20 = vld [vmem:[%s9951_s7 + $0x6b0] sm:$0xff]   ;;  %v7937_v11 = vld [vmem:[%s9951_s7 + $0x6f8] sm:$0xff]   ;;  %v7941_v3 = vld [vmem:[%s9951_s7 + $0x7c0] sm:$0xff]  }
0x13e6   : > { %7375 = vmatpush3.bf16.msra.mxu0 %v7906_v62  ;;  %7397 = vmatpush3.bf16.msra.mxu1 %v7907_v41  ;;  %v4766_v17 = vpack.c.bf16 %v4750_v35, %v4750_v35  ;;  %v4768_v21 = vpack.c.bf16 %v4752_v9, %v4752_v9  ;;  %v4653_v62 = vadd.f32 %v9642_v53, %v4053_v58  ;;  %v7938_v43 = vld [vmem:[%s9951_s7 + $0x638] sm:$0xff]   ;;  %v7940_v53 = vld [vmem:[%s9951_s7 + $0x740] sm:$0xff]  }
0x13e7   : > { %7404 = vmatprep.subr.bf16.mxu0 %v7908_v7  ;;  %7426 = vmatprep.subr.bf16.mxu1 %v7909_v8  ;;  %v4749_v63 = vmax.f32 %v4612_v61, 0.0  ;;  %v7942_v35 = vld [vmem:[%s9951_s7 + $0x700] sm:$0xff]  }
0x13e8   : > { %v4751_v2 = vmax.f32 %v4653_v62, 0.0 }
0x13e9   : > { %5912 = vmatmul.mubr.bf16.vlgmr.msra.gmra.mrb[96].mxu0 %v4761_v40  ;;  %5952 = vmatmul.mubr.bf16.vlgmr.msra.gmra.mrb[92].mxu1 %v4763_v4  ;;  %v4765_v9 = vpack.c.bf16 %v4749_v63, %v4749_v63  ;;  %v7944_v4 = vld [vmem:[%s9951_s7 + $0x748] sm:$0xff]  }
0x13ea   : > { %7405 = vmatpush3.bf16.msra.mxu0 %v7910_v15  ;;  %5991 = vmatprep.mubr.bf16.mxu0 %v4766_v17  ;;  %v7943_v15 = vld [vmem:[%s9951_s7 + $0x780] sm:$0xff]   ;;  %v4767_v40 = vpack.c.bf16 %v4751_v2, %v4751_v2  ;;  %v7945_v17 = vld [vmem:[%s9951_s7 + $0x7c8] sm:$0xff]  }
0x13eb   : > { %7427 = vmatpush3.bf16.msra.mxu1 %v7911_v16  ;;  %6031 = vmatprep.mubr.bf16.mxu1 %v4768_v21  ;;  %v7947_v21 = vld [vmem:[%s9951_s7 + $0x788] sm:$0xff]  }
0x13ec   : > { %7406 = vmatprep.subr.bf16.mxu0 %v7912_v18  ;;  %7428 = vmatprep.subr.bf16.mxu1 %v7913_v19  ;;  %v7946_v19 = vld [vmem:[%s9951_s7 + $0x708] sm:$0xff]  }
0x13ee   : > { %7407 = vmatpush3.bf16.msra.mxu0 %v7914_v22  ;;  %v7948_v22 = vld [vmem:[%s9951_s7 + $0x750] sm:$0xff]  }
0x13ef   : > { %7429 = vmatpush3.bf16.msra.mxu1 %v7915_v54  ;;  %7408 = vmatprep.subr.bf16.mxu0 %v7916_v23  ;;  %v7949_v54 = vld [vmem:[%s9951_s7 + $0x7d0] sm:$0xff]  }
0x13f0   : > { %v4693_v29 = vpop.f32.mrb[88].mxu0  ;;  %v4734_v46 = vpop.f32.mrb[84].mxu1  ;;  %7430 = vmatprep.subr.bf16.mxu1 %v7917_v55  ;;  %v7950_v23 = vld [vmem:[%s9951_s7 + $0x710] sm:$0xff]  }
0x13f1   : > { %v9696_v30 = vadd.f32 %v4693_v29, %v4061_v26  ;;  %v9698_v6 = vadd.f32 %v4734_v46, %v4069_v56  ;;  %v4695_v31 = vpop.f32.mrb[89].mxu0  ;;  %v4736_v32 = vpop.f32.mrb[85].mxu1  ;;  %v7951_v55 = vld [vmem:[%s9951_s7 + $0x790] sm:$0xff]   ;;  %v7952_v26 = vld [vmem:[%s9951_s7 + $0x758] sm:$0xff]   ;;  %v7957_v29 = vld [vmem:[%s9951_s7 + $0x7e0] sm:$0xff]  }
0x13f2   : > { %v4697_v33 = vpop.f32.mrb[90].mxu0  ;;  %v4738_v36 = vpop.f32.mrb[86].mxu1  ;;  %7409 = vmatpush3.bf16.msra.mxu0 %v7918_v27  ;;  %v4696_v38 = vadd.f32 %v4695_v31, %v4065_v25  ;;  %v4737_v41 = vadd.f32 %v4736_v32, %v4073_v14  ;;  %v7953_v56 = vld [vmem:[%s9951_s7 + $0x7d8] sm:$0xff]   ;;  %v7958_v46 = vld [vmem:[%s9951_s7 + $0x720] sm:$0xff]   ;;  %v7960_v31 = vld [vmem:[%s9951_s7 + $0x768] sm:$0xff]  }
0x13f3   : > { %7431 = vmatpush3.bf16.msra.mxu1 %v7919_v28  ;;  %v4698_v39 = vpop.f32.mrb[91].mxu0  ;;  %v4739_v44 = vpop.f32.mrb[87].mxu1  ;;  %7410 = vmatprep.subr.bf16.mxu0 %v7920_v5  ;;  %v7954_v27 = vld [vmem:[%s9951_s7 + $0x718] sm:$0xff]   ;;  %v7956_v5 = vld [vmem:[%s9951_s7 + $0x760] sm:$0xff]   ;;  %v7961_v32 = vld [vmem:[%s9951_s7 + $0x7e8] sm:$0xff]  }
0x13f4   : > { %7432 = vmatprep.subr.bf16.mxu1 %v7921_v48  ;;  %v4754_v7 = vmax.f32 %v4696_v38, 0.0  ;;  %v4756_v8 = vmax.f32 %v4737_v41, 0.0  ;;  %v7955_v28 = vld [vmem:[%s9951_s7 + $0x798] sm:$0xff]   ;;  %v7959_v48 = vld [vmem:[%s9951_s7 + $0x7a0] sm:$0xff]   ;;  %v7962_v33 = vld [vmem:[%s9951_s7 + $0x728] sm:$0xff]  }
0x13f5   : > { %v7963_v36 = vld [vmem:[%s9951_s7 + $0x7a8] sm:$0xff]   ;;  %v7965_v39 = vld [vmem:[%s9951_s7 + $0x7f0] sm:$0xff]  }
0x13f6   : > { %7411 = vmatpush3.bf16.msra.mxu0 %v7922_v37  ;;  %v4770_v16 = vpack.c.bf16 %v4754_v7, %v4754_v7  ;;  %v4772_v18 = vpack.c.bf16 %v4756_v8, %v4756_v8  ;;  %v7964_v37 = vld [vmem:[%s9951_s7 + $0x770] sm:$0xff]  }
0x13f7   : > { %7433 = vmatpush3.bf16.msra.mxu1 %v7923_v45  ;;  %7412 = vmatprep.subr.bf16.mxu0 %v7924_v49  ;;  %v7966_v44 = vld [vmem:[%s9951_s7 + $0x730] sm:$0xff]   ;;  %v7968_v49 = vld [vmem:[%s9951_s7 + $0x778] sm:$0xff]  }
0x13f8   : > { %7434 = vmatprep.subr.bf16.mxu1 %v7925_v47  ;;  %v7967_v45 = vld [vmem:[%s9951_s7 + $0x7b0] sm:$0xff]   ;;  %v7969_v47 = vld [vmem:[%s9951_s7 + $0x7f8] sm:$0xff]  }
0x13fa   : > { %7413 = vmatpush3.bf16.msra.mxu0 %v7926_v50  ;;  %v7970_v50 = vld [vmem:[%s9951_s7 + $0x738] sm:$0xff]  }
0x13fb   : > { %7435 = vmatpush3.bf16.msra.mxu1 %v7927_v34  ;;  %7414 = vmatprep.subr.bf16.mxu0 %v7928_v13  ;;  %v4753_v34 = vmax.f32 %v9696_v30, 0.0  ;;  %v7971_v13 = vld [vmem:[%s9951_s7 + $0x7b8] sm:$0xff]  }
0x13fc   : > { %7436 = vmatprep.subr.bf16.mxu1 %v7929_v51  ;;  %v4755_v51 = vmax.f32 %v9698_v6, 0.0 }
0x13fe   : > { %7415 = vmatpush3.bf16.msra.mxu0 %v7930_v52  ;;  %v4769_v52 = vpack.c.bf16 %v4753_v34, %v4753_v34  ;;  %v4771_v24 = vpack.c.bf16 %v4755_v51, %v4755_v51  ;;  %v7973_v34 = vld [vmem:[%s9952_s8 + $0x8] sm:$0xff]  }
0x13ff   : > { %7437 = vmatpush3.bf16.msra.mxu1 %v7931_v42  ;;  %7416 = vmatprep.subr.bf16.mxu0 %v7932_v57  ;;  %v5030_v57 = vld [vmem:[%s9946_s2 + $0x87] ss:$0 sm:$0xff] }
0x1400   : > { %7438 = vmatprep.subr.bf16.mxu1 %v7933_v59 }
0x1402   : > { %7417 = vmatpush3.bf16.msra.mxu0 %v7934_v60 }
0x1403   : > { %7439 = vmatpush3.bf16.msra.mxu1 %v7935_v20  ;;  %7418 = vmatprep.subr.bf16.mxu0 %v7936_v10 }
0x1404   : > { %7440 = vmatprep.subr.bf16.mxu1 %v7937_v11 }
0x1406   : > { %7419 = vmatpush3.bf16.msra.mxu0 %v7938_v43 }
0x1407   : > { %7441 = vmatpush3.bf16.msra.mxu1 %v7939_v0  ;;  %7448 = vmatprep.subr.bf16.mxu0 %v7940_v53 }
0x1408   : > { %7470 = vmatprep.subr.bf16.mxu1 %v7941_v3 }
0x1409   : > { %5992 = vmatmul.mubr.bf16.vlgmr.msra.gmra.mrb[100].mxu0 %v4765_v9 }
0x140a   : > { %6032 = vmatmul.mubr.bf16.vlgmr.msra.gmra.mrb[96].mxu1 %v4767_v40  ;;  %7449 = vmatpush3.bf16.msra.mxu0 %v7942_v35 }
0x140b   : > { %6071 = vmatprep.mubr.bf16.mxu0 %v4770_v16  ;;  %7471 = vmatpush3.bf16.msra.mxu1 %v7943_v15 }
0x140c   : > { %6111 = vmatprep.mubr.bf16.mxu1 %v4772_v18  ;;  %7450 = vmatprep.subr.bf16.mxu0 %v7944_v4 }
0x140d   : > { %7472 = vmatprep.subr.bf16.mxu1 %v7945_v17 }
0x140e   : > { %7451 = vmatpush3.bf16.msra.mxu0 %v7946_v19 }
0x140f   : > { %7473 = vmatpush3.bf16.msra.mxu1 %v7947_v21  ;;  %7452 = vmatprep.subr.bf16.mxu0 %v7948_v22 }
0x1410   : > { %7474 = vmatprep.subr.bf16.mxu1 %v7949_v54 }
0x1412   : > { %7453 = vmatpush3.bf16.msra.mxu0 %v7950_v23 }
0x1413   : > { %7475 = vmatpush3.bf16.msra.mxu1 %v7951_v55  ;;  %7454 = vmatprep.subr.bf16.mxu0 %v7952_v26 }
0x1414   : > { %7476 = vmatprep.subr.bf16.mxu1 %v7953_v56 }
0x1416   : > { %7455 = vmatpush3.bf16.msra.mxu0 %v7954_v27 }
0x1417   : > { %7477 = vmatpush3.bf16.msra.mxu1 %v7955_v28  ;;  %7456 = vmatprep.subr.bf16.mxu0 %v7956_v5 }
0x1418   : > { %7478 = vmatprep.subr.bf16.mxu1 %v7957_v29 }
0x141a   : > { %7457 = vmatpush3.bf16.msra.mxu0 %v7958_v46 }
0x141b   : > { %7479 = vmatpush3.bf16.msra.mxu1 %v7959_v48  ;;  %7458 = vmatprep.subr.bf16.mxu0 %v7960_v31 }
0x141c   : > { %7480 = vmatprep.subr.bf16.mxu1 %v7961_v32 }
0x141e   : > { %7459 = vmatpush3.bf16.msra.mxu0 %v7962_v33 }
0x141f   : > { %7481 = vmatpush3.bf16.msra.mxu1 %v7963_v36  ;;  %7460 = vmatprep.subr.bf16.mxu0 %v7964_v37 }
0x1420   : > { %7482 = vmatprep.subr.bf16.mxu1 %v7965_v39 }
0x1422   : > { %7461 = vmatpush3.bf16.msra.mxu0 %v7966_v44 }
0x1423   : > { %7483 = vmatpush3.bf16.msra.mxu1 %v7967_v45  ;;  %7462 = vmatprep.subr.bf16.mxu0 %v7968_v49 }
0x1424   : > { %7484 = vmatprep.subr.bf16.mxu1 %v7969_v47 }
0x1426   : > { %7463 = vmatpush3.bf16.msra.mxu0 %v7970_v50  ;;  %v7972_v50 = vld [vmem:[%s9952_s8] sm:$0xff]  }
0x1427   : > { %7485 = vmatpush3.bf16.msra.mxu1 %v7971_v13  ;;  %7623 = vmatprep.subr.bf16.mxu0 %v8080_v1  ;;  %v7975_v13 = vld [vmem:[%s9952_s8 + $0x18] sm:$0xff]  }
0x1429   : > { %6072 = vmatmul.mubr.bf16.vlgmr.msra.gmra.mrb[104].mxu0 %v4769_v52 }
0x142a   : > { %6112 = vmatmul.mubr.bf16.vlgmr.msra.gmra.mrb[100].mxu1 %v4771_v24  ;;  %7631 = vmatprep.mubr.msk.bf16.mxu0 %vm8081_vm1, %v8080_v1 }
0x142b   : > { %7624 = vmatpush3.bf16.msra.mxu0 %v7972_v50 }
0x142c   : > { %7625 = vmatprep.subr.bf16.mxu0 %v8080_v1 }
0x142f   : > { %7626 = vmatpush3.bf16.msra.mxu0 %v7973_v34 }
0x1430   : > { %7627 = vmatprep.subr.bf16.mxu0 %v8080_v1 }
0x149c   : > { %v7332_v30 = vpop.f32.mrb[92].mxu0  ;;  %v7354_v42 = vpop.f32.mrb[88].mxu1 }
0x149d   : > { %v7333_v58 = vpop.f32.mrb[93].mxu0  ;;  %v7355_v6 = vpop.f32.mrb[89].mxu1 }
0x149e   : > { %v7334_v59 = vadd.f32 %v7333_v58, %v7332_v30  ;;  %v7356_v25 = vadd.f32 %v7355_v6, %v7354_v42  ;;  %v7335_v14 = vpop.f32.mrb[94].mxu0  ;;  %v7357_v60 = vpop.f32.mrb[90].mxu1  ;;  %v6120_v42 = vld [vmem:[%s9946_s2 + $0x100] ss:$0 sm:$0xff]  ;;  %v6121_v58 = vld [vmem:[%s9946_s2 + $0x101] ss:$0 sm:$0xff] }
0x149f   : > { %v7336_v61 = vpop.f32.mrb[95].mxu0  ;;  %v7358_v20 = vpop.f32.mrb[91].mxu1 }
0x14a0   : > { %v5834_v10 = vadd.f32 %v7334_v59, %v5030_v57 }
0x14a2   : > { %v5874_v62 = vadd.f32 %v7356_v25, %v5834_v10 }
0x14bc   : > { %v7376_v11 = vpop.f32.mrb[96].mxu0  ;;  %v7398_v38 = vpop.f32.mrb[92].mxu1 }
0x14bd   : > { %v7377_v41 = vpop.f32.mrb[97].mxu0  ;;  %v7399_v43 = vpop.f32.mrb[93].mxu1 }
0x14be   : > { %v7378_v63 = vadd.f32 %v7377_v41, %v7376_v11  ;;  %v7400_v0 = vadd.f32 %v7399_v43, %v7398_v38  ;;  %v7379_v53 = vpop.f32.mrb[98].mxu0  ;;  %v7401_v2 = vpop.f32.mrb[94].mxu1  ;;  %v6155_v38 = vld [vmem:[%s9946_s2 + $0x1] ss:$0 sm:$0xff] }
0x14bf   : > { %v7380_v3 = vpop.f32.mrb[99].mxu0  ;;  %v7402_v7 = vpop.f32.mrb[95].mxu1 }
0x14c0   : > { %v5914_v8 = vadd.f32 %v7378_v63, %v5874_v62 }
0x14c2   : > { %v5954_v35 = vadd.f32 %v7400_v0, %v5914_v8 }
0x14dc   : > { %v7420_v9 = vpop.f32.mrb[100].mxu0 }
0x14dd   : > { %v7442_v15 = vpop.f32.mrb[96].mxu1  ;;  %v7421_v40 = vpop.f32.mrb[101].mxu0 }
0x14de   : > { %v7422_v4 = vadd.f32 %v7421_v40, %v7420_v9  ;;  %v7443_v16 = vpop.f32.mrb[97].mxu1  ;;  %v7423_v17 = vpop.f32.mrb[102].mxu0 }
0x14df   : > { %v7444_v18 = vadd.f32 %v7443_v16, %v7442_v15  ;;  %v7445_v19 = vpop.f32.mrb[98].mxu1  ;;  %v7424_v21 = vpop.f32.mrb[103].mxu0 }
0x14e0   : > { %v5994_v22 = vadd.f32 %v7422_v4, %v5954_v35  ;;  %v7446_v54 = vpop.f32.mrb[99].mxu1 }
0x14e2   : > { %v6034_v23 = vadd.f32 %v7444_v18, %v5994_v22 }
0x14fc   : > { %v7464_v55 = vpop.f32.mrb[104].mxu0 }
0x14fd   : > { %v7486_v26 = vpop.f32.mrb[100].mxu1  ;;  %v7465_v56 = vpop.f32.mrb[105].mxu0 }
0x14fe   : > { %v7466_v27 = vadd.f32 %v7465_v56, %v7464_v55  ;;  %v7487_v28 = vpop.f32.mrb[101].mxu1  ;;  %v7467_v5 = vpop.f32.mrb[106].mxu0 }
0x14ff   : > { %v7488_v29 = vadd.f32 %v7487_v28, %v7486_v26  ;;  %v7489_v46 = vpop.f32.mrb[102].mxu1  ;;  %v7468_v48 = vpop.f32.mrb[107].mxu0 }
0x1500   : > { %v6074_v31 = vadd.f32 %v7466_v27, %v6034_v23  ;;  %v7490_v32 = vpop.f32.mrb[103].mxu1 }
0x1502   : > { %v6114_v33 = vadd.f32 %v7488_v29, %v6074_v31 }
0x1504   : > { %v6119_v36 = vadd.f32 %v6114_v33, %v9270_v12  ;;  %v7974_v12 = vld [vmem:[%s9952_s8 + $0x10] sm:$0xff]  }
0x1505   : > { %7628 = vmatpush3.bf16.msra.mxu0 %v7974_v12 }
0x1506   : > { %v6122_v37 = vsel %vm444_vm3, %v6119_v36, 0.0  ;;  %7629 = vmatprep.subr.bf16.mxu0 %v8080_v1 }
0x1507   : > { %6123 = vadd.xlane.f32.xlu0 %v6122_v37 }
0x1509   : > { %7630 = vmatpush3.bf16.msra.mxu0 %v7975_v13 }
0x1594   : > { %v6124_v39 = vpop.xlane.xlu0 %6123 }
0x1595   : > { %v6125_v44 = vmul.f32 0.015625, %v6124_v39 }
0x1597   : > { %v6126_v45 = vsub.f32 %v6119_v36, %v6125_v44 }
0x1599   : > { %v6127_v49 = vmul.f32 %v6126_v45, %v6126_v45 }
0x159b   : > { %v6128_v47 = vsel %vm444_vm3, %v6127_v49, 0.0 }
0x159c   : > { %6129 = vadd.xlane.f32.xlu0 %v6128_v47 }
0x1629   : > { %v6130_v51 = vpop.xlane.xlu0 %6129 }
0x162a   : > { %v6131_v52 = vmul.f32 0.015625, %v6130_v51 }
0x162c   : > { %v6132_v24 = vadd.f32 1e-05, %v6131_v52 }
0x162e   : > { %8014 = vrsqrt.f32 %v6132_v24 }
0x1638   : > { %v8015_v30 = vpop.eup %8014 }
0x1639   : > { %v6134_v57 = vmul.f32 %v8015_v30, %v6126_v45 }
0x163b   : > { %v6135_v6 = vmul.f32 %v6134_v57, %v6120_v42 }
0x163d   : > { %v6136_v59 = vadd.f32 %v6135_v6, %v6121_v58 }
0x163f   : > { %v6137_v1 = vsel %vm444_vm3, %v6136_v59, 0.0 }
0x1640   : > { %v6138_v25 = vrot.slane %v6137_v1, 4 }
0x1642   : > { %v6139_v14 = vadd.f32 %v6138_v25, %v6137_v1 }
0x1644   : > { %v6140_v60 = vrot.slane %v6139_v14, 2 }
0x1646   : > { %v6141_v61 = vadd.f32 %v6140_v60, %v6139_v14 }
0x1648   : > { %v6142_v20 = vrot.slane %v6141_v61, 1 }
0x164a   : > { %v6143_v10 = vadd.f32 %v6142_v20, %v6141_v61 }
0x164c   : > { %v6145_v62 = vmul.f32 0.125, %v6143_v10 }
0x164e   : > { %v6146_v11 = vpack.c.bf16 %v6145_v62, %v6145_v62 }
0x1650   : > { %7632 = vmatmul.mubr.msk.bf16.vlgmr.msra.gmra.mrb[108].mxu0 %vm444_vm3, %v6146_v11 }
0x1723   : > { %v6217_v41 = vpop.f32.mrb[108].mxu0 }
0x1724   : > { %v6218_v43 = vadd.f32 %v6217_v41, %v6155_v38  ;;  %v7633_v63 = vpop.f32.mrb[109].mxu0 }
0x1725   : > { %v6220_v0 = vpop.f32.mrb[110].mxu0 }
0x1726   : > { %6223 = vst [vmem:[%s322_s29] sm:$0x1] %v6218_v43  ;;  %v7634_v53 = vpop.f32.mrb[111].mxu0 }
0x1727   : > { %8029 = shalt.err (!%p8026_p3)
}
0x1728   : > { %s8030_s21 = scalar_lea.hbm %s9902_s14, 16  ;;  %s8034_s29 = scalar_lea.hbm %s9953_s9, 32 }
0x1729   : > { %p8031_p4 = scmp.ne.s32.totalorder %s9902_s14, %s8030_s21  ;;  %p8035_p9 = scmp.lt.u32.totalorder %s9902_s14, %s9953_s9 }
0x172a   : > { %p8036_p10 = scmp.lt.u32.totalorder %s8034_s29, %s8030_s21  ;;  %p8038_p12 = scmp.lt.u32.totalorder %s8030_s21, %s9902_s14 }
0x172b   : > { %p8032_p7 = pnand %p8031_p4, %p8179_p5 }
0x172c   : > { %p8037_p11 = por %p8036_p10, %p8035_p9 }
0x172d   : > { %p8033_p8 = pneg %p8032_p7 }
0x172e   : > { %p8039_p13 = por %p8038_p12, %p8037_p11 }
0x1730   : > { %p8040_p0 = pnand %p8039_p13, %p8033_p8 }
0x1732   : > { %8043 = shalt.err (!%p8040_p0)
}
0x1733   : > { %7635 = dma.vmem_to_hbm [thread:$0]  (%p8179_p5), %s9904_s24, 16, %s9902_s14, %s6225_s27  }
0x1734 PF: > { %p7641_p1 = scmp.ge.s32.totalorder %s8078_s12, 2  ;;  %s6249_s13 = sand.u32 1, %s8066_s30  }
0x1735   : > { %s6250_s28 = scalar_lea.sflag [#allocation3], %s6249_s13 }
0x1736   : > { %p7638_p2 = pnand %p7641_p1, %p8183_p6 }
0x1738   : > { %8061 = dma.done.wait (!%p7638_p2), %s6250_s28, 16  }
0x1739   : > { %8063 = vsyncadd (!%p7638_p2), %s6250_s28, 4294967280  ;;  %p19_p3 = scmp.ge.s32.totalorder %s8166_s15, 4   ;;  %s9968_s30 = smov %s8070_s10 }
0x173a   : > { %s9969_s10 = smov %s8074_s11  ;;  %s9970_s11 = smov %s8177_s18 }
0x173b   : > { %s9971_s12 = smov %s8166_s15  ;;  %21 = sbr.rel (!%p19_p3) target bundleno = 3 (0x3), region = 101 }
0x1742   :  { %6254 = vsyncpa [#allocation3], 1 }
0x1743   :  { %6256 = vsyncpa [#allocation3 + $0x1], 1 }

</bundles_post_ra>
